<compile_context>
chip_gen: v5e
topology: v5e:2x2
jax: 0.10.0
libtpu: 0.0.40
codegen_flags: <defaults>
</compile_context>

<pallas_src>
import functools
import math

import jax
import jax.numpy as jnp
from jax import lax
from jax.experimental import pallas as pl
from jax.experimental.pallas import tpu as pltpu


# ----------------------------------------------------------------------------
# Pallas kernel: runs all `num_steps` liquid-ODE steps for one tile of points.
# Transposed layout: points on lanes, channels on sublanes.
# ----------------------------------------------------------------------------
def liquid_ode_kernel(coords_ref,   # (3, TM)    coordinates, points in lanes
                      w_h_ref,      # (Hd, Hd)
                      w_tau_ref,    # (Hd, Hd)
                      u_h_ref,      # (Hd, 3)
                      u_tau_ref,    # (Hd, 3)
                      b_h_ref,      # (Hd, 1)
                      b_tau_ref,    # (Hd, 1)
                      w_out_ref,    # (3, Hd)
                      b_out_ref,    # (3, 1)
                      v_ref,        # (3, TM)    velocity output
                      *, hidden_dim, num_steps, dt, min_tau, max_tau,
                      velocity_scale, mxu_bf16):
    u = coords_ref[...].astype(jnp.float32)                           # (3, TM)

    # Input projections depend only on coords -> hoist out of the step loop.
    u_proj_h = (jnp.dot(u_h_ref[...], u, preferred_element_type=jnp.float32)
                + b_h_ref[...])                                        # (Hd, TM)
    u_proj_tau = (jnp.dot(u_tau_ref[...], u, preferred_element_type=jnp.float32)
                  + b_tau_ref[...])                                    # (Hd, TM)

    w_h = w_h_ref[...]
    w_tau = w_tau_ref[...]
    if mxu_bf16:
        # Opt-in for large hidden_dim on v6e/v7x (must be re-validated vs 1e-4).
        w_h = w_h.astype(jnp.bfloat16)
        w_tau = w_tau.astype(jnp.bfloat16)

    tau_scale = max_tau - min_tau
    tm = u.shape[-1]

    def ode_step(h):
        """One Euler step.  Returns the UNCLAMPED h_new."""
        hm = h.astype(jnp.bfloat16) if mxu_bf16 else h
        # Two small MXU pushes per step (MXU has large slack at K = Hd).
        pre_h = (jnp.dot(w_h, hm, preferred_element_type=jnp.float32)
                 + u_proj_h)                                           # (Hd, TM)
        tau_raw = (jnp.dot(w_tau, hm, preferred_element_type=jnp.float32)
                   + u_proj_tau)
        tau_raw = jnp.clip(tau_raw, -50.0, 50.0)
        # tau = min_tau + softplus(tau_raw) * (max_tau - min_tau)
        # tau >= min_tau = 0.1 >> 1e-6, so the reference clamp(min=1e-6) is a no-op.
        tau = min_tau + jax.nn.softplus(tau_raw) * tau_scale
        # Approx reciprocal on the EUP + one Newton refinement on the VPU
        # (free slot); keeps the 1e-4 check against the exact-divide reference.
        inv_tau = pl.reciprocal(tau, approx=True)
        inv_tau = inv_tau * (2.0 - tau * inv_tau)
        # sigmoid(x) = 0.5*(tanh(0.5*x)+1): one EUP push instead of exp+recip.
        f_h = 0.5 * (jnp.tanh(0.5 * pre_h) + 1.0)
        # Euler step of  h_dot = -h / tau + f_h
        return h + dt * f_h - (dt * inv_tau) * h

    h0 = jnp.zeros((hidden_dim, tm), jnp.float32)

    def body(_, h):
        # Clamp applied to the state fed forward (matches the reference).
        return jnp.clip(ode_step(h), -100.0, 100.0)

    # Peel the final step: the loop carries only the clamped state; the readout
    # uses the UNCLAMPED h_new of the last step, exactly as the reference does.
    # Full unroll only for small hidden_dim (steps are serially dependent).
    h = lax.fori_loop(0, num_steps - 1, body, h0,
                      unroll=bool(hidden_dim <= 128))
    h_last = ode_step(h)

    # TODO(synk): torch.nan_to_num is omitted — with finite inputs and the
    # clamps above no NaNs can arise in this computation.
    # Velocity readout of the LAST step only (the reference discards earlier v).
    v = jnp.tanh(jnp.dot(w_out_ref[...], h_last,
                         preferred_element_type=jnp.float32) + b_out_ref[...])
    # tanh is already in [-1, 1] so the reference clamp(-100, 100) is a no-op.
    v_ref[...] = (v * velocity_scale).astype(v_ref.dtype)


# ----------------------------------------------------------------------------
# Tile selection helpers
# ----------------------------------------------------------------------------
def _num_tensorcores():
    """Best-effort TensorCore-per-device count (perf-only; default 1)."""
    try:
        dev = jax.devices()[0]
        nc = getattr(dev, "num_cores", None)
        if isinstance(nc, int) and nc > 0:
            return nc
        kind = str(getattr(dev, "device_kind", "")).lower()
        if ("lite" in kind) or ("v5e" in kind) or ("v6" in kind):
            return 1
        if ("v4" in kind) or ("v5p" in kind) or ("v7" in kind):
            return 2
        return 1
    except Exception:
        return 1


def _choose_tile_m(M, hidden_dim, tile_m_max=2048):
    """Pick the lane-tile size.

    * as large as possible (amortizes ~0.35 us per grid step and the per-tile
      input-projection matmul),
    * capped so the per-tile working set (~8 live (Hd, tile_m) f32 arrays plus
      double-buffered (3, tile_m) coords/output) stays under ~24 MiB — safe for
      v7x's 64 MiB physical / 32 MiB default scoped VMEM,
    * on multi-TensorCore chips the tile COUNT is rounded to a multiple of the
      TC count so the "parallel" grid splits evenly; single-TC chips (v5e/v6e)
      do not pay any >=2-tile cap.
    """
    num_tc = _num_tensorcores()
    bytes_per_col = 4 * (8 * hidden_dim + 4 * 3)
    vmem_budget = 24 * 1024 * 1024
    cap = max(128, (vmem_budget // bytes_per_col) // 128 * 128)
    tile_m = max(128, min(tile_m_max, cap))

    m128 = pl.cdiv(M, 128) * 128
    if m128 <= tile_m:
        return m128                      # one tile covers everything
    n_tiles = pl.cdiv(m128, tile_m)
    if num_tc > 1:
        n_tiles = pl.cdiv(n_tiles, num_tc) * num_tc
    return pl.cdiv(pl.cdiv(m128, n_tiles), 128) * 128


# ----------------------------------------------------------------------------
# Wrapper
# ----------------------------------------------------------------------------
def liquid_ode_core(spatial_coords, params, *, hidden_dim, num_steps=8,
                    dt=0.125, min_tau=0.1, max_tau=10.0, velocity_scale=10.0,
                    tile_m_max=2048, mxu_bf16=False):
    """spatial_coords: (B, D, H, W, 3) float32 -> velocity field (B, 3, D, H, W).

    Set mxu_bf16=True only for large hidden_dim (>=256) on v6e/v7x, after
    re-validating the tolerance (bf16 MXU feed, f32 accumulation).
    """
    assert min_tau >= 1e-6, "kernel drops clamp(tau, min=1e-6); needs min_tau >= 1e-6"
    B, D, H, W, C = spatial_coords.shape
    assert C == 3
    M = B * D * H * W

    # Points-in-lanes layout: (3, M).
    coords_t = spatial_coords.reshape(M, 3).astype(jnp.float32).T

    tile_m = _choose_tile_m(M, hidden_dim, tile_m_max)
    n_tiles = pl.cdiv(M, tile_m)
    M_pad = n_tiles * tile_m
    if M_pad != M:
        coords_t = jnp.pad(coords_t, ((0, 0), (0, M_pad - M)))

    W_h, U_h, b_h, W_tau, U_tau, b_tau, W_out, b_out = params
    Hd = hidden_dim
    f32 = lambda x: jnp.asarray(x, jnp.float32)
    w_h = f32(W_h)                                  # (Hd, Hd)
    w_tau = f32(W_tau)                              # (Hd, Hd)
    u_h = f32(U_h)                                  # (Hd, 3)
    u_tau = f32(U_tau)                              # (Hd, 3)
    b_h_c = f32(b_h).reshape(Hd, 1)                 # (Hd, 1)
    b_tau_c = f32(b_tau).reshape(Hd, 1)             # (Hd, 1)
    w_out = f32(W_out)                              # (3, Hd)
    b_out_c = f32(b_out).reshape(3, 1)              # (3, 1)
    # TODO(synk): for very large Hd on v7x, single-buffer the replicated weight
    # BlockSpecs (their block index never changes) to save VMEM headroom.

    kernel = functools.partial(
        liquid_ode_kernel,
        hidden_dim=Hd, num_steps=num_steps, dt=dt,
        min_tau=min_tau, max_tau=max_tau, velocity_scale=velocity_scale,
        mxu_bf16=mxu_bf16)

    def replicated(shape):
        return pl.BlockSpec(shape, lambda i: (0, 0))

    # Advisory cost hint: the kernel is strongly compute-bound.
    flops = int(M_pad * (num_steps * 2 * 2 * Hd * Hd      # two recurrent matmuls
                         + 2 * 2 * 3 * Hd                  # input projections
                         + 2 * 3 * Hd))                    # readout
    transcendentals = int(M_pad * (num_steps * 4 * Hd + 3))
    bytes_accessed = int(4 * (2 * 3 * M_pad
                              + w_h.size + w_tau.size + u_h.size + u_tau.size
                              + b_h_c.size + b_tau_c.size
                              + w_out.size + b_out_c.size))

    v_t = pl.pallas_call(
        kernel,
        out_shape=jax.ShapeDtypeStruct((3, M_pad), jnp.float32),
        grid_spec=pltpu.PrefetchScalarGridSpec(
            num_scalar_prefetch=0,
            grid=(n_tiles,),
            in_specs=[
                pl.BlockSpec((3, tile_m), lambda i: (0, i)),   # coords tile
                replicated((Hd, Hd)),                          # W_h
                replicated((Hd, Hd)),                          # W_tau
                replicated((Hd, 3)),                           # U_h
                replicated((Hd, 3)),                           # U_tau
                replicated((Hd, 1)),                           # b_h
                replicated((Hd, 1)),                           # b_tau
                replicated((3, Hd)),                           # W_out
                replicated((3, 1)),                            # b_out
            ],
            out_specs=pl.BlockSpec((3, tile_m), lambda i: (0, i)),
        ),
        compiler_params=pltpu.CompilerParams(
            dimension_semantics=("parallel",)),
        cost_estimate=pl.CostEstimate(flops=flops,
                                      transcendentals=transcendentals,
                                      bytes_accessed=bytes_accessed),
    )(coords_t, w_h, w_tau, u_h, u_tau, b_h_c, b_tau_c, w_out, b_out_c)

    # (3, M) -> (B, 3, D, H, W): only the two leading (small) axes swap; the
    # large minor axis stays contiguous.
    v = v_t[:, :M].reshape(3, B, D, H, W)
    return jnp.transpose(v, (1, 0, 2, 3, 4))


# ----------------------------------------------------------------------------
# Deterministic parameter init (mimics xavier_uniform_ + zero biases)
# ----------------------------------------------------------------------------
def init_params(key, hidden_dim, input_dim=3, out_dim=3):
    def xavier(key, shape):
        fan_out, fan_in = shape
        bound = math.sqrt(6.0 / (fan_in + fan_out))
        return jax.random.uniform(key, shape, jnp.float32, -bound, bound)

    ks = jax.random.split(key, 5)
    W_h = xavier(ks[0], (hidden_dim, hidden_dim))
    U_h = xavier(ks[1], (hidden_dim, input_dim))
    b_h = jnp.zeros((hidden_dim,), jnp.float32)
    W_tau = xavier(ks[2], (hidden_dim, hidden_dim))
    U_tau = xavier(ks[3], (hidden_dim, input_dim))
    b_tau = jnp.zeros((hidden_dim,), jnp.float32)
    W_out = xavier(ks[4], (out_dim, hidden_dim))
    b_out = jnp.zeros((out_dim,), jnp.float32)
    return (W_h, U_h, b_h, W_tau, U_tau, b_tau, W_out, b_out)


# ----------------------------------------------------------------------------
# Pure-JAX reference (mirrors the PyTorch forward) for a correctness check
# ----------------------------------------------------------------------------
def reference(spatial_coords, params, *, hidden_dim, num_steps, dt,
              min_tau, max_tau, velocity_scale):
    B, D, H, W, _ = spatial_coords.shape
    N = D * H * W
    coords = spatial_coords.reshape(B, N, 3).astype(jnp.float32)
    W_h, U_h, b_h, W_tau, U_tau, b_tau, W_out, b_out = params
    h = jnp.zeros((B, N, hidden_dim), jnp.float32)
    v = jnp.zeros((B, N, 3), jnp.float32)
    for _ in range(num_steps):
        tau_raw = coords @ U_tau.T + h @ W_tau.T + b_tau
        tau_raw = jnp.clip(tau_raw, -50.0, 50.0)
        tau = min_tau + jax.nn.softplus(tau_raw) * (max_tau - min_tau)
        tau = jnp.maximum(tau, 1e-6)
        pre = h @ W_h.T + coords @ U_h.T + b_h
        f_h = jax.nn.sigmoid(pre)
        h_new = h + dt * (-h / tau + f_h)
        v = jnp.tanh(h_new @ W_out.T + b_out)
        h = jnp.clip(h_new, -100.0, 100.0)
        v = jnp.clip(v, -100.0, 100.0)
    v = v * velocity_scale
    return jnp.transpose(v.reshape(B, D, H, W, 3), (0, 4, 1, 2, 3))


if __name__ == "__main__":
    B, D, H, W = 2, 4, 8, 8
    hidden_dim = 32
    num_steps = 8
    dt = 0.125
    velocity_scale = 10.0

    key = jax.random.PRNGKey(0)
    k_coords, k_params = jax.random.split(key)
    spatial_coords = jax.random.uniform(
        k_coords, (B, D, H, W, 3), jnp.float32, -1.0, 1.0)
    params = init_params(k_params, hidden_dim)

    out = liquid_ode_core(
        spatial_coords, params, hidden_dim=hidden_dim, num_steps=num_steps,
        dt=dt, velocity_scale=velocity_scale)
    out = jax.block_until_ready(out)

    ref = reference(
        spatial_coords, params, hidden_dim=hidden_dim, num_steps=num_steps,
        dt=dt, min_tau=0.1, max_tau=10.0, velocity_scale=velocity_scale)

    assert out.shape == (B, 3, D, H, W), out.shape
    assert jnp.allclose(out, ref, atol=1e-4, rtol=1e-4), float(
        jnp.max(jnp.abs(out - ref)))
    print("KERNEL_OK")
</pallas_src>

<mosaic_0001>
module attributes {stable_mosaic.version = 11 : i64} {
  func.func @liquid_ode_kernel(%arg0: i32, %arg1: memref<3x512xf32, #tpu.memory_space<vmem>>, %arg2: memref<32x32xf32, #tpu.memory_space<vmem>>, %arg3: memref<32x32xf32, #tpu.memory_space<vmem>>, %arg4: memref<32x3xf32, #tpu.memory_space<vmem>>, %arg5: memref<32x3xf32, #tpu.memory_space<vmem>>, %arg6: memref<32x1xf32, #tpu.memory_space<vmem>>, %arg7: memref<32x1xf32, #tpu.memory_space<vmem>>, %arg8: memref<3x32xf32, #tpu.memory_space<vmem>>, %arg9: memref<3x1xf32, #tpu.memory_space<vmem>>, %arg10: memref<3x512xf32, #tpu.memory_space<vmem>>) attributes {dimension_semantics = [#tpu.dimension_semantics<parallel>], iteration_bounds = array<i64: 1>, scalar_prefetch = 0 : i64, scratch_operands = 0 : i64, tpu.core_type = #tpu.core_type<tc>, window_params = [{transform_indices = @transform_0, window_bounds = array<i64: 3, 512>}, {pipeline_mode = #tpu.pipeline_mode<synchronous>, transform_indices = @transform_1, window_bounds = array<i64: 32, 32>}, {pipeline_mode = #tpu.pipeline_mode<synchronous>, transform_indices = @transform_2, window_bounds = array<i64: 32, 32>}, {pipeline_mode = #tpu.pipeline_mode<synchronous>, transform_indices = @transform_3, window_bounds = array<i64: 32, 3>}, {pipeline_mode = #tpu.pipeline_mode<synchronous>, transform_indices = @transform_4, window_bounds = array<i64: 32, 3>}, {pipeline_mode = #tpu.pipeline_mode<synchronous>, transform_indices = @transform_5, window_bounds = array<i64: 32, 1>}, {pipeline_mode = #tpu.pipeline_mode<synchronous>, transform_indices = @transform_6, window_bounds = array<i64: 32, 1>}, {pipeline_mode = #tpu.pipeline_mode<synchronous>, transform_indices = @transform_7, window_bounds = array<i64: 3, 32>}, {pipeline_mode = #tpu.pipeline_mode<synchronous>, transform_indices = @transform_8, window_bounds = array<i64: 3, 1>}, {transform_indices = @transform_9, window_bounds = array<i64: 3, 512>}]} {
    %c0 = arith.constant 0 : index
    %c0_0 = arith.constant 0 : index
    %0 = vector.load %arg1[%c0, %c0_0] : memref<3x512xf32, #tpu.memory_space<vmem>>, vector<3x512xf32>
    %c0_1 = arith.constant 0 : index
    %c0_2 = arith.constant 0 : index
    %1 = vector.load %arg4[%c0_1, %c0_2] : memref<32x3xf32, #tpu.memory_space<vmem>>, vector<32x3xf32>
    %cst = arith.constant dense<0.000000e+00> : vector<32x512xf32>
    %2 = tpu.matmul %1, %0, %cst {dimension_numbers = #tpu.dot_dimension_numbers<[1], [0], [0], [1], [0, 0, 1, 1], [], []>} : vector<32x3xf32>, vector<3x512xf32>, vector<32x512xf32> -> vector<32x512xf32>
    %c0_3 = arith.constant 0 : index
    %c0_4 = arith.constant 0 : index
    %3 = vector.load %arg6[%c0_3, %c0_4] : memref<32x1xf32, #tpu.memory_space<vmem>>, vector<32x1xf32>
    %4 = vector.broadcast %3 : vector<32x1xf32> to vector<32x512xf32>
    %5 = arith.addf %2, %4 : vector<32x512xf32>
    %c0_5 = arith.constant 0 : index
    %c0_6 = arith.constant 0 : index
    %6 = vector.load %arg5[%c0_5, %c0_6] : memref<32x3xf32, #tpu.memory_space<vmem>>, vector<32x3xf32>
    %cst_7 = arith.constant dense<0.000000e+00> : vector<32x512xf32>
    %7 = tpu.matmul %6, %0, %cst_7 {dimension_numbers = #tpu.dot_dimension_numbers<[1], [0], [0], [1], [0, 0, 1, 1], [], []>} : vector<32x3xf32>, vector<3x512xf32>, vector<32x512xf32> -> vector<32x512xf32>
    %c0_8 = arith.constant 0 : index
    %c0_9 = arith.constant 0 : index
    %8 = vector.load %arg7[%c0_8, %c0_9] : memref<32x1xf32, #tpu.memory_space<vmem>>, vector<32x1xf32>
    %9 = vector.broadcast %8 : vector<32x1xf32> to vector<32x512xf32>
    %10 = arith.addf %7, %9 : vector<32x512xf32>
    %c0_10 = arith.constant 0 : index
    %c0_11 = arith.constant 0 : index
    %11 = vector.load %arg2[%c0_10, %c0_11] : memref<32x32xf32, #tpu.memory_space<vmem>>, vector<32x32xf32>
    %c0_12 = arith.constant 0 : index
    %c0_13 = arith.constant 0 : index
    %12 = vector.load %arg3[%c0_12, %c0_13] : memref<32x32xf32, #tpu.memory_space<vmem>>, vector<32x32xf32>
    %cst_14 = arith.constant 0.000000e+00 : f32
    %13 = vector.broadcast %cst_14 : f32 to vector<32x512xf32>
    %c0_i32 = arith.constant 0 : i32
    %cst_15 = arith.constant dense<0.000000e+00> : vector<32x512xf32>
    %14 = tpu.matmul %11, %13, %cst_15 {dimension_numbers = #tpu.dot_dimension_numbers<[1], [0], [0], [1], [0, 0, 1, 1], [], []>} : vector<32x32xf32>, vector<32x512xf32>, vector<32x512xf32> -> vector<32x512xf32>
    %15 = arith.addf %14, %5 : vector<32x512xf32>
    %cst_16 = arith.constant dense<0.000000e+00> : vector<32x512xf32>
    %16 = tpu.matmul %12, %13, %cst_16 {dimension_numbers = #tpu.dot_dimension_numbers<[1], [0], [0], [1], [0, 0, 1, 1], [], []>} : vector<32x32xf32>, vector<32x512xf32>, vector<32x512xf32> -> vector<32x512xf32>
    %17 = arith.addf %16, %10 : vector<32x512xf32>
    %cst_17 = arith.constant -5.000000e+01 : f32
    %cst_18 = arith.constant 5.000000e+01 : f32
    %18 = vector.broadcast %cst_17 : f32 to vector<32x512xf32>
    %19 = arith.maximumf %18, %17 : vector<32x512xf32>
    %20 = vector.broadcast %cst_18 : f32 to vector<32x512xf32>
    %21 = arith.minimumf %20, %19 : vector<32x512xf32>
    %cst_19 = arith.constant 0.000000e+00 : f32
    %22 = vector.broadcast %cst_19 : f32 to vector<32x512xf32>
    %23 = arith.maximumf %21, %22 : vector<32x512xf32>
    %24 = vector.broadcast %cst_19 : f32 to vector<32x512xf32>
    %25 = arith.subf %21, %24 : vector<32x512xf32>
    %26 = arith.cmpf one, %25, %25 : vector<32x512xf32>
    %27 = vector.broadcast %cst_19 : f32 to vector<32x512xf32>
    %28 = arith.addf %21, %27 : vector<32x512xf32>
    %29 = math.absf %25 : vector<32x512xf32>
    %cst_20 = arith.constant 0.000000e+00 : f32
    %30 = vector.broadcast %cst_20 : f32 to vector<32x512xf32>
    %31 = arith.subf %30, %29 : vector<32x512xf32>
    %32 = math.exp %31 : vector<32x512xf32>
    %33 = math.log1p %32 : vector<32x512xf32>
    %34 = arith.addf %23, %33 : vector<32x512xf32>
    %35 = arith.select %26, %28, %34 : vector<32x512xi1>, vector<32x512xf32>
    %cst_21 = arith.constant 9.89999961 : f32
    %36 = vector.broadcast %cst_21 : f32 to vector<32x512xf32>
    %37 = arith.mulf %35, %36 : vector<32x512xf32>
    %cst_22 = arith.constant 1.000000e-01 : f32
    %38 = vector.broadcast %cst_22 : f32 to vector<32x512xf32>
    %39 = arith.addf %38, %37 : vector<32x512xf32>
    %40 = tpu.reciprocal %39 {approx = true} : vector<32x512xf32> -> vector<32x512xf32>
    %41 = arith.mulf %39, %40 : vector<32x512xf32>
    %cst_23 = arith.constant 2.000000e+00 : f32
    %42 = vector.broadcast %cst_23 : f32 to vector<32x512xf32>
    %43 = arith.subf %42, %41 : vector<32x512xf32>
    %44 = arith.mulf %40, %43 : vector<32x512xf32>
    %cst_24 = arith.constant 5.000000e-01 : f32
    %45 = vector.broadcast %cst_24 : f32 to vector<32x512xf32>
    %46 = arith.mulf %45, %15 : vector<32x512xf32>
    %47 = math.tanh %46 : vector<32x512xf32>
    %cst_25 = arith.constant 1.000000e+00 : f32
    %48 = vector.broadcast %cst_25 : f32 to vector<32x512xf32>
    %49 = arith.addf %47, %48 : vector<32x512xf32>
    %cst_26 = arith.constant 5.000000e-01 : f32
    %50 = vector.broadcast %cst_26 : f32 to vector<32x512xf32>
    %51 = arith.mulf %50, %49 : vector<32x512xf32>
    %cst_27 = arith.constant 1.250000e-01 : f32
    %52 = vector.broadcast %cst_27 : f32 to vector<32x512xf32>
    %53 = arith.mulf %52, %51 : vector<32x512xf32>
    %54 = arith.addf %13, %53 : vector<32x512xf32>
    %cst_28 = arith.constant 1.250000e-01 : f32
    %55 = vector.broadcast %cst_28 : f32 to vector<32x512xf32>
    %56 = arith.mulf %55, %44 : vector<32x512xf32>
    %57 = arith.mulf %56, %13 : vector<32x512xf32>
    %58 = arith.subf %54, %57 : vector<32x512xf32>
    %cst_29 = arith.constant -1.000000e+02 : f32
    %cst_30 = arith.constant 1.000000e+02 : f32
    %59 = vector.broadcast %cst_29 : f32 to vector<32x512xf32>
    %60 = arith.maximumf %59, %58 : vector<32x512xf32>
    %61 = vector.broadcast %cst_30 : f32 to vector<32x512xf32>
    %62 = arith.minimumf %61, %60 : vector<32x512xf32>
    %c1_i32 = arith.constant 1 : i32
    %cst_31 = arith.constant dense<0.000000e+00> : vector<32x512xf32>
    %63 = tpu.matmul %11, %62, %cst_31 {dimension_numbers = #tpu.dot_dimension_numbers<[1], [0], [0], [1], [0, 0, 1, 1], [], []>} : vector<32x32xf32>, vector<32x512xf32>, vector<32x512xf32> -> vector<32x512xf32>
    %64 = arith.addf %63, %5 : vector<32x512xf32>
    %cst_32 = arith.constant dense<0.000000e+00> : vector<32x512xf32>
    %65 = tpu.matmul %12, %62, %cst_32 {dimension_numbers = #tpu.dot_dimension_numbers<[1], [0], [0], [1], [0, 0, 1, 1], [], []>} : vector<32x32xf32>, vector<32x512xf32>, vector<32x512xf32> -> vector<32x512xf32>
    %66 = arith.addf %65, %10 : vector<32x512xf32>
    %cst_33 = arith.constant -5.000000e+01 : f32
    %cst_34 = arith.constant 5.000000e+01 : f32
    %67 = vector.broadcast %cst_33 : f32 to vector<32x512xf32>
    %68 = arith.maximumf %67, %66 : vector<32x512xf32>
    %69 = vector.broadcast %cst_34 : f32 to vector<32x512xf32>
    %70 = arith.minimumf %69, %68 : vector<32x512xf32>
    %cst_35 = arith.constant 0.000000e+00 : f32
    %71 = vector.broadcast %cst_35 : f32 to vector<32x512xf32>
    %72 = arith.maximumf %70, %71 : vector<32x512xf32>
    %73 = vector.broadcast %cst_35 : f32 to vector<32x512xf32>
    %74 = arith.subf %70, %73 : vector<32x512xf32>
    %75 = arith.cmpf one, %74, %74 : vector<32x512xf32>
    %76 = vector.broadcast %cst_35 : f32 to vector<32x512xf32>
    %77 = arith.addf %70, %76 : vector<32x512xf32>
    %78 = math.absf %74 : vector<32x512xf32>
    %cst_36 = arith.constant 0.000000e+00 : f32
    %79 = vector.broadcast %cst_36 : f32 to vector<32x512xf32>
    %80 = arith.subf %79, %78 : vector<32x512xf32>
    %81 = math.exp %80 : vector<32x512xf32>
    %82 = math.log1p %81 : vector<32x512xf32>
    %83 = arith.addf %72, %82 : vector<32x512xf32>
    %84 = arith.select %75, %77, %83 : vector<32x512xi1>, vector<32x512xf32>
    %cst_37 = arith.constant 9.89999961 : f32
    %85 = vector.broadcast %cst_37 : f32 to vector<32x512xf32>
    %86 = arith.mulf %84, %85 : vector<32x512xf32>
    %cst_38 = arith.constant 1.000000e-01 : f32
    %87 = vector.broadcast %cst_38 : f32 to vector<32x512xf32>
    %88 = arith.addf %87, %86 : vector<32x512xf32>
    %89 = tpu.reciprocal %88 {approx = true} : vector<32x512xf32> -> vector<32x512xf32>
    %90 = arith.mulf %88, %89 : vector<32x512xf32>
    %cst_39 = arith.constant 2.000000e+00 : f32
    %91 = vector.broadcast %cst_39 : f32 to vector<32x512xf32>
    %92 = arith.subf %91, %90 : vector<32x512xf32>
    %93 = arith.mulf %89, %92 : vector<32x512xf32>
    %cst_40 = arith.constant 5.000000e-01 : f32
    %94 = vector.broadcast %cst_40 : f32 to vector<32x512xf32>
    %95 = arith.mulf %94, %64 : vector<32x512xf32>
    %96 = math.tanh %95 : vector<32x512xf32>
    %cst_41 = arith.constant 1.000000e+00 : f32
    %97 = vector.broadcast %cst_41 : f32 to vector<32x512xf32>
    %98 = arith.addf %96, %97 : vector<32x512xf32>
    %cst_42 = arith.constant 5.000000e-01 : f32
    %99 = vector.broadcast %cst_42 : f32 to vector<32x512xf32>
    %100 = arith.mulf %99, %98 : vector<32x512xf32>
    %cst_43 = arith.constant 1.250000e-01 : f32
    %101 = vector.broadcast %cst_43 : f32 to vector<32x512xf32>
    %102 = arith.mulf %101, %100 : vector<32x512xf32>
    %103 = arith.addf %62, %102 : vector<32x512xf32>
    %cst_44 = arith.constant 1.250000e-01 : f32
    %104 = vector.broadcast %cst_44 : f32 to vector<32x512xf32>
    %105 = arith.mulf %104, %93 : vector<32x512xf32>
    %106 = arith.mulf %105, %62 : vector<32x512xf32>
    %107 = arith.subf %103, %106 : vector<32x512xf32>
    %cst_45 = arith.constant -1.000000e+02 : f32
    %cst_46 = arith.constant 1.000000e+02 : f32
    %108 = vector.broadcast %cst_45 : f32 to vector<32x512xf32>
    %109 = arith.maximumf %108, %107 : vector<32x512xf32>
    %110 = vector.broadcast %cst_46 : f32 to vector<32x512xf32>
    %111 = arith.minimumf %110, %109 : vector<32x512xf32>
    %c2_i32 = arith.constant 2 : i32
    %cst_47 = arith.constant dense<0.000000e+00> : vector<32x512xf32>
    %112 = tpu.matmul %11, %111, %cst_47 {dimension_numbers = #tpu.dot_dimension_numbers<[1], [0], [0], [1], [0, 0, 1, 1], [], []>} : vector<32x32xf32>, vector<32x512xf32>, vector<32x512xf32> -> vector<32x512xf32>
    %113 = arith.addf %112, %5 : vector<32x512xf32>
    %cst_48 = arith.constant dense<0.000000e+00> : vector<32x512xf32>
    %114 = tpu.matmul %12, %111, %cst_48 {dimension_numbers = #tpu.dot_dimension_numbers<[1], [0], [0], [1], [0, 0, 1, 1], [], []>} : vector<32x32xf32>, vector<32x512xf32>, vector<32x512xf32> -> vector<32x512xf32>
    %115 = arith.addf %114, %10 : vector<32x512xf32>
    %cst_49 = arith.constant -5.000000e+01 : f32
    %cst_50 = arith.constant 5.000000e+01 : f32
    %116 = vector.broadcast %cst_49 : f32 to vector<32x512xf32>
    %117 = arith.maximumf %116, %115 : vector<32x512xf32>
    %118 = vector.broadcast %cst_50 : f32 to vector<32x512xf32>
    %119 = arith.minimumf %118, %117 : vector<32x512xf32>
    %cst_51 = arith.constant 0.000000e+00 : f32
    %120 = vector.broadcast %cst_51 : f32 to vector<32x512xf32>
    %121 = arith.maximumf %119, %120 : vector<32x512xf32>
    %122 = vector.broadcast %cst_51 : f32 to vector<32x512xf32>
    %123 = arith.subf %119, %122 : vector<32x512xf32>
    %124 = arith.cmpf one, %123, %123 : vector<32x512xf32>
    %125 = vector.broadcast %cst_51 : f32 to vector<32x512xf32>
    %126 = arith.addf %119, %125 : vector<32x512xf32>
    %127 = math.absf %123 : vector<32x512xf32>
    %cst_52 = arith.constant 0.000000e+00 : f32
    %128 = vector.broadcast %cst_52 : f32 to vector<32x512xf32>
    %129 = arith.subf %128, %127 : vector<32x512xf32>
    %130 = math.exp %129 : vector<32x512xf32>
    %131 = math.log1p %130 : vector<32x512xf32>
    %132 = arith.addf %121, %131 : vector<32x512xf32>
    %133 = arith.select %124, %126, %132 : vector<32x512xi1>, vector<32x512xf32>
    %cst_53 = arith.constant 9.89999961 : f32
    %134 = vector.broadcast %cst_53 : f32 to vector<32x512xf32>
    %135 = arith.mulf %133, %134 : vector<32x512xf32>
    %cst_54 = arith.constant 1.000000e-01 : f32
    %136 = vector.broadcast %cst_54 : f32 to vector<32x512xf32>
    %137 = arith.addf %136, %135 : vector<32x512xf32>
    %138 = tpu.reciprocal %137 {approx = true} : vector<32x512xf32> -> vector<32x512xf32>
    %139 = arith.mulf %137, %138 : vector<32x512xf32>
    %cst_55 = arith.constant 2.000000e+00 : f32
    %140 = vector.broadcast %cst_55 : f32 to vector<32x512xf32>
    %141 = arith.subf %140, %139 : vector<32x512xf32>
    %142 = arith.mulf %138, %141 : vector<32x512xf32>
    %cst_56 = arith.constant 5.000000e-01 : f32
    %143 = vector.broadcast %cst_56 : f32 to vector<32x512xf32>
    %144 = arith.mulf %143, %113 : vector<32x512xf32>
    %145 = math.tanh %144 : vector<32x512xf32>
    %cst_57 = arith.constant 1.000000e+00 : f32
    %146 = vector.broadcast %cst_57 : f32 to vector<32x512xf32>
    %147 = arith.addf %145, %146 : vector<32x512xf32>
    %cst_58 = arith.constant 5.000000e-01 : f32
    %148 = vector.broadcast %cst_58 : f32 to vector<32x512xf32>
    %149 = arith.mulf %148, %147 : vector<32x512xf32>
    %cst_59 = arith.constant 1.250000e-01 : f32
    %150 = vector.broadcast %cst_59 : f32 to vector<32x512xf32>
    %151 = arith.mulf %150, %149 : vector<32x512xf32>
    %152 = arith.addf %111, %151 : vector<32x512xf32>
    %cst_60 = arith.constant 1.250000e-01 : f32
    %153 = vector.broadcast %cst_60 : f32 to vector<32x512xf32>
    %154 = arith.mulf %153, %142 : vector<32x512xf32>
    %155 = arith.mulf %154, %111 : vector<32x512xf32>
    %156 = arith.subf %152, %155 : vector<32x512xf32>
    %cst_61 = arith.constant -1.000000e+02 : f32
    %cst_62 = arith.constant 1.000000e+02 : f32
    %157 = vector.broadcast %cst_61 : f32 to vector<32x512xf32>
    %158 = arith.maximumf %157, %156 : vector<32x512xf32>
    %159 = vector.broadcast %cst_62 : f32 to vector<32x512xf32>
    %160 = arith.minimumf %159, %158 : vector<32x512xf32>
    %c3_i32 = arith.constant 3 : i32
    %cst_63 = arith.constant dense<0.000000e+00> : vector<32x512xf32>
    %161 = tpu.matmul %11, %160, %cst_63 {dimension_numbers = #tpu.dot_dimension_numbers<[1], [0], [0], [1], [0, 0, 1, 1], [], []>} : vector<32x32xf32>, vector<32x512xf32>, vector<32x512xf32> -> vector<32x512xf32>
    %162 = arith.addf %161, %5 : vector<32x512xf32>
    %cst_64 = arith.constant dense<0.000000e+00> : vector<32x512xf32>
    %163 = tpu.matmul %12, %160, %cst_64 {dimension_numbers = #tpu.dot_dimension_numbers<[1], [0], [0], [1], [0, 0, 1, 1], [], []>} : vector<32x32xf32>, vector<32x512xf32>, vector<32x512xf32> -> vector<32x512xf32>
    %164 = arith.addf %163, %10 : vector<32x512xf32>
    %cst_65 = arith.constant -5.000000e+01 : f32
    %cst_66 = arith.constant 5.000000e+01 : f32
    %165 = vector.broadcast %cst_65 : f32 to vector<32x512xf32>
    %166 = arith.maximumf %165, %164 : vector<32x512xf32>
    %167 = vector.broadcast %cst_66 : f32 to vector<32x512xf32>
    %168 = arith.minimumf %167, %166 : vector<32x512xf32>
    %cst_67 = arith.constant 0.000000e+00 : f32
    %169 = vector.broadcast %cst_67 : f32 to vector<32x512xf32>
    %170 = arith.maximumf %168, %169 : vector<32x512xf32>
    %171 = vector.broadcast %cst_67 : f32 to vector<32x512xf32>
    %172 = arith.subf %168, %171 : vector<32x512xf32>
    %173 = arith.cmpf one, %172, %172 : vector<32x512xf32>
    %174 = vector.broadcast %cst_67 : f32 to vector<32x512xf32>
    %175 = arith.addf %168, %174 : vector<32x512xf32>
    %176 = math.absf %172 : vector<32x512xf32>
    %cst_68 = arith.constant 0.000000e+00 : f32
    %177 = vector.broadcast %cst_68 : f32 to vector<32x512xf32>
    %178 = arith.subf %177, %176 : vector<32x512xf32>
    %179 = math.exp %178 : vector<32x512xf32>
    %180 = math.log1p %179 : vector<32x512xf32>
    %181 = arith.addf %170, %180 : vector<32x512xf32>
    %182 = arith.select %173, %175, %181 : vector<32x512xi1>, vector<32x512xf32>
    %cst_69 = arith.constant 9.89999961 : f32
    %183 = vector.broadcast %cst_69 : f32 to vector<32x512xf32>
    %184 = arith.mulf %182, %183 : vector<32x512xf32>
    %cst_70 = arith.constant 1.000000e-01 : f32
    %185 = vector.broadcast %cst_70 : f32 to vector<32x512xf32>
    %186 = arith.addf %185, %184 : vector<32x512xf32>
    %187 = tpu.reciprocal %186 {approx = true} : vector<32x512xf32> -> vector<32x512xf32>
    %188 = arith.mulf %186, %187 : vector<32x512xf32>
    %cst_71 = arith.constant 2.000000e+00 : f32
    %189 = vector.broadcast %cst_71 : f32 to vector<32x512xf32>
    %190 = arith.subf %189, %188 : vector<32x512xf32>
    %191 = arith.mulf %187, %190 : vector<32x512xf32>
    %cst_72 = arith.constant 5.000000e-01 : f32
    %192 = vector.broadcast %cst_72 : f32 to vector<32x512xf32>
    %193 = arith.mulf %192, %162 : vector<32x512xf32>
    %194 = math.tanh %193 : vector<32x512xf32>
    %cst_73 = arith.constant 1.000000e+00 : f32
    %195 = vector.broadcast %cst_73 : f32 to vector<32x512xf32>
    %196 = arith.addf %194, %195 : vector<32x512xf32>
    %cst_74 = arith.constant 5.000000e-01 : f32
    %197 = vector.broadcast %cst_74 : f32 to vector<32x512xf32>
    %198 = arith.mulf %197, %196 : vector<32x512xf32>
    %cst_75 = arith.constant 1.250000e-01 : f32
    %199 = vector.broadcast %cst_75 : f32 to vector<32x512xf32>
    %200 = arith.mulf %199, %198 : vector<32x512xf32>
    %201 = arith.addf %160, %200 : vector<32x512xf32>
    %cst_76 = arith.constant 1.250000e-01 : f32
    %202 = vector.broadcast %cst_76 : f32 to vector<32x512xf32>
    %203 = arith.mulf %202, %191 : vector<32x512xf32>
    %204 = arith.mulf %203, %160 : vector<32x512xf32>
    %205 = arith.subf %201, %204 : vector<32x512xf32>
    %cst_77 = arith.constant -1.000000e+02 : f32
    %cst_78 = arith.constant 1.000000e+02 : f32
    %206 = vector.broadcast %cst_77 : f32 to vector<32x512xf32>
    %207 = arith.maximumf %206, %205 : vector<32x512xf32>
    %208 = vector.broadcast %cst_78 : f32 to vector<32x512xf32>
    %209 = arith.minimumf %208, %207 : vector<32x512xf32>
    %c4_i32 = arith.constant 4 : i32
    %cst_79 = arith.constant dense<0.000000e+00> : vector<32x512xf32>
    %210 = tpu.matmul %11, %209, %cst_79 {dimension_numbers = #tpu.dot_dimension_numbers<[1], [0], [0], [1], [0, 0, 1, 1], [], []>} : vector<32x32xf32>, vector<32x512xf32>, vector<32x512xf32> -> vector<32x512xf32>
    %211 = arith.addf %210, %5 : vector<32x512xf32>
    %cst_80 = arith.constant dense<0.000000e+00> : vector<32x512xf32>
    %212 = tpu.matmul %12, %209, %cst_80 {dimension_numbers = #tpu.dot_dimension_numbers<[1], [0], [0], [1], [0, 0, 1, 1], [], []>} : vector<32x32xf32>, vector<32x512xf32>, vector<32x512xf32> -> vector<32x512xf32>
    %213 = arith.addf %212, %10 : vector<32x512xf32>
    %cst_81 = arith.constant -5.000000e+01 : f32
    %cst_82 = arith.constant 5.000000e+01 : f32
    %214 = vector.broadcast %cst_81 : f32 to vector<32x512xf32>
    %215 = arith.maximumf %214, %213 : vector<32x512xf32>
    %216 = vector.broadcast %cst_82 : f32 to vector<32x512xf32>
    %217 = arith.minimumf %216, %215 : vector<32x512xf32>
    %cst_83 = arith.constant 0.000000e+00 : f32
    %218 = vector.broadcast %cst_83 : f32 to vector<32x512xf32>
    %219 = arith.maximumf %217, %218 : vector<32x512xf32>
    %220 = vector.broadcast %cst_83 : f32 to vector<32x512xf32>
    %221 = arith.subf %217, %220 : vector<32x512xf32>
    %222 = arith.cmpf one, %221, %221 : vector<32x512xf32>
    %223 = vector.broadcast %cst_83 : f32 to vector<32x512xf32>
    %224 = arith.addf %217, %223 : vector<32x512xf32>
    %225 = math.absf %221 : vector<32x512xf32>
    %cst_84 = arith.constant 0.000000e+00 : f32
    %226 = vector.broadcast %cst_84 : f32 to vector<32x512xf32>
    %227 = arith.subf %226, %225 : vector<32x512xf32>
    %228 = math.exp %227 : vector<32x512xf32>
    %229 = math.log1p %228 : vector<32x512xf32>
    %230 = arith.addf %219, %229 : vector<32x512xf32>
    %231 = arith.select %222, %224, %230 : vector<32x512xi1>, vector<32x512xf32>
    %cst_85 = arith.constant 9.89999961 : f32
    %232 = vector.broadcast %cst_85 : f32 to vector<32x512xf32>
    %233 = arith.mulf %231, %232 : vector<32x512xf32>
    %cst_86 = arith.constant 1.000000e-01 : f32
    %234 = vector.broadcast %cst_86 : f32 to vector<32x512xf32>
    %235 = arith.addf %234, %233 : vector<32x512xf32>
    %236 = tpu.reciprocal %235 {approx = true} : vector<32x512xf32> -> vector<32x512xf32>
    %237 = arith.mulf %235, %236 : vector<32x512xf32>
    %cst_87 = arith.constant 2.000000e+00 : f32
    %238 = vector.broadcast %cst_87 : f32 to vector<32x512xf32>
    %239 = arith.subf %238, %237 : vector<32x512xf32>
    %240 = arith.mulf %236, %239 : vector<32x512xf32>
    %cst_88 = arith.constant 5.000000e-01 : f32
    %241 = vector.broadcast %cst_88 : f32 to vector<32x512xf32>
    %242 = arith.mulf %241, %211 : vector<32x512xf32>
    %243 = math.tanh %242 : vector<32x512xf32>
    %cst_89 = arith.constant 1.000000e+00 : f32
    %244 = vector.broadcast %cst_89 : f32 to vector<32x512xf32>
    %245 = arith.addf %243, %244 : vector<32x512xf32>
    %cst_90 = arith.constant 5.000000e-01 : f32
    %246 = vector.broadcast %cst_90 : f32 to vector<32x512xf32>
    %247 = arith.mulf %246, %245 : vector<32x512xf32>
    %cst_91 = arith.constant 1.250000e-01 : f32
    %248 = vector.broadcast %cst_91 : f32 to vector<32x512xf32>
    %249 = arith.mulf %248, %247 : vector<32x512xf32>
    %250 = arith.addf %209, %249 : vector<32x512xf32>
    %cst_92 = arith.constant 1.250000e-01 : f32
    %251 = vector.broadcast %cst_92 : f32 to vector<32x512xf32>
    %252 = arith.mulf %251, %240 : vector<32x512xf32>
    %253 = arith.mulf %252, %209 : vector<32x512xf32>
    %254 = arith.subf %250, %253 : vector<32x512xf32>
    %cst_93 = arith.constant -1.000000e+02 : f32
    %cst_94 = arith.constant 1.000000e+02 : f32
    %255 = vector.broadcast %cst_93 : f32 to vector<32x512xf32>
    %256 = arith.maximumf %255, %254 : vector<32x512xf32>
    %257 = vector.broadcast %cst_94 : f32 to vector<32x512xf32>
    %258 = arith.minimumf %257, %256 : vector<32x512xf32>
    %c5_i32 = arith.constant 5 : i32
    %cst_95 = arith.constant dense<0.000000e+00> : vector<32x512xf32>
    %259 = tpu.matmul %11, %258, %cst_95 {dimension_numbers = #tpu.dot_dimension_numbers<[1], [0], [0], [1], [0, 0, 1, 1], [], []>} : vector<32x32xf32>, vector<32x512xf32>, vector<32x512xf32> -> vector<32x512xf32>
    %260 = arith.addf %259, %5 : vector<32x512xf32>
    %cst_96 = arith.constant dense<0.000000e+00> : vector<32x512xf32>
    %261 = tpu.matmul %12, %258, %cst_96 {dimension_numbers = #tpu.dot_dimension_numbers<[1], [0], [0], [1], [0, 0, 1, 1], [], []>} : vector<32x32xf32>, vector<32x512xf32>, vector<32x512xf32> -> vector<32x512xf32>
    %262 = arith.addf %261, %10 : vector<32x512xf32>
    %cst_97 = arith.constant -5.000000e+01 : f32
    %cst_98 = arith.constant 5.000000e+01 : f32
    %263 = vector.broadcast %cst_97 : f32 to vector<32x512xf32>
    %264 = arith.maximumf %263, %262 : vector<32x512xf32>
    %265 = vector.broadcast %cst_98 : f32 to vector<32x512xf32>
    %266 = arith.minimumf %265, %264 : vector<32x512xf32>
    %cst_99 = arith.constant 0.000000e+00 : f32
    %267 = vector.broadcast %cst_99 : f32 to vector<32x512xf32>
    %268 = arith.maximumf %266, %267 : vector<32x512xf32>
    %269 = vector.broadcast %cst_99 : f32 to vector<32x512xf32>
    %270 = arith.subf %266, %269 : vector<32x512xf32>
    %271 = arith.cmpf one, %270, %270 : vector<32x512xf32>
    %272 = vector.broadcast %cst_99 : f32 to vector<32x512xf32>
    %273 = arith.addf %266, %272 : vector<32x512xf32>
    %274 = math.absf %270 : vector<32x512xf32>
    %cst_100 = arith.constant 0.000000e+00 : f32
    %275 = vector.broadcast %cst_100 : f32 to vector<32x512xf32>
    %276 = arith.subf %275, %274 : vector<32x512xf32>
    %277 = math.exp %276 : vector<32x512xf32>
    %278 = math.log1p %277 : vector<32x512xf32>
    %279 = arith.addf %268, %278 : vector<32x512xf32>
    %280 = arith.select %271, %273, %279 : vector<32x512xi1>, vector<32x512xf32>
    %cst_101 = arith.constant 9.89999961 : f32
    %281 = vector.broadcast %cst_101 : f32 to vector<32x512xf32>
    %282 = arith.mulf %280, %281 : vector<32x512xf32>
    %cst_102 = arith.constant 1.000000e-01 : f32
    %283 = vector.broadcast %cst_102 : f32 to vector<32x512xf32>
    %284 = arith.addf %283, %282 : vector<32x512xf32>
    %285 = tpu.reciprocal %284 {approx = true} : vector<32x512xf32> -> vector<32x512xf32>
    %286 = arith.mulf %284, %285 : vector<32x512xf32>
    %cst_103 = arith.constant 2.000000e+00 : f32
    %287 = vector.broadcast %cst_103 : f32 to vector<32x512xf32>
    %288 = arith.subf %287, %286 : vector<32x512xf32>
    %289 = arith.mulf %285, %288 : vector<32x512xf32>
    %cst_104 = arith.constant 5.000000e-01 : f32
    %290 = vector.broadcast %cst_104 : f32 to vector<32x512xf32>
    %291 = arith.mulf %290, %260 : vector<32x512xf32>
    %292 = math.tanh %291 : vector<32x512xf32>
    %cst_105 = arith.constant 1.000000e+00 : f32
    %293 = vector.broadcast %cst_105 : f32 to vector<32x512xf32>
    %294 = arith.addf %292, %293 : vector<32x512xf32>
    %cst_106 = arith.constant 5.000000e-01 : f32
    %295 = vector.broadcast %cst_106 : f32 to vector<32x512xf32>
    %296 = arith.mulf %295, %294 : vector<32x512xf32>
    %cst_107 = arith.constant 1.250000e-01 : f32
    %297 = vector.broadcast %cst_107 : f32 to vector<32x512xf32>
    %298 = arith.mulf %297, %296 : vector<32x512xf32>
    %299 = arith.addf %258, %298 : vector<32x512xf32>
    %cst_108 = arith.constant 1.250000e-01 : f32
    %300 = vector.broadcast %cst_108 : f32 to vector<32x512xf32>
    %301 = arith.mulf %300, %289 : vector<32x512xf32>
    %302 = arith.mulf %301, %258 : vector<32x512xf32>
    %303 = arith.subf %299, %302 : vector<32x512xf32>
    %cst_109 = arith.constant -1.000000e+02 : f32
    %cst_110 = arith.constant 1.000000e+02 : f32
    %304 = vector.broadcast %cst_109 : f32 to vector<32x512xf32>
    %305 = arith.maximumf %304, %303 : vector<32x512xf32>
    %306 = vector.broadcast %cst_110 : f32 to vector<32x512xf32>
    %307 = arith.minimumf %306, %305 : vector<32x512xf32>
    %c6_i32 = arith.constant 6 : i32
    %cst_111 = arith.constant dense<0.000000e+00> : vector<32x512xf32>
    %308 = tpu.matmul %11, %307, %cst_111 {dimension_numbers = #tpu.dot_dimension_numbers<[1], [0], [0], [1], [0, 0, 1, 1], [], []>} : vector<32x32xf32>, vector<32x512xf32>, vector<32x512xf32> -> vector<32x512xf32>
    %309 = arith.addf %308, %5 : vector<32x512xf32>
    %cst_112 = arith.constant dense<0.000000e+00> : vector<32x512xf32>
    %310 = tpu.matmul %12, %307, %cst_112 {dimension_numbers = #tpu.dot_dimension_numbers<[1], [0], [0], [1], [0, 0, 1, 1], [], []>} : vector<32x32xf32>, vector<32x512xf32>, vector<32x512xf32> -> vector<32x512xf32>
    %311 = arith.addf %310, %10 : vector<32x512xf32>
    %cst_113 = arith.constant -5.000000e+01 : f32
    %cst_114 = arith.constant 5.000000e+01 : f32
    %312 = vector.broadcast %cst_113 : f32 to vector<32x512xf32>
    %313 = arith.maximumf %312, %311 : vector<32x512xf32>
    %314 = vector.broadcast %cst_114 : f32 to vector<32x512xf32>
    %315 = arith.minimumf %314, %313 : vector<32x512xf32>
    %cst_115 = arith.constant 0.000000e+00 : f32
    %316 = vector.broadcast %cst_115 : f32 to vector<32x512xf32>
    %317 = arith.maximumf %315, %316 : vector<32x512xf32>
    %318 = vector.broadcast %cst_115 : f32 to vector<32x512xf32>
    %319 = arith.subf %315, %318 : vector<32x512xf32>
    %320 = arith.cmpf one, %319, %319 : vector<32x512xf32>
    %321 = vector.broadcast %cst_115 : f32 to vector<32x512xf32>
    %322 = arith.addf %315, %321 : vector<32x512xf32>
    %323 = math.absf %319 : vector<32x512xf32>
    %cst_116 = arith.constant 0.000000e+00 : f32
    %324 = vector.broadcast %cst_116 : f32 to vector<32x512xf32>
    %325 = arith.subf %324, %323 : vector<32x512xf32>
    %326 = math.exp %325 : vector<32x512xf32>
    %327 = math.log1p %326 : vector<32x512xf32>
    %328 = arith.addf %317, %327 : vector<32x512xf32>
    %329 = arith.select %320, %322, %328 : vector<32x512xi1>, vector<32x512xf32>
    %cst_117 = arith.constant 9.89999961 : f32
    %330 = vector.broadcast %cst_117 : f32 to vector<32x512xf32>
    %331 = arith.mulf %329, %330 : vector<32x512xf32>
    %cst_118 = arith.constant 1.000000e-01 : f32
    %332 = vector.broadcast %cst_118 : f32 to vector<32x512xf32>
    %333 = arith.addf %332, %331 : vector<32x512xf32>
    %334 = tpu.reciprocal %333 {approx = true} : vector<32x512xf32> -> vector<32x512xf32>
    %335 = arith.mulf %333, %334 : vector<32x512xf32>
    %cst_119 = arith.constant 2.000000e+00 : f32
    %336 = vector.broadcast %cst_119 : f32 to vector<32x512xf32>
    %337 = arith.subf %336, %335 : vector<32x512xf32>
    %338 = arith.mulf %334, %337 : vector<32x512xf32>
    %cst_120 = arith.constant 5.000000e-01 : f32
    %339 = vector.broadcast %cst_120 : f32 to vector<32x512xf32>
    %340 = arith.mulf %339, %309 : vector<32x512xf32>
    %341 = math.tanh %340 : vector<32x512xf32>
    %cst_121 = arith.constant 1.000000e+00 : f32
    %342 = vector.broadcast %cst_121 : f32 to vector<32x512xf32>
    %343 = arith.addf %341, %342 : vector<32x512xf32>
    %cst_122 = arith.constant 5.000000e-01 : f32
    %344 = vector.broadcast %cst_122 : f32 to vector<32x512xf32>
    %345 = arith.mulf %344, %343 : vector<32x512xf32>
    %cst_123 = arith.constant 1.250000e-01 : f32
    %346 = vector.broadcast %cst_123 : f32 to vector<32x512xf32>
    %347 = arith.mulf %346, %345 : vector<32x512xf32>
    %348 = arith.addf %307, %347 : vector<32x512xf32>
    %cst_124 = arith.constant 1.250000e-01 : f32
    %349 = vector.broadcast %cst_124 : f32 to vector<32x512xf32>
    %350 = arith.mulf %349, %338 : vector<32x512xf32>
    %351 = arith.mulf %350, %307 : vector<32x512xf32>
    %352 = arith.subf %348, %351 : vector<32x512xf32>
    %cst_125 = arith.constant -1.000000e+02 : f32
    %cst_126 = arith.constant 1.000000e+02 : f32
    %353 = vector.broadcast %cst_125 : f32 to vector<32x512xf32>
    %354 = arith.maximumf %353, %352 : vector<32x512xf32>
    %355 = vector.broadcast %cst_126 : f32 to vector<32x512xf32>
    %356 = arith.minimumf %355, %354 : vector<32x512xf32>
    %cst_127 = arith.constant dense<0.000000e+00> : vector<32x512xf32>
    %357 = tpu.matmul %11, %356, %cst_127 {dimension_numbers = #tpu.dot_dimension_numbers<[1], [0], [0], [1], [0, 0, 1, 1], [], []>} : vector<32x32xf32>, vector<32x512xf32>, vector<32x512xf32> -> vector<32x512xf32>
    %358 = arith.addf %357, %5 : vector<32x512xf32>
    %cst_128 = arith.constant dense<0.000000e+00> : vector<32x512xf32>
    %359 = tpu.matmul %12, %356, %cst_128 {dimension_numbers = #tpu.dot_dimension_numbers<[1], [0], [0], [1], [0, 0, 1, 1], [], []>} : vector<32x32xf32>, vector<32x512xf32>, vector<32x512xf32> -> vector<32x512xf32>
    %360 = arith.addf %359, %10 : vector<32x512xf32>
    %cst_129 = arith.constant -5.000000e+01 : f32
    %cst_130 = arith.constant 5.000000e+01 : f32
    %361 = vector.broadcast %cst_129 : f32 to vector<32x512xf32>
    %362 = arith.maximumf %361, %360 : vector<32x512xf32>
    %363 = vector.broadcast %cst_130 : f32 to vector<32x512xf32>
    %364 = arith.minimumf %363, %362 : vector<32x512xf32>
    %cst_131 = arith.constant 0.000000e+00 : f32
    %365 = vector.broadcast %cst_131 : f32 to vector<32x512xf32>
    %366 = arith.maximumf %364, %365 : vector<32x512xf32>
    %367 = vector.broadcast %cst_131 : f32 to vector<32x512xf32>
    %368 = arith.subf %364, %367 : vector<32x512xf32>
    %369 = arith.cmpf one, %368, %368 : vector<32x512xf32>
    %370 = vector.broadcast %cst_131 : f32 to vector<32x512xf32>
    %371 = arith.addf %364, %370 : vector<32x512xf32>
    %372 = math.absf %368 : vector<32x512xf32>
    %cst_132 = arith.constant 0.000000e+00 : f32
    %373 = vector.broadcast %cst_132 : f32 to vector<32x512xf32>
    %374 = arith.subf %373, %372 : vector<32x512xf32>
    %375 = math.exp %374 : vector<32x512xf32>
    %376 = math.log1p %375 : vector<32x512xf32>
    %377 = arith.addf %366, %376 : vector<32x512xf32>
    %378 = arith.select %369, %371, %377 : vector<32x512xi1>, vector<32x512xf32>
    %cst_133 = arith.constant 9.89999961 : f32
    %379 = vector.broadcast %cst_133 : f32 to vector<32x512xf32>
    %380 = arith.mulf %378, %379 : vector<32x512xf32>
    %cst_134 = arith.constant 1.000000e-01 : f32
    %381 = vector.broadcast %cst_134 : f32 to vector<32x512xf32>
    %382 = arith.addf %381, %380 : vector<32x512xf32>
    %383 = tpu.reciprocal %382 {approx = true} : vector<32x512xf32> -> vector<32x512xf32>
    %384 = arith.mulf %382, %383 : vector<32x512xf32>
    %cst_135 = arith.constant 2.000000e+00 : f32
    %385 = vector.broadcast %cst_135 : f32 to vector<32x512xf32>
    %386 = arith.subf %385, %384 : vector<32x512xf32>
    %387 = arith.mulf %383, %386 : vector<32x512xf32>
    %cst_136 = arith.constant 5.000000e-01 : f32
    %388 = vector.broadcast %cst_136 : f32 to vector<32x512xf32>
    %389 = arith.mulf %388, %358 : vector<32x512xf32>
    %390 = math.tanh %389 : vector<32x512xf32>
    %cst_137 = arith.constant 1.000000e+00 : f32
    %391 = vector.broadcast %cst_137 : f32 to vector<32x512xf32>
    %392 = arith.addf %390, %391 : vector<32x512xf32>
    %cst_138 = arith.constant 5.000000e-01 : f32
    %393 = vector.broadcast %cst_138 : f32 to vector<32x512xf32>
    %394 = arith.mulf %393, %392 : vector<32x512xf32>
    %cst_139 = arith.constant 1.250000e-01 : f32
    %395 = vector.broadcast %cst_139 : f32 to vector<32x512xf32>
    %396 = arith.mulf %395, %394 : vector<32x512xf32>
    %397 = arith.addf %356, %396 : vector<32x512xf32>
    %cst_140 = arith.constant 1.250000e-01 : f32
    %398 = vector.broadcast %cst_140 : f32 to vector<32x512xf32>
    %399 = arith.mulf %398, %387 : vector<32x512xf32>
    %400 = arith.mulf %399, %356 : vector<32x512xf32>
    %401 = arith.subf %397, %400 : vector<32x512xf32>
    %c0_141 = arith.constant 0 : index
    %c0_142 = arith.constant 0 : index
    %402 = vector.load %arg8[%c0_141, %c0_142] : memref<3x32xf32, #tpu.memory_space<vmem>>, vector<3x32xf32>
    %cst_143 = arith.constant dense<0.000000e+00> : vector<3x512xf32>
    %403 = tpu.matmul %402, %401, %cst_143 {dimension_numbers = #tpu.dot_dimension_numbers<[1], [0], [0], [1], [0, 0, 1, 1], [], []>} : vector<3x32xf32>, vector<32x512xf32>, vector<3x512xf32> -> vector<3x512xf32>
    %c0_144 = arith.constant 0 : index
    %c0_145 = arith.constant 0 : index
    %404 = vector.load %arg9[%c0_144, %c0_145] : memref<3x1xf32, #tpu.memory_space<vmem>>, vector<3x1xf32>
    %405 = vector.broadcast %404 : vector<3x1xf32> to vector<3x512xf32>
    %406 = arith.addf %403, %405 : vector<3x512xf32>
    %407 = math.tanh %406 : vector<3x512xf32>
    %cst_146 = arith.constant 1.000000e+01 : f32
    %408 = vector.broadcast %cst_146 : f32 to vector<3x512xf32>
    %409 = arith.mulf %407, %408 : vector<3x512xf32>
    %c0_147 = arith.constant 0 : index
    %c0_148 = arith.constant 0 : index
    %410 = vector.load %arg10[%c0_147, %c0_148] : memref<3x512xf32, #tpu.memory_space<vmem>>, vector<3x512xf32>
    tpu.vector_store %arg10[%c0_147, %c0_148], %409 {strides = array<i32>} : memref<3x512xf32, #tpu.memory_space<vmem>>, vector<3x512xf32>,
    return
  }
  func.func @transform_0(%arg0: i32) -> (i32, i32) {
    %c0_i32 = arith.constant 0 : i32
    %c0_i32_0 = arith.constant 0 : i32
    return %c0_i32, %arg0 : i32, i32
  }
  func.func @transform_1(%arg0: i32) -> (i32, i32) {
    %c0_i32 = arith.constant 0 : i32
    %c0_i32_0 = arith.constant 0 : i32
    %c0_i32_1 = arith.constant 0 : i32
    return %c0_i32, %c0_i32_0 : i32, i32
  }
  func.func @transform_2(%arg0: i32) -> (i32, i32) {
    %c0_i32 = arith.constant 0 : i32
    %c0_i32_0 = arith.constant 0 : i32
    %c0_i32_1 = arith.constant 0 : i32
    return %c0_i32, %c0_i32_0 : i32, i32
  }
  func.func @transform_3(%arg0: i32) -> (i32, i32) {
    %c0_i32 = arith.constant 0 : i32
    %c0_i32_0 = arith.constant 0 : i32
    %c0_i32_1 = arith.constant 0 : i32
    return %c0_i32, %c0_i32_0 : i32, i32
  }
  func.func @transform_4(%arg0: i32) -> (i32, i32) {
    %c0_i32 = arith.constant 0 : i32
    %c0_i32_0 = arith.constant 0 : i32
    %c0_i32_1 = arith.constant 0 : i32
    return %c0_i32, %c0_i32_0 : i32, i32
  }
  func.func @transform_5(%arg0: i32) -> (i32, i32) {
    %c0_i32 = arith.constant 0 : i32
    %c0_i32_0 = arith.constant 0 : i32
    %c0_i32_1 = arith.constant 0 : i32
    return %c0_i32, %c0_i32_0 : i32, i32
  }
  func.func @transform_6(%arg0: i32) -> (i32, i32) {
    %c0_i32 = arith.constant 0 : i32
    %c0_i32_0 = arith.constant 0 : i32
    %c0_i32_1 = arith.constant 0 : i32
    return %c0_i32, %c0_i32_0 : i32, i32
  }
  func.func @transform_7(%arg0: i32) -> (i32, i32) {
    %c0_i32 = arith.constant 0 : i32
    %c0_i32_0 = arith.constant 0 : i32
    %c0_i32_1 = arith.constant 0 : i32
    return %c0_i32, %c0_i32_0 : i32, i32
  }
  func.func @transform_8(%arg0: i32) -> (i32, i32) {
    %c0_i32 = arith.constant 0 : i32
    %c0_i32_0 = arith.constant 0 : i32
    %c0_i32_1 = arith.constant 0 : i32
    return %c0_i32, %c0_i32_0 : i32, i32
  }
  func.func @transform_9(%arg0: i32) -> (i32, i32) {
    %c0_i32 = arith.constant 0 : i32
    %c0_i32_0 = arith.constant 0 : i32
    return %c0_i32, %arg0 : i32, i32
  }
}

</mosaic_0001>

<bundles_post_ra>
// kernel: tpu_custom_call.1
= control target key start
LH: loop header
LB: loop body
LE: loop exit
PB: predicated region body
PF: predicated region fallthrough
CT: control target
= control target key end

     0   :  { %v8761_v2 = vmov 0   ;;  %s13769_s0 = inlined_call_operand.vmem [shape: f32[3,512], index: 0, kind: input, shape index: {}]   ;;  %s13770_s1 = inlined_call_operand.vmem [shape: f32[32,32], index: 1, kind: input, shape index: {}]   ;;  %s13771_s2 = inlined_call_operand.vmem [shape: f32[32,32], index: 2, kind: input, shape index: {}]   ;;  %s13772_s3 = inlined_call_operand.vmem [shape: f32[32,3], index: 3, kind: input, shape index: {}]   ;;  %s13773_s4 = inlined_call_operand.vmem [shape: f32[32,3], index: 4, kind: input, shape index: {}]   ;;  %s13774_s5 = inlined_call_operand.vmem [shape: f32[32,1], index: 5, kind: input, shape index: {}]   ;;  %s13775_s6 = inlined_call_operand.vmem [shape: f32[32,1], index: 6, kind: input, shape index: {}]   ;;  %s13776_s7 = inlined_call_operand.vmem [shape: f32[3,32], index: 7, kind: input, shape index: {}]   ;;  %s13777_s8 = inlined_call_operand.vmem [shape: f32[3,1], index: 8, kind: input, shape index: {}]   ;;  %s13778_s9 = inlined_call_operand.hbm [shape: f32[3,512], index: 9, kind: output, shape index: {}]  }
   0x1   :  { %v33_v0 = vld [vmem:[%s13769_s0] sm:$0x77]  ;;  %v34_v1 = vld [vmem:[%s13769_s0 + $0x8] sm:$0x77]  ;;  %7645 = vset.pattern.permute.xlu1 %v8761_v2  ;;  %7644 = vset.pattern.permute.xlu0 %v8761_v2  ;;  %v217_v4 = vld [vmem:[%s13775_s6 + $0x18] sm:$0xff] }
   0x2   :  { %65 = vst [vmem:[#allocation1] ss:$2 sm:$0xff] %v33_v0  ;;  %v215_v3 = vld [vmem:[%s13775_s6 + $0x8] sm:$0xff]  ;;  %7646 = vset.pattern.permute.xlu2 %v8761_v2  ;;  %235 = vperm.xlu0 %7644, %v217_v4  }
   0x3   :  { %67 = vst [vmem:[#allocation1 + $0x10] ss:$2 sm:$0xff] %v34_v1  ;;  %225 = vperm.xlu1 %7645, %v215_v3  }
   0x4   :  { %14 = vsyncpa [#allocation3], 0  ;;  %vm85_vm0 = vcmask 1042432   ;;  %v35_v5 = vld [vmem:[%s13772_s3] sm:$0xff]  ;;  %vm72_vm1 = vcmask 23552   ;;  %v216_v11 = vld [vmem:[%s13775_s6 + $0x10] sm:$0xff] }
   0x5   :  { %v214_v10 = vld [vmem:[%s13775_s6] sm:$0xff]  ;;  %v36_v12 = vld [vmem:[%s13772_s3 + $0x8] sm:$0xff]  ;;  %v37_v19 = vld [vmem:[%s13772_s3 + $0x10] sm:$0xff]  ;;  %v8762_v23 = vmov 0.0   ;;  %vm389_vm2 = vcmask 261120   ;;  %s7092_s0 = sshll.u32 %s13778_s9, 4  ;;  %s7093_s0 = int_to_ptr.hbm [resolvable:$true] %s7092_s0 }
   0x6   :  { %v39_v15 = vld [vmem:[%s13774_s5] sm:$0xff]  ;;  %v40_v16 = vld [vmem:[%s13774_s5 + $0x8] sm:$0xff]  ;;  %v42_v20 = vld [vmem:[%s13774_s5 + $0x18] sm:$0xff] }
   0x7   :  { %60 = vperm.xlu2 %7646, %v42_v20   ;;  %v38_v21 = vld [vmem:[%s13772_s3 + $0x18] sm:$0xff]  ;;  %v41_v22 = vld [vmem:[%s13774_s5 + $0x10] sm:$0xff]  ;;  %v210_v24 = vld [vmem:[%s13773_s4] sm:$0xff] }
   0x8   :  { %v211_v25 = vld [vmem:[%s13773_s4 + $0x8] sm:$0xff]  ;;  %v212_v26 = vld [vmem:[%s13773_s4 + $0x10] sm:$0xff]  ;;  %v213_v27 = vld [vmem:[%s13773_s4 + $0x18] sm:$0xff] }
   0x9   :  { %v68_v6 = vld.sshfl [vmem:[#allocation1] sm:$0xff pattern:$0x75316420]  ;;  %v69_v7 = vld.sshfl [vmem:[#allocation1 + $0x8] sm:$0xff pattern:$0x75316420] }
   0xa   :  { %7101 = vmatpush.msk.msra.mxu0 %vm85_vm0, %v68_v6  ;;  %7106 = vmatpush.msk.msra.mxu1 %vm85_vm0, %v69_v7  ;;  %238 = vst [vmem:[#allocation1] ss:$2 sm:$0xff] %v33_v0  ;;  %v70_v8 = vld.sshfl [vmem:[#allocation1 + $0x10] sm:$0xff pattern:$0x75316420]  ;;  %v381_v28 = vld [vmem:[%s13770_s1] sm:$0xff] }
   0xb   :  { %7111 = vmatpush.msk.msra.mxu2 %vm85_vm0, %v70_v8  ;;  %v71_v9 = vld.sshfl [vmem:[#allocation1 + $0x18] sm:$0xff pattern:$0x75316420]  ;;  %7102 = vmatmul.msk.f32.vlgmr.msra.gmra.mxu0 %vm72_vm1, %v35_v5  ;;  %v382_v29 = vld [vmem:[%s13770_s1 + $0x8] sm:$0xff]  ;;  %v383_v30 = vld [vmem:[%s13770_s1 + $0x10] sm:$0xff] }
   0xc   :  { %7116 = vmatpush.msk.msra.mxu3 %vm85_vm0, %v71_v9  ;;  %240 = vst [vmem:[#allocation1 + $0x10] ss:$2 sm:$0xff] %v34_v1  ;;  %7107 = vmatmul.msk.f32.vlgmr.msra.gmra.mxu1 %vm72_vm1, %v35_v5  ;;  %v384_v31 = vld [vmem:[%s13770_s1 + $0x18] sm:$0xff]  ;;  %v385_v32 = vld [vmem:[%s13771_s2] sm:$0xff]  ;;  %v386_v33 = vld [vmem:[%s13771_s2 + $0x8] sm:$0xff] }
   0xd   :  { %7112 = vmatmul.msk.f32.vlgmr.msra.gmra.mxu2 %vm72_vm1, %v35_v5  ;;  %7117 = vmatmul.msk.f32.vlgmr.msra.gmra.mxu3 %vm72_vm1, %v35_v5  ;;  %v387_v34 = vld [vmem:[%s13771_s2 + $0x10] sm:$0xff]  ;;  %v388_v35 = vld [vmem:[%s13771_s2 + $0x18] sm:$0xff]  ;;  %v6975_v54 = vld [vmem:[%s13777_s8] sm:$0x7] }
   0xe   :  { %220 = vperm.xlu1 %7645, %v214_v10   ;;  %230 = vperm.xlu0 %7644, %v216_v11  }
   0xf   :  { %55 = vperm.xlu2 %7646, %v41_v22  }
  0x11   :  { %v241_v13 = vld.sshfl [vmem:[#allocation1] sm:$0xff pattern:$0x75316420]  ;;  %v242_v14 = vld.sshfl [vmem:[#allocation1 + $0x8] sm:$0xff pattern:$0x75316420] }
  0x12   :  { %7121 = vmatpush.msk.msrb.mxu0 %vm85_vm0, %v241_v13  ;;  %7126 = vmatpush.msk.msrb.mxu1 %vm85_vm0, %v242_v14 }
  0x13   :  { %7103 = vmatmul.msk.f32.gmra.mxu0 %vm72_vm1, %v36_v12  ;;  %v244_v17 = vld.sshfl [vmem:[#allocation1 + $0x18] sm:$0xff pattern:$0x75316420]  ;;  %v243_v18 = vld.sshfl [vmem:[#allocation1 + $0x10] sm:$0xff pattern:$0x75316420] }
  0x14   :  { %7108 = vmatmul.msk.f32.gmra.mxu1 %vm72_vm1, %v36_v12  ;;  %7136 = vmatpush.msk.msrb.mxu3 %vm85_vm0, %v244_v17 }
  0x15   :  { %7113 = vmatmul.msk.f32.gmra.mxu2 %vm72_vm1, %v36_v12  ;;  %7118 = vmatmul.msk.f32.gmra.mxu3 %vm72_vm1, %v36_v12 }
  0x16   :  { %45 = vperm.xlu1 %7645, %v39_v15   ;;  %50 = vperm.xlu0 %7644, %v40_v16  }
  0x17   :  { %7131 = vmatpush.msk.msrb.mxu2 %vm85_vm0, %v243_v18  ;;  %504 = vmatpush.msra.mxu3 %v8762_v23 }
  0x18   :  { %417 = vmatpush.msra.mxu0 %v8762_v23  ;;  %446 = vmatpush.msra.mxu1 %v8762_v23 }
  0x19   :  { %475 = vmatpush.msra.mxu2 %v8762_v23  ;;  %6978 = vperm.xlu2 %7646, %v6975_v54  }
  0x1b   :  { %7104 = vmatmul.msk.f32.gmra.mxu0 %vm72_vm1, %v37_v19 }
  0x1c   :  { %7109 = vmatmul.msk.f32.gmra.mxu1 %vm72_vm1, %v37_v19 }
  0x1d   :  { %7114 = vmatmul.msk.f32.gmra.mxu2 %vm72_vm1, %v37_v19  ;;  %7119 = vmatmul.msk.f32.gmra.mxu3 %vm72_vm1, %v37_v19 }
  0x23   :  { %7105 = vmatmul.msk.f32.gmra.mxu0 %vm72_vm1, %v38_v21 }
  0x24   :  { %7110 = vmatmul.msk.f32.gmra.mxu1 %vm72_vm1, %v38_v21 }
  0x25   :  { %7115 = vmatmul.msk.f32.gmra.mxu2 %vm72_vm1, %v38_v21  ;;  %7120 = vmatmul.msk.f32.gmra.mxu3 %vm72_vm1, %v38_v21 }
  0x2b   :  { %7122 = vmatmul.msk.f32.vlgmr.msrb.gmra.mxu0 %vm72_vm1, %v210_v24 }
  0x2c   :  { %7127 = vmatmul.msk.f32.vlgmr.msrb.gmra.mxu1 %vm72_vm1, %v210_v24  ;;  %545 = vmatpush.msrb.mxu0 %v8762_v23 }
  0x2d   :  { %7132 = vmatmul.msk.f32.vlgmr.msrb.gmra.mxu2 %vm72_vm1, %v210_v24  ;;  %7137 = vmatmul.msk.f32.vlgmr.msrb.gmra.mxu3 %vm72_vm1, %v210_v24 }
  0x2e   :  { %632 = vmatpush.msrb.mxu3 %v8762_v23  ;;  %603 = vmatpush.msrb.mxu2 %v8762_v23 }
  0x2f   :  { %574 = vmatpush.msrb.mxu1 %v8762_v23 }
  0x33   :  { %7123 = vmatmul.msk.f32.gmra.mxu0 %vm72_vm1, %v211_v25 }
  0x34   :  { %7128 = vmatmul.msk.f32.gmra.mxu1 %vm72_vm1, %v211_v25 }
  0x35   :  { %7133 = vmatmul.msk.f32.gmra.mxu2 %vm72_vm1, %v211_v25  ;;  %7138 = vmatmul.msk.f32.gmra.mxu3 %vm72_vm1, %v211_v25 }
  0x3b   :  { %7124 = vmatmul.msk.f32.gmra.mxu0 %vm72_vm1, %v212_v26 }
  0x3c   :  { %7129 = vmatmul.msk.f32.gmra.mxu1 %vm72_vm1, %v212_v26 }
  0x3d   :  { %7134 = vmatmul.msk.f32.gmra.mxu2 %vm72_vm1, %v212_v26  ;;  %7139 = vmatmul.msk.f32.gmra.mxu3 %vm72_vm1, %v212_v26 }
  0x43   :  { %7125 = vmatmul.msk.f32.gmra.mxu0 %vm72_vm1, %v213_v27 }
  0x44   :  { %7130 = vmatmul.msk.f32.gmra.mxu1 %vm72_vm1, %v213_v27 }
  0x45   :  { %7135 = vmatmul.msk.f32.gmra.mxu2 %vm72_vm1, %v213_v27  ;;  %7140 = vmatmul.msk.f32.gmra.mxu3 %vm72_vm1, %v213_v27 }
  0x4b   :  { %7141 = vmatmul.msk.f32.vlgmr.msra.gmra.mxu0 %vm389_vm2, %v381_v28 }
  0x4c   :  { %7145 = vmatmul.msk.f32.vlgmr.msra.gmra.mxu1 %vm389_vm2, %v381_v28 }
  0x4d   :  { %7149 = vmatmul.msk.f32.vlgmr.msra.gmra.mxu2 %vm389_vm2, %v381_v28  ;;  %7153 = vmatmul.msk.f32.vlgmr.msra.gmra.mxu3 %vm389_vm2, %v381_v28 }
  0x53   :  { %7142 = vmatmul.msk.f32.gmra.mxu0 %vm389_vm2, %v382_v29 }
  0x54   :  { %7146 = vmatmul.msk.f32.gmra.mxu1 %vm389_vm2, %v382_v29 }
  0x55   :  { %7150 = vmatmul.msk.f32.gmra.mxu2 %vm389_vm2, %v382_v29  ;;  %7154 = vmatmul.msk.f32.gmra.mxu3 %vm389_vm2, %v382_v29 }
  0x5b   :  { %7143 = vmatmul.msk.f32.gmra.mxu0 %vm389_vm2, %v383_v30 }
  0x5c   :  { %7147 = vmatmul.msk.f32.gmra.mxu1 %vm389_vm2, %v383_v30 }
  0x5d   :  { %7151 = vmatmul.msk.f32.gmra.mxu2 %vm389_vm2, %v383_v30  ;;  %7155 = vmatmul.msk.f32.gmra.mxu3 %vm389_vm2, %v383_v30 }
  0x61   :  { %v61_v16 = vpop.permute.xlu2 %60 }
  0x63   :  { %7144 = vmatmul.msk.f32.gmra.mxu0 %vm389_vm2, %v384_v31 }
  0x64   :  { %7148 = vmatmul.msk.f32.gmra.mxu1 %vm389_vm2, %v384_v31 }
  0x65   :  { %7152 = vmatmul.msk.f32.gmra.mxu2 %vm389_vm2, %v384_v31  ;;  %7156 = vmatmul.msk.f32.gmra.mxu3 %vm389_vm2, %v384_v31 }
  0x6b   :  { %7157 = vmatmul.msk.f32.vlgmr.msrb.gmra.mxu0 %vm389_vm2, %v385_v32 }
  0x6c   :  { %7161 = vmatmul.msk.f32.vlgmr.msrb.gmra.mxu1 %vm389_vm2, %v385_v32 }
  0x6d   :  { %7165 = vmatmul.msk.f32.vlgmr.msrb.gmra.mxu2 %vm389_vm2, %v385_v32  ;;  %7169 = vmatmul.msk.f32.vlgmr.msrb.gmra.mxu3 %vm389_vm2, %v385_v32 }
  0x73   :  { %7158 = vmatmul.msk.f32.gmra.mxu0 %vm389_vm2, %v386_v33 }
  0x74   :  { %7162 = vmatmul.msk.f32.gmra.mxu1 %vm389_vm2, %v386_v33  ;;  %v9003_v8 = vpop.permute.xlu0 %235 }
  0x75   :  { %7166 = vmatmul.msk.f32.gmra.mxu2 %vm389_vm2, %v386_v33  ;;  %7170 = vmatmul.msk.f32.gmra.mxu3 %vm389_vm2, %v386_v33  ;;  %v8997_v3 = vpop.permute.xlu1 %225 }
  0x7b   :  { %7159 = vmatmul.msk.f32.gmra.mxu0 %vm389_vm2, %v387_v34 }
  0x7c   :  { %7163 = vmatmul.msk.f32.gmra.mxu1 %vm389_vm2, %v387_v34 }
  0x7d   :  { %7167 = vmatmul.msk.f32.gmra.mxu2 %vm389_vm2, %v387_v34  ;;  %7171 = vmatmul.msk.f32.gmra.mxu3 %vm389_vm2, %v387_v34 }
  0x80   :  { %v221_v9 = vpop.permute.xlu1 %220  ;;  %v9005_v14 = vpop.permute.xlu0 %230 }
  0x83   :  { %7160 = vmatmul.msk.f32.gmra.mxu0 %vm389_vm2, %v388_v35 }
  0x84   :  { %7164 = vmatmul.msk.f32.gmra.mxu1 %vm389_vm2, %v388_v35 }
  0x85   :  { %7168 = vmatmul.msk.f32.gmra.mxu2 %vm389_vm2, %v388_v35  ;;  %7172 = vmatmul.msk.f32.gmra.mxu3 %vm389_vm2, %v388_v35  ;;  %v56_v35 = vpop.permute.xlu2 %55 }
  0x88   :  { %v111_v36 = vpop.f32.mrf.mxu0  ;;  %v46_v15 = vpop.permute.xlu1 %45 }
  0x89   :  { %v140_v37 = vpop.f32.mrf.mxu1  ;;  %v9011_v19 = vadd.f32 %v111_v36, %v46_v15  ;;  %v51_v24 = vpop.permute.xlu0 %50 }
  0x8a   :  { %v9014_v23 = vadd.f32 %v140_v37, %v46_v15 }
  0x8b   :  { %13964 = vst [vmem:[#allocation5_spill] sm:$0xff] %v9011_v19 }
  0x8c   :  { %13965 = vst [vmem:[#allocation6_spill] sm:$0xff] %v9014_v23 }
  0x90   :  { %v169_v38 = vpop.f32.mrf.mxu2  ;;  %v198_v39 = vpop.f32.mrf.mxu3 }
  0x91   :  { %v114_v40 = vpop.f32.mrf.mxu0  ;;  %v143_v41 = vpop.f32.mrf.mxu1  ;;  %v9025_v31 = vadd.f32 %v169_v38, %v46_v15  ;;  %v9027_v32 = vadd.f32 %v198_v39, %v46_v15 }
  0x92   :  { %v9029_v33 = vadd.f32 %v114_v40, %v51_v24  ;;  %v9031_v34 = vadd.f32 %v143_v41, %v51_v24 }
  0x93   :  { %13966 = vst [vmem:[#allocation7_spill] sm:$0xff] %v9025_v31 }
  0x94   :  { %13967 = vst [vmem:[#allocation8_spill] sm:$0xff] %v9027_v32 }
  0x95   :  { %13968 = vst [vmem:[#allocation9_spill] sm:$0xff] %v9029_v33 }
  0x96   :  { %13969 = vst [vmem:[#allocation10_spill] sm:$0xff] %v9031_v34 }
  0x98   :  { %v172_v42 = vpop.f32.mrf.mxu2  ;;  %v201_v43 = vpop.f32.mrf.mxu3 }
  0x99   :  { %v117_v44 = vpop.f32.mrf.mxu0  ;;  %v146_v45 = vpop.f32.mrf.mxu1  ;;  %v9033_v36 = vadd.f32 %v172_v42, %v51_v24  ;;  %v9035_v37 = vadd.f32 %v201_v43, %v51_v24 }
  0x9b   :  { %13970 = vst [vmem:[#allocation11_spill] sm:$0xff] %v9033_v36 }
  0x9c   :  { %13971 = vst [vmem:[#allocation12_spill] sm:$0xff] %v9035_v37 }
  0xa0   :  { %v175_v46 = vpop.f32.mrf.mxu2  ;;  %v204_v47 = vpop.f32.mrf.mxu3 }
  0xa1   :  { %v120_v48 = vpop.f32.mrf.mxu0  ;;  %v149_v49 = vpop.f32.mrf.mxu1  ;;  %v9044_v39 = vadd.f32 %v204_v47, %v56_v35 }
  0xa2   :  { %v9046_v40 = vadd.f32 %v120_v48, %v61_v16  ;;  %v9048_v41 = vadd.f32 %v149_v49, %v61_v16 }
  0xa3   :  { %13975 = vst [vmem:[#allocation16_spill] sm:$0xff] %v9044_v39 }
  0xa4   :  { %13976 = vst [vmem:[#allocation17_spill] sm:$0xff] %v9046_v40 }
  0xa5   :  { %13977 = vst [vmem:[#allocation18_spill] sm:$0xff] %v9048_v41 }
  0xa8   :  { %v8964_v50 = vpop.f32.mrf.mxu2  ;;  %v8966_v51 = vpop.f32.mrf.mxu3 }
  0xa9   :  { %v8968_v52 = vpop.f32.mrf.mxu0  ;;  %v8970_v53 = vpop.f32.mrf.mxu1  ;;  %v9052_v43 = vadd.f32 %v8964_v50, %v61_v16 }
  0xaa   :  { %v9062_v47 = vadd.f32 %v8970_v53, %v221_v9 }
  0xab   :  { %13978 = vst [vmem:[#allocation19_spill] sm:$0xff] %v9052_v43 }
  0xac   :  { %13981 = vst [vmem:[#allocation22_spill] sm:$0xff] %v9062_v47 }
  0xb0   :  { %v340_v55 = vpop.f32.mrf.mxu2  ;;  %v8975_v56 = vpop.f32.mrf.mxu3 }
  0xb1   :  { %v8977_v57 = vpop.f32.mrf.mxu0  ;;  %v8979_v58 = vpop.f32.mrf.mxu1  ;;  %v9064_v48 = vadd.f32 %v340_v55, %v221_v9 }
  0xb2   :  { %v9072_v50 = vadd.f32 %v8977_v57, %v8997_v3  ;;  %v9081_v55 = vadd.f32 %v8979_v58, %v8997_v3 }
  0xb3   :  { %13982 = vst [vmem:[#allocation23_spill] sm:$0xff] %v9064_v48 }
  0xb4   :  { %13984 = vst [vmem:[#allocation25_spill] sm:$0xff] %v9072_v50 }
  0xb5   :  { %13985 = vst [vmem:[#allocation26_spill] sm:$0xff] %v9081_v55 }
  0xb8   :  { %v8981_v59 = vpop.f32.mrf.mxu2  ;;  %v8983_v60 = vpop.f32.mrf.mxu3 }
  0xb9   :  { %v8985_v61 = vpop.f32.mrf.mxu0  ;;  %v8987_v62 = vpop.f32.mrf.mxu1 }
  0xba   :  { %v9096_v58 = vadd.f32 %v8985_v61, %v9005_v14 }
  0xbc   :  { %13988 = vst [vmem:[#allocation29_spill] sm:$0xff] %v9096_v58 }
  0xc0   :  { %v8989_v63 = vpop.f32.mrf.mxu2  ;;  %v8991_v0 = vpop.f32.mrf.mxu3 }
  0xc1   :  { %v8993_v1 = vpop.f32.mrf.mxu0  ;;  %v8995_v2 = vpop.f32.mrf.mxu1 }
  0xc8   :  { %v8999_v4 = vpop.f32.mrf.mxu2  ;;  %v9001_v5 = vpop.f32.mrf.mxu3 }
  0xc9   :  { %v419_v6 = vpop.f32.mrf.mxu0  ;;  %v448_v7 = vpop.f32.mrf.mxu1 }
  0xca   :  { %v420_v22 = vadd.f32 %v419_v6, %v9011_v19  ;;  %v449_v26 = vadd.f32 %v448_v7, %v9014_v23  ;;  %v9037_v6 = vadd.f32 %v117_v44, %v56_v35  ;;  %v9039_v7 = vadd.f32 %v146_v45, %v56_v35 }
  0xcb   :  { %v9055_v44 = vadd.f32 %v8966_v51, %v61_v16  ;;  %v9058_v45 = vadd.f32 %v8968_v52, %v221_v9  ;;  %v9090_v16 = vadd.f32 %v8983_v60, %v8997_v3 }
  0xcc   :  { %v1062_v25 = vmul.f32 0.5, %v420_v22  ;;  %v1063_v54 = vmul.f32 0.5, %v449_v26  ;;  %13972 = vst [vmem:[#allocation13_spill] sm:$0xff] %v9037_v6  ;;  %v9041_v22 = vadd.f32 %v175_v46, %v56_v35 }
  0xcd   :  { %13973 = vst [vmem:[#allocation14_spill] sm:$0xff] %v9039_v7 }
  0xce   :  { %7647 = vtanh.f32 %v1062_v25  ;;  %13974 = vst [vmem:[#allocation15_spill] sm:$0xff] %v9041_v22 }
  0xcf   :  { %13979 = vst [vmem:[#allocation20_spill] sm:$0xff] %v9055_v44  ;;  %7649 = vtanh.f32 %v1063_v54 }
  0xd0   :  { %v477_v10 = vpop.f32.mrf.mxu2  ;;  %v506_v11 = vpop.f32.mrf.mxu3  ;;  %13980 = vst [vmem:[#allocation21_spill] sm:$0xff] %v9058_v45 }
  0xd1   :  { %v422_v12 = vpop.f32.mrf.mxu0  ;;  %v451_v13 = vpop.f32.mrf.mxu1  ;;  %v478_v38 = vadd.f32 %v477_v10, %v9025_v31  ;;  %v507_v42 = vadd.f32 %v506_v11, %v9027_v32  ;;  %v9068_v10 = vadd.f32 %v8975_v56, %v221_v9  ;;  %v9085_v56 = vadd.f32 %v8981_v59, %v8997_v3  ;;  %13987 = vst [vmem:[#allocation28_spill] sm:$0xff] %v9090_v16 }
  0xd2   :  { %v423_v46 = vadd.f32 %v422_v12, %v9029_v33  ;;  %v452_v49 = vadd.f32 %v451_v13, %v9031_v34  ;;  %v9100_v59 = vadd.f32 %v8987_v62, %v9005_v14  ;;  %v9114_v62 = vadd.f32 %v8991_v0, %v9005_v14 }
  0xd3   :  { %13983 = vst [vmem:[#allocation24_spill] sm:$0xff] %v9068_v10  ;;  %v1064_v51 = vmul.f32 0.5, %v478_v38  ;;  %v1065_v9 = vmul.f32 0.5, %v507_v42 }
  0xd4   :  { %v7648_v53 = vpop.eup %7647  ;;  %13986 = vst [vmem:[#allocation27_spill] sm:$0xff] %v9085_v56  ;;  %v1067_v26 = vmul.f32 0.5, %v452_v49  ;;  %v9126_v49 = vadd.f32 %v8999_v4, %v9003_v8 }
  0xd5   :  { %13989 = vst [vmem:[#allocation30_spill] sm:$0xff] %v9100_v59  ;;  %v1094_v60 = vadd.f32 1.0, %v7648_v53  ;;  %7651 = vtanh.f32 %v1064_v51  ;;  %v7650_v54 = vpop.eup %7649 }
  0xd6   :  { %7653 = vtanh.f32 %v1065_v9  ;;  %13991 = vst [vmem:[#allocation32_spill] sm:$0xff] %v9114_v62  ;;  %v1095_v51 = vadd.f32 1.0, %v7650_v54 }
  0xd7   :  { %13994 = vst [vmem:[#allocation35_spill] sm:$0xff] %v9126_v49 }
  0xd8   :  { %v9007_v17 = vpop.f32.mrf.mxu2  ;;  %v9009_v18 = vpop.f32.mrf.mxu3 }
  0xd9   :  { %v425_v20 = vpop.f32.mrf.mxu0  ;;  %v454_v21 = vpop.f32.mrf.mxu1  ;;  %v481_v61 = vadd.f32 %v9007_v17, %v9033_v36  ;;  %v9130_v17 = vadd.f32 %v9001_v5, %v9003_v8 }
  0xda   :  { %v426_v52 = vadd.f32 %v425_v20, %v9037_v6  ;;  %v455_v57 = vadd.f32 %v454_v21, %v9039_v7  ;;  %v1066_v20 = vmul.f32 0.5, %v423_v46  ;;  %v9104_v21 = vadd.f32 %v8989_v63, %v9005_v14 }
  0xdb   :  { %v9118_v63 = vadd.f32 %v8993_v1, %v9003_v8  ;;  %v9122_v46 = vadd.f32 %v8995_v2, %v9003_v8  ;;  %13995 = vst [vmem:[#allocation36_spill] sm:$0xff] %v9130_v17  ;;  %v1110_v14 = vmul.f32 0.5, %v1094_v60  ;;  %v510_v1 = vadd.f32 %v9009_v18, %v9035_v37  ;;  %v7652_v5 = vpop.eup %7651 }
  0xdc   :  { %13990 = vst [vmem:[#allocation31_spill] sm:$0xff] %v9104_v21  ;;  %v1070_v3 = vmul.f32 0.5, %v426_v52  ;;  %v1071_v38 = vmul.f32 0.5, %v455_v57  ;;  %7655 = vtanh.f32 %v1066_v20  ;;  %v1068_v53 = vmul.f32 0.5, %v481_v61 }
  0xdd   :  { %13992 = vst [vmem:[#allocation33_spill] sm:$0xff] %v9118_v63  ;;  %7657 = vtanh.f32 %v1067_v26  ;;  %v1111_v61 = vmul.f32 0.5, %v1095_v51 }
  0xde   :  { %13993 = vst [vmem:[#allocation34_spill] sm:$0xff] %v9122_v46  ;;  %7659 = vtanh.f32 %v1070_v3 }
  0xdf   :  { %7661 = vtanh.f32 %v1071_v38  ;;  %v1069_v38 = vmul.f32 0.5, %v510_v1  ;;  %v9157_v1 = vmul.f32 0.125, %v1110_v14 }
  0xe0   :  { %v9017_v27 = vpop.f32.mrf.mxu2  ;;  %v9019_v28 = vpop.f32.mrf.mxu3 }
  0xe1   :  { %v9021_v29 = vpop.f32.mrf.mxu0  ;;  %v9023_v30 = vpop.f32.mrf.mxu1  ;;  %v484_v8 = vadd.f32 %v9017_v27, %v9041_v22 }
  0xe8   :  { %v9075_v11 = vpop.f32.mrf.mxu2  ;;  %v9077_v12 = vpop.f32.mrf.mxu3 }
  0xe9   :  { %v547_v13 = vpop.f32.mrf.mxu0  ;;  %v576_v15 = vpop.f32.mrf.mxu1 }
  0xea   :  { %v548_v24 = vadd.f32 %v547_v13, %v9058_v45  ;;  %v577_v25 = vadd.f32 %v576_v15, %v9062_v47 }
  0xec   :  { %v9106_v35 = vclamps-f32 %v548_v24, 50.0  ;;  %v9110_v42 = vclamps-f32 %v577_v25, 50.0  ;;  %v9141_v24 = vpop.eup %7653  ;;  %v513_v25 = vadd.f32 %v9019_v28, %v9044_v39  ;;  %v9159_v39 = vmul.f32 0.125, %v1111_v61 }
  0xed   :  { %v7656_v54 = vpop.eup %7655  ;;  %v1096_v61 = vadd.f32 1.0, %v7652_v5 }
  0xee   :  { %v726_v0 = vand.u32 2147483647, %v9106_v35  ;;  %v727_v4 = vand.u32 2147483647, %v9110_v42  ;;  %vm694_vm5 = vcmp.ne.f32.partialorder %v9106_v35, %v9106_v35  ;;  %vm695_vm7 = vcmp.ne.f32.partialorder %v9110_v42, %v9110_v42 }
  0xf0   :  { %v605_v2 = vpop.f32.mrf.mxu2  ;;  %v634_v52 = vpop.f32.mrf.mxu3  ;;  %v742_v9 = vsub.f32 0.0, %v726_v0  ;;  %v743_v60 = vsub.f32 0.0, %v727_v4 }
  0xf1   :  { %v550_v57 = vpop.f32.mrf.mxu0  ;;  %v579_v13 = vpop.f32.mrf.mxu1  ;;  %v606_v15 = vadd.f32 %v605_v2, %v9064_v48  ;;  %v635_v20 = vadd.f32 %v634_v52, %v9068_v10  ;;  %v429_v52 = vadd.f32 %v9021_v29, %v9046_v40 }
  0xf2   :  { %v551_v18 = vadd.f32 %v550_v57, %v9072_v50  ;;  %v758_v26 = vmul.f32 1.442695, %v742_v9  ;;  %v580_v3 = vadd.f32 %v579_v13, %v9081_v55  ;;  %v7658_v2 = vpop.eup %7657  ;;  %v760_v57 = vmul.f32 1.442695, %v743_v60 }
  0xf3   :  { %v9146_v0 = vclamps-f32 %v606_v15, 50.0  ;;  %v9148_v27 = vclamps-f32 %v635_v20, 50.0  ;;  %v7660_v28 = vpop.eup %7659  ;;  %v1072_v9 = vmul.f32 0.5, %v484_v8  ;;  %v1098_v15 = vadd.f32 1.0, %v7656_v54 }
  0xf4   :  { %7663 = vpow2.f32 %v758_v26  ;;  %v9152_v22 = vclamps-f32 %v551_v18, 50.0  ;;  %v9155_v13 = vclamps-f32 %v580_v3, 50.0  ;;  %v7662_v51 = vpop.eup %7661  ;;  %v1073_v20 = vmul.f32 0.5, %v513_v25 }
  0xf5   :  { %7665 = vtanh.f32 %v1068_v53  ;;  %v728_v4 = vand.u32 2147483647, %v9146_v0  ;;  %v729_v18 = vand.u32 2147483647, %v9148_v27  ;;  %v1099_v26 = vadd.f32 1.0, %v7658_v2 }
  0xf6   :  { %7667 = vpow2.f32 %v760_v57  ;;  %v1074_v60 = vmul.f32 0.5, %v429_v52  ;;  %v458_v53 = vadd.f32 %v9023_v30, %v9048_v41  ;;  %v730_v8 = vand.u32 2147483647, %v9152_v22 }
  0xf7   :  { %7669 = vtanh.f32 %v1069_v38  ;;  %v744_v29 = vsub.f32 0.0, %v728_v4  ;;  %v745_v14 = vsub.f32 0.0, %v729_v18  ;;  %v731_v54 = vand.u32 2147483647, %v9155_v13 }
  0xf8   :  { %7671 = vtanh.f32 %v1072_v9  ;;  %v1114_v57 = vmul.f32 0.5, %v1098_v15  ;;  %v746_v38 = vsub.f32 0.0, %v730_v8  ;;  %v1102_v2 = vadd.f32 1.0, %v7660_v28  ;;  %v608_v30 = vpop.f32.mrf.mxu2 }
  0xf9   :  { %v762_v3 = vmul.f32 1.442695, %v744_v29  ;;  %7673 = vtanh.f32 %v1073_v20  ;;  %v1103_v52 = vadd.f32 1.0, %v7662_v51  ;;  %v764_v9 = vmul.f32 1.442695, %v745_v14 }
  0xfa   :  { %v9166_v25 = vpop.eup %7663  ;;  %v766_v29 = vmul.f32 1.442695, %v746_v38  ;;  %v747_v18 = vsub.f32 0.0, %v731_v54  ;;  %v1115_v5 = vmul.f32 0.5, %v1099_v26  ;;  %v1075_v15 = vmul.f32 0.5, %v458_v53  ;;  %v637_v54 = vpop.f32.mrf.mxu3 }
  0xfb   :  { %v9168_v4 = vpop.eup %7665  ;;  %v790_v10 = vadd.f32 1.0, %v9166_v25  ;;  %7675 = vpow2.f32 %v762_v3  ;;  %v487_v28 = vadd.f32 %v9075_v11, %v9052_v43  ;;  %v609_v8 = vadd.f32 %v608_v30, %v9085_v56 }
  0xfc   :  { %v9171_v37 = vpop.eup %7667  ;;  %7677 = vtanh.f32 %v1074_v60  ;;  %v768_v51 = vmul.f32 1.442695, %v747_v18  ;;  %v1118_v36 = vmul.f32 0.5, %v1102_v2  ;;  %v1119_v60 = vmul.f32 0.5, %v1103_v52 }
  0xfd   :  { %v9173_v48 = vpop.eup %7669  ;;  %7679 = vlog2.f32 %v790_v10  ;;  %v799_v20 = vadd.f32 1.0, %v9171_v37  ;;  %v793_v14 = vmul.f32 -0.5, %v9166_v25  ;;  %v9182_v26 = vmul.f32 0.5, %v1096_v61 }
  0xfe   :  { %7681 = vpow2.f32 %v764_v9  ;;  %v7672_v3 = vpop.eup %7671  ;;  %v9185_v10 = vadd.f32 1.0, %v9141_v24  ;;  %v516_v11 = vadd.f32 %v9077_v12, %v9055_v44  ;;  %v9191_v30 = vmul.f32 0.125, %v1114_v57 }
  0xff   :  { %7683 = vlog2.f32 %v799_v20  ;;  %v9180_v38 = vpop.eup %7673  ;;  %13996 = vst [vmem:[#allocation37_spill] sm:$0xff] %v9182_v26  ;;  %v9193_v2 = vmul.f32 0.125, %v1115_v5  ;;  %v802_v52 = vmul.f32 -0.5, %v9171_v37  ;;  %v1076_v18 = vmul.f32 0.5, %v487_v28 }
 0x100   :  { %13997 = vst [vmem:[#allocation38_spill] sm:$0xff] %v9185_v10  ;;  %7685 = vpow2.f32 %v766_v29  ;;  %v9197_v20 = vclamps-f32 %v609_v8, 50.0  ;;  %v638_v24 = vadd.f32 %v637_v54, %v9090_v16  ;;  %v9200_v12 = vmul.f32 0.125, %v1118_v36  ;;  %v553_v16 = vpop.f32.mrf.mxu0 }
 0x101   :  { %v9189_v53 = vpop.eup %7675  ;;  %7687 = vpow2.f32 %v768_v51  ;;  %v9202_v29 = vmul.f32 0.125, %v1119_v60  ;;  %v794_v57 = vadd.f32 1.0, %v793_v14  ;;  %v1077_v44 = vmul.f32 0.5, %v516_v11 }
 0x102   :  { %v7678_v9 = vpop.eup %7677  ;;  %v808_v61 = vadd.f32 1.0, %v9189_v53  ;;  %7689 = vtanh.f32 %v1075_v15  ;;  %v796_v51 = vand.u32 2147483647, %v9166_v25  ;;  %v805_v28 = vand.u32 2147483647, %v9171_v37  ;;  %v640_v45 = vpop.f32.mrf.mxu3 }
 0x103   :  { %v7680_v56 = vpop.eup %7679  ;;  %v803_v32 = vadd.f32 1.0, %v802_v52  ;;  %v811_v54 = vmul.f32 -0.5, %v9189_v53  ;;  %v9212_v15 = vadd.f32 1.0, %v7672_v3  ;;  %v732_v14 = vand.u32 2147483647, %v9197_v20 }
 0x104   :  { %v9204_v5 = vpop.eup %7681  ;;  %7691 = vlog2.f32 %v808_v61  ;;  %v792_v8 = vmul.f32 0.6931472, %v7680_v56  ;;  %v9215_v11 = vclamps-f32 %v638_v24, 50.0  ;;  %v1106_v61 = vadd.f32 1.0, %v7678_v9 }
 0x105   :  { %v7684_v43 = vpop.eup %7683  ;;  %v817_v36 = vadd.f32 1.0, %v9204_v5  ;;  %7693 = vtanh.f32 %v1076_v18  ;;  %v678_v56 = vmax.f32 %v9106_v35, 0.0  ;;  %v795_v52 = vmul.f32 %v9166_v25, %v794_v57 }
 0x106   :  { %v9210_v60 = vpop.eup %7685  ;;  %v801_v50 = vmul.f32 0.6931472, %v7684_v43  ;;  %vm9221_vm3 = vcmp.lt.f32.partialorder %v796_v51, 0.0004427343  ;;  %v554_v18 = vadd.f32 %v553_v16, %v9096_v58  ;;  %v804_v9 = vmul.f32 %v9171_v37, %v803_v32 }
 0x107   :  { %v9217_v55 = vpop.eup %7687  ;;  %7695 = vlog2.f32 %v817_v36  ;;  %v826_v3 = vadd.f32 1.0, %v9210_v60  ;;  %v798_v24 = vsel %vm9221_vm3, %v795_v52, %v792_v8  ;;  %vm9230_vm4 = vcmp.lt.f32.partialorder %v805_v28, 0.0004427343 }
 0x108   :  { %v7690_v40 = vpop.eup %7689  ;;  %v812_v43 = vadd.f32 1.0, %v811_v54  ;;  %v814_v57 = vand.u32 2147483647, %v9189_v53  ;;  %v835_v51 = vadd.f32 1.0, %v9217_v55  ;;  %v748_v36 = vsub.f32 0.0, %v732_v14 }
 0x109   :  { %v733_v47 = vand.u32 2147483647, %v9215_v11  ;;  %v807_v16 = vsel %vm9230_vm4, %v804_v9, %v801_v50  ;;  %v820_v8 = vmul.f32 -0.5, %v9204_v5  ;;  %7697 = vlog2.f32 %v826_v3 }
 0x10a   :  { %v7692_v25 = vpop.eup %7691  ;;  %v1107_v37 = vadd.f32 1.0, %v7690_v40  ;;  %7699 = vtanh.f32 %v1077_v44  ;;  %v934_v28 = vadd.f32 %v798_v24, %v678_v56  ;;  %v679_v54 = vmax.f32 %v9110_v42, 0.0 }
 0x10b   :  { %v810_v41 = vmul.f32 0.6931472, %v7692_v25  ;;  %v9240_v32 = vpop.eup %7693  ;;  %v813_v14 = vmul.f32 %v9189_v53, %v812_v43  ;;  %v829_v52 = vmul.f32 -0.5, %v9210_v60  ;;  %v9247_v31 = vclamps-f32 %v554_v18, 50.0 }
 0x10c   :  { %v935_v9 = vadd.f32 %v807_v16, %v679_v54  ;;  %vm9249_vm6 = vcmp.lt.f32.partialorder %v814_v57, 0.0004427343  ;;  %7701 = vlog2.f32 %v835_v51  ;;  %v770_v40 = vmul.f32 1.442695, %v748_v36  ;;  %v582_v54 = vpop.f32.mrf.mxu1 }
 0x10d   :  { %v7696_v50 = vpop.eup %7695  ;;  %v9253_v44 = vmul.f32 0.5, %v1106_v61  ;;  %v816_v56 = vsel %vm9249_vm6, %v813_v14, %v810_v41  ;;  %v821_v24 = vadd.f32 1.0, %v820_v8  ;;  %v749_v25 = vsub.f32 0.0, %v733_v47 }
 0x10e   :  { %v950_v53 = vsel %vm694_vm5, %v9106_v35, %v934_v28  ;;  %v680_v18 = vmax.f32 %v9146_v0, 0.0  ;;  %v823_v43 = vand.u32 2147483647, %v9204_v5  ;;  %v9262_v16 = vmul.f32 0.5, %v1107_v37 }
 0x10f   :  { %v7698_v57 = vpop.eup %7697  ;;  %v819_v51 = vmul.f32 0.6931472, %v7696_v50  ;;  %v830_v61 = vadd.f32 1.0, %v829_v52  ;;  %v838_v36 = vmul.f32 -0.5, %v9217_v55  ;;  %v951_v47 = vsel %vm695_vm7, %v9110_v42, %v935_v9 }
 0x110   :  { %v9265_v41 = vpop.eup %7699  ;;  %v936_v35 = vadd.f32 %v816_v56, %v680_v18  ;;  %7703 = vpow2.f32 %v770_v40  ;;  %v734_v8 = vand.u32 2147483647, %v9247_v31  ;;  %v966_v28 = vmul.f32 9.9, %v950_v53 }
 0x111   :  { %v822_v14 = vmul.f32 %v9204_v5, %v821_v24  ;;  %v832_v3 = vand.u32 2147483647, %v9210_v60  ;;  %v772_v37 = vmul.f32 1.442695, %v749_v25  ;;  %vm696_vm8 = vcmp.ne.f32.partialorder %v9146_v0, %v9146_v0  ;;  %v611_v24 = vpop.f32.mrf.mxu2 }
 0x112   :  { %v7702_v58 = vpop.eup %7701  ;;  %vm9273_vm9 = vcmp.lt.f32.partialorder %v823_v43, 0.0004427343  ;;  %v828_v50 = vmul.f32 0.6931472, %v7698_v57  ;;  %v583_v42 = vadd.f32 %v582_v54, %v9100_v59  ;;  %v967_v9 = vmul.f32 9.9, %v951_v47 }
 0x113   :  { %v681_v40 = vmax.f32 %v9148_v27, 0.0  ;;  %v825_v5 = vsel %vm9273_vm9, %v822_v14, %v819_v51  ;;  %v839_v56 = vadd.f32 1.0, %v838_v36  ;;  %v952_v25 = vsel %vm696_vm8, %v9146_v0, %v936_v35 }
 0x114   :  { %v831_v53 = vmul.f32 %v9210_v60, %v830_v61  ;;  %v841_v18 = vand.u32 2147483647, %v9217_v55  ;;  %v750_v43 = vsub.f32 0.0, %v734_v8  ;;  %v9284_v7 = vadd.f32 0.1, %v966_v28 }
 0x115   :  { %vm9286_vm10 = vcmp.lt.f32.partialorder %v832_v3, 0.0004427343  ;;  %v837_v54 = vmul.f32 0.6931472, %v7702_v58  ;;  %7705 = vpow2.f32 %v772_v37  ;;  %v937_v51 = vadd.f32 %v825_v5, %v681_v40 }
 0x116   :  { %v9290_v47 = vpop.eup %7703  ;;  %v834_v0 = vsel %vm9286_vm10, %v831_v53, %v828_v50  ;;  %v9294_v36 = vclamps-f32 %v583_v42, 50.0  ;;  %v612_v60 = vadd.f32 %v611_v24, %v9104_v21  ;;  %v968_v61 = vmul.f32 9.9, %v952_v25  ;;  %v556_v53 = vpop.f32.mrf.mxu0 }
 0x117   :  { %v682_v35 = vmax.f32 %v9152_v22, 0.0  ;;  %v840_v8 = vmul.f32 %v9217_v55, %v839_v56  ;;  %v641_v28 = vadd.f32 %v640_v45, %v9114_v62  ;;  %v9300_v14 = vadd.f32 0.1, %v967_v9 }
 0x118   :  { %vm697_vm11 = vcmp.ne.f32.partialorder %v9148_v27, %v9148_v27  ;;  %vm9304_vm12 = vcmp.lt.f32.partialorder %v841_v18, 0.0004427343  ;;  %v774_v3 = vmul.f32 1.442695, %v750_v43  ;;  %v683_v52 = vmax.f32 %v9155_v13, 0.0 }
 0x119   :  { %v938_v37 = vadd.f32 %v834_v0, %v682_v35  ;;  %v843_v50 = vsel %vm9304_vm12, %v840_v8, %v837_v54  ;;  %v844_v55 = vadd.f32 1.0, %v9290_v47  ;;  %7707 = vrcp.f32 %v9284_v7  ;;  %v585_v8 = vpop.f32.mrf.mxu1 }
 0x11a   :  { %v953_v45 = vsel %vm697_vm11, %v9148_v27, %v937_v51  ;;  %v735_v42 = vand.u32 2147483647, %v9294_v36  ;;  %v9315_v9 = vclamps-f32 %v612_v60, 50.0  ;;  %v9319_v5 = vadd.f32 0.1, %v968_v61 }
 0x11b   :  { %v9317_v40 = vpop.eup %7705  ;;  %vm698_vm13 = vcmp.ne.f32.partialorder %v9152_v22, %v9152_v22  ;;  %7709 = vpow2.f32 %v774_v3  ;;  %v9323_v56 = vclamps-f32 %v641_v28, 50.0  ;;  %v939_v24 = vadd.f32 %v843_v50, %v683_v52 }
 0x11c   :  { %7711 = vrcp.f32 %v9300_v14  ;;  %v751_v25 = vsub.f32 0.0, %v735_v42  ;;  %v736_v27 = vand.u32 2147483647, %v9315_v9  ;;  %v969_v18 = vmul.f32 9.9, %v953_v45 }
 0x11d   :  { %v954_v43 = vsel %vm698_vm13, %v9152_v22, %v938_v37  ;;  %7713 = vlog2.f32 %v844_v55  ;;  %v847_v57 = vmul.f32 -0.5, %v9290_v47  ;;  %v853_v54 = vadd.f32 1.0, %v9317_v40 }
 0x11e   :  { %v776_v51 = vmul.f32 1.442695, %v751_v25  ;;  %v752_v0 = vsub.f32 0.0, %v736_v27  ;;  %v737_v60 = vand.u32 2147483647, %v9323_v56  ;;  %7715 = vrcp.f32 %v9319_v5 }
 0x11f   :  { %vm699_vm14 = vcmp.ne.f32.partialorder %v9155_v13, %v9155_v13  ;;  %v557_v35 = vadd.f32 %v556_v53, %v9118_v63  ;;  %v9336_v22 = vpop.eup %7707  ;;  %v850_v58 = vand.u32 2147483647, %v9290_v47  ;;  %v9340_v52 = vadd.f32 0.1, %v969_v18  ;;  %v614_v18 = vpop.f32.mrf.mxu2 }
 0x120   :  { %v955_v28 = vsel %vm699_vm14, %v9155_v13, %v939_v24  ;;  %7717 = vpow2.f32 %v776_v51  ;;  %v778_v3 = vmul.f32 1.442695, %v752_v0  ;;  %v970_v50 = vmul.f32 9.9, %v954_v43 }
 0x121   :  { %v7710_v37 = vpop.eup %7709  ;;  %v848_v55 = vadd.f32 1.0, %v847_v57  ;;  %v753_v45 = vsub.f32 0.0, %v737_v60  ;;  %7719 = vlog2.f32 %v853_v54  ;;  %v586_v53 = vadd.f32 %v585_v8, %v9122_v46 }
 0x122   :  { %v9342_v42 = vpop.eup %7711  ;;  %v862_v25 = vadd.f32 1.0, %v7710_v37  ;;  %v865_v27 = vmul.f32 -0.5, %v7710_v37  ;;  %v971_v62 = vmul.f32 9.9, %v955_v28  ;;  %7721 = vpow2.f32 %v778_v3 }
 0x123   :  { %v7714_v61 = vpop.eup %7713  ;;  %v780_v13 = vmul.f32 1.442695, %v753_v45  ;;  %v9345_v24 = vclamps-f32 %v557_v35, 50.0  ;;  %vm9347_vm15 = vcmp.lt.f32.partialorder %v850_v58, 0.0004427343  ;;  %v686_v43 = vmax.f32 %v9247_v31, 0.0 }
 0x124   :  { %7723 = vlog2.f32 %v862_v25  ;;  %v9353_v57 = vpop.eup %7715  ;;  %v9356_v54 = vadd.f32 0.1, %v970_v50  ;;  %v856_v0 = vmul.f32 -0.5, %v9317_v40  ;;  %v859_v60 = vand.u32 2147483647, %v9317_v40 }
 0x125   :  { %7725 = vrcp.f32 %v9340_v52  ;;  %v866_v8 = vadd.f32 1.0, %v865_v27  ;;  %v738_v28 = vand.u32 2147483647, %v9345_v24  ;;  %v9361_v58 = vclamps-f32 %v586_v53, 50.0 }
 0x126   :  { %v7718_v35 = vpop.eup %7717  ;;  %7727 = vpow2.f32 %v780_v13  ;;  %v9363_v3 = vadd.f32 0.1, %v971_v62  ;;  %v846_v45 = vmul.f32 0.6931472, %v7714_v61  ;;  %v849_v25 = vmul.f32 %v9290_v47, %v848_v55 }
 0x127   :  { %vm702_vm0 = vcmp.ne.f32.partialorder %v9247_v31, %v9247_v31  ;;  %v871_v50 = vadd.f32 1.0, %v7718_v35  ;;  %v7720_v21 = vpop.eup %7719  ;;  %v868_v46 = vand.u32 2147483647, %v7710_v37  ;;  %v687_v63 = vmax.f32 %v9294_v36, 0.0 }
 0x128   :  { %v754_v27 = vsub.f32 0.0, %v738_v28  ;;  %v739_v13 = vand.u32 2147483647, %v9361_v58  ;;  %v7722_v59 = vpop.eup %7721  ;;  %7729 = vrcp.f32 %v9356_v54  ;;  %v857_v62 = vadd.f32 1.0, %v856_v0 }
 0x129   :  { %vm9371_vm1 = vcmp.lt.f32.partialorder %v859_v60, 0.0004427343  ;;  %v874_v47 = vmul.f32 -0.5, %v7718_v35  ;;  %v867_v53 = vmul.f32 %v7710_v37, %v866_v8  ;;  %7731 = vlog2.f32 %v871_v50 }
 0x12a   :  { %v7724_v55 = vpop.eup %7723  ;;  %v880_v6 = vadd.f32 1.0, %v7722_v59  ;;  %v615_v34 = vadd.f32 %v614_v18, %v9126_v49  ;;  %v883_v23 = vmul.f32 -0.5, %v7722_v59  ;;  %v782_v19 = vmul.f32 1.442695, %v754_v27 }
 0x12b   :  { %v9376_v33 = vpop.eup %7725  ;;  %v864_v28 = vmul.f32 0.6931472, %v7724_v55  ;;  %v755_v10 = vsub.f32 0.0, %v739_v13  ;;  %vm700_vm3 = vcmp.ne.f32.partialorder %v9197_v20, %v9197_v20  ;;  %v852_v0 = vsel %vm9347_vm15, %v849_v25, %v846_v45 }
 0x12c   :  { %v9378_v26 = vpop.eup %7727  ;;  %v855_v60 = vmul.f32 0.6931472, %v7720_v21  ;;  %vm869_vm4 = vcmp.lt.f32.partialorder %v868_v46, 0.0004427343  ;;  %7733 = vlog2.f32 %v880_v6  ;;  %v875_v8 = vadd.f32 1.0, %v874_v47 }
 0x12d   :  { %v870_v37 = vsel %vm869_vm4, %v867_v53, %v864_v28  ;;  %v877_v18 = vand.u32 2147483647, %v7718_v35  ;;  %v889_v50 = vadd.f32 1.0, %v9378_v26  ;;  %7735 = vpow2.f32 %v782_v19  ;;  %v643_v53 = vpop.f32.mrf.mxu3 }
 0x12e   :  { %v942_v55 = vadd.f32 %v870_v37, %v686_v43  ;;  %v784_v27 = vmul.f32 1.442695, %v755_v10  ;;  %v9385_v13 = vclamps-f32 %v615_v34, 50.0  ;;  %v9387_v49 = vpop.eup %7729  ;;  %vm701_vm5 = vcmp.ne.f32.partialorder %v9215_v11, %v9215_v11 }
 0x12f   :  { %v858_v51 = vmul.f32 %v9317_v40, %v857_v62  ;;  %vm703_vm6 = vcmp.ne.f32.partialorder %v9294_v36, %v9294_v36  ;;  %v884_v6 = vadd.f32 1.0, %v883_v23  ;;  %7737 = vlog2.f32 %v889_v50  ;;  %v7732_v21 = vpop.eup %7731 }
 0x130   :  { %v14014_v46 = vmax.f32 %v9197_v20, 0.0  ;;  %v958_v19 = vsel %vm702_vm0, %v9247_v31, %v942_v55  ;;  %v886_v34 = vand.u32 2147483647, %v7722_v59  ;;  %7739 = vpow2.f32 %v784_v27 }
 0x131   :  { %v861_v10 = vsel %vm9371_vm1, %v858_v51, %v855_v60  ;;  %v974_v40 = vmul.f32 9.9, %v958_v19  ;;  %v873_v45 = vmul.f32 0.6931472, %v7732_v21  ;;  %v876_v25 = vmul.f32 %v7718_v35, %v875_v8 }
 0x132   :  { %v940_v43 = vadd.f32 %v852_v0, %v14014_v46  ;;  %v7734_v62 = vpop.eup %7733  ;;  %7741 = vrcp.f32 %v9363_v3  ;;  %vm878_vm7 = vcmp.lt.f32.partialorder %v877_v18, 0.0004427343  ;;  %v892_v23 = vmul.f32 -0.5, %v9378_v26 }
 0x133   :  { %v740_v47 = vand.u32 2147483647, %v9385_v13  ;;  %v990_v28 = vadd.f32 0.1, %v974_v40  ;;  %v879_v0 = vsel %vm878_vm7, %v876_v25, %v873_v45  ;;  %v882_v31 = vmul.f32 0.6931472, %v7734_v62  ;;  %v7736_v50 = vpop.eup %7735 }
 0x134   :  { %v885_v37 = vmul.f32 %v7722_v59, %v884_v6  ;;  %v14015_v61 = vmax.f32 %v9215_v11, 0.0  ;;  %v943_v55 = vadd.f32 %v879_v0, %v687_v63  ;;  %v688_v35 = vmax.f32 %v9315_v9, 0.0 }
 0x135   :  { %vm9408_vm8 = vcmp.lt.f32.partialorder %v886_v34, 0.0004427343  ;;  %v7738_v18 = vpop.eup %7737  ;;  %v956_v27 = vsel %vm700_vm3, %v9197_v20, %v940_v43  ;;  %v898_v51 = vadd.f32 1.0, %v7736_v50  ;;  %v644_v6 = vadd.f32 %v643_v53, %v9130_v17 }
 0x136   :  { %v941_v60 = vadd.f32 %v861_v10, %v14015_v61  ;;  %v888_v59 = vsel %vm9408_vm8, %v885_v37, %v882_v31  ;;  %v7740_v21 = vpop.eup %7739  ;;  %7743 = vrcp.f32 %v990_v28  ;;  %v959_v63 = vsel %vm703_vm6, %v9294_v36, %v943_v55 }
 0x137   :  { %v901_v46 = vmul.f32 -0.5, %v7736_v50  ;;  %v756_v19 = vsub.f32 0.0, %v740_v47  ;;  %v975_v34 = vmul.f32 9.9, %v959_v63  ;;  %v893_v10 = vadd.f32 1.0, %v892_v23 }
 0x138   :  { %7745 = vlog2.f32 %v898_v51  ;;  %v907_v40 = vadd.f32 1.0, %v7740_v21  ;;  %v9423_v20 = vpop.eup %7741  ;;  %v972_v43 = vmul.f32 9.9, %v956_v27  ;;  %v957_v45 = vsel %vm701_vm5, %v9215_v11, %v941_v60 }
 0x139   :  { %v944_v25 = vadd.f32 %v888_v59, %v688_v35  ;;  %v895_v62 = vand.u32 2147483647, %v9378_v26  ;;  %v991_v53 = vadd.f32 0.1, %v975_v34  ;;  %v891_v0 = vmul.f32 0.6931472, %v7738_v18 }
 0x13a   :  { %v910_v36 = vmul.f32 -0.5, %v7740_v21  ;;  %v9430_v31 = vclamps-f32 %v644_v6, 50.0  ;;  %vm704_vm9 = vcmp.ne.f32.partialorder %v9315_v9, %v9315_v9  ;;  %v902_v23 = vadd.f32 1.0, %v901_v46 }
 0x13b   :  { %7747 = vlog2.f32 %v907_v40  ;;  %v786_v47 = vmul.f32 1.442695, %v756_v19  ;;  %v973_v37 = vmul.f32 9.9, %v957_v45  ;;  %v689_v61 = vmax.f32 %v9323_v56, 0.0 }
 0x13c   :  { %v894_v55 = vmul.f32 %v9378_v26, %v893_v10  ;;  %v904_v11 = vand.u32 2147483647, %v7736_v50  ;;  %v9436_v60 = vpop.eup %7743  ;;  %v9440_v35 = vmul.f32 %v9387_v49, %v9356_v54  ;;  %v9442_v8 = vadd.f32 0.1, %v972_v43 }
 0x13d   :  { %v960_v18 = vsel %vm704_vm9, %v9315_v9, %v944_v25  ;;  %vm705_vm10 = vcmp.ne.f32.partialorder %v9323_v56, %v9323_v56  ;;  %vm9447_vm11 = vcmp.lt.f32.partialorder %v895_v62, 0.0004427343  ;;  %7749 = vrcp.f32 %v991_v53 }
 0x13e   :  { %v7746_v59 = vpop.eup %7745  ;;  %v897_v26 = vsel %vm9447_vm11, %v894_v55, %v891_v0  ;;  %v911_v51 = vadd.f32 1.0, %v910_v36  ;;  %v741_v54 = vand.u32 2147483647, %v9430_v31  ;;  %v903_v63 = vmul.f32 %v7736_v50, %v902_v23 }
 0x13f   :  { %v900_v6 = vmul.f32 0.6931472, %v7746_v59  ;;  %v913_v46 = vand.u32 2147483647, %v7740_v21  ;;  %7751 = vpow2.f32 %v786_v47  ;;  %v9454_v9 = vadd.f32 0.1, %v973_v37 }
 0x140   :  { %v690_v19 = vmax.f32 %v9345_v24, 0.0  ;;  %vm905_vm12 = vcmp.lt.f32.partialorder %v904_v11, 0.0004427343  ;;  %v757_v34 = vsub.f32 0.0, %v741_v54  ;;  %v1022_v40 = vmul.f32 %v9436_v60, %v990_v28 }
 0x141   :  { %v7748_v10 = vpop.eup %7747  ;;  %v976_v43 = vmul.f32 9.9, %v960_v18  ;;  %v945_v45 = vadd.f32 %v897_v26, %v689_v61  ;;  %v906_v25 = vsel %vm905_vm12, %v903_v63, %v900_v6  ;;  %v912_v36 = vmul.f32 %v7740_v21, %v911_v51 }
 0x142   :  { %v946_v62 = vadd.f32 %v906_v25, %v690_v19  ;;  %v909_v0 = vmul.f32 0.6931472, %v7748_v10  ;;  %v788_v55 = vmul.f32 1.442695, %v757_v34  ;;  %7753 = vrcp.f32 %v9442_v8 }
 0x143   :  { %vm706_vm13 = vcmp.ne.f32.partialorder %v9345_v24, %v9345_v24  ;;  %v691_v50 = vmax.f32 %v9361_v58, 0.0  ;;  %vm914_vm14 = vcmp.lt.f32.partialorder %v913_v46, 0.0004427343  ;;  %v7750_v23 = vpop.eup %7749  ;;  %v1019_v47 = vmul.f32 %v9423_v20, %v9363_v3 }
 0x144   :  { %v962_v28 = vsel %vm706_vm13, %v9345_v24, %v946_v62  ;;  %v915_v37 = vsel %vm914_vm14, %v912_v36, %v909_v0  ;;  %7755 = vpow2.f32 %v788_v55  ;;  %vm707_vm15 = vcmp.ne.f32.partialorder %v9361_v58, %v9361_v58 }
 0x145   :  { %v7752_v61 = vpop.eup %7751  ;;  %7757 = vrcp.f32 %v9454_v9  ;;  %v978_v21 = vmul.f32 9.9, %v962_v28  ;;  %v947_v11 = vadd.f32 %v915_v37, %v691_v50  ;;  %v9468_v18 = vadd.f32 0.1, %v976_v43 }
 0x146   :  { %v961_v27 = vsel %vm705_vm10, %v9323_v56, %v945_v45  ;;  %v916_v3 = vadd.f32 1.0, %v7752_v61  ;;  %v1038_v59 = vsub.f32 2.0, %v1022_v40  ;;  %v1023_v24 = vmul.f32 %v7750_v23, %v991_v53 }
 0x147   :  { %v994_v26 = vadd.f32 0.1, %v978_v21  ;;  %v963_v51 = vsel %vm707_vm15, %v9361_v58, %v947_v11  ;;  %v919_v54 = vmul.f32 -0.5, %v7752_v61  ;;  %v9476_v6 = vmul.f32 0.125, %v9253_v44 }
 0x148   :  { %v9479_v63 = vmul.f32 0.125, %v9262_v16  ;;  %v979_v46 = vmul.f32 9.9, %v963_v51  ;;  %7759 = vlog2.f32 %v916_v3  ;;  %v9481_v19 = vpop.eup %7753  ;;  %v1014_v56 = vmul.f32 %v9336_v22, %v9284_v7 }
 0x149   :  { %v1015_v53 = vmul.f32 %v9342_v42, %v9300_v14  ;;  %7761 = vrcp.f32 %v994_v26  ;;  %v1034_v58 = vsub.f32 2.0, %v9440_v35  ;;  %v977_v44 = vmul.f32 9.9, %v961_v27 }
 0x14a   :  { %v7756_v34 = vpop.eup %7755  ;;  %7763 = vrcp.f32 %v9468_v18  ;;  %v995_v10 = vadd.f32 0.1, %v979_v46  ;;  %v1035_v16 = vsub.f32 2.0, %v1019_v47  ;;  %v920_v43 = vadd.f32 1.0, %v919_v54 }
 0x14b   :  { %v9489_v40 = vpop.eup %7757  ;;  %v925_v45 = vadd.f32 1.0, %v7756_v34  ;;  %v1054_v25 = vmul.f32 %v9436_v60, %v1038_v59  ;;  %v1039_v62 = vsub.f32 2.0, %v1023_v24  ;;  %v9494_v7 = vmul.f32 %v9353_v57, %v9319_v5 }
 0x14c   :  { %7765 = vrcp.f32 %v995_v10  ;;  %v922_v14 = vand.u32 2147483647, %v7752_v61  ;;  %v928_v35 = vmul.f32 -0.5, %v7756_v34  ;;  %v9498_v0 = vmul.f32 %v9481_v19, %v9442_v8 }
 0x14d   :  { %v692_v36 = vmax.f32 %v9385_v13, 0.0  ;;  %vm708_vm0 = vcmp.ne.f32.partialorder %v9385_v13, %v9385_v13  ;;  %7767 = vlog2.f32 %v925_v45  ;;  %v993_v60 = vadd.f32 0.1, %v977_v44 }
 0x14e   :  { %v7760_v55 = vpop.eup %7759  ;;  %v1050_v50 = vmul.f32 %v9387_v49, %v1034_v58  ;;  %v1051_v5 = vmul.f32 %v9423_v20, %v1035_v16  ;;  %v1030_v47 = vsub.f32 2.0, %v1014_v56  ;;  %v921_v21 = vmul.f32 %v7752_v61, %v920_v43 }
 0x14f   :  { %v7762_v28 = vpop.eup %7761  ;;  %v918_v37 = vmul.f32 0.6931472, %v7760_v55  ;;  %v1166_v11 = vmul.f32 0.125, %v1054_v25  ;;  %v1055_v27 = vmul.f32 %v7750_v23, %v1039_v62  ;;  %vm923_vm1 = vcmp.lt.f32.partialorder %v922_v14, 0.0004427343 }
 0x150   :  { %v9505_v8 = vpop.eup %7763  ;;  %v1026_v3 = vmul.f32 %v7762_v28, %v994_v26  ;;  %v693_v59 = vmax.f32 %v9430_v31, 0.0  ;;  %v929_v24 = vadd.f32 1.0, %v928_v35  ;;  %vm709_vm3 = vcmp.ne.f32.partialorder %v9430_v31, %v9430_v31 }
 0x151   :  { %v924_v51 = vsel %vm923_vm1, %v921_v21, %v918_v37  ;;  %v931_v49 = vand.u32 2147483647, %v7756_v34  ;;  %v1031_v54 = vsub.f32 2.0, %v1015_v53  ;;  %7769 = vrcp.f32 %v993_v60 }
 0x152   :  { %v7766_v20 = vpop.eup %7765  ;;  %v948_v46 = vadd.f32 %v924_v51, %v692_v36  ;;  %v1042_v56 = vsub.f32 2.0, %v1026_v3  ;;  %v1046_v61 = vmul.f32 %v9336_v22, %v1030_v47  ;;  %v1182_v44 = vmul.f32 0.0, %v1166_v11 }
 0x153   :  { %v7768_v23 = vpop.eup %7767  ;;  %v1027_v58 = vmul.f32 %v7766_v20, %v995_v10  ;;  %v1167_v26 = vmul.f32 0.125, %v1055_v27  ;;  %v1162_v16 = vmul.f32 0.125, %v1050_v50  ;;  %v930_v25 = vmul.f32 %v7756_v34, %v929_v24 }
 0x154   :  { %v964_v43 = vsel %vm708_vm0, %v9385_v13, %v948_v46  ;;  %v927_v45 = vmul.f32 0.6931472, %v7768_v23  ;;  %v1058_v62 = vmul.f32 %v7762_v28, %v1042_v56  ;;  %vm932_vm4 = vcmp.lt.f32.partialorder %v931_v49, 0.0004427343 }
 0x155   :  { %v980_v53 = vmul.f32 9.9, %v964_v43  ;;  %v1043_v14 = vsub.f32 2.0, %v1027_v58  ;;  %v1047_v35 = vmul.f32 %v9342_v42, %v1031_v54  ;;  %v1024_v22 = vmul.f32 %v9505_v8, %v9468_v18 }
 0x156   :  { %v933_v10 = vsel %vm932_vm4, %v930_v25, %v927_v45  ;;  %v1170_v36 = vmul.f32 0.125, %v1058_v62  ;;  %v1158_v55 = vmul.f32 0.125, %v1046_v61  ;;  %v1163_v21 = vmul.f32 0.125, %v1051_v5 }
 0x157   :  { %v996_v50 = vadd.f32 0.1, %v980_v53  ;;  %v949_v47 = vadd.f32 %v933_v10, %v693_v59  ;;  %v1059_v37 = vmul.f32 %v7766_v20, %v1043_v14  ;;  %v7770_v11 = vpop.eup %7769  ;;  %v1198_v34 = vsub.f32 %v9200_v12, %v1182_v44 }
 0x158   :  { %v1186_v13 = vmul.f32 0.0, %v1170_v36  ;;  %v1183_v28 = vmul.f32 0.0, %v1167_v26  ;;  %v1178_v27 = vmul.f32 0.0, %v1162_v16  ;;  %v1159_v3 = vmul.f32 0.125, %v1047_v35 }
 0x159   :  { %7771 = vrcp.f32 %v996_v50  ;;  %v965_v42 = vsel %vm709_vm3, %v9430_v31, %v949_v47  ;;  %v1171_v18 = vmul.f32 0.125, %v1059_v37  ;;  %v1174_v59 = vmul.f32 0.0, %v1158_v55 }
 0x15a   :  { %v981_v24 = vmul.f32 9.9, %v965_v42  ;;  %v1202_v51 = vsub.f32 %v9476_v6, %v1186_v13  ;;  %v1040_v49 = vsub.f32 2.0, %v1024_v22  ;;  %v1021_v5 = vmul.f32 %v9489_v40, %v9454_v9 }
 0x15b   :  { %v1025_v54 = vmul.f32 %v7770_v11, %v993_v60  ;;  %v1187_v12 = vmul.f32 0.0, %v1171_v18  ;;  %v1179_v20 = vmul.f32 0.0, %v1163_v21  ;;  %v1194_v61 = vsub.f32 %v9191_v30, %v1178_v27 }
 0x15c   :  { %v997_v46 = vadd.f32 0.1, %v981_v24  ;;  %v9526_v56 = vclamps-f32 %v1202_v51, 100.0  ;;  %v1036_v31 = vsub.f32 2.0, %v9498_v0  ;;  %v9531_v58 = vclamps-f32 %v1198_v34, 100.0 }
 0x15d   :  { %v1203_v23 = vsub.f32 %v9479_v63, %v1187_v12  ;;  %v1199_v6 = vsub.f32 %v9202_v29, %v1183_v28  ;;  %v1175_v44 = vmul.f32 0.0, %v1159_v3  ;;  %v1190_v9 = vsub.f32 %v9157_v1, %v1174_v59 }
 0x15e   :  { %7773 = vrcp.f32 %v997_v46  ;;  %1250 = vmatpush.msra.mxu0 %v9526_v56  ;;  %v1056_v60 = vmul.f32 %v9505_v8, %v1040_v49  ;;  %v1032_v26 = vsub.f32 2.0, %v9494_v7  ;;  %v1017_v30 = vmul.f32 %v9376_v33, %v9340_v52 }
 0x15f   :  { %v7772_v16 = vpop.eup %7771  ;;  %v9540_v0 = vclamps-f32 %v1203_v23, 100.0  ;;  %v1195_v63 = vsub.f32 %v9193_v2, %v1179_v20  ;;  %v1041_v43 = vsub.f32 2.0, %v1025_v54  ;;  %v1108_v29 = vadd.f32 1.0, %v9240_v32  ;;  %v14020_v23 = vld [vmem:[#allocation37_spill] sm:$0xff] }
 0x160   :  { %v1028_v45 = vmul.f32 %v7772_v16, %v996_v50  ;;  %1251 = vmatpush.msra.mxu0 %v9531_v58  ;;  %v9545_v25 = vclamps-f32 %v1194_v61, 100.0  ;;  %v1052_v1 = vmul.f32 %v9481_v19, %v1036_v31  ;;  %v1100_v7 = vadd.f32 1.0, %v9168_v4 }
 0x161   :  { %1279 = vmatpush.msra.mxu1 %v9540_v0  ;;  %v9550_v8 = vclamps-f32 %v1199_v6, 100.0  ;;  %v1191_v52 = vsub.f32 %v9159_v39, %v1175_v44  ;;  %v1037_v62 = vsub.f32 2.0, %v1021_v5  ;;  %v9554_v2 = vclamps-f32 %v1190_v9, 100.0  ;;  %v14021_v44 = vld [vmem:[#allocation38_spill] sm:$0xff] }
 0x162   :  { %1252 = vmatpush.msra.mxu0 %v9545_v25  ;;  %v1044_v32 = vsub.f32 2.0, %v1028_v45  ;;  %v1168_v53 = vmul.f32 0.125, %v1056_v60  ;;  %v1048_v14 = vmul.f32 %v9353_v57, %v1032_v26  ;;  %v1105_v35 = vadd.f32 1.0, %v9180_v38  ;;  %v9570_v57 = vld [vmem:[%s13770_s1] sm:$0xff] }
 0x163   :  { %1280 = vmatpush.msra.mxu1 %v9550_v8  ;;  %v9559_v4 = vclamps-f32 %v1195_v63, 100.0  ;;  %v1057_v19 = vmul.f32 %v7770_v11, %v1041_v43  ;;  %v1033_v22 = vsub.f32 2.0, %v1017_v30  ;;  %v1120_v39 = vmul.f32 0.5, %v9212_v15 }
 0x164   :  { %v7774_v10 = vpop.eup %7773  ;;  %v1124_v36 = vmul.f32 0.5, %v1108_v29  ;;  %1253 = vmatpush.msra.mxu0 %v9554_v2  ;;  %v1060_v55 = vmul.f32 %v7772_v16, %v1044_v32  ;;  %v1164_v50 = vmul.f32 0.125, %v1052_v1  ;;  %v1109_v47 = vadd.f32 1.0, %v9265_v41  ;;  %v8680_v29 = vld [vmem:[%s13770_s1 + $0x8] sm:$0xff] }
 0x165   :  { %v1029_v37 = vmul.f32 %v7774_v10, %v997_v46  ;;  %1281 = vmatpush.msra.mxu1 %v9559_v4  ;;  %v9565_v38 = vclamps-f32 %v1191_v52, 100.0  ;;  %7205 = vmatmul.msk.f32.vlgmr.msra.gmra.mxu0 %vm389_vm2, %v9570_v57  ;;  %v1053_v15 = vmul.f32 %v9489_v40, %v1037_v62  ;;  %v1116_v21 = vmul.f32 0.5, %v1100_v7 }
 0x166   :  { %v1172_v11 = vmul.f32 0.125, %v1060_v55  ;;  %1366 = vmatpush.msrb.mxu0 %v9526_v56  ;;  %v1184_v41 = vmul.f32 0.0, %v1168_v53  ;;  %v1160_v13 = vmul.f32 0.125, %v1048_v14  ;;  %v1101_v34 = vadd.f32 1.0, %v9173_v48  ;;  %v8681_v55 = vld [vmem:[%s13770_s1 + $0x10] sm:$0xff] }
 0x167   :  { %1282 = vmatpush.msra.mxu1 %v9565_v38  ;;  %v1045_v28 = vsub.f32 2.0, %v1029_v37  ;;  %v1169_v27 = vmul.f32 0.125, %v1057_v19  ;;  %v1049_v42 = vmul.f32 %v9376_v33, %v1033_v22  ;;  %v1136_v18 = vmul.f32 0.125, %v1120_v39  ;;  %v8683_v37 = vld [vmem:[%s13771_s2] sm:$0xff] }
 0x168   :  { %v1140_v3 = vmul.f32 0.125, %v1124_v36  ;;  %v1188_v24 = vmul.f32 0.0, %v1172_v11  ;;  %7209 = vmatmul.msk.f32.vlgmr.msra.gmra.mxu1 %vm389_vm2, %v9570_v57  ;;  %1367 = vmatpush.msrb.mxu0 %v9531_v58  ;;  %v1180_v40 = vmul.f32 0.0, %v1164_v50  ;;  %v1121_v51 = vmul.f32 0.5, %v1105_v35 }
 0x169   :  { %v1125_v59 = vmul.f32 0.5, %v1109_v47  ;;  %v1061_v49 = vmul.f32 %v7774_v10, %v1045_v28  ;;  %1395 = vmatpush.msrb.mxu1 %v9540_v0  ;;  %v1165_v48 = vmul.f32 0.125, %v1053_v15  ;;  %v1132_v5 = vmul.f32 0.125, %v1116_v21  ;;  %v8682_v47 = vld [vmem:[%s13770_s1 + $0x18] sm:$0xff]  ;;  %v8685_v15 = vld [vmem:[%s13771_s2 + $0x10] sm:$0xff] }
 0x16a   :  { %v1204_v54 = vsub.f32 %v1140_v3, %v1188_v24  ;;  %v1200_v12 = vsub.f32 %v1136_v18, %v1184_v41  ;;  %1368 = vmatpush.msrb.mxu0 %v9545_v25  ;;  %v1176_v33 = vmul.f32 0.0, %v1160_v13  ;;  %v1117_v20 = vmul.f32 0.5, %v1101_v34  ;;  %v8686_v21 = vld [vmem:[%s13771_s2 + $0x18] sm:$0xff]  ;;  %v14031_v3 = vld [vmem:[#allocation6_spill] sm:$0xff] }
 0x16b   :  { %v1173_v46 = vmul.f32 0.125, %v1061_v49  ;;  %v1185_v61 = vmul.f32 0.0, %v1169_v27  ;;  %1396 = vmatpush.msrb.mxu1 %v9550_v8  ;;  %v1161_v31 = vmul.f32 0.125, %v1049_v42  ;;  %v1128_v6 = vmul.f32 0.125, %v14020_v23  ;;  %v14030_v42 = vld [vmem:[#allocation5_spill] sm:$0xff] }
 0x16c   :  { %v1113_v9 = vmul.f32 0.5, %v14021_v44  ;;  %v9587_v60 = vclamps-f32 %v1204_v54, 100.0  ;;  %v1196_v26 = vsub.f32 %v1132_v5, %v1180_v40  ;;  %1369 = vmatpush.msrb.mxu0 %v9554_v2  ;;  %v1137_v16 = vmul.f32 0.125, %v1121_v51  ;;  %v14032_v51 = vld [vmem:[#allocation9_spill] sm:$0xff] }
 0x16d   :  { %v1141_v30 = vmul.f32 0.125, %v1125_v59  ;;  %v1189_v63 = vmul.f32 0.0, %v1173_v46  ;;  %v1181_v43 = vmul.f32 0.0, %v1165_v48  ;;  %1397 = vmatpush.msrb.mxu1 %v9559_v4  ;;  %7206 = vmatmul.msk.f32.gmra.mxu0 %vm389_vm2, %v8680_v29  ;;  %v9596_v45 = vclamps-f32 %v1200_v12, 100.0 }
 0x16e   :  { %14022 = vst [vmem:[#allocation37_spill] sm:$0xff] %v9587_v60  ;;  %1308 = vmatpush.msra.mxu2 %v9587_v60  ;;  %v1192_v1 = vsub.f32 %v1128_v6, %v1176_v33  ;;  %v1133_v7 = vmul.f32 0.125, %v1117_v20  ;;  %v1201_v62 = vsub.f32 %v1137_v16, %v1185_v61  ;;  %v1177_v32 = vmul.f32 0.0, %v1161_v31  ;;  %v14033_v20 = vld [vmem:[#allocation10_spill] sm:$0xff]  ;;  %v14034_v61 = vld [vmem:[#allocation13_spill] sm:$0xff] }
 0x16f   :  { %14023 = vst [vmem:[#allocation38_spill] sm:$0xff] %v9596_v45  ;;  %v1205_v52 = vsub.f32 %v1141_v30, %v1189_v63  ;;  %1398 = vmatpush.msrb.mxu1 %v9565_v38  ;;  %v9600_v53 = vclamps-f32 %v1196_v26, 100.0  ;;  %v1129_v14 = vmul.f32 0.125, %v1113_v9  ;;  %v14035_v26 = vld [vmem:[#allocation14_spill] sm:$0xff]  ;;  %v14036_v30 = vld [vmem:[#allocation21_spill] sm:$0xff] }
 0x170   :  { %1309 = vmatpush.msra.mxu2 %v9596_v45  ;;  %7210 = vmatmul.msk.f32.gmra.mxu1 %vm389_vm2, %v8680_v29  ;;  %v1197_v19 = vsub.f32 %v1133_v7, %v1181_v43  ;;  %v9606_v22 = vclamps-f32 %v1192_v1, 100.0  ;;  %v9609_v10 = vclamps-f32 %v1201_v62, 100.0  ;;  %v14037_v62 = vld [vmem:[#allocation22_spill] sm:$0xff] }
 0x171   :  { %14024 = vst [vmem:[#allocation39_spill] sm:$0xff] %v9600_v53  ;;  %v9603_v35 = vclamps-f32 %v1205_v52, 100.0  ;;  %v1193_v39 = vsub.f32 %v1129_v14, %v1177_v32 }
 0x172   :  { %1310 = vmatpush.msra.mxu2 %v9600_v53  ;;  %14026 = vst [vmem:[#allocation41_spill] sm:$0xff] %v9606_v22  ;;  %v9613_v36 = vclamps-f32 %v1197_v19, 100.0  ;;  %v14038_v19 = vld [vmem:[#allocation7_spill] sm:$0xff] }
 0x173   :  { %14025 = vst [vmem:[#allocation40_spill] sm:$0xff] %v9603_v35  ;;  %1337 = vmatpush.msra.mxu3 %v9603_v35  ;;  %v9623_v50 = vclamps-f32 %v1193_v39, 100.0 }
 0x174   :  { %14027 = vst [vmem:[#allocation42_spill] sm:$0xff] %v9609_v10  ;;  %1311 = vmatpush.msra.mxu2 %v9606_v22 }
 0x175   :  { %1338 = vmatpush.msra.mxu3 %v9609_v10  ;;  %14028 = vst [vmem:[#allocation43_spill] sm:$0xff] %v9613_v36  ;;  %7213 = vmatmul.msk.f32.vlgmr.msra.gmra.mxu2 %vm389_vm2, %v9570_v57 }
 0x176   :  { %1424 = vmatpush.msrb.mxu2 %v9587_v60  ;;  %7207 = vmatmul.msk.f32.gmra.mxu0 %vm389_vm2, %v8681_v55  ;;  %14029 = vst [vmem:[#allocation44_spill] sm:$0xff] %v9623_v50 }
 0x177   :  { %1339 = vmatpush.msra.mxu3 %v9613_v36 }
 0x178   :  { %1425 = vmatpush.msrb.mxu2 %v9596_v45  ;;  %7211 = vmatmul.msk.f32.gmra.mxu1 %vm389_vm2, %v8681_v55 }
 0x179   :  { %1340 = vmatpush.msra.mxu3 %v9623_v50 }
 0x17a   :  { %7217 = vmatmul.msk.f32.vlgmr.msra.gmra.mxu3 %vm389_vm2, %v9570_v57  ;;  %1426 = vmatpush.msrb.mxu2 %v9600_v53  ;;  %v8684_v57 = vld [vmem:[%s13771_s2 + $0x8] sm:$0xff] }
 0x17b   :  { %1453 = vmatpush.msrb.mxu3 %v9603_v35 }
 0x17c   :  { %1427 = vmatpush.msrb.mxu2 %v9606_v22 }
 0x17d   :  { %1454 = vmatpush.msrb.mxu3 %v9609_v10  ;;  %7214 = vmatmul.msk.f32.gmra.mxu2 %vm389_vm2, %v8680_v29 }
 0x17e   :  { %7208 = vmatmul.msk.f32.gmra.mxu0 %vm389_vm2, %v8682_v47 }
 0x17f   :  { %1455 = vmatpush.msrb.mxu3 %v9613_v36 }
 0x180   :  { %7212 = vmatmul.msk.f32.gmra.mxu1 %vm389_vm2, %v8682_v47 }
 0x181   :  { %1456 = vmatpush.msrb.mxu3 %v9623_v50 }
 0x182   :  { %7218 = vmatmul.msk.f32.gmra.mxu3 %vm389_vm2, %v8680_v29 }
 0x185   :  { %7215 = vmatmul.msk.f32.gmra.mxu2 %vm389_vm2, %v8681_v55 }
 0x186   :  { %7221 = vmatmul.msk.f32.vlgmr.msrb.gmra.mxu0 %vm389_vm2, %v8683_v37 }
 0x188   :  { %7225 = vmatmul.msk.f32.vlgmr.msrb.gmra.mxu1 %vm389_vm2, %v8683_v37 }
 0x18a   :  { %7219 = vmatmul.msk.f32.gmra.mxu3 %vm389_vm2, %v8681_v55 }
 0x18d   :  { %7216 = vmatmul.msk.f32.gmra.mxu2 %vm389_vm2, %v8682_v47 }
 0x18e   :  { %7222 = vmatmul.msk.f32.gmra.mxu0 %vm389_vm2, %v8684_v57 }
 0x190   :  { %7226 = vmatmul.msk.f32.gmra.mxu1 %vm389_vm2, %v8684_v57 }
 0x192   :  { %7220 = vmatmul.msk.f32.gmra.mxu3 %vm389_vm2, %v8682_v47 }
 0x195   :  { %7229 = vmatmul.msk.f32.vlgmr.msrb.gmra.mxu2 %vm389_vm2, %v8683_v37 }
 0x196   :  { %7223 = vmatmul.msk.f32.gmra.mxu0 %vm389_vm2, %v8685_v15 }
 0x198   :  { %7227 = vmatmul.msk.f32.gmra.mxu1 %vm389_vm2, %v8685_v15 }
 0x19a   :  { %7233 = vmatmul.msk.f32.vlgmr.msrb.gmra.mxu3 %vm389_vm2, %v8683_v37 }
 0x19d   :  { %7230 = vmatmul.msk.f32.gmra.mxu2 %vm389_vm2, %v8684_v57 }
 0x19e   :  { %7224 = vmatmul.msk.f32.gmra.mxu0 %vm389_vm2, %v8686_v21 }
 0x1a0   :  { %7228 = vmatmul.msk.f32.gmra.mxu1 %vm389_vm2, %v8686_v21 }
 0x1a2   :  { %7234 = vmatmul.msk.f32.gmra.mxu3 %vm389_vm2, %v8684_v57 }
 0x1a5   :  { %7231 = vmatmul.msk.f32.gmra.mxu2 %vm389_vm2, %v8685_v15 }
 0x1aa   :  { %7235 = vmatmul.msk.f32.gmra.mxu3 %vm389_vm2, %v8685_v15 }
 0x1ad   :  { %7232 = vmatmul.msk.f32.gmra.mxu2 %vm389_vm2, %v8686_v21 }
 0x1b2   :  { %7236 = vmatmul.msk.f32.gmra.mxu3 %vm389_vm2, %v8686_v21 }
 0x1e2   :  { %v1255_v11 = vpop.f32.mrf.mxu0 }
 0x1e3   :  { %v1256_v18 = vadd.f32 %v1255_v11, %v14030_v42  ;;  %v14039_v11 = vld [vmem:[#allocation17_spill] sm:$0xff] }
 0x1e5   :  { %v1284_v41 = vpop.f32.mrf.mxu1  ;;  %v1886_v49 = vmul.f32 0.5, %v1256_v18 }
 0x1e6   :  { %v1285_v24 = vadd.f32 %v1284_v41, %v14031_v3 }
 0x1e7   :  { %7775 = vtanh.f32 %v1886_v49 }
 0x1e8   :  { %v1887_v5 = vmul.f32 0.5, %v1285_v24 }
 0x1ea   :  { %v1258_v13 = vpop.f32.mrf.mxu0  ;;  %7777 = vtanh.f32 %v1887_v5 }
 0x1eb   :  { %v1259_v59 = vadd.f32 %v1258_v13, %v14032_v51 }
 0x1ed   :  { %v1287_v34 = vpop.f32.mrf.mxu1  ;;  %v1890_v54 = vmul.f32 0.5, %v1259_v59  ;;  %v7776_v43 = vpop.eup %7775 }
 0x1ee   :  { %v1288_v46 = vadd.f32 %v1287_v34, %v14033_v20  ;;  %v1918_v37 = vadd.f32 1.0, %v7776_v43 }
 0x1ef   :  { %7779 = vtanh.f32 %v1890_v54 }
 0x1f0   :  { %v1891_v6 = vmul.f32 0.5, %v1288_v46  ;;  %v7778_v7 = vpop.eup %7777  ;;  %v1934_v24 = vmul.f32 0.5, %v1918_v37 }
 0x1f1   :  { %v1919_v15 = vadd.f32 1.0, %v7778_v7 }
 0x1f2   :  { %7781 = vtanh.f32 %v1891_v6 }
 0x1f3   :  { %v1261_v28 = vpop.f32.mrf.mxu0  ;;  %v1935_v54 = vmul.f32 0.5, %v1919_v15 }
 0x1f4   :  { %v1262_v31 = vadd.f32 %v1261_v28, %v14034_v61 }
 0x1f5   :  { %v1290_v27 = vpop.f32.mrf.mxu1  ;;  %v7780_v14 = vpop.eup %7779 }
 0x1f6   :  { %v1894_v9 = vmul.f32 0.5, %v1262_v31  ;;  %v1291_v16 = vadd.f32 %v1290_v27, %v14035_v26  ;;  %v1922_v21 = vadd.f32 1.0, %v7780_v14  ;;  %v14043_v14 = vld [vmem:[#allocation8_spill] sm:$0xff] }
 0x1f8   :  { %v1313_v40 = vpop.f32.mrf.mxu2  ;;  %7783 = vtanh.f32 %v1894_v9  ;;  %v1895_v55 = vmul.f32 0.5, %v1291_v16  ;;  %v7782_v18 = vpop.eup %7781  ;;  %v1938_v46 = vmul.f32 0.5, %v1922_v21  ;;  %v14041_v9 = vld [vmem:[#allocation25_spill] sm:$0xff]  ;;  %v1950_v21 = vmul.f32 0.125, %v1934_v24 }
 0x1f9   :  { %v1314_v39 = vadd.f32 %v1313_v40, %v14038_v19 }
 0x1fa   :  { %7785 = vtanh.f32 %v1895_v55 }
 0x1fb   :  { %v1264_v48 = vpop.f32.mrf.mxu0  ;;  %v1888_v28 = vmul.f32 0.5, %v1314_v39 }
 0x1fc   :  { %v1265_v41 = vadd.f32 %v1264_v48, %v14039_v11 }
 0x1fd   :  { %v1342_v12 = vpop.f32.mrf.mxu3  ;;  %v1293_v33 = vpop.f32.mrf.mxu1 }
 0x1fe   :  { %v7784_v5 = vpop.eup %7783  ;;  %v1898_v31 = vmul.f32 0.5, %v1265_v41  ;;  %v1343_v39 = vadd.f32 %v1342_v12, %v14043_v14  ;;  %v1951_v41 = vmul.f32 0.125, %v1935_v54  ;;  %v9713_v54 = vadd.f32 %v9554_v2, %v1950_v21 }
 0x1ff   :  { %v1926_v55 = vadd.f32 1.0, %v7784_v5 }
 0x200   :  { %v1316_v23 = vpop.f32.mrf.mxu2  ;;  %v7786_v15 = vpop.eup %7785  ;;  %v1889_v12 = vmul.f32 0.5, %v1343_v39 }
 0x201   :  { %v1942_v5 = vmul.f32 0.5, %v1926_v55 }
 0x203   :  { %v1371_v44 = vpop.f32.mrf.mxu0  ;;  %v1958_v21 = vmul.f32 0.125, %v1942_v5 }
 0x204   :  { %v1372_v63 = vadd.f32 %v1371_v44, %v14036_v30  ;;  %v14040_v44 = vld [vmem:[#allocation18_spill] sm:$0xff] }
 0x205   :  { %v9682_v29 = vpop.f32.mrf.mxu3  ;;  %v1400_v1 = vpop.f32.mrf.mxu1  ;;  %v1294_v48 = vadd.f32 %v1293_v33, %v14040_v44 }
 0x206   :  { %v9684_v52 = vclamps-f32 %v1372_v63, 50.0  ;;  %v1401_v32 = vadd.f32 %v1400_v1, %v14037_v62  ;;  %v14042_v63 = vld [vmem:[#allocation26_spill] sm:$0xff]  ;;  %v1923_v1 = vadd.f32 1.0, %v7782_v18  ;;  %v14044_v18 = vld [vmem:[#allocation11_spill] sm:$0xff] }
 0x208   :  { %v9688_v47 = vpop.f32.mrf.mxu2  ;;  %v1550_v57 = vand.u32 2147483647, %v9684_v52  ;;  %v9692_v13 = vclamps-f32 %v1401_v32, 50.0  ;;  %vm1518_vm6 = vcmp.ne.f32.partialorder %v9684_v52, %v9684_v52 }
 0x20a   :  { %v1566_v34 = vsub.f32 0.0, %v1550_v57  ;;  %v1551_v6 = vand.u32 2147483647, %v9692_v13  ;;  %vm1519_vm8 = vcmp.ne.f32.partialorder %v9692_v13, %v9692_v13 }
 0x20b   :  { %v1374_v27 = vpop.f32.mrf.mxu0 }
 0x20c   :  { %v1582_v59 = vmul.f32 1.442695, %v1566_v34  ;;  %v1375_v16 = vadd.f32 %v1374_v27, %v14041_v9  ;;  %v1567_v7 = vsub.f32 0.0, %v1551_v6  ;;  %v1954_v34 = vmul.f32 0.125, %v1938_v46  ;;  %v14047_v9 = vld [vmem:[#allocation29_spill] sm:$0xff] }
 0x20d   :  { %v9694_v40 = vpop.f32.mrf.mxu3  ;;  %v1403_v49 = vpop.f32.mrf.mxu1  ;;  %v1899_v27 = vmul.f32 0.5, %v1294_v48 }
 0x20e   :  { %7787 = vpow2.f32 %v1582_v59  ;;  %v1404_v43 = vadd.f32 %v1403_v49, %v14042_v63  ;;  %v9703_v37 = vclamps-f32 %v1375_v16, 50.0  ;;  %v1584_v33 = vmul.f32 1.442695, %v1567_v7 }
 0x20f   :  { %7789 = vtanh.f32 %v1888_v28  ;;  %v1939_v59 = vmul.f32 0.5, %v1923_v1  ;;  %v1317_v28 = vadd.f32 %v1316_v23, %v14044_v18  ;;  %v1927_v16 = vadd.f32 1.0, %v7786_v15 }
 0x210   :  { %v9700_v32 = vpop.f32.mrf.mxu2  ;;  %v9705_v57 = vclamps-f32 %v1404_v43, 50.0  ;;  %7791 = vtanh.f32 %v1898_v31  ;;  %v1554_v49 = vand.u32 2147483647, %v9703_v37  ;;  %v9716_v7 = vadd.f32 %v9565_v38, %v1951_v41  ;;  %v14048_v41 = vld [vmem:[#allocation12_spill] sm:$0xff] }
 0x211   :  { %7793 = vpow2.f32 %v1584_v33  ;;  %v9719_v39 = vadd.f32 %v9545_v25, %v1954_v34  ;;  %v1892_v55 = vmul.f32 0.5, %v1317_v28  ;;  %v1955_v18 = vmul.f32 0.125, %v1939_v59 }
 0x212   :  { %v1555_v43 = vand.u32 2147483647, %v9705_v57  ;;  %7795 = vtanh.f32 %v1899_v27  ;;  %v1570_v48 = vsub.f32 0.0, %v1554_v49  ;;  %14045 = vst [vmem:[#allocation45_spill] sm:$0xff] %v9716_v7  ;;  %v1943_v63 = vmul.f32 0.5, %v1927_v16  ;;  %v14046_v49 = vld [vmem:[#allocation23_spill] sm:$0xff] }
 0x213   :  { %v1377_v1 = vpop.f32.mrf.mxu0  ;;  %v1346_v11 = vadd.f32 %v9682_v29, %v14048_v41  ;;  %v9728_v5 = vadd.f32 %v9559_v4, %v1955_v18  ;;  %v9731_v16 = vadd.f32 %v9531_v58, %v1958_v21  ;;  %vm1522_vm10 = vcmp.ne.f32.partialorder %v9703_v37, %v9703_v37 }
 0x214   :  { %v7788_v6 = vpop.eup %7787  ;;  %v1571_v23 = vsub.f32 0.0, %v1555_v43  ;;  %v1590_v44 = vmul.f32 1.442695, %v1570_v48  ;;  %v1378_v62 = vadd.f32 %v1377_v1, %v14047_v9  ;;  %v1959_v29 = vmul.f32 0.125, %v1943_v63 }
 0x215   :  { %v9709_v14 = vpop.f32.mrf.mxu3  ;;  %v7790_v24 = vpop.eup %7789  ;;  %v1614_v46 = vadd.f32 1.0, %v7788_v6  ;;  %v1617_v31 = vmul.f32 -0.5, %v7788_v6  ;;  %v1620_v30 = vand.u32 2147483647, %v7788_v6  ;;  %vm1523_vm11 = vcmp.ne.f32.partialorder %v9705_v57, %v9705_v57 }
 0x216   :  { %v7792_v33 = vpop.eup %7791  ;;  %v1920_v27 = vadd.f32 1.0, %v7790_v24  ;;  %v1592_v28 = vmul.f32 1.442695, %v1571_v23 }
 0x217   :  { %7797 = vlog2.f32 %v1614_v46  ;;  %v7794_v19 = vpop.eup %7793  ;;  %v1618_v34 = vadd.f32 1.0, %v1617_v31  ;;  %v1930_v46 = vadd.f32 1.0, %v7792_v33  ;;  %v9733_v31 = vclamps-f32 %v1378_v62, 50.0 }
 0x218   :  { %v1429_v15 = vpop.f32.mrf.mxu2  ;;  %7799 = vtanh.f32 %v1889_v12  ;;  %v1623_v26 = vadd.f32 1.0, %v7794_v19  ;;  %v7796_v12 = vpop.eup %7795  ;;  %v1626_v24 = vmul.f32 -0.5, %v7794_v19  ;;  %v1936_v1 = vmul.f32 0.5, %v1920_v27 }
 0x219   :  { %v1430_v43 = vadd.f32 %v1429_v15, %v14046_v49  ;;  %7801 = vtanh.f32 %v1892_v55  ;;  %v1893_v55 = vmul.f32 0.5, %v1346_v11  ;;  %v1619_v33 = vmul.f32 %v7788_v6, %v1618_v34  ;;  %v14049_v11 = vld [vmem:[#allocation24_spill] sm:$0xff] }
 0x21a   :  { %7803 = vlog2.f32 %v1623_v26  ;;  %v1946_v18 = vmul.f32 0.5, %v1930_v46  ;;  %v1502_v49 = vmax.f32 %v9684_v52, 0.0  ;;  %vm1621_vm5 = vcmp.lt.f32.partialorder %v1620_v30, 0.0004427343  ;;  %v14051_v46 = vld [vmem:[#allocation15_spill] sm:$0xff] }
 0x21b   :  { %v9725_v59 = vclamps-f32 %v1430_v43, 50.0  ;;  %7805 = vpow2.f32 %v1590_v44  ;;  %v1931_v21 = vadd.f32 1.0, %v7796_v12  ;;  %v1627_v27 = vadd.f32 1.0, %v1626_v24  ;;  %v1406_v44 = vpop.f32.mrf.mxu1 }
 0x21c   :  { %7807 = vpow2.f32 %v1592_v28  ;;  %v1629_v63 = vand.u32 2147483647, %v7794_v19  ;;  %v1558_v6 = vand.u32 2147483647, %v9733_v31  ;;  %v9743_v28 = vmul.f32 0.125, %v1936_v1 }
 0x21d   :  { %v7798_v48 = vpop.eup %7797  ;;  %v1458_v43 = vpop.f32.mrf.mxu3  ;;  %v1552_v26 = vand.u32 2147483647, %v9725_v59  ;;  %v9746_v30 = vadd.f32 %v9550_v8, %v1959_v29  ;;  %v1320_v12 = vadd.f32 %v9688_v47, %v14051_v46  ;;  %7809 = vtanh.f32 %v1893_v55 }
 0x21e   :  { %v9735_v23 = vpop.eup %7799  ;;  %v1616_v15 = vmul.f32 0.6931472, %v7798_v48  ;;  %v1459_v48 = vadd.f32 %v1458_v43, %v14049_v11  ;;  %14050 = vst [vmem:[#allocation46_spill] sm:$0xff] %v9743_v28  ;;  %v1628_v1 = vmul.f32 %v7794_v19, %v1627_v27  ;;  %vm9755_vm7 = vcmp.lt.f32.partialorder %v1629_v63, 0.0004427343  ;;  %v14055_v27 = vld [vmem:[#allocation16_spill] sm:$0xff] }
 0x21f   :  { %v9739_v62 = vpop.eup %7801  ;;  %v1568_v20 = vsub.f32 0.0, %v1552_v26  ;;  %v1947_v26 = vmul.f32 0.5, %v1931_v21  ;;  %v1574_v3 = vsub.f32 0.0, %v1558_v6  ;;  %v1896_v19 = vmul.f32 0.5, %v1320_v12  ;;  %v14057_v11 = vld [vmem:[#allocation27_spill] sm:$0xff] }
 0x220   :  { %v1622_v41 = vsel %vm1621_vm5, %v1619_v33, %v1616_v15  ;;  %v7804_v34 = vpop.eup %7803  ;;  %v14052_v15 = vld [vmem:[#allocation30_spill] sm:$0xff]  ;;  %v9760_v61 = vclamps-f32 %v1459_v48, 50.0  ;;  %v1432_v55 = vpop.f32.mrf.mxu2  ;;  %v1349_v63 = vadd.f32 %v9694_v40, %v14055_v27  ;;  %vm1526_vm13 = vcmp.ne.f32.partialorder %v9733_v31, %v9733_v31 }
 0x221   :  { %v1758_v9 = vadd.f32 %v1622_v41, %v1502_v49  ;;  %v7806_v24 = vpop.eup %7805  ;;  %v1962_v49 = vmul.f32 0.125, %v1946_v18  ;;  %v1625_v41 = vmul.f32 0.6931472, %v7804_v34  ;;  %v1407_v33 = vadd.f32 %v1406_v44, %v14052_v15 }
 0x222   :  { %v9753_v43 = vpop.eup %7807  ;;  %v1650_v29 = vadd.f32 1.0, %v7806_v24  ;;  %v1586_v46 = vmul.f32 1.442695, %v1568_v20  ;;  %v1653_v44 = vmul.f32 -0.5, %v7806_v24  ;;  %v1503_v34 = vmax.f32 %v9692_v13, 0.0 }
 0x223   :  { %v1774_v47 = vsel %vm1518_vm6, %v9684_v52, %v1758_v9  ;;  %v1631_v18 = vsel %vm9755_vm7, %v1628_v1, %v1625_v41  ;;  %v1659_v21 = vadd.f32 1.0, %v9753_v43  ;;  %v9768_v15 = vclamps-f32 %v1407_v33, 50.0  ;;  %v14056_v52 = vld [vmem:[#allocation19_spill] sm:$0xff]  ;;  %v9778_v6 = vpop.eup %7809 }
 0x224   :  { %7811 = vlog2.f32 %v1650_v29  ;;  %v9771_v20 = vadd.f32 %v9526_v56, %v1962_v49  ;;  %v1323_v9 = vadd.f32 %v9700_v32, %v14056_v52  ;;  %v1433_v48 = vadd.f32 %v1432_v55, %v14057_v11  ;;  %14058 = vst [vmem:[#allocation47_spill] sm:$0xff] %v9778_v6 }
 0x225   :  { %v1963_v12 = vmul.f32 0.125, %v1947_v26  ;;  %v1790_v41 = vmul.f32 9.9, %v1774_v47  ;;  %v1759_v40 = vadd.f32 %v1631_v18, %v1503_v34  ;;  %7813 = vpow2.f32 %v1586_v46 }
 0x226   :  { %v1654_v1 = vadd.f32 1.0, %v1653_v44  ;;  %7815 = vlog2.f32 %v1659_v21  ;;  %v1553_v33 = vand.u32 2147483647, %v9760_v61  ;;  %v1598_v49 = vmul.f32 1.442695, %v1574_v3 }
 0x227   :  { %7817 = vtanh.f32 %v1896_v19  ;;  %v1897_v29 = vmul.f32 0.5, %v1349_v63  ;;  %v1656_v27 = vand.u32 2147483647, %v7806_v24  ;;  %v1559_v51 = vand.u32 2147483647, %v9768_v15 }
 0x228   :  { %v1900_v32 = vmul.f32 0.5, %v1323_v9  ;;  %v1569_v52 = vsub.f32 0.0, %v1553_v33  ;;  %7819 = vpow2.f32 %v1598_v49  ;;  %v9782_v55 = vclamps-f32 %v1433_v48, 50.0  ;;  %v14062_v9 = vld [vmem:[#allocation28_spill] sm:$0xff] }
 0x229   :  { %v9785_v26 = vadd.f32 %v9540_v0, %v1963_v12  ;;  %v1775_v46 = vsel %vm1519_vm8, %v9692_v13, %v1759_v40  ;;  %v1662_v47 = vmul.f32 -0.5, %v9753_v43  ;;  %v9792_v18 = vadd.f32 0.1, %v1790_v41  ;;  %v14061_v41 = vld [vmem:[#allocation20_spill] sm:$0xff] }
 0x22a   :  { %v7812_v42 = vpop.eup %7811  ;;  %v1655_v44 = vmul.f32 %v7806_v24, %v1654_v1  ;;  %v1588_v21 = vmul.f32 1.442695, %v1569_v52  ;;  %v1575_v19 = vsub.f32 0.0, %v1559_v51  ;;  %7821 = vtanh.f32 %v1897_v29  ;;  %v1461_v51 = vpop.f32.mrf.mxu3 }
 0x22b   :  { %v1652_v3 = vmul.f32 0.6931472, %v7812_v42  ;;  %v9794_v63 = vpop.eup %7813  ;;  %v1506_v34 = vmax.f32 %v9703_v37, 0.0  ;;  %vm9797_vm9 = vcmp.lt.f32.partialorder %v1656_v27, 0.0004427343  ;;  %7823 = vtanh.f32 %v1900_v32  ;;  %v1380_v1 = vpop.f32.mrf.mxu0 }
 0x22c   :  { %v1556_v48 = vand.u32 2147483647, %v9782_v55  ;;  %v7816_v13 = vpop.eup %7815  ;;  %v1791_v42 = vmul.f32 9.9, %v1775_v46  ;;  %v1632_v24 = vadd.f32 1.0, %v9794_v63  ;;  %v1352_v40 = vadd.f32 %v9709_v14, %v14061_v41  ;;  %v14063_v41 = vld [vmem:[#allocation33_spill] sm:$0xff] }
 0x22d   :  { %v1658_v12 = vsel %vm9797_vm9, %v1655_v44, %v1652_v3  ;;  %v7818_v52 = vpop.eup %7817  ;;  %v1663_v27 = vadd.f32 1.0, %v1662_v47  ;;  %7825 = vpow2.f32 %v1588_v21  ;;  %v1665_v49 = vand.u32 2147483647, %v9753_v43 }
 0x22e   :  { %v7820_v33 = vpop.eup %7819  ;;  %7827 = vrcp.f32 %v9792_v18  ;;  %v1600_v29 = vmul.f32 1.442695, %v1575_v19  ;;  %v1572_v32 = vsub.f32 0.0, %v1556_v48  ;;  %v1762_v46 = vadd.f32 %v1658_v12, %v1506_v34 }
 0x22f   :  { %v1661_v3 = vmul.f32 0.6931472, %v7816_v13  ;;  %v1686_v44 = vadd.f32 1.0, %v7820_v33  ;;  %v1462_v11 = vadd.f32 %v1461_v51, %v14062_v9  ;;  %v9812_v50 = vadd.f32 0.1, %v1791_v42 }
 0x230   :  { %7829 = vlog2.f32 %v1632_v24  ;;  %v1689_v14 = vmul.f32 -0.5, %v7820_v33  ;;  %v1381_v47 = vadd.f32 %v1380_v1, %v14063_v41  ;;  %v9815_v21 = vpop.eup %7821  ;;  %v9817_v36 = vadd.f32 1.0, %v7818_v52 }
 0x231   :  { %14064 = vst [vmem:[#allocation48_spill] sm:$0xff] %v9815_v21  ;;  %v1664_v35 = vmul.f32 %v9753_v43, %v1663_v27  ;;  %7831 = vlog2.f32 %v1686_v44  ;;  %v1594_v19 = vmul.f32 1.442695, %v1572_v32  ;;  %v9820_v48 = vpop.eup %7823  ;;  %v1507_v34 = vmax.f32 %v9705_v57, 0.0 }
 0x232   :  { %vm9825_vm12 = vcmp.lt.f32.partialorder %v1665_v49, 0.0004427343  ;;  %7833 = vpow2.f32 %v1600_v29  ;;  %v9831_v12 = vmul.f32 0.5, %v1352_v40  ;;  %v1778_v43 = vsel %vm1522_vm10, %v9703_v37, %v1762_v46 }
 0x233   :  { %v9829_v42 = vpop.eup %7825  ;;  %v1667_v24 = vsel %vm9825_vm12, %v1664_v35, %v1661_v3  ;;  %v9839_v51 = vclamps-f32 %v1462_v11, 50.0  ;;  %7835 = vrcp.f32 %v9812_v50  ;;  %v1690_v1 = vadd.f32 1.0, %v1689_v14 }
 0x234   :  { %v9841_v52 = vpop.eup %7827  ;;  %v1641_v27 = vadd.f32 1.0, %v9829_v42  ;;  %v9845_v49 = vclamps-f32 %v1381_v47, 50.0  ;;  %v1635_v29 = vmul.f32 -0.5, %v9794_v63  ;;  %v1692_v32 = vand.u32 2147483647, %v7820_v33 }
 0x235   :  { %7837 = vpow2.f32 %v1594_v19  ;;  %v1794_v46 = vmul.f32 9.9, %v1778_v43  ;;  %v1763_v35 = vadd.f32 %v1667_v24, %v1507_v34  ;;  %v1510_v11 = vmax.f32 %v9733_v31, 0.0 }
 0x236   :  { %v7830_v37 = vpop.eup %7829  ;;  %7839 = vlog2.f32 %v1641_v27  ;;  %v1644_v13 = vmul.f32 -0.5, %v9829_v42  ;;  %v1557_v47 = vand.u32 2147483647, %v9839_v51  ;;  %v9858_v19 = vmul.f32 %v9841_v52, %v9792_v18 }
 0x237   :  { %v7832_v3 = vpop.eup %7831  ;;  %v1691_v43 = vmul.f32 %v7820_v33, %v1690_v1  ;;  %v1562_v24 = vand.u32 2147483647, %v9845_v49  ;;  %v1636_v27 = vadd.f32 1.0, %v1635_v29  ;;  %v1638_v44 = vand.u32 2147483647, %v9794_v63 }
 0x238   :  { %v7834_v40 = vpop.eup %7833  ;;  %v1688_v34 = vmul.f32 0.6931472, %v7832_v3  ;;  %vm1693_vm14 = vcmp.lt.f32.partialorder %v1692_v32, 0.0004427343  ;;  %v9864_v28 = vadd.f32 0.1, %v1794_v46  ;;  %v1779_v14 = vsel %vm1523_vm11, %v9705_v57, %v1763_v35 }
 0x239   :  { %v1695_v9 = vadd.f32 1.0, %v7834_v40  ;;  %v9862_v41 = vpop.eup %7835  ;;  %v1698_v10 = vmul.f32 -0.5, %v7834_v40  ;;  %v1634_v33 = vmul.f32 0.6931472, %v7830_v37  ;;  %v1645_v1 = vadd.f32 1.0, %v1644_v13  ;;  %v1409_v13 = vpop.f32.mrf.mxu1 }
 0x23a   :  { %v1694_v18 = vsel %vm1693_vm14, %v1691_v43, %v1688_v34  ;;  %v1573_v29 = vsub.f32 0.0, %v1557_v47  ;;  %v1647_v32 = vand.u32 2147483647, %v9829_v42  ;;  %v1578_v60 = vsub.f32 0.0, %v1562_v24  ;;  %v14071_v24 = vld [vmem:[#allocation34_spill] sm:$0xff] }
 0x23b   :  { %v9870_v3 = vpop.eup %7837  ;;  %7841 = vlog2.f32 %v1695_v9  ;;  %v1766_v53 = vadd.f32 %v1694_v18, %v1510_v11  ;;  %v1795_v45 = vmul.f32 9.9, %v1779_v14  ;;  %v1637_v6 = vmul.f32 %v9794_v63, %v1636_v27  ;;  %v1435_v63 = vpop.f32.mrf.mxu2 }
 0x23c   :  { %v7840_v22 = vpop.eup %7839  ;;  %v1668_v46 = vadd.f32 1.0, %v9870_v3  ;;  %vm9875_vm15 = vcmp.lt.f32.partialorder %v1638_v44, 0.0004427343  ;;  %v9881_v37 = vmul.f32 %v9862_v41, %v9812_v50  ;;  %vm1520_vm0 = vcmp.ne.f32.partialorder %v9725_v59, %v9725_v59 }
 0x23d   :  { %v1643_v35 = vmul.f32 0.6931472, %v7840_v22  ;;  %vm1527_vm1 = vcmp.ne.f32.partialorder %v9768_v15, %v9768_v15  ;;  %v1699_v9 = vadd.f32 1.0, %v1698_v10  ;;  %v1701_v11 = vand.u32 2147483647, %v7834_v40 }
 0x23e   :  { %7843 = vlog2.f32 %v1668_v46  ;;  %v1640_v44 = vsel %vm9875_vm15, %v1637_v6, %v1634_v33  ;;  %vm1521_vm3 = vcmp.ne.f32.partialorder %v9760_v61, %v9760_v61  ;;  %v1646_v22 = vmul.f32 %v9829_v42, %v1645_v1 }
 0x23f   :  { %v1671_v50 = vmul.f32 -0.5, %v9870_v3  ;;  %v1596_v14 = vmul.f32 1.442695, %v1573_v29  ;;  %7845 = vrcp.f32 %v9864_v28  ;;  %vm9894_vm4 = vcmp.lt.f32.partialorder %v1647_v32, 0.0004427343 }
 0x240   :  { %v1782_v10 = vsel %vm1526_vm13, %v9733_v31, %v1766_v53  ;;  %v1606_v6 = vmul.f32 1.442695, %v1578_v60  ;;  %v1811_v43 = vadd.f32 0.1, %v1795_v45  ;;  %v1649_v42 = vsel %vm9894_vm4, %v1646_v22, %v1643_v35 }
 0x241   :  { %v7842_v34 = vpop.eup %7841  ;;  %7847 = vpow2.f32 %v1596_v14  ;;  %v1410_v27 = vadd.f32 %v1409_v13, %v14071_v24  ;;  %v14072_v18 = vmax.f32 %v9725_v59, 0.0  ;;  %v1700_v29 = vmul.f32 %v7834_v40, %v1699_v9  ;;  %v14075_v9 = vld [vmem:[#allocation31_spill] sm:$0xff] }
 0x242   :  { %v1697_v1 = vmul.f32 0.6931472, %v7842_v34  ;;  %vm1702_vm5 = vcmp.lt.f32.partialorder %v1701_v11, 0.0004427343  ;;  %v1798_v32 = vmul.f32 9.9, %v1782_v10  ;;  %7849 = vpow2.f32 %v1606_v6  ;;  %v1464_v34 = vpop.f32.mrf.mxu3 }
 0x243   :  { %v1760_v33 = vadd.f32 %v1640_v44, %v14072_v18  ;;  %v1672_v46 = vadd.f32 1.0, %v1671_v50  ;;  %v9907_v57 = vclamps-f32 %v1410_v27, 50.0  ;;  %v14073_v45 = vmax.f32 %v9760_v61, 0.0 }
 0x244   :  { %v7844_v60 = vpop.eup %7843  ;;  %v1703_v31 = vsel %vm1702_vm5, %v1700_v29, %v1697_v1  ;;  %v1508_v35 = vmax.f32 %v9782_v55, 0.0  ;;  %v1674_v13 = vand.u32 2147483647, %v9870_v3  ;;  %7851 = vrcp.f32 %v1811_v43 }
 0x245   :  { %v1761_v53 = vadd.f32 %v1649_v42, %v14073_v45  ;;  %v14074_v44 = vmax.f32 %v9768_v15, 0.0  ;;  %v1670_v40 = vmul.f32 0.6931472, %v7844_v60  ;;  %v1436_v11 = vadd.f32 %v1435_v63, %v14075_v9  ;;  %v9916_v50 = vpop.eup %7845 }
 0x246   :  { %v1563_v6 = vand.u32 2147483647, %v9907_v57  ;;  %v1776_v27 = vsel %vm1520_vm0, %v9725_v59, %v1760_v33  ;;  %v9926_v18 = vadd.f32 0.1, %v1798_v32  ;;  %vm1524_vm6 = vcmp.ne.f32.partialorder %v9782_v55, %v9782_v55  ;;  %v1438_v32 = vpop.f32.mrf.mxu2  ;;  %v14079_v59 = vld [vmem:[#allocation35_spill] sm:$0xff] }
 0x247   :  { %v1767_v22 = vadd.f32 %v1703_v31, %v14074_v44  ;;  %v7848_v42 = vpop.eup %7847  ;;  %v1673_v1 = vmul.f32 %v9870_v3, %v1672_v46  ;;  %v1777_v29 = vsel %vm1521_vm3, %v9760_v61, %v1761_v53  ;;  %vm9939_vm7 = vcmp.lt.f32.partialorder %v1674_v13, 0.0004427343 }
 0x248   :  { %v1677_v33 = vadd.f32 1.0, %v7848_v42  ;;  %v7850_v45 = vpop.eup %7849  ;;  %v1680_v31 = vmul.f32 -0.5, %v7848_v42  ;;  %v1579_v44 = vsub.f32 0.0, %v1563_v6  ;;  %v9949_v3 = vmul.f32 %v9916_v50, %v9864_v28 }
 0x249   :  { %v1783_v63 = vsel %vm1527_vm1, %v9768_v15, %v1767_v22  ;;  %v1676_v15 = vsel %vm9939_vm7, %v1673_v1, %v1670_v40  ;;  %v9945_v22 = vclamps-f32 %v1436_v11, 50.0  ;;  %v1792_v61 = vmul.f32 9.9, %v1776_v27 }
 0x24a   :  { %v1799_v60 = vmul.f32 9.9, %v1783_v63  ;;  %7853 = vlog2.f32 %v1677_v33  ;;  %v1722_v46 = vadd.f32 1.0, %v7850_v45  ;;  %v9951_v53 = vpop.eup %7851  ;;  %v14078_v63 = vld [vmem:[#allocation32_spill] sm:$0xff]  ;;  %v1439_v40 = vadd.f32 %v1438_v32, %v14079_v59 }
 0x24b   :  { %7855 = vrcp.f32 %v9926_v18  ;;  %v1465_v47 = vadd.f32 %v1464_v34, %v14078_v63  ;;  %v1793_v1 = vmul.f32 9.9, %v1777_v29  ;;  %v1764_v6 = vadd.f32 %v1676_v15, %v1508_v35 }
 0x24c   :  { %v1815_v13 = vadd.f32 0.1, %v1799_v60  ;;  %v1725_v11 = vmul.f32 -0.5, %v7850_v45  ;;  %v1608_v14 = vmul.f32 1.442695, %v1579_v44  ;;  %v1681_v10 = vadd.f32 1.0, %v1680_v31  ;;  %v1467_v44 = vpop.f32.mrf.mxu3 }
 0x24d   :  { %v1514_v28 = vmax.f32 %v9845_v49, 0.0  ;;  %7857 = vlog2.f32 %v1722_v46  ;;  %v1560_v27 = vand.u32 2147483647, %v9945_v22  ;;  %v9959_v33 = vmul.f32 %v9951_v53, %v1811_v43 }
 0x24e   :  { %v9961_v9 = vadd.f32 0.1, %v1792_v61  ;;  %v1683_v60 = vand.u32 2147483647, %v7848_v42  ;;  %7859 = vpow2.f32 %v1608_v14  ;;  %v9963_v32 = vclamps-f32 %v1465_v47, 50.0 }
 0x24f   :  { %7861 = vrcp.f32 %v1815_v13  ;;  %v1576_v34 = vsub.f32 0.0, %v1560_v27  ;;  %v9965_v35 = vclamps-f32 %v1439_v40, 50.0  ;;  %v9968_v31 = vadd.f32 0.1, %v1793_v1 }
 0x250   :  { %v7854_v29 = vpop.eup %7853  ;;  %v1780_v43 = vsel %vm1524_vm6, %v9782_v55, %v1764_v6  ;;  %vm1530_vm8 = vcmp.ne.f32.partialorder %v9845_v49, %v9845_v49  ;;  %v1726_v14 = vadd.f32 1.0, %v1725_v11  ;;  %vm1525_vm9 = vcmp.ne.f32.partialorder %v9839_v51, %v9839_v51 }
 0x251   :  { %v9976_v61 = vpop.eup %7855  ;;  %v1679_v47 = vmul.f32 0.6931472, %v7854_v29  ;;  %v1682_v46 = vmul.f32 %v7848_v42, %v1681_v10  ;;  %v1728_v40 = vand.u32 2147483647, %v7850_v45  ;;  %v1602_v1 = vmul.f32 1.442695, %v1576_v34 }
 0x252   :  { %7863 = vrcp.f32 %v9961_v9  ;;  %vm9981_vm10 = vcmp.lt.f32.partialorder %v1683_v60, 0.0004427343  ;;  %v1561_v55 = vand.u32 2147483647, %v9963_v32  ;;  %v1564_v6 = vand.u32 2147483647, %v9965_v35 }
 0x253   :  { %v7858_v11 = vpop.eup %7857  ;;  %v1796_v15 = vmul.f32 9.9, %v1780_v43  ;;  %v1685_v59 = vsel %vm9981_vm10, %v1682_v46, %v1679_v47  ;;  %7865 = vpow2.f32 %v1602_v1  ;;  %v1468_v10 = vadd.f32 %v1467_v44, %v9130_v17 }
 0x254   :  { %v7860_v42 = vpop.eup %7859  ;;  %7867 = vrcp.f32 %v9968_v31  ;;  %v1724_v34 = vmul.f32 0.6931472, %v7858_v11  ;;  %v1727_v60 = vmul.f32 %v7850_v45, %v1726_v14  ;;  %v1577_v29 = vsub.f32 0.0, %v1561_v55 }
 0x255   :  { %v9991_v63 = vpop.eup %7861  ;;  %v1846_v24 = vmul.f32 %v9976_v61, %v9926_v18  ;;  %vm1729_vm11 = vcmp.lt.f32.partialorder %v1728_v40, 0.0004427343  ;;  %v1731_v21 = vadd.f32 1.0, %v7860_v42  ;;  %v1580_v43 = vsub.f32 0.0, %v1564_v6 }
 0x256   :  { %v14082_v27 = vmax.f32 %v9839_v51, 0.0  ;;  %v1730_v46 = vsel %vm1729_vm11, %v1727_v60, %v1724_v34  ;;  %v1734_v1 = vmul.f32 -0.5, %v7860_v42  ;;  %v1604_v44 = vmul.f32 1.442695, %v1577_v29 }
 0x257   :  { %v9997_v17 = vadd.f32 0.1, %v1796_v15  ;;  %v1770_v7 = vadd.f32 %v1730_v46, %v1514_v28  ;;  %7869 = vlog2.f32 %v1731_v21  ;;  %v9999_v45 = vclamps-f32 %v1468_v10, 50.0 }
 0x258   :  { %v1765_v47 = vadd.f32 %v1685_v59, %v14082_v27  ;;  %v10001_v14 = vpop.eup %7863  ;;  %v1847_v18 = vmul.f32 %v9991_v63, %v1815_v13  ;;  %v1515_v40 = vmax.f32 %v9907_v57, 0.0  ;;  %7871 = vpow2.f32 %v1604_v44 }
 0x259   :  { %v7866_v6 = vpop.eup %7865  ;;  %v1862_v59 = vsub.f32 2.0, %v1846_v24  ;;  %v1786_v15 = vsel %vm1530_vm8, %v9845_v49, %v1770_v7  ;;  %v1737_v28 = vand.u32 2147483647, %v7860_v42  ;;  %v1610_v21 = vmul.f32 1.442695, %v1580_v43 }
 0x25a   :  { %v10010_v11 = vpop.eup %7867  ;;  %v1781_v10 = vsel %vm1525_vm9, %v9839_v51, %v1765_v47  ;;  %v1802_v13 = vmul.f32 9.9, %v1786_v15  ;;  %v1735_v34 = vadd.f32 1.0, %v1734_v1  ;;  %v1704_v60 = vadd.f32 1.0, %v7866_v6 }
 0x25b   :  { %14083 = vst [vmem:[#allocation49_spill] sm:$0xff] %v10010_v11  ;;  %7873 = vrcp.f32 %v9997_v17  ;;  %vm1531_vm12 = vcmp.ne.f32.partialorder %v9907_v57, %v9907_v57  ;;  %v1707_v24 = vmul.f32 -0.5, %v7866_v6  ;;  %v1565_v7 = vand.u32 2147483647, %v9999_v45 }
 0x25c   :  { %v1863_v49 = vsub.f32 2.0, %v1847_v18  ;;  %v1818_v29 = vadd.f32 0.1, %v1802_v13  ;;  %v1512_v43 = vmax.f32 %v9945_v22, 0.0  ;;  %7875 = vlog2.f32 %v1704_v60 }
 0x25d   :  { %v7870_v27 = vpop.eup %7869  ;;  %v1797_v46 = vmul.f32 9.9, %v1781_v10  ;;  %vm10021_vm13 = vcmp.lt.f32.partialorder %v1737_v28, 0.0004427343  ;;  %7877 = vpow2.f32 %v1610_v21  ;;  %v1581_v47 = vsub.f32 0.0, %v1565_v7 }
 0x25e   :  { %v7872_v1 = vpop.eup %7871  ;;  %7879 = vrcp.f32 %v1818_v29  ;;  %v1733_v44 = vmul.f32 0.6931472, %v7870_v27  ;;  %v1736_v15 = vmul.f32 %v7860_v42, %v1735_v34  ;;  %v1878_v55 = vmul.f32 %v9976_v61, %v1862_v59 }
 0x25f   :  { %vm1528_vm14 = vcmp.ne.f32.partialorder %v9945_v22, %v9945_v22  ;;  %v1708_v18 = vadd.f32 1.0, %v1707_v24  ;;  %v1713_v13 = vadd.f32 1.0, %v7872_v1  ;;  %v1716_v60 = vmul.f32 -0.5, %v7872_v1 }
 0x260   :  { %v1612_v11 = vmul.f32 1.442695, %v1581_v47  ;;  %v1739_v28 = vsel %vm10021_vm13, %v1736_v15, %v1733_v44  ;;  %v1710_v10 = vand.u32 2147483647, %v7866_v6  ;;  %v1513_v21 = vmax.f32 %v9963_v32, 0.0 }
 0x261   :  { %v14086_v7 = vsub.f32 2.0, %v9949_v3  ;;  %v10034_v42 = vpop.eup %7873  ;;  %v10036_v61 = vadd.f32 0.1, %v1797_v46  ;;  %v1771_v59 = vadd.f32 %v1739_v28, %v1515_v40  ;;  %7881 = vlog2.f32 %v1713_v13 }
 0x262   :  { %v7876_v24 = vpop.eup %7875  ;;  %7883 = vpow2.f32 %v1612_v11  ;;  %v1990_v51 = vmul.f32 0.125, %v1878_v55  ;;  %v1879_v44 = vmul.f32 %v9991_v63, %v1863_v49  ;;  %v1709_v46 = vmul.f32 %v7866_v6, %v1708_v18 }
 0x263   :  { %v1874_v27 = vmul.f32 %v9916_v50, %v14086_v7  ;;  %v7878_v15 = vpop.eup %7877  ;;  %v1787_v50 = vsel %vm1531_vm12, %v9907_v57, %v1771_v59  ;;  %v1706_v3 = vmul.f32 0.6931472, %v7876_v24  ;;  %v1717_v7 = vadd.f32 1.0, %v1716_v60 }
 0x264   :  { %v7880_v40 = vpop.eup %7879  ;;  %v1803_v13 = vmul.f32 9.9, %v1787_v50  ;;  %vm1711_vm15 = vcmp.lt.f32.partialorder %v1710_v10, 0.0004427343  ;;  %vm1529_vm0 = vcmp.ne.f32.partialorder %v9963_v32, %v9963_v32  ;;  %v1740_v28 = vadd.f32 1.0, %v7878_v15 }
 0x265   :  { %v1743_v11 = vmul.f32 -0.5, %v7878_v15  ;;  %7885 = vrcp.f32 %v10036_v61  ;;  %v1850_v63 = vmul.f32 %v7880_v40, %v1818_v29  ;;  %v1712_v55 = vsel %vm1711_vm15, %v1709_v46, %v1706_v3 }
 0x266   :  { %v1719_v49 = vand.u32 2147483647, %v7872_v1  ;;  %v1819_v47 = vadd.f32 0.1, %v1803_v13  ;;  %v1768_v34 = vadd.f32 %v1712_v55, %v1512_v43  ;;  %7887 = vlog2.f32 %v1740_v28 }
 0x267   :  { %v1991_v57 = vmul.f32 0.125, %v1879_v44  ;;  %v7882_v59 = vpop.eup %7881  ;;  %v1866_v6 = vsub.f32 2.0, %v1850_v63  ;;  %v1718_v18 = vmul.f32 %v7872_v1, %v1717_v7  ;;  %v2006_v60 = vmul.f32 %v9531_v58, %v1990_v51 }
 0x268   :  { %v1986_v10 = vmul.f32 0.125, %v1874_v27  ;;  %v7884_v24 = vpop.eup %7883  ;;  %7889 = vrcp.f32 %v1819_v47  ;;  %v1784_v50 = vsel %vm1528_vm14, %v9945_v22, %v1768_v34  ;;  %v1715_v29 = vmul.f32 0.6931472, %v7882_v59 }
 0x269   :  { %v1744_v3 = vadd.f32 1.0, %v1743_v11  ;;  %v1800_v46 = vmul.f32 9.9, %v1784_v50  ;;  %vm1720_vm1 = vcmp.lt.f32.partialorder %v1719_v49, 0.0004427343  ;;  %vm1532_vm3 = vcmp.ne.f32.partialorder %v9965_v35, %v9965_v35 }
 0x26a   :  { %v1749_v43 = vadd.f32 1.0, %v7884_v24  ;;  %v1752_v44 = vmul.f32 -0.5, %v7884_v24  ;;  %v1721_v1 = vsel %vm1720_vm1, %v1718_v18, %v1715_v29  ;;  %v1746_v7 = vand.u32 2147483647, %v7878_v15 }
 0x26b   :  { %v1882_v58 = vmul.f32 %v7880_v40, %v1866_v6  ;;  %v14087_v27 = vsub.f32 2.0, %v9858_v19  ;;  %v10058_v13 = vpop.eup %7885  ;;  %v1816_v28 = vadd.f32 0.1, %v1800_v46  ;;  %v1769_v22 = vadd.f32 %v1721_v1, %v1513_v21 }
 0x26c   :  { %7891 = vlog2.f32 %v1749_v43  ;;  %v10061_v34 = vmul.f32 %v9550_v8, %v1991_v57  ;;  %v7888_v11 = vpop.eup %7887  ;;  %v1745_v63 = vmul.f32 %v7878_v15, %v1744_v3  ;;  %v2002_v49 = vmul.f32 %v9545_v25, %v1986_v10 }
 0x26d   :  { %v1870_v51 = vmul.f32 %v9841_v52, %v14087_v27  ;;  %v1994_v55 = vmul.f32 0.125, %v1882_v58  ;;  %7893 = vrcp.f32 %v1816_v28  ;;  %v1785_v52 = vsel %vm1529_vm0, %v9963_v32, %v1769_v22 }
 0x26e   :  { %v1742_v19 = vmul.f32 0.6931472, %v7888_v11  ;;  %v1753_v40 = vadd.f32 1.0, %v1752_v44  ;;  %v7890_v6 = vpop.eup %7889  ;;  %v1801_v21 = vmul.f32 9.9, %v1785_v52  ;;  %v2022_v57 = vsub.f32 %v9731_v16, %v2006_v60 }
 0x26f   :  { %v1982_v59 = vmul.f32 0.125, %v1870_v51  ;;  %vm1747_vm4 = vcmp.lt.f32.partialorder %v1746_v7, 0.0004427343  ;;  %v2010_v8 = vmul.f32 %v9526_v56, %v1994_v55  ;;  %v1851_v15 = vmul.f32 %v7890_v6, %v1819_v47 }
 0x270   :  { %v1748_v18 = vsel %vm1747_vm4, %v1745_v63, %v1742_v19  ;;  %v1755_v50 = vand.u32 2147483647, %v7884_v24  ;;  %v14088_v25 = vsub.f32 2.0, %v9959_v33  ;;  %v1817_v29 = vadd.f32 0.1, %v1801_v21 }
 0x271   :  { %v14089_v3 = vmax.f32 %v9965_v35, 0.0  ;;  %v2026_v46 = vsub.f32 %v9771_v20, %v2010_v8  ;;  %v1998_v43 = vmul.f32 %v9554_v2, %v1982_v59  ;;  %v1867_v1 = vsub.f32 2.0, %v1851_v15 }
 0x272   :  { %v1875_v10 = vmul.f32 %v9951_v53, %v14088_v25  ;;  %v7892_v44 = vpop.eup %7891  ;;  %v1754_v56 = vmul.f32 %v7884_v24, %v1753_v40  ;;  %v2018_v16 = vsub.f32 %v9719_v39, %v2002_v49  ;;  %v14090_v47 = vsub.f32 2.0, %v9881_v37 }
 0x273   :  { %v1772_v32 = vadd.f32 %v1748_v18, %v14089_v3  ;;  %7895 = vrcp.f32 %v1817_v29  ;;  %v1751_v33 = vmul.f32 0.6931472, %v7892_v44  ;;  %v10085_v7 = vclamps-f32 %v2026_v46, 100.0  ;;  %v7894_v20 = vpop.eup %7893 }
 0x274   :  { %v1871_v60 = vmul.f32 %v9862_v41, %v14090_v47  ;;  %vm1756_vm5 = vcmp.lt.f32.partialorder %v1755_v50, 0.0004427343  ;;  %v1883_v58 = vmul.f32 %v7890_v6, %v1867_v1  ;;  %v1987_v24 = vmul.f32 0.125, %v1875_v10  ;;  %v14092_v50 = vld [vmem:[#allocation49_spill] sm:$0xff]  ;;  %v14095_v47 = vld [vmem:[#allocation47_spill] sm:$0xff] }
 0x275   :  { %v1788_v53 = vsel %vm1532_vm3, %v9965_v35, %v1772_v32  ;;  %v1848_v27 = vmul.f32 %v7894_v20, %v1816_v28  ;;  %v1757_v39 = vsel %vm1756_vm5, %v1754_v56, %v1751_v33  ;;  %2074 = vmatpush.msra.mxu0 %v10085_v7  ;;  %v10088_v37 = vclamps-f32 %v2022_v57, 100.0  ;;  %v14094_v32 = vld [vmem:[#allocation48_spill] sm:$0xff] }
 0x276   :  { %v1804_v2 = vmul.f32 9.9, %v1788_v53  ;;  %v2014_v41 = vsub.f32 %v9713_v54, %v1998_v43  ;;  %v14091_v22 = vmax.f32 %v9999_v45, 0.0  ;;  %v1995_v11 = vmul.f32 0.125, %v1883_v58 }
 0x277   :  { %v1983_v63 = vmul.f32 0.125, %v1871_v60  ;;  %7897 = vtanh.f32 %v9831_v12  ;;  %v1844_v55 = vmul.f32 %v10034_v42, %v9997_v17  ;;  %vm1533_vm6 = vcmp.ne.f32.partialorder %v9999_v45, %v9999_v45  ;;  %2075 = vmatpush.msra.mxu0 %v10088_v37 }
 0x278   :  { %v1820_v51 = vadd.f32 0.1, %v1804_v2  ;;  %v1773_v35 = vadd.f32 %v1757_v39, %v14091_v22  ;;  %v10099_v28 = vclamps-f32 %v2018_v16, 100.0  ;;  %v2011_v49 = vmul.f32 %v9540_v0, %v1995_v11 }
 0x279   :  { %v2003_v59 = vmul.f32 %v9559_v4, %v1987_v24  ;;  %v7896_v52 = vpop.eup %7895  ;;  %v1840_v12 = vmul.f32 %v10001_v14, %v9961_v9  ;;  %v1864_v19 = vsub.f32 2.0, %v1848_v27  ;;  %v10107_v40 = vclamps-f32 %v2014_v41, 100.0 }
 0x27a   :  { %7899 = vrcp.f32 %v1820_v51  ;;  %v1789_v54 = vsel %vm1533_vm6, %v9999_v45, %v1773_v35  ;;  %2076 = vmatpush.msra.mxu0 %v10099_v28  ;;  %v1849_v6 = vmul.f32 %v7896_v52, %v1817_v29  ;;  %v2027_v21 = vsub.f32 %v9785_v26, %v2011_v49  ;;  %v14093_v29 = vld [vmem:[#allocation45_spill] sm:$0xff] }
 0x27b   :  { %v1805_v17 = vmul.f32 9.9, %v1789_v54  ;;  %v2023_v45 = vsub.f32 %v9746_v30, %v10061_v34  ;;  %v1999_v0 = vmul.f32 %v9565_v38, %v1983_v63  ;;  %v10114_v4 = vadd.f32 1.0, %v9735_v23  ;;  %v10127_v38 = vld [vmem:[%s13770_s1] sm:$0xff] }
 0x27c   :  { %v1932_v8 = vadd.f32 1.0, %v9820_v48  ;;  %v1860_v9 = vsub.f32 2.0, %v1844_v55  ;;  %2077 = vmatpush.msra.mxu0 %v10107_v40  ;;  %v1924_v15 = vadd.f32 1.0, %v9739_v62  ;;  %v1845_v18 = vmul.f32 %v10058_v13, %v10036_v61 }
 0x27d   :  { %v1821_v57 = vadd.f32 0.1, %v1805_v17  ;;  %v10121_v26 = vclamps-f32 %v2027_v21, 100.0  ;;  %v2019_v30 = vsub.f32 %v9728_v5, %v2003_v59  ;;  %7269 = vmatmul.msk.f32.vlgmr.msra.gmra.mxu0 %vm389_vm2, %v10127_v38  ;;  %v7898_v23 = vpop.eup %7897  ;;  %v1944_v48 = vmul.f32 0.5, %v9817_v36  ;;  %v14096_v59 = vld [vmem:[#allocation38_spill] sm:$0xff] }
 0x27e   :  { %v1856_v34 = vsub.f32 2.0, %v1840_v12  ;;  %2190 = vmatpush.msrb.mxu0 %v10085_v7  ;;  %v1880_v62 = vmul.f32 %v7894_v20, %v1864_v19  ;;  %v1841_v5 = vmul.f32 %v14092_v50, %v9968_v31  ;;  %v1865_v25 = vsub.f32 2.0, %v1849_v6 }
 0x27f   :  { %7901 = vrcp.f32 %v1821_v57  ;;  %2103 = vmatpush.msra.mxu1 %v10121_v26  ;;  %v10136_v10 = vclamps-f32 %v2023_v45, 100.0  ;;  %v2015_v3 = vsub.f32 %v14093_v29, %v1999_v0  ;;  %v1929_v46 = vadd.f32 1.0, %v14094_v32  ;;  %v14097_v0 = vld [vmem:[#allocation37_spill] sm:$0xff]  ;;  %v14100_v29 = vld [vmem:[#allocation42_spill] sm:$0xff] }
 0x280   :  { %v7900_v61 = vpop.eup %7899  ;;  %v1948_v43 = vmul.f32 0.5, %v1932_v8  ;;  %2191 = vmatpush.msrb.mxu0 %v10088_v37  ;;  %v1876_v44 = vmul.f32 %v10034_v42, %v1860_v9  ;;  %v1940_v1 = vmul.f32 0.5, %v1924_v15  ;;  %v1933_v56 = vadd.f32 1.0, %v7898_v23  ;;  %v14098_v9 = vld [vmem:[#allocation39_spill] sm:$0xff] }
 0x281   :  { %v1852_v36 = vmul.f32 %v7900_v61, %v1820_v51  ;;  %v1861_v16 = vsub.f32 2.0, %v1845_v18  ;;  %2104 = vmatpush.msra.mxu1 %v10136_v10  ;;  %v10143_v31 = vclamps-f32 %v2019_v30, 100.0  ;;  %v1925_v60 = vadd.f32 1.0, %v14095_v47 }
 0x282   :  { %2192 = vmatpush.msrb.mxu0 %v10099_v28  ;;  %v1992_v33 = vmul.f32 0.125, %v1880_v62  ;;  %v1872_v20 = vmul.f32 %v10001_v14, %v1856_v34  ;;  %v1960_v2 = vmul.f32 0.125, %v1944_v48  ;;  %v1857_v58 = vsub.f32 2.0, %v1841_v5  ;;  %v10156_v14 = vld [vmem:[%s13770_s1 + $0x8] sm:$0xff] }
 0x283   :  { %v1868_v53 = vsub.f32 2.0, %v1852_v36  ;;  %2105 = vmatpush.msra.mxu1 %v10143_v31  ;;  %v10149_v42 = vclamps-f32 %v2015_v3, 100.0  ;;  %v1881_v24 = vmul.f32 %v7896_v52, %v1865_v25  ;;  %v1945_v39 = vmul.f32 0.5, %v1929_v46  ;;  %v14101_v46 = vld [vmem:[#allocation46_spill] sm:$0xff] }
 0x284   :  { %v1964_v41 = vmul.f32 0.125, %v1948_v43  ;;  %2193 = vmatpush.msrb.mxu0 %v10107_v40  ;;  %v1988_v22 = vmul.f32 0.125, %v1876_v44  ;;  %v1956_v35 = vmul.f32 0.125, %v1940_v1  ;;  %v1949_v11 = vmul.f32 0.5, %v1933_v56  ;;  %v14103_v56 = vld [vmem:[#allocation40_spill] sm:$0xff] }
 0x285   :  { %v7902_v27 = vpop.eup %7901  ;;  %v1884_v51 = vmul.f32 %v7900_v61, %v1868_v53  ;;  %2106 = vmatpush.msra.mxu1 %v10149_v42  ;;  %7270 = vmatmul.msk.f32.gmra.mxu0 %vm389_vm2, %v10156_v14  ;;  %v1877_v55 = vmul.f32 %v10058_v13, %v1861_v16  ;;  %v1941_v54 = vmul.f32 0.5, %v1925_v60  ;;  %v2008_v52 = vmul.f32 %v14096_v59, %v1992_v33  ;;  %v14099_v61 = vld [vmem:[#allocation41_spill] sm:$0xff]  ;;  %v14104_v60 = vld [vmem:[#allocation43_spill] sm:$0xff]  ;;  %v8689_v33 = vld [vmem:[%s13770_s1 + $0x10] sm:$0xff] }
 0x286   :  { %v1853_v63 = vmul.f32 %v7902_v27, %v1821_v57  ;;  %7273 = vmatmul.msk.f32.vlgmr.msra.gmra.mxu1 %vm389_vm2, %v10127_v38  ;;  %v1984_v12 = vmul.f32 0.125, %v1872_v20  ;;  %v1976_v19 = vadd.f32 %v14096_v59, %v1960_v2  ;;  %v1993_v6 = vmul.f32 0.125, %v1881_v24 }
 0x287   :  { %v1996_v49 = vmul.f32 0.125, %v1884_v51  ;;  %2219 = vmatpush.msrb.mxu1 %v10121_v26  ;;  %v1873_v21 = vmul.f32 %v14092_v50, %v1857_v58  ;;  %v1961_v45 = vmul.f32 0.125, %v1945_v39  ;;  %v1980_v8 = vadd.f32 %v14097_v0, %v1964_v41  ;;  %v14106_v39 = vld [vmem:[#allocation44_spill] sm:$0xff] }
 0x288   :  { %v1869_v17 = vsub.f32 2.0, %v1853_v63  ;;  %v2004_v57 = vmul.f32 %v14098_v9, %v1988_v22  ;;  %v1937_v15 = vmul.f32 0.5, %v10114_v4  ;;  %v1965_v18 = vmul.f32 0.125, %v1949_v11 }
 0x289   :  { %v2012_v13 = vmul.f32 %v14097_v0, %v1996_v49  ;;  %2220 = vmatpush.msrb.mxu1 %v10136_v10  ;;  %v1989_v23 = vmul.f32 0.125, %v1877_v55  ;;  %v1972_v48 = vadd.f32 %v14098_v9, %v1956_v35  ;;  %v2024_v62 = vsub.f32 %v1976_v19, %v2008_v52  ;;  %v8690_v52 = vld [vmem:[%s13770_s1 + $0x18] sm:$0xff] }
 0x28a   :  { %v1885_v30 = vmul.f32 %v7902_v27, %v1869_v17  ;;  %v2000_v50 = vmul.f32 %v14099_v61, %v1984_v12  ;;  %v1957_v5 = vmul.f32 0.125, %v1941_v54  ;;  %v2009_v3 = vmul.f32 %v14100_v29, %v1993_v6  ;;  %v8691_v12 = vld [vmem:[%s13771_s2] sm:$0xff]  ;;  %v8694_v19 = vld [vmem:[%s13771_s2 + $0x18] sm:$0xff] }
 0x28b   :  { %v2028_v34 = vsub.f32 %v1980_v8, %v2012_v13  ;;  %2221 = vmatpush.msrb.mxu1 %v10143_v31  ;;  %v1985_v32 = vmul.f32 0.125, %v1873_v21  ;;  %v1968_v4 = vadd.f32 %v14099_v61, %v14101_v46  ;;  %v1977_v43 = vadd.f32 %v14100_v29, %v1961_v45  ;;  %v14113_v8 = vld [vmem:[#allocation5_spill] sm:$0xff] }
 0x28c   :  { %v1997_v25 = vmul.f32 0.125, %v1885_v30  ;;  %v2020_v44 = vsub.f32 %v1972_v48, %v2004_v57  ;;  %v1953_v1 = vmul.f32 0.125, %v1937_v15  ;;  %v1981_v16 = vadd.f32 %v14103_v56, %v1965_v18  ;;  %v14114_v18 = vld [vmem:[#allocation9_spill] sm:$0xff] }
 0x28d   :  { %v10179_v36 = vclamps-f32 %v2028_v34, 100.0  ;;  %2222 = vmatpush.msrb.mxu1 %v10149_v42  ;;  %v2005_v53 = vmul.f32 %v14104_v60, %v1989_v23  ;;  %7271 = vmatmul.msk.f32.gmra.mxu0 %vm389_vm2, %v8689_v33  ;;  %v10190_v20 = vclamps-f32 %v2024_v62, 100.0  ;;  %v2016_v2 = vsub.f32 %v1968_v4, %v2000_v50  ;;  %v14115_v23 = vld [vmem:[#allocation6_spill] sm:$0xff]  ;;  %v14116_v34 = vld [vmem:[#allocation13_spill] sm:$0xff] }
 0x28e   :  { %v2013_v47 = vmul.f32 %v14103_v56, %v1997_v25  ;;  %7274 = vmatmul.msk.f32.gmra.mxu1 %vm389_vm2, %v10156_v14  ;;  %v1973_v58 = vadd.f32 %v14104_v60, %v1957_v5  ;;  %v2025_v27 = vsub.f32 %v1977_v43, %v2009_v3  ;;  %v2001_v41 = vmul.f32 %v14106_v39, %v1985_v32  ;;  %v14117_v5 = vld [vmem:[#allocation10_spill] sm:$0xff]  ;;  %v14118_v43 = vld [vmem:[#allocation21_spill] sm:$0xff] }
 0x28f   :  { %14102 = vst [vmem:[#allocation49_spill] sm:$0xff] %v10179_v36  ;;  %2132 = vmatpush.msra.mxu2 %v10179_v36  ;;  %v10197_v51 = vclamps-f32 %v2020_v44, 100.0  ;;  %v1969_v22 = vadd.f32 %v14106_v39, %v1953_v1  ;;  %v10203_v63 = vclamps-f32 %v2016_v2, 100.0  ;;  %v14119_v56 = vld [vmem:[#allocation14_spill] sm:$0xff]  ;;  %v14120_v60 = vld [vmem:[#allocation17_spill] sm:$0xff] }
 0x290   :  { %14105 = vst [vmem:[#allocation45_spill] sm:$0xff] %v10190_v20  ;;  %v2029_v24 = vsub.f32 %v1981_v16, %v2013_v47  ;;  %v2021_v11 = vsub.f32 %v1973_v58, %v2005_v53  ;;  %v10206_v55 = vclamps-f32 %v2025_v27, 100.0 }
 0x291   :  { %2133 = vmatpush.msra.mxu2 %v10190_v20  ;;  %14107 = vst [vmem:[#allocation48_spill] sm:$0xff] %v10197_v51  ;;  %v2017_v54 = vsub.f32 %v1969_v22, %v2001_v41 }
 0x292   :  { %v10200_v35 = vclamps-f32 %v2029_v24, 100.0  ;;  %14109 = vst [vmem:[#allocation38_spill] sm:$0xff] %v10203_v63  ;;  %v10210_v49 = vclamps-f32 %v2021_v11, 100.0 }
 0x293   :  { %2134 = vmatpush.msra.mxu2 %v10197_v51  ;;  %14110 = vst [vmem:[#allocation37_spill] sm:$0xff] %v10206_v55  ;;  %v10217_v59 = vclamps-f32 %v2017_v54, 100.0  ;;  %v14121_v54 = vld [vmem:[#allocation22_spill] sm:$0xff] }
 0x294   :  { %14108 = vst [vmem:[#allocation47_spill] sm:$0xff] %v10200_v35  ;;  %2161 = vmatpush.msra.mxu3 %v10200_v35 }
 0x295   :  { %2135 = vmatpush.msra.mxu2 %v10203_v63  ;;  %14111 = vst [vmem:[#allocation39_spill] sm:$0xff] %v10210_v49  ;;  %7272 = vmatmul.msk.f32.gmra.mxu0 %vm389_vm2, %v8690_v52 }
 0x296   :  { %2162 = vmatpush.msra.mxu3 %v10206_v55  ;;  %7277 = vmatmul.msk.f32.vlgmr.msra.gmra.mxu2 %vm389_vm2, %v10127_v38  ;;  %14112 = vst [vmem:[#allocation41_spill] sm:$0xff] %v10217_v59 }
 0x297   :  { %2248 = vmatpush.msrb.mxu2 %v10179_v36  ;;  %7275 = vmatmul.msk.f32.gmra.mxu1 %vm389_vm2, %v8689_v33 }
 0x298   :  { %2163 = vmatpush.msra.mxu3 %v10210_v49 }
 0x299   :  { %2249 = vmatpush.msrb.mxu2 %v10190_v20 }
 0x29a   :  { %2164 = vmatpush.msra.mxu3 %v10217_v59 }
 0x29b   :  { %7281 = vmatmul.msk.f32.vlgmr.msra.gmra.mxu3 %vm389_vm2, %v10127_v38  ;;  %2250 = vmatpush.msrb.mxu2 %v10197_v51  ;;  %v8692_v38 = vld [vmem:[%s13771_s2 + $0x8] sm:$0xff] }
 0x29c   :  { %2277 = vmatpush.msrb.mxu3 %v10200_v35 }
 0x29d   :  { %2251 = vmatpush.msrb.mxu2 %v10203_v63  ;;  %7285 = vmatmul.msk.f32.vlgmr.msrb.gmra.mxu0 %vm389_vm2, %v8691_v12 }
 0x29e   :  { %2278 = vmatpush.msrb.mxu3 %v10206_v55  ;;  %7278 = vmatmul.msk.f32.gmra.mxu2 %vm389_vm2, %v10156_v14 }
 0x29f   :  { %7276 = vmatmul.msk.f32.gmra.mxu1 %vm389_vm2, %v8690_v52 }
 0x2a0   :  { %2279 = vmatpush.msrb.mxu3 %v10210_v49 }
 0x2a2   :  { %2280 = vmatpush.msrb.mxu3 %v10217_v59 }
 0x2a3   :  { %7282 = vmatmul.msk.f32.gmra.mxu3 %vm389_vm2, %v10156_v14  ;;  %v8693_v14 = vld [vmem:[%s13771_s2 + $0x10] sm:$0xff] }
 0x2a5   :  { %7286 = vmatmul.msk.f32.gmra.mxu0 %vm389_vm2, %v8692_v38 }
 0x2a6   :  { %7279 = vmatmul.msk.f32.gmra.mxu2 %vm389_vm2, %v8689_v33 }
 0x2a7   :  { %7289 = vmatmul.msk.f32.vlgmr.msrb.gmra.mxu1 %vm389_vm2, %v8691_v12 }
 0x2ab   :  { %7283 = vmatmul.msk.f32.gmra.mxu3 %vm389_vm2, %v8689_v33 }
 0x2ad   :  { %7287 = vmatmul.msk.f32.gmra.mxu0 %vm389_vm2, %v8693_v14 }
 0x2ae   :  { %7280 = vmatmul.msk.f32.gmra.mxu2 %vm389_vm2, %v8690_v52 }
 0x2af   :  { %7290 = vmatmul.msk.f32.gmra.mxu1 %vm389_vm2, %v8692_v38 }
 0x2b3   :  { %7284 = vmatmul.msk.f32.gmra.mxu3 %vm389_vm2, %v8690_v52 }
 0x2b5   :  { %7288 = vmatmul.msk.f32.gmra.mxu0 %vm389_vm2, %v8694_v19 }
 0x2b6   :  { %7293 = vmatmul.msk.f32.vlgmr.msrb.gmra.mxu2 %vm389_vm2, %v8691_v12 }
 0x2b7   :  { %7291 = vmatmul.msk.f32.gmra.mxu1 %vm389_vm2, %v8693_v14 }
 0x2bb   :  { %7297 = vmatmul.msk.f32.vlgmr.msrb.gmra.mxu3 %vm389_vm2, %v8691_v12 }
 0x2be   :  { %7294 = vmatmul.msk.f32.gmra.mxu2 %vm389_vm2, %v8692_v38 }
 0x2bf   :  { %7292 = vmatmul.msk.f32.gmra.mxu1 %vm389_vm2, %v8694_v19 }
 0x2c3   :  { %7298 = vmatmul.msk.f32.gmra.mxu3 %vm389_vm2, %v8692_v38 }
 0x2c6   :  { %7295 = vmatmul.msk.f32.gmra.mxu2 %vm389_vm2, %v8693_v14 }
 0x2cb   :  { %7299 = vmatmul.msk.f32.gmra.mxu3 %vm389_vm2, %v8693_v14 }
 0x2ce   :  { %7296 = vmatmul.msk.f32.gmra.mxu2 %vm389_vm2, %v8694_v19 }
 0x2d3   :  { %7300 = vmatmul.msk.f32.gmra.mxu3 %vm389_vm2, %v8694_v19  ;;  %v14122_v19 = vld [vmem:[#allocation25_spill] sm:$0xff] }
 0x2fa   :  { %v2079_v17 = vpop.f32.mrf.mxu0 }
 0x2fb   :  { %v2080_v13 = vadd.f32 %v2079_v17, %v14113_v8 }
 0x2fd   :  { %v2710_v57 = vmul.f32 0.5, %v2080_v13  ;;  %v14123_v13 = vld [vmem:[#allocation18_spill] sm:$0xff] }
 0x2ff   :  { %7903 = vtanh.f32 %v2710_v57 }
 0x302   :  { %v2082_v6 = vpop.f32.mrf.mxu0 }
 0x303   :  { %v2108_v21 = vpop.f32.mrf.mxu1  ;;  %v2083_v30 = vadd.f32 %v2082_v6, %v14114_v18 }
 0x304   :  { %v2109_v48 = vadd.f32 %v2108_v21, %v14115_v23 }
 0x305   :  { %v2714_v50 = vmul.f32 0.5, %v2083_v30  ;;  %v7904_v1 = vpop.eup %7903 }
 0x306   :  { %v2711_v29 = vmul.f32 0.5, %v2109_v48  ;;  %v2742_v58 = vadd.f32 1.0, %v7904_v1 }
 0x307   :  { %7905 = vtanh.f32 %v2714_v50 }
 0x308   :  { %7907 = vtanh.f32 %v2711_v29  ;;  %v2758_v14 = vmul.f32 0.5, %v2742_v58 }
 0x30a   :  { %v2085_v45 = vpop.f32.mrf.mxu0  ;;  %v2774_v48 = vmul.f32 0.125, %v2758_v14 }
 0x30b   :  { %v2111_v0 = vpop.f32.mrf.mxu1  ;;  %v2086_v62 = vadd.f32 %v2085_v45, %v14116_v34 }
 0x30c   :  { %v2112_v25 = vadd.f32 %v2111_v0, %v14117_v5 }
 0x30d   :  { %v2718_v32 = vmul.f32 0.5, %v2086_v62  ;;  %v7906_v39 = vpop.eup %7905 }
 0x30e   :  { %v2715_v4 = vmul.f32 0.5, %v2112_v25  ;;  %v7908_v38 = vpop.eup %7907  ;;  %v2746_v21 = vadd.f32 1.0, %v7906_v39  ;;  %v10300_v39 = vadd.f32 %v10107_v40, %v2774_v48  ;;  %v14126_v48 = vld [vmem:[#allocation29_spill] sm:$0xff] }
 0x30f   :  { %7909 = vtanh.f32 %v2718_v32 }
 0x310   :  { %7911 = vtanh.f32 %v2715_v4  ;;  %v2762_v25 = vmul.f32 0.5, %v2746_v21  ;;  %v14124_v4 = vld [vmem:[#allocation7_spill] sm:$0xff] }
 0x312   :  { %v2088_v15 = vpop.f32.mrf.mxu0 }
 0x313   :  { %v2089_v53 = vadd.f32 %v2088_v15, %v14120_v60  ;;  %v2743_v15 = vadd.f32 1.0, %v7908_v38  ;;  %v14125_v38 = vld [vmem:[#allocation26_spill] sm:$0xff] }
 0x314   :  { %v2114_v9 = vpop.f32.mrf.mxu1 }
 0x315   :  { %v2115_v16 = vadd.f32 %v2114_v9, %v14119_v56  ;;  %v2722_v41 = vmul.f32 0.5, %v2089_v53  ;;  %v7910_v6 = vpop.eup %7909  ;;  %v2759_v53 = vmul.f32 0.5, %v2743_v15  ;;  %v14135_v56 = vld [vmem:[#allocation23_spill] sm:$0xff] }
 0x316   :  { %v7912_v0 = vpop.eup %7911  ;;  %v2750_v62 = vadd.f32 1.0, %v7910_v6 }
 0x317   :  { %v2719_v24 = vmul.f32 0.5, %v2115_v16  ;;  %v2747_v29 = vadd.f32 1.0, %v7912_v0 }
 0x319   :  { %v2137_v61 = vpop.f32.mrf.mxu2  ;;  %7913 = vtanh.f32 %v2719_v24 }
 0x31a   :  { %v2195_v46 = vpop.f32.mrf.mxu0  ;;  %7915 = vtanh.f32 %v2722_v41  ;;  %v2766_v41 = vmul.f32 0.5, %v2750_v62 }
 0x31b   :  { %v2196_v44 = vadd.f32 %v2195_v46, %v14118_v43 }
 0x31c   :  { %v2117_v3 = vpop.f32.mrf.mxu1  ;;  %v2782_v15 = vmul.f32 0.125, %v2766_v41 }
 0x31d   :  { %v10280_v33 = vclamps-f32 %v2196_v44, 50.0  ;;  %v2118_v9 = vadd.f32 %v2117_v3, %v14123_v13  ;;  %v2138_v44 = vadd.f32 %v2137_v61, %v14124_v4 }
 0x31e   :  { %v10277_v47 = vpop.f32.mrf.mxu3 }
 0x31f   :  { %v2374_v27 = vand.u32 2147483647, %v10280_v33  ;;  %v2723_v1 = vmul.f32 0.5, %v2118_v9  ;;  %v7914_v16 = vpop.eup %7913  ;;  %v2712_v6 = vmul.f32 0.5, %v2138_v44  ;;  %vm2342_vm7 = vcmp.ne.f32.partialorder %v10280_v33, %v10280_v33 }
 0x320   :  { %v2751_v61 = vadd.f32 1.0, %v7914_v16  ;;  %v14128_v16 = vld [vmem:[#allocation11_spill] sm:$0xff] }
 0x321   :  { %v10282_v2 = vpop.f32.mrf.mxu2  ;;  %v2390_v11 = vsub.f32 0.0, %v2374_v27  ;;  %v7916_v27 = vpop.eup %7915 }
 0x322   :  { %v2198_v12 = vpop.f32.mrf.mxu0 }
 0x323   :  { %v2199_v17 = vadd.f32 %v2198_v12, %v14122_v19  ;;  %v2406_v45 = vmul.f32 1.442695, %v2390_v11  ;;  %v2778_v11 = vmul.f32 0.125, %v2762_v25  ;;  %v14127_v25 = vld [vmem:[#allocation8_spill] sm:$0xff] }
 0x324   :  { %v2224_v22 = vpop.f32.mrf.mxu1 }
 0x325   :  { %v2225_v52 = vadd.f32 %v2224_v22, %v14121_v54  ;;  %7917 = vpow2.f32 %v2406_v45  ;;  %v10290_v30 = vclamps-f32 %v2199_v17, 50.0  ;;  %v2775_v45 = vmul.f32 0.125, %v2759_v53 }
 0x326   :  { %v10292_v50 = vpop.f32.mrf.mxu3  ;;  %7919 = vtanh.f32 %v2723_v1  ;;  %v10309_v44 = vadd.f32 %v10099_v28, %v2778_v11  ;;  %v2767_v1 = vmul.f32 0.5, %v2751_v61  ;;  %v2141_v53 = vadd.f32 %v10282_v2, %v14128_v16 }
 0x327   :  { %v10288_v57 = vclamps-f32 %v2225_v52, 50.0  ;;  %v2378_v24 = vand.u32 2147483647, %v10290_v30  ;;  %v2763_v52 = vmul.f32 0.5, %v2747_v29  ;;  %v2167_v29 = vadd.f32 %v10277_v47, %v14127_v25 }
 0x328   :  { %v10322_v11 = vadd.f32 %v10088_v37, %v2782_v15  ;;  %v2716_v16 = vmul.f32 0.5, %v2141_v53  ;;  %vm2346_vm12 = vcmp.ne.f32.partialorder %v10290_v30, %v10290_v30 }
 0x329   :  { %v2375_v32 = vand.u32 2147483647, %v10288_v57  ;;  %v10295_v46 = vpop.f32.mrf.mxu2  ;;  %v2394_v9 = vsub.f32 0.0, %v2378_v24  ;;  %v2779_v4 = vmul.f32 0.125, %v2763_v52  ;;  %vm2343_vm10 = vcmp.ne.f32.partialorder %v10288_v57, %v10288_v57 }
 0x32a   :  { %v2201_v17 = vpop.f32.mrf.mxu0 }
 0x32b   :  { %v2391_v58 = vsub.f32 0.0, %v2375_v32  ;;  %v7918_v22 = vpop.eup %7917  ;;  %v2754_v32 = vadd.f32 1.0, %v7916_v27  ;;  %v2202_v62 = vadd.f32 %v2201_v17, %v14126_v48  ;;  %v10316_v27 = vadd.f32 %v10149_v42, %v2775_v45 }
 0x32c   :  { %v2227_v3 = vpop.f32.mrf.mxu1  ;;  %v2438_v21 = vadd.f32 1.0, %v7918_v22  ;;  %v2441_v0 = vmul.f32 -0.5, %v7918_v22  ;;  %v2444_v17 = vand.u32 2147483647, %v7918_v22  ;;  %v2326_v45 = vmax.f32 %v10280_v33, 0.0 }
 0x32d   :  { %v2408_v12 = vmul.f32 1.442695, %v2391_v58  ;;  %v2228_v14 = vadd.f32 %v2227_v3, %v14125_v38  ;;  %v2414_v58 = vmul.f32 1.442695, %v2394_v9  ;;  %v10324_v61 = vclamps-f32 %v2202_v62, 50.0 }
 0x32e   :  { %v10313_v24 = vpop.f32.mrf.mxu3  ;;  %v2442_v41 = vadd.f32 1.0, %v2441_v0  ;;  %vm2445_vm8 = vcmp.lt.f32.partialorder %v2444_v17, 0.0004427343 }
 0x32f   :  { %7921 = vpow2.f32 %v2408_v12  ;;  %v10306_v3 = vclamps-f32 %v2228_v14, 50.0  ;;  %v7920_v12 = vpop.eup %7919  ;;  %v2770_v14 = vmul.f32 0.5, %v2754_v32  ;;  %vm2350_vm15 = vcmp.ne.f32.partialorder %v10324_v61, %v10324_v61 }
 0x330   :  { %7923 = vlog2.f32 %v2438_v21  ;;  %v2713_v21 = vmul.f32 0.5, %v2167_v29  ;;  %v2443_v32 = vmul.f32 %v7918_v22, %v2442_v41  ;;  %v2755_v19 = vadd.f32 1.0, %v7920_v12 }
 0x331   :  { %7925 = vtanh.f32 %v2712_v6  ;;  %v2379_v47 = vand.u32 2147483647, %v10306_v3  ;;  %v10319_v52 = vpop.f32.mrf.mxu2  ;;  %v10327_v6 = vadd.f32 %v10143_v31, %v2779_v4  ;;  %v2786_v13 = vmul.f32 0.125, %v2770_v14 }
 0x332   :  { %7927 = vpow2.f32 %v2414_v58  ;;  %v2783_v58 = vmul.f32 0.125, %v2767_v1  ;;  %v2382_v4 = vand.u32 2147483647, %v10324_v61  ;;  %vm2347_vm14 = vcmp.ne.f32.partialorder %v10306_v3, %v10306_v3 }
 0x333   :  { %v2395_v0 = vsub.f32 0.0, %v2379_v47  ;;  %v14129_v47 = vld [vmem:[#allocation12_spill] sm:$0xff]  ;;  %v10341_v12 = vadd.f32 %v10085_v7, %v2786_v13 }
 0x334   :  { %v2170_v1 = vadd.f32 %v10292_v50, %v14129_v47  ;;  %v2230_v22 = vpop.f32.mrf.mxu1 }
 0x335   :  { %v7922_v2 = vpop.eup %7921  ;;  %v2416_v62 = vmul.f32 1.442695, %v2395_v0  ;;  %v10338_v0 = vadd.f32 %v10136_v10, %v2783_v58  ;;  %v2327_v58 = vmax.f32 %v10288_v57, 0.0 }
 0x336   :  { %v7924_v9 = vpop.eup %7923  ;;  %v2447_v15 = vadd.f32 1.0, %v7922_v2  ;;  %v2450_v25 = vmul.f32 -0.5, %v7922_v2  ;;  %v2453_v54 = vand.u32 2147483647, %v7922_v2  ;;  %v10343_v50 = vpop.f32.mrf.mxu3 }
 0x337   :  { %v2440_v48 = vmul.f32 0.6931472, %v7924_v9  ;;  %v7926_v38 = vpop.eup %7925 }
 0x338   :  { %7929 = vlog2.f32 %v2447_v15  ;;  %v7928_v29 = vpop.eup %7927  ;;  %v10335_v41 = vadd.f32 1.0, %v7926_v38  ;;  %v2451_v14 = vadd.f32 1.0, %v2450_v25  ;;  %vm10351_vm9 = vcmp.lt.f32.partialorder %v2453_v54, 0.0004427343 }
 0x339   :  { %v2446_v53 = vsel %vm2445_vm8, %v2443_v32, %v2440_v48  ;;  %7931 = vpow2.f32 %v2416_v62  ;;  %v2474_v9 = vadd.f32 1.0, %v7928_v29  ;;  %v2477_v17 = vmul.f32 -0.5, %v7928_v29  ;;  %v2253_v15 = vpop.f32.mrf.mxu2  ;;  %v14134_v62 = vld [vmem:[#allocation15_spill] sm:$0xff] }
 0x33a   :  { %7933 = vtanh.f32 %v2713_v21  ;;  %v2582_v60 = vadd.f32 %v2446_v53, %v2326_v45  ;;  %14130 = vst [vmem:[#allocation42_spill] sm:$0xff] %v10335_v41  ;;  %v2398_v48 = vsub.f32 0.0, %v2382_v4  ;;  %v2771_v21 = vmul.f32 0.5, %v2755_v19 }
 0x33b   :  { %7935 = vtanh.f32 %v2716_v16  ;;  %v2717_v45 = vmul.f32 0.5, %v2170_v1  ;;  %v14131_v16 = vld [vmem:[#allocation30_spill] sm:$0xff]  ;;  %v2144_v4 = vadd.f32 %v10295_v46, %v14134_v62  ;;  %v2480_v19 = vand.u32 2147483647, %v7928_v29 }
 0x33c   :  { %7937 = vlog2.f32 %v2474_v9  ;;  %v2598_v38 = vsel %vm2342_vm7, %v10280_v33, %v2582_v60  ;;  %v2231_v25 = vadd.f32 %v2230_v22, %v14131_v16  ;;  %v2452_v9 = vmul.f32 %v7922_v2, %v2451_v14 }
 0x33d   :  { %v2478_v47 = vadd.f32 1.0, %v2477_v17  ;;  %v2422_v43 = vmul.f32 1.442695, %v2398_v48  ;;  %v2614_v33 = vmul.f32 9.9, %v2598_v38  ;;  %v2254_v54 = vadd.f32 %v2253_v15, %v14135_v56 }
 0x33e   :  { %v7930_v32 = vpop.eup %7929  ;;  %v10359_v16 = vclamps-f32 %v2231_v25, 50.0  ;;  %7939 = vtanh.f32 %v2717_v45  ;;  %v2720_v48 = vmul.f32 0.5, %v2144_v4  ;;  %vm2481_vm11 = vcmp.lt.f32.partialorder %v2480_v19, 0.0004427343  ;;  %v2282_v19 = vpop.f32.mrf.mxu3 }
 0x33f   :  { %v7932_v1 = vpop.eup %7931  ;;  %v2449_v53 = vmul.f32 0.6931472, %v7930_v32  ;;  %v14137_v32 = vld [vmem:[#allocation16_spill] sm:$0xff]  ;;  %v2479_v62 = vmul.f32 %v7928_v29, %v2478_v47  ;;  %v10370_v15 = vadd.f32 0.1, %v2614_v33  ;;  %v2330_v45 = vmax.f32 %v10290_v30, 0.0 }
 0x340   :  { %v10357_v60 = vpop.eup %7933  ;;  %v2483_v22 = vadd.f32 1.0, %v7932_v1  ;;  %v2486_v2 = vmul.f32 -0.5, %v7932_v1  ;;  %v2173_v38 = vadd.f32 %v10313_v24, %v14137_v32  ;;  %v2383_v56 = vand.u32 2147483647, %v10359_v16  ;;  %v14141_v32 = vld [vmem:[#allocation33_spill] sm:$0xff] }
 0x341   :  { %v10362_v23 = vpop.eup %7935  ;;  %v2455_v46 = vsel %vm10351_vm9, %v2452_v9, %v2449_v53  ;;  %v10374_v13 = vclamps-f32 %v2254_v54, 50.0  ;;  %v2787_v53 = vmul.f32 0.125, %v2771_v21  ;;  %v2489_v29 = vand.u32 2147483647, %v7932_v1  ;;  %v2204_v9 = vpop.f32.mrf.mxu0  ;;  %v14139_v21 = vld [vmem:[#allocation19_spill] sm:$0xff] }
 0x342   :  { %14136 = vst [vmem:[#allocation46_spill] sm:$0xff] %v10362_v23  ;;  %v7938_v14 = vpop.eup %7937  ;;  %v2583_v17 = vadd.f32 %v2455_v46, %v2327_v58  ;;  %7941 = vlog2.f32 %v2483_v22  ;;  %v2487_v4 = vadd.f32 1.0, %v2486_v2  ;;  %v2399_v47 = vsub.f32 0.0, %v2383_v56 }
 0x343   :  { %v2476_v25 = vmul.f32 0.6931472, %v7938_v14  ;;  %7943 = vpow2.f32 %v2422_v43  ;;  %v2721_v22 = vmul.f32 0.5, %v2173_v38  ;;  %v2147_v54 = vadd.f32 %v10319_v52, %v14139_v21 }
 0x344   :  { %v2599_v58 = vsel %vm2343_vm10, %v10288_v57, %v2583_v17  ;;  %v10382_v33 = vpop.eup %7939  ;;  %7945 = vtanh.f32 %v2720_v48  ;;  %v2376_v46 = vand.u32 2147483647, %v10374_v13  ;;  %v2331_v2 = vmax.f32 %v10306_v3, 0.0 }
 0x345   :  { %v2482_v24 = vsel %vm2481_vm11, %v2479_v62, %v2476_v25  ;;  %14138 = vst [vmem:[#allocation40_spill] sm:$0xff] %v10382_v33  ;;  %7947 = vrcp.f32 %v10370_v15  ;;  %v2615_v62 = vmul.f32 9.9, %v2599_v58  ;;  %v2424_v14 = vmul.f32 1.442695, %v2399_v47 }
 0x346   :  { %v2586_v43 = vadd.f32 %v2482_v24, %v2330_v45  ;;  %v2488_v25 = vmul.f32 %v7932_v1, %v2487_v4  ;;  %v14140_v45 = vld [vmem:[#allocation24_spill] sm:$0xff]  ;;  %v2205_v48 = vadd.f32 %v2204_v9, %v14141_v32  ;;  %vm2490_vm13 = vcmp.lt.f32.partialorder %v2489_v29, 0.0004427343 }
 0x347   :  { %v2283_v24 = vadd.f32 %v2282_v19, %v14140_v45  ;;  %7949 = vpow2.f32 %v2424_v14  ;;  %v2392_v47 = vsub.f32 0.0, %v2376_v46  ;;  %v2724_v4 = vmul.f32 0.5, %v2147_v54 }
 0x348   :  { %v7942_v57 = vpop.eup %7941  ;;  %v2602_v52 = vsel %vm2346_vm12, %v10290_v30, %v2586_v43  ;;  %v10403_v30 = vclamps-f32 %v2205_v48, 50.0  ;;  %v2233_v43 = vpop.f32.mrf.mxu1  ;;  %vm2351_vm1 = vcmp.ne.f32.partialorder %v10359_v16, %v10359_v16  ;;  %vm2344_vm4 = vcmp.ne.f32.partialorder %v10374_v13, %v10374_v13 }
 0x349   :  { %v7944_v17 = vpop.eup %7943  ;;  %v2485_v56 = vmul.f32 0.6931472, %v7942_v57  ;;  %v10397_v57 = vadd.f32 0.1, %v2615_v62  ;;  %v2618_v9 = vmul.f32 9.9, %v2602_v52 }
 0x34a   :  { %v2510_v38 = vadd.f32 1.0, %v7944_v17  ;;  %v2513_v21 = vmul.f32 -0.5, %v7944_v17  ;;  %v10399_v19 = vpop.eup %7945  ;;  %v2410_v45 = vmul.f32 1.442695, %v2392_v47  ;;  %v10401_v32 = vclamps-f32 %v2283_v24, 50.0  ;;  %v2256_v24 = vpop.f32.mrf.mxu2  ;;  %v14144_v52 = vld [vmem:[#allocation34_spill] sm:$0xff] }
 0x34b   :  { %v2491_v58 = vsel %vm2490_vm13, %v2488_v25, %v2485_v56  ;;  %14142 = vst [vmem:[#allocation43_spill] sm:$0xff] %v10399_v19  ;;  %v10405_v29 = vpop.eup %7947  ;;  %v10408_v56 = vadd.f32 %v10121_v26, %v2787_v53  ;;  %v2334_v25 = vmax.f32 %v10324_v61, 0.0  ;;  %v2516_v48 = vand.u32 2147483647, %v7944_v17 }
 0x34c   :  { %v2587_v1 = vadd.f32 %v2491_v58, %v2331_v2  ;;  %7951 = vlog2.f32 %v2510_v38  ;;  %v2514_v46 = vadd.f32 1.0, %v2513_v21  ;;  %v14143_v2 = vld [vmem:[#allocation20_spill] sm:$0xff]  ;;  %v2377_v53 = vand.u32 2147483647, %v10401_v32 }
 0x34d   :  { %7953 = vtanh.f32 %v2721_v22  ;;  %v2176_v14 = vadd.f32 %v10343_v50, %v14143_v2  ;;  %v2234_v22 = vadd.f32 %v2233_v43, %v14144_v52  ;;  %v7950_v38 = vpop.eup %7949  ;;  %v10420_v58 = vadd.f32 0.1, %v2618_v9 }
 0x34e   :  { %v2603_v54 = vsel %vm2347_vm14, %v10306_v3, %v2587_v1  ;;  %7955 = vpow2.f32 %v2410_v45  ;;  %v2386_v3 = vand.u32 2147483647, %v10403_v30  ;;  %v2515_v45 = vmul.f32 %v7944_v17, %v2514_v46  ;;  %v14145_v1 = vld [vmem:[#allocation27_spill] sm:$0xff] }
 0x34f   :  { %v2619_v62 = vmul.f32 9.9, %v2603_v54  ;;  %7957 = vtanh.f32 %v2724_v4  ;;  %v2519_v47 = vadd.f32 1.0, %v7950_v38  ;;  %v2257_v4 = vadd.f32 %v2256_v24, %v14145_v1 }
 0x350   :  { %7959 = vrcp.f32 %v10397_v57  ;;  %v2522_v2 = vmul.f32 -0.5, %v7950_v38  ;;  %v2393_v43 = vsub.f32 0.0, %v2377_v53  ;;  %v2402_v52 = vsub.f32 0.0, %v2386_v3 }
 0x351   :  { %v10425_v21 = vadd.f32 0.1, %v2619_v62  ;;  %v10432_v9 = vmul.f32 %v10405_v29, %v10370_v15  ;;  %vm2517_vm0 = vcmp.lt.f32.partialorder %v2516_v48, 0.0004427343  ;;  %7961 = vlog2.f32 %v2519_v47 }
 0x352   :  { %v7952_v50 = vpop.eup %7951  ;;  %v10434_v5 = vclamps-f32 %v2234_v22, 50.0  ;;  %7963 = vrcp.f32 %v10420_v58  ;;  %v2412_v46 = vmul.f32 1.442695, %v2393_v43  ;;  %v2430_v24 = vmul.f32 1.442695, %v2402_v52 }
 0x353   :  { %v2512_v54 = vmul.f32 0.6931472, %v7952_v50  ;;  %v10428_v34 = vpop.eup %7953  ;;  %7965 = vrcp.f32 %v10425_v21  ;;  %v10440_v1 = vclamps-f32 %v2257_v4, 50.0  ;;  %v2523_v48 = vadd.f32 1.0, %v2522_v2  ;;  %v2285_v4 = vpop.f32.mrf.mxu3 }
 0x354   :  { %14146 = vst [vmem:[#allocation44_spill] sm:$0xff] %v10428_v34  ;;  %v7956_v62 = vpop.eup %7955  ;;  %v2525_v47 = vand.u32 2147483647, %v7950_v38  ;;  %7967 = vpow2.f32 %v2412_v46  ;;  %v10444_v18 = vmul.f32 0.5, %v2176_v14  ;;  %v2387_v52 = vand.u32 2147483647, %v10434_v5 }
 0x355   :  { %v2518_v17 = vsel %vm2517_vm0, %v2515_v45, %v2512_v54  ;;  %v10437_v50 = vpop.eup %7957  ;;  %v2456_v3 = vadd.f32 1.0, %v7956_v62  ;;  %v2459_v22 = vmul.f32 -0.5, %v7956_v62  ;;  %v2335_v45 = vmax.f32 %v10359_v16, 0.0 }
 0x356   :  { %14147 = vst [vmem:[#allocation50_spill] sm:$0xff] %v10437_v50  ;;  %v2590_v53 = vadd.f32 %v2518_v17, %v2334_v25  ;;  %v10442_v15 = vpop.eup %7959  ;;  %v2328_v25 = vmax.f32 %v10374_v13, 0.0  ;;  %v2403_v17 = vsub.f32 0.0, %v2387_v52  ;;  %v2380_v46 = vand.u32 2147483647, %v10440_v1 }
 0x357   :  { %7969 = vlog2.f32 %v2456_v3  ;;  %v7962_v2 = vpop.eup %7961  ;;  %v10454_v43 = vmul.f32 %v10442_v15, %v10397_v57  ;;  %v2524_v8 = vmul.f32 %v7950_v38, %v2523_v48  ;;  %vm10463_vm3 = vcmp.lt.f32.partialorder %v2525_v47, 0.0004427343 }
 0x358   :  { %7971 = vpow2.f32 %v2430_v24  ;;  %v2606_v14 = vsel %vm2350_vm15, %v10324_v61, %v2590_v53  ;;  %v10461_v3 = vpop.eup %7963  ;;  %v2521_v54 = vmul.f32 0.6931472, %v7962_v2  ;;  %v2460_v59 = vadd.f32 1.0, %v2459_v22  ;;  %v14150_v53 = vld [vmem:[#allocation28_spill] sm:$0xff]  ;;  %v2259_v24 = vpop.f32.mrf.mxu2 }
 0x359   :  { %v10467_v63 = vpop.eup %7965  ;;  %v2462_v57 = vand.u32 2147483647, %v7956_v62  ;;  %v2432_v49 = vmul.f32 1.442695, %v2403_v17  ;;  %v2396_v61 = vsub.f32 0.0, %v2380_v46  ;;  %v2286_v52 = vadd.f32 %v2285_v4, %v14150_v53 }
 0x35a   :  { %v7968_v35 = vpop.eup %7967  ;;  %v2622_v55 = vmul.f32 9.9, %v2606_v14  ;;  %v2527_v38 = vsel %vm10463_vm3, %v2524_v8, %v2521_v54  ;;  %v10479_v51 = vmul.f32 %v10461_v3, %v10420_v58  ;;  %v2461_v53 = vmul.f32 %v7956_v62, %v2460_v59 }
 0x35b   :  { %v2591_v17 = vadd.f32 %v2527_v38, %v2335_v45  ;;  %v2465_v46 = vadd.f32 1.0, %v7968_v35  ;;  %7973 = vpow2.f32 %v2432_v49  ;;  %v2418_v14 = vmul.f32 1.442695, %v2396_v61  ;;  %v14151_v61 = vld [vmem:[#allocation31_spill] sm:$0xff] }
 0x35c   :  { %vm2463_vm5 = vcmp.lt.f32.partialorder %v2462_v57, 0.0004427343  ;;  %v2468_v8 = vmul.f32 -0.5, %v7968_v35  ;;  %v10481_v54 = vclamps-f32 %v2286_v52, 50.0  ;;  %v10483_v47 = vadd.f32 0.1, %v2622_v55 }
 0x35d   :  { %v7970_v22 = vpop.eup %7969  ;;  %7975 = vlog2.f32 %v2465_v46  ;;  %v2607_v58 = vsel %vm2351_vm1, %v10359_v16, %v2591_v17  ;;  %v10491_v59 = vmul.f32 %v10467_v63, %v10425_v21  ;;  %v2260_v52 = vadd.f32 %v2259_v24, %v14151_v61 }
 0x35e   :  { %v7972_v36 = vpop.eup %7971  ;;  %v2458_v4 = vmul.f32 0.6931472, %v7970_v22  ;;  %7977 = vpow2.f32 %v2418_v14  ;;  %v2288_v22 = vpop.f32.mrf.mxu3  ;;  %v2623_v46 = vmul.f32 9.9, %v2607_v58  ;;  %v2469_v2 = vadd.f32 1.0, %v2468_v8 }
 0x35f   :  { %v2546_v38 = vadd.f32 1.0, %v7972_v36  ;;  %v2549_v62 = vmul.f32 -0.5, %v7972_v36  ;;  %vm2354_vm6 = vcmp.ne.f32.partialorder %v10403_v30, %v10403_v30  ;;  %v10507_v48 = vclamps-f32 %v2260_v52, 50.0 }
 0x360   :  { %v2464_v45 = vsel %vm2463_vm5, %v2461_v53, %v2458_v4  ;;  %v2381_v53 = vand.u32 2147483647, %v10481_v54  ;;  %v2552_v4 = vand.u32 2147483647, %v7972_v36  ;;  %v10509_v20 = vadd.f32 0.1, %v2623_v46 }
 0x361   :  { %v2584_v49 = vadd.f32 %v2464_v45, %v2328_v25  ;;  %7979 = vlog2.f32 %v2546_v38  ;;  %v7974_v17 = vpop.eup %7973  ;;  %v2471_v25 = vand.u32 2147483647, %v7968_v35  ;;  %v2550_v8 = vadd.f32 1.0, %v2549_v62  ;;  %v14152_v45 = vld [vmem:[#allocation32_spill] sm:$0xff] }
 0x362   :  { %7981 = vrcp.f32 %v10483_v47  ;;  %v2555_v58 = vadd.f32 1.0, %v7974_v17  ;;  %v2289_v38 = vadd.f32 %v2288_v22, %v14152_v45  ;;  %v2558_v16 = vmul.f32 -0.5, %v7974_v17 }
 0x363   :  { %v2600_v21 = vsel %vm2344_vm4, %v10374_v13, %v2584_v49  ;;  %v7976_v14 = vpop.eup %7975  ;;  %v2397_v55 = vsub.f32 0.0, %v2381_v53  ;;  %vm2345_vm7 = vcmp.ne.f32.partialorder %v10401_v32, %v10401_v32  ;;  %v2470_v49 = vmul.f32 %v7968_v35, %v2469_v2 }
 0x364   :  { %v2467_v57 = vmul.f32 0.6931472, %v7976_v14  ;;  %v7978_v61 = vpop.eup %7977  ;;  %v2616_v13 = vmul.f32 9.9, %v2600_v21  ;;  %7983 = vlog2.f32 %v2555_v58  ;;  %vm10513_vm8 = vcmp.lt.f32.partialorder %v2471_v25, 0.0004427343 }
 0x365   :  { %vm10517_vm9 = vcmp.lt.f32.partialorder %v2552_v4, 0.0004427343  ;;  %v2492_v52 = vadd.f32 1.0, %v7978_v61  ;;  %v2551_v14 = vmul.f32 %v7972_v36, %v2550_v8  ;;  %v2495_v45 = vmul.f32 -0.5, %v7978_v61  ;;  %v2262_v36 = vpop.f32.mrf.mxu2 }
 0x366   :  { %v2473_v46 = vsel %vm10513_vm8, %v2470_v49, %v2467_v57  ;;  %vm2355_vm10 = vcmp.ne.f32.partialorder %v10434_v5, %v10434_v5  ;;  %v2559_v2 = vadd.f32 1.0, %v2558_v16  ;;  %v2420_v25 = vmul.f32 1.442695, %v2397_v55  ;;  %v2291_v33 = vpop.f32.mrf.mxu3 }
 0x367   :  { %v7980_v24 = vpop.eup %7979  ;;  %7985 = vlog2.f32 %v2492_v52  ;;  %v2384_v4 = vand.u32 2147483647, %v10507_v48  ;;  %v10530_v58 = vadd.f32 0.1, %v2616_v13  ;;  %v14158_v8 = vmax.f32 %v10401_v32, 0.0 }
 0x368   :  { %v2548_v21 = vmul.f32 0.6931472, %v7980_v24  ;;  %v10524_v35 = vpop.eup %7981  ;;  %7987 = vrcp.f32 %v10509_v20  ;;  %v2561_v24 = vand.u32 2147483647, %v7974_v17  ;;  %v14159_v62 = vmax.f32 %v10403_v30, 0.0 }
 0x369   :  { %14157 = vst [vmem:[#allocation51_spill] sm:$0xff] %v10530_v58  ;;  %v2585_v49 = vadd.f32 %v2473_v46, %v14158_v8  ;;  %v2498_v16 = vand.u32 2147483647, %v7978_v61  ;;  %7989 = vpow2.f32 %v2420_v25  ;;  %v10540_v52 = vmul.f32 %v10524_v35, %v10483_v47  ;;  %v14160_v25 = vld [vmem:[#allocation35_spill] sm:$0xff] }
 0x36a   :  { %v2554_v57 = vsel %vm10517_vm9, %v2551_v14, %v2548_v21  ;;  %v7984_v55 = vpop.eup %7983  ;;  %vm2348_vm11 = vcmp.ne.f32.partialorder %v10440_v1, %v10440_v1  ;;  %v2496_v13 = vadd.f32 1.0, %v2495_v45  ;;  %v2400_v22 = vsub.f32 0.0, %v2384_v4 }
 0x36b   :  { %v2594_v53 = vadd.f32 %v2554_v57, %v14159_v62  ;;  %v10544_v21 = vclamps-f32 %v2289_v38, 50.0  ;;  %v2557_v14 = vmul.f32 0.6931472, %v7984_v55  ;;  %v2560_v57 = vmul.f32 %v7974_v17, %v2559_v2 }
 0x36c   :  { %v2263_v8 = vadd.f32 %v2262_v36, %v14160_v25  ;;  %7991 = vrcp.f32 %v10530_v58  ;;  %vm2562_vm12 = vcmp.lt.f32.partialorder %v2561_v24, 0.0004427343  ;;  %v2426_v62 = vmul.f32 1.442695, %v2400_v22 }
 0x36d   :  { %v2610_v46 = vsel %vm2354_vm6, %v10403_v30, %v2594_v53  ;;  %v7986_v34 = vpop.eup %7985  ;;  %v2601_v45 = vsel %vm2345_vm7, %v10401_v32, %v2585_v49  ;;  %v2563_v38 = vsel %vm2562_vm12, %v2560_v57, %v2557_v14  ;;  %vm10556_vm13 = vcmp.lt.f32.partialorder %v2498_v16, 0.0004427343  ;;  %v14164_v32 = vld [vmem:[#allocation36_spill] sm:$0xff] }
 0x36e   :  { %v2626_v47 = vmul.f32 9.9, %v2610_v46  ;;  %v2385_v30 = vand.u32 2147483647, %v10544_v21  ;;  %v10561_v17 = vpop.eup %7987  ;;  %v14163_v2 = vmax.f32 %v10434_v5, 0.0  ;;  %v2497_v55 = vmul.f32 %v7978_v61, %v2496_v13 }
 0x36f   :  { %v2494_v36 = vmul.f32 0.6931472, %v7986_v34  ;;  %v7990_v22 = vpop.eup %7989  ;;  %7993 = vpow2.f32 %v2426_v62  ;;  %v10565_v25 = vclamps-f32 %v2263_v8, 50.0  ;;  %v2292_v49 = vadd.f32 %v2291_v33, %v14164_v32 }
 0x370   :  { %v2642_v53 = vadd.f32 0.1, %v2626_v47  ;;  %v2595_v24 = vadd.f32 %v2563_v38, %v14163_v2  ;;  %v2401_v46 = vsub.f32 0.0, %v2385_v30  ;;  %v2501_v57 = vadd.f32 1.0, %v7990_v22 }
 0x371   :  { %v2500_v14 = vsel %vm10556_vm13, %v2497_v55, %v2494_v36  ;;  %v2671_v34 = vmul.f32 %v10561_v17, %v10509_v20  ;;  %v14165_v13 = vmax.f32 %v10440_v1, 0.0  ;;  %v2504_v47 = vmul.f32 -0.5, %v7990_v22 }
 0x372   :  { %7995 = vrcp.f32 %v2642_v53  ;;  %v2611_v16 = vsel %vm2355_vm10, %v10434_v5, %v2595_v24  ;;  %v10578_v62 = vpop.eup %7991  ;;  %v2686_v33 = vsub.f32 2.0, %v10540_v52  ;;  %v2617_v38 = vmul.f32 9.9, %v2601_v45 }
 0x373   :  { %v2627_v61 = vmul.f32 9.9, %v2611_v16  ;;  %v2588_v8 = vadd.f32 %v2500_v14, %v14165_v13  ;;  %14166 = vst [vmem:[#allocation52_spill] sm:$0xff] %v10578_v62  ;;  %7997 = vlog2.f32 %v2501_v57  ;;  %v2428_v30 = vmul.f32 1.442695, %v2401_v46 }
 0x374   :  { %v2507_v2 = vand.u32 2147483647, %v7990_v22  ;;  %v10585_v20 = vclamps-f32 %v2292_v49, 50.0  ;;  %v2505_v36 = vadd.f32 1.0, %v2504_v47  ;;  %v2388_v55 = vand.u32 2147483647, %v10565_v25 }
 0x375   :  { %v2643_v5 = vadd.f32 0.1, %v2627_v61  ;;  %v2604_v4 = vsel %vm2348_vm11, %v10440_v1, %v2588_v8  ;;  %7999 = vpow2.f32 %v2428_v30  ;;  %v7994_v16 = vpop.eup %7993  ;;  %v2687_v14 = vsub.f32 2.0, %v2671_v34 }
 0x376   :  { %v2620_v24 = vmul.f32 9.9, %v2604_v4  ;;  %vm2349_vm14 = vcmp.ne.f32.partialorder %v10481_v54, %v10481_v54  ;;  %v2336_v52 = vmax.f32 %v10507_v48, 0.0  ;;  %v10591_v46 = vadd.f32 0.1, %v2617_v38 }
 0x377   :  { %8001 = vrcp.f32 %v2643_v5  ;;  %v2528_v1 = vadd.f32 1.0, %v7994_v16  ;;  %v2531_v57 = vmul.f32 -0.5, %v7994_v16  ;;  %v2404_v8 = vsub.f32 0.0, %v2388_v55 }
 0x378   :  { %v7996_v45 = vpop.eup %7995  ;;  %v2389_v47 = vand.u32 2147483647, %v10585_v20  ;;  %v10596_v30 = vadd.f32 0.1, %v2620_v24  ;;  %v2506_v4 = vmul.f32 %v7990_v22, %v2505_v36  ;;  %vm10598_vm15 = vcmp.lt.f32.partialorder %v2507_v2, 0.0004427343 }
 0x379   :  { %v2674_v61 = vmul.f32 %v7996_v45, %v2642_v53  ;;  %v7998_v34 = vpop.eup %7997  ;;  %v2702_v38 = vmul.f32 %v10524_v35, %v2686_v33  ;;  %8003 = vlog2.f32 %v2528_v1  ;;  %v2534_v49 = vand.u32 2147483647, %v7994_v16 }
 0x37a   :  { %v2503_v50 = vmul.f32 0.6931472, %v7998_v34  ;;  %v2532_v19 = vadd.f32 1.0, %v2531_v57  ;;  %v2434_v13 = vmul.f32 1.442695, %v2404_v8  ;;  %v2405_v55 = vsub.f32 0.0, %v2389_v47 }
 0x37b   :  { %v2690_v23 = vsub.f32 2.0, %v2674_v61  ;;  %v8000_v53 = vpop.eup %7999  ;;  %v2814_v62 = vmul.f32 0.125, %v2702_v38  ;;  %v2703_v36 = vmul.f32 %v10561_v17, %v2687_v14  ;;  %v14169_v35 = vmax.f32 %v10481_v54, 0.0 }
 0x37c   :  { %v2509_v24 = vsel %vm10598_vm15, %v2506_v4, %v2503_v50  ;;  %v2537_v22 = vadd.f32 1.0, %v8000_v53  ;;  %v2540_v2 = vmul.f32 -0.5, %v8000_v53  ;;  %vm2352_vm0 = vcmp.ne.f32.partialorder %v10507_v48, %v10507_v48 }
 0x37d   :  { %v8002_v58 = vpop.eup %8001  ;;  %v2589_v33 = vadd.f32 %v2509_v24, %v14169_v35  ;;  %8005 = vpow2.f32 %v2434_v13  ;;  %v2436_v1 = vmul.f32 1.442695, %v2405_v55  ;;  %v2543_v61 = vand.u32 2147483647, %v8000_v53 }
 0x37e   :  { %v2675_v41 = vmul.f32 %v8002_v58, %v2643_v5  ;;  %8007 = vlog2.f32 %v2537_v22  ;;  %v2541_v57 = vadd.f32 1.0, %v2540_v2  ;;  %v2706_v8 = vmul.f32 %v7996_v45, %v2690_v23 }
 0x37f   :  { %v2605_v50 = vsel %vm2349_vm14, %v10481_v54, %v2589_v33  ;;  %8009 = vpow2.f32 %v2436_v1  ;;  %v2830_v17 = vmul.f32 %v10088_v37, %v2814_v62  ;;  %v8004_v32 = vpop.eup %8003  ;;  %v2341_v14 = vmax.f32 %v10585_v20, 0.0 }
 0x380   :  { %v2691_v47 = vsub.f32 2.0, %v2675_v41  ;;  %8011 = vrcp.f32 %v10596_v30  ;;  %v2621_v5 = vmul.f32 9.9, %v2605_v50  ;;  %v2818_v13 = vmul.f32 0.125, %v2706_v8 }
 0x381   :  { %v2530_v34 = vmul.f32 0.6931472, %v8004_v32  ;;  %v2533_v4 = vmul.f32 %v7994_v16, %v2532_v19  ;;  %vm2353_vm1 = vcmp.ne.f32.partialorder %v10544_v21, %v10544_v21  ;;  %v2815_v41 = vmul.f32 0.125, %v2703_v36 }
 0x382   :  { %v2707_v23 = vmul.f32 %v8002_v58, %v2691_v47  ;;  %vm2535_vm3 = vcmp.lt.f32.partialorder %v2534_v49, 0.0004427343  ;;  %v2542_v45 = vmul.f32 %v8000_v53, %v2541_v57  ;;  %vm10619_vm4 = vcmp.lt.f32.partialorder %v2543_v61, 0.0004427343 }
 0x383   :  { %v2834_v37 = vmul.f32 %v10085_v7, %v2818_v13  ;;  %v8006_v62 = vpop.eup %8005  ;;  %v10624_v38 = vadd.f32 0.1, %v2621_v5  ;;  %v2536_v55 = vsel %vm2535_vm3, %v2533_v4, %v2530_v34  ;;  %v2846_v19 = vsub.f32 %v10322_v11, %v2830_v17 }
 0x384   :  { %v2819_v24 = vmul.f32 0.125, %v2707_v23  ;;  %v8008_v16 = vpop.eup %8007  ;;  %v2592_v22 = vadd.f32 %v2536_v55, %v2336_v52  ;;  %v2564_v2 = vadd.f32 1.0, %v8006_v62  ;;  %v2567_v58 = vmul.f32 -0.5, %v8006_v62 }
 0x385   :  { %v14172_v49 = vsub.f32 2.0, %v10479_v51  ;;  %v8010_v36 = vpop.eup %8009  ;;  %v2539_v35 = vmul.f32 0.6931472, %v8008_v16  ;;  %v2850_v33 = vsub.f32 %v10341_v12, %v2834_v37  ;;  %v2831_v1 = vmul.f32 %v10136_v10, %v2815_v41 }
 0x386   :  { %v2835_v7 = vmul.f32 %v10121_v26, %v2819_v24  ;;  %v10633_v57 = vpop.eup %8011  ;;  %v2608_v11 = vsel %vm2352_vm0, %v10507_v48, %v2592_v22  ;;  %8013 = vlog2.f32 %v2564_v2  ;;  %v2570_v52 = vand.u32 2147483647, %v8006_v62 }
 0x387   :  { %v2698_v53 = vmul.f32 %v10461_v3, %v14172_v49  ;;  %v2573_v51 = vadd.f32 1.0, %v8010_v36  ;;  %v2624_v61 = vmul.f32 9.9, %v2608_v11  ;;  %v2545_v3 = vsel %vm10619_vm4, %v2542_v45, %v2539_v35 }
 0x388   :  { %v2568_v8 = vadd.f32 1.0, %v2567_v58  ;;  %v2576_v12 = vmul.f32 -0.5, %v8010_v36  ;;  %v14173_v26 = vmax.f32 %v10544_v21, 0.0  ;;  %v2579_v10 = vand.u32 2147483647, %v8010_v36 }
 0x389   :  { %8015 = vlog2.f32 %v2573_v51  ;;  %v10643_v50 = vclamps-f32 %v2846_v19, 100.0  ;;  %v2640_v17 = vadd.f32 0.1, %v2624_v61  ;;  %v10645_v5 = vclamps-f32 %v2850_v33, 100.0 }
 0x38a   :  { %v2593_v47 = vadd.f32 %v2545_v3, %v14173_v26  ;;  %v2577_v32 = vadd.f32 1.0, %v2576_v12  ;;  %v2851_v48 = vsub.f32 %v10408_v56, %v2835_v7  ;;  %8017 = vrcp.f32 %v10624_v38 }
 0x38b   :  { %v2847_v34 = vsub.f32 %v10338_v0, %v2831_v1  ;;  %v2810_v4 = vmul.f32 0.125, %v2698_v53  ;;  %8019 = vrcp.f32 %v2640_v17  ;;  %v2569_v41 = vmul.f32 %v8006_v62, %v2568_v8  ;;  %2898 = vmatpush.msra.mxu0 %v10645_v5 }
 0x38c   :  { %v2609_v13 = vsel %vm2353_vm1, %v10544_v21, %v2593_v47  ;;  %vm10654_vm5 = vcmp.lt.f32.partialorder %v2570_v52, 0.0004427343  ;;  %v8014_v56 = vpop.eup %8013  ;;  %vm10659_vm6 = vcmp.lt.f32.partialorder %v2579_v10, 0.0004427343  ;;  %v10663_v37 = vclamps-f32 %v2851_v48, 100.0 }
 0x38d   :  { %v2625_v23 = vmul.f32 9.9, %v2609_v13  ;;  %v2826_v21 = vmul.f32 %v10099_v28, %v2810_v4  ;;  %v14178_v0 = vsub.f32 2.0, %v10491_v59  ;;  %v2566_v24 = vmul.f32 0.6931472, %v8014_v56  ;;  %2899 = vmatpush.msra.mxu0 %v10643_v50  ;;  %v14182_v13 = vld [vmem:[#allocation42_spill] sm:$0xff] }
 0x38e   :  { %v2578_v19 = vmul.f32 %v8010_v36, %v2577_v32  ;;  %v14179_v16 = vsub.f32 2.0, %v10432_v9  ;;  %2927 = vmatpush.msra.mxu1 %v10663_v37  ;;  %v10674_v58 = vclamps-f32 %v2847_v34, 100.0  ;;  %v14180_v59 = vsub.f32 2.0, %v10454_v43  ;;  %v14184_v4 = vld [vmem:[#allocation52_spill] sm:$0xff]  ;;  %v14186_v56 = vld [vmem:[#allocation50_spill] sm:$0xff] }
 0x38f   :  { %v2699_v55 = vmul.f32 %v10467_v63, %v14178_v0  ;;  %v2641_v62 = vadd.f32 0.1, %v2625_v23  ;;  %v8016_v2 = vpop.eup %8015  ;;  %v2842_v28 = vsub.f32 %v10309_v44, %v2826_v21  ;;  %v2572_v53 = vsel %vm10654_vm5, %v2569_v41, %v2566_v24  ;;  %v10729_v41 = vld [vmem:[%s13770_s1] sm:$0xff] }
 0x390   :  { %v2694_v22 = vmul.f32 %v10405_v29, %v14179_v16  ;;  %v2695_v63 = vmul.f32 %v10442_v15, %v14180_v59  ;;  %v2575_v36 = vmul.f32 0.6931472, %v8016_v2  ;;  %v10682_v35 = vpop.eup %8017  ;;  %v14181_v29 = vmax.f32 %v10565_v25, 0.0  ;;  %2928 = vmatpush.msra.mxu1 %v10674_v58  ;;  %v14187_v24 = vld [vmem:[#allocation46_spill] sm:$0xff]  ;;  %v14188_v16 = vld [vmem:[#allocation44_spill] sm:$0xff] }
 0x391   :  { %v2811_v49 = vmul.f32 0.125, %v2699_v55  ;;  %8021 = vrcp.f32 %v2641_v62  ;;  %v10687_v7 = vclamps-f32 %v2842_v28, 100.0  ;;  %v8020_v1 = vpop.eup %8019  ;;  %vm2356_vm7 = vcmp.ne.f32.partialorder %v10565_v25, %v10565_v25 }
 0x392   :  { %v2806_v9 = vmul.f32 0.125, %v2694_v22  ;;  %v2596_v33 = vadd.f32 %v2572_v53, %v14181_v29  ;;  %v2807_v43 = vmul.f32 0.125, %v2695_v63  ;;  %8023 = vrcp.f32 %v10591_v46 }
 0x393   :  { %v2827_v44 = vmul.f32 %v10143_v31, %v2811_v49  ;;  %v2581_v15 = vsel %vm10659_vm6, %v2578_v19, %v2575_v36  ;;  %8025 = vtanh.f32 %v10444_v18  ;;  %2900 = vmatpush.msra.mxu0 %v10687_v7  ;;  %vm2357_vm8 = vcmp.ne.f32.partialorder %v10585_v20, %v10585_v20 }
 0x394   :  { %v2822_v11 = vmul.f32 %v10107_v40, %v2806_v9  ;;  %v2612_v52 = vsel %vm2356_vm7, %v10565_v25, %v2596_v33  ;;  %v2597_v51 = vadd.f32 %v2581_v15, %v2341_v14  ;;  %v2823_v8 = vmul.f32 %v10149_v42, %v2807_v43 }
 0x395   :  { %v2843_v31 = vsub.f32 %v10327_v6, %v2827_v44  ;;  %v2628_v61 = vmul.f32 9.9, %v2612_v52  ;;  %v2668_v40 = vmul.f32 %v10633_v57, %v10596_v30  ;;  %v2672_v18 = vmul.f32 %v8020_v1, %v2640_v17 }
 0x396   :  { %v2838_v3 = vsub.f32 %v10300_v39, %v2822_v11  ;;  %v2613_v25 = vsel %vm2357_vm8, %v10585_v20, %v2597_v51  ;;  %v2839_v10 = vsub.f32 %v10316_v27, %v2823_v8  ;;  %v2745_v32 = vadd.f32 1.0, %v10357_v60  ;;  %v14183_v27 = vld [vmem:[#allocation51_spill] sm:$0xff] }
 0x397   :  { %v10709_v12 = vclamps-f32 %v2843_v31, 100.0  ;;  %v8022_v14 = vpop.eup %8021  ;;  %v2644_v26 = vadd.f32 0.1, %v2628_v61  ;;  %v2629_v47 = vmul.f32 9.9, %v2613_v25  ;;  %v2669_v30 = vmul.f32 %v10682_v35, %v10624_v38  ;;  %v14185_v38 = vld [vmem:[#allocation43_spill] sm:$0xff] }
 0x398   :  { %v10711_v6 = vclamps-f32 %v2838_v3, 100.0  ;;  %v2673_v39 = vmul.f32 %v8022_v14, %v2641_v62  ;;  %v10716_v42 = vpop.eup %8023  ;;  %v10721_v17 = vclamps-f32 %v2839_v10, 100.0  ;;  %v2760_v34 = vmul.f32 0.5, %v14182_v13 }
 0x399   :  { %2929 = vmatpush.msra.mxu1 %v10709_v12  ;;  %8027 = vrcp.f32 %v2644_v26  ;;  %v2645_v20 = vadd.f32 0.1, %v2629_v47  ;;  %v8026_v48 = vpop.eup %8025  ;;  %v2664_v60 = vmul.f32 %v14184_v4, %v14183_v27  ;;  %v2688_v23 = vsub.f32 2.0, %v2672_v18 }
 0x39a   :  { %2901 = vmatpush.msra.mxu0 %v10711_v6  ;;  %v2752_v45 = vadd.f32 1.0, %v14185_v38  ;;  %v2756_v54 = vadd.f32 1.0, %v14186_v56  ;;  %v2684_v21 = vsub.f32 2.0, %v2668_v40  ;;  %v2761_v0 = vmul.f32 0.5, %v2745_v32  ;;  %v14191_v56 = vld [vmem:[#allocation49_spill] sm:$0xff] }
 0x39b   :  { %7333 = vmatmul.msk.f32.vlgmr.msra.gmra.mxu0 %vm389_vm2, %v10729_v41  ;;  %8029 = vrcp.f32 %v2645_v20  ;;  %2930 = vmatpush.msra.mxu1 %v10721_v17  ;;  %v2665_v55 = vmul.f32 %v10716_v42, %v10591_v46  ;;  %v2689_v62 = vsub.f32 2.0, %v2673_v39  ;;  %v2748_v19 = vadd.f32 1.0, %v14187_v24  ;;  %v14189_v46 = vld [vmem:[#allocation40_spill] sm:$0xff] }
 0x39c   :  { %3014 = vmatpush.msrb.mxu0 %v10645_v5  ;;  %7337 = vmatmul.msk.f32.vlgmr.msra.gmra.mxu1 %vm389_vm2, %v10729_v41  ;;  %v2753_v22 = vadd.f32 1.0, %v14188_v16  ;;  %v2757_v2 = vadd.f32 1.0, %v8026_v48  ;;  %v2685_v28 = vsub.f32 2.0, %v2669_v30  ;;  %v10745_v49 = vmul.f32 0.125, %v2760_v34 }
 0x39d   :  { %3043 = vmatpush.msrb.mxu1 %v10663_v37  ;;  %v2680_v59 = vsub.f32 2.0, %v2664_v60  ;;  %v2704_v63 = vmul.f32 %v8020_v1, %v2688_v23  ;;  %v2749_v36 = vadd.f32 1.0, %v14189_v46  ;;  %v2768_v9 = vmul.f32 0.5, %v2752_v45 }
 0x39e   :  { %3015 = vmatpush.msrb.mxu0 %v10643_v50  ;;  %v2772_v29 = vmul.f32 0.5, %v2756_v54  ;;  %v2700_v33 = vmul.f32 %v10633_v57, %v2684_v21  ;;  %v2777_v44 = vmul.f32 0.125, %v2761_v0  ;;  %v2681_v43 = vsub.f32 2.0, %v2665_v55  ;;  %v10757_v57 = vld [vmem:[%s13770_s1 + $0x8] sm:$0xff]  ;;  %v14192_v21 = vld [vmem:[#allocation48_spill] sm:$0xff] }
 0x39f   :  { %v8028_v53 = vpop.eup %8027  ;;  %3044 = vmatpush.msrb.mxu1 %v10674_v58  ;;  %v2705_v11 = vmul.f32 %v8022_v14, %v2689_v62  ;;  %v2764_v51 = vmul.f32 0.5, %v2748_v19  ;;  %v2769_v31 = vmul.f32 0.5, %v2753_v22  ;;  %v2773_v61 = vmul.f32 0.5, %v2757_v2  ;;  %v14194_v2 = vld [vmem:[#allocation47_spill] sm:$0xff] }
 0x3a0   :  { %3016 = vmatpush.msrb.mxu0 %v10687_v7  ;;  %v2676_v15 = vmul.f32 %v8028_v53, %v2644_v26  ;;  %v2701_v1 = vmul.f32 %v10682_v35, %v2685_v28  ;;  %v2816_v40 = vmul.f32 0.125, %v2704_v63  ;;  %v2696_v18 = vmul.f32 %v14184_v4, %v2680_v59  ;;  %v14190_v4 = vld [vmem:[#allocation45_spill] sm:$0xff]  ;;  %v14195_v59 = vld [vmem:[#allocation39_spill] sm:$0xff] }
 0x3a1   :  { %v8030_v52 = vpop.eup %8029  ;;  %3045 = vmatpush.msrb.mxu1 %v10709_v12  ;;  %v2765_v25 = vmul.f32 0.5, %v2749_v36  ;;  %v2784_v14 = vmul.f32 0.125, %v2768_v9  ;;  %v2788_v26 = vmul.f32 0.125, %v2772_v29  ;;  %v2812_v47 = vmul.f32 0.125, %v2700_v33  ;;  %v8697_v9 = vld [vmem:[%s13770_s1 + $0x10] sm:$0xff]  ;;  %v14196_v29 = vld [vmem:[#allocation38_spill] sm:$0xff] }
 0x3a2   :  { %3017 = vmatpush.msrb.mxu0 %v10711_v6  ;;  %v2692_v3 = vsub.f32 2.0, %v2676_v15  ;;  %v2677_v8 = vmul.f32 %v8030_v52, %v2645_v20  ;;  %v2817_v32 = vmul.f32 0.125, %v2705_v11  ;;  %v2697_v39 = vmul.f32 %v10716_v42, %v2681_v43  ;;  %v14193_v42 = vld [vmem:[#allocation37_spill] sm:$0xff] }
 0x3a3   :  { %7334 = vmatmul.msk.f32.gmra.mxu0 %vm389_vm2, %v10757_v57  ;;  %3046 = vmatpush.msrb.mxu1 %v10721_v17  ;;  %v2780_v30 = vmul.f32 0.125, %v2764_v51  ;;  %v2785_v20 = vmul.f32 0.125, %v2769_v31  ;;  %v2789_v48 = vmul.f32 0.125, %v2773_v61  ;;  %v2813_v13 = vmul.f32 0.125, %v2701_v1  ;;  %v14198_v61 = vld [vmem:[#allocation41_spill] sm:$0xff] }
 0x3a4   :  { %v2693_v35 = vsub.f32 2.0, %v2677_v8  ;;  %7338 = vmatmul.msk.f32.gmra.mxu1 %vm389_vm2, %v10757_v57  ;;  %v2708_v10 = vmul.f32 %v8028_v53, %v2692_v3  ;;  %v2832_v60 = vmul.f32 %v14190_v4, %v2816_v40  ;;  %v2808_v23 = vmul.f32 0.125, %v2696_v18 }
 0x3a5   :  { %v2781_v38 = vmul.f32 0.125, %v2765_v25  ;;  %v2800_v45 = vadd.f32 %v14190_v4, %v2784_v14  ;;  %v2804_v54 = vadd.f32 %v14191_v56, %v2788_v26  ;;  %v2828_v0 = vmul.f32 %v14192_v21, %v2812_v47 }
 0x3a6   :  { %v2820_v34 = vmul.f32 0.125, %v2708_v10  ;;  %v2709_v27 = vmul.f32 %v8030_v52, %v2693_v35  ;;  %v2833_v24 = vmul.f32 %v14193_v42, %v2817_v32  ;;  %v2809_v19 = vmul.f32 0.125, %v2697_v39  ;;  %v8698_v35 = vld [vmem:[%s13770_s1 + $0x18] sm:$0xff]  ;;  %v8699_v32 = vld [vmem:[%s13771_s2] sm:$0xff]  ;;  %v8701_v39 = vld [vmem:[%s13771_s2 + $0x10] sm:$0xff] }
 0x3a7   :  { %v2796_v16 = vadd.f32 %v14192_v21, %v2780_v30  ;;  %v2801_v22 = vadd.f32 %v14193_v42, %v2785_v20  ;;  %v2805_v28 = vadd.f32 %v14194_v2, %v2789_v48  ;;  %v2829_v63 = vmul.f32 %v14195_v59, %v2813_v13  ;;  %v14210_v42 = vld [vmem:[#allocation6_spill] sm:$0xff] }
 0x3a8   :  { %v2836_v55 = vmul.f32 %v14191_v56, %v2820_v34  ;;  %v2821_v62 = vmul.f32 0.125, %v2709_v27  ;;  %v2848_v36 = vsub.f32 %v2800_v45, %v2832_v60  ;;  %v2824_v33 = vmul.f32 %v14196_v29, %v2808_v23  ;;  %v14206_v60 = vld [vmem:[#allocation5_spill] sm:$0xff] }
 0x3a9   :  { %v2792_v43 = vadd.f32 %v14196_v29, %v10745_v49  ;;  %v2797_v15 = vadd.f32 %v14195_v59, %v2781_v38  ;;  %v2844_v11 = vsub.f32 %v2796_v16, %v2828_v0  ;;  %v2849_v31 = vsub.f32 %v2801_v22, %v2833_v24  ;;  %v14207_v38 = vld [vmem:[#allocation9_spill] sm:$0xff]  ;;  %v14211_v59 = vld [vmem:[#allocation14_spill] sm:$0xff] }
 0x3aa   :  { %v2852_v53 = vsub.f32 %v2804_v54, %v2836_v55  ;;  %v2837_v46 = vmul.f32 %v14194_v2, %v2821_v62  ;;  %v2825_v1 = vmul.f32 %v14198_v61, %v2809_v19  ;;  %v2793_v3 = vadd.f32 %v14198_v61, %v2777_v44  ;;  %v14208_v54 = vld [vmem:[#allocation10_spill] sm:$0xff]  ;;  %v14209_v0 = vld [vmem:[#allocation13_spill] sm:$0xff] }
 0x3ab   :  { %7335 = vmatmul.msk.f32.gmra.mxu0 %vm389_vm2, %v8697_v9  ;;  %v10793_v40 = vclamps-f32 %v2848_v36, 100.0  ;;  %v2845_v49 = vsub.f32 %v2797_v15, %v2829_v63  ;;  %v2840_v18 = vsub.f32 %v2792_v43, %v2824_v33  ;;  %v10797_v25 = vclamps-f32 %v2849_v31, 100.0  ;;  %v14213_v33 = vld [vmem:[#allocation22_spill] sm:$0xff] }
 0x3ac   :  { %v10785_v52 = vclamps-f32 %v2852_v53, 100.0  ;;  %v2853_v51 = vsub.f32 %v2805_v28, %v2837_v46  ;;  %7339 = vmatmul.msk.f32.gmra.mxu1 %vm389_vm2, %v8697_v9  ;;  %v10799_v14 = vclamps-f32 %v2844_v11, 100.0  ;;  %v2841_v26 = vsub.f32 %v2793_v3, %v2825_v1  ;;  %v14212_v53 = vld [vmem:[#allocation21_spill] sm:$0xff] }
 0x3ad   :  { %14200 = vst [vmem:[#allocation52_spill] sm:$0xff] %v10793_v40  ;;  %v10803_v44 = vclamps-f32 %v2845_v49, 100.0  ;;  %v10805_v47 = vclamps-f32 %v2840_v18, 100.0  ;;  %v14214_v11 = vld [vmem:[#allocation17_spill] sm:$0xff] }
 0x3ae   :  { %14197 = vst [vmem:[#allocation42_spill] sm:$0xff] %v10785_v52  ;;  %2956 = vmatpush.msra.mxu2 %v10785_v52  ;;  %v10791_v8 = vclamps-f32 %v2853_v51, 100.0  ;;  %v10813_v10 = vclamps-f32 %v2841_v26, 100.0 }
 0x3af   :  { %14201 = vst [vmem:[#allocation43_spill] sm:$0xff] %v10797_v25 }
 0x3b0   :  { %14199 = vst [vmem:[#allocation51_spill] sm:$0xff] %v10791_v8  ;;  %2985 = vmatpush.msra.mxu3 %v10791_v8  ;;  %2957 = vmatpush.msra.mxu2 %v10793_v40 }
 0x3b1   :  { %14202 = vst [vmem:[#allocation50_spill] sm:$0xff] %v10799_v14 }
 0x3b2   :  { %2986 = vmatpush.msra.mxu3 %v10797_v25  ;;  %2958 = vmatpush.msra.mxu2 %v10799_v14  ;;  %14203 = vst [vmem:[#allocation46_spill] sm:$0xff] %v10803_v44 }
 0x3b3   :  { %14204 = vst [vmem:[#allocation44_spill] sm:$0xff] %v10805_v47  ;;  %7336 = vmatmul.msk.f32.gmra.mxu0 %vm389_vm2, %v8698_v35 }
 0x3b4   :  { %2987 = vmatpush.msra.mxu3 %v10803_v44  ;;  %2959 = vmatpush.msra.mxu2 %v10805_v47  ;;  %14205 = vst [vmem:[#allocation40_spill] sm:$0xff] %v10813_v10 }
 0x3b5   :  { %7341 = vmatmul.msk.f32.vlgmr.msra.gmra.mxu2 %vm389_vm2, %v10729_v41  ;;  %7340 = vmatmul.msk.f32.gmra.mxu1 %vm389_vm2, %v8698_v35 }
 0x3b6   :  { %2988 = vmatpush.msra.mxu3 %v10813_v10  ;;  %3072 = vmatpush.msrb.mxu2 %v10785_v52 }
 0x3b7   :  { %7345 = vmatmul.msk.f32.vlgmr.msra.gmra.mxu3 %vm389_vm2, %v10729_v41  ;;  %v8700_v41 = vld [vmem:[%s13771_s2 + $0x8] sm:$0xff] }
 0x3b8   :  { %3101 = vmatpush.msrb.mxu3 %v10791_v8  ;;  %3073 = vmatpush.msrb.mxu2 %v10793_v40 }
 0x3ba   :  { %3102 = vmatpush.msrb.mxu3 %v10797_v25  ;;  %3074 = vmatpush.msrb.mxu2 %v10799_v14 }
 0x3bb   :  { %7349 = vmatmul.msk.f32.vlgmr.msrb.gmra.mxu0 %vm389_vm2, %v8699_v32 }
 0x3bc   :  { %3103 = vmatpush.msrb.mxu3 %v10803_v44  ;;  %3075 = vmatpush.msrb.mxu2 %v10805_v47 }
 0x3bd   :  { %7342 = vmatmul.msk.f32.gmra.mxu2 %vm389_vm2, %v10757_v57  ;;  %7353 = vmatmul.msk.f32.vlgmr.msrb.gmra.mxu1 %vm389_vm2, %v8699_v32 }
 0x3be   :  { %3104 = vmatpush.msrb.mxu3 %v10813_v10 }
 0x3bf   :  { %7346 = vmatmul.msk.f32.gmra.mxu3 %vm389_vm2, %v10757_v57  ;;  %v8702_v57 = vld [vmem:[%s13771_s2 + $0x18] sm:$0xff] }
 0x3c3   :  { %7350 = vmatmul.msk.f32.gmra.mxu0 %vm389_vm2, %v8700_v41 }
 0x3c5   :  { %7343 = vmatmul.msk.f32.gmra.mxu2 %vm389_vm2, %v8697_v9  ;;  %7354 = vmatmul.msk.f32.gmra.mxu1 %vm389_vm2, %v8700_v41 }
 0x3c7   :  { %7347 = vmatmul.msk.f32.gmra.mxu3 %vm389_vm2, %v8697_v9 }
 0x3cb   :  { %7351 = vmatmul.msk.f32.gmra.mxu0 %vm389_vm2, %v8701_v39 }
 0x3cd   :  { %7344 = vmatmul.msk.f32.gmra.mxu2 %vm389_vm2, %v8698_v35  ;;  %7355 = vmatmul.msk.f32.gmra.mxu1 %vm389_vm2, %v8701_v39 }
 0x3cf   :  { %7348 = vmatmul.msk.f32.gmra.mxu3 %vm389_vm2, %v8698_v35 }
 0x3d3   :  { %7352 = vmatmul.msk.f32.gmra.mxu0 %vm389_vm2, %v8702_v57 }
 0x3d5   :  { %7357 = vmatmul.msk.f32.vlgmr.msrb.gmra.mxu2 %vm389_vm2, %v8699_v32  ;;  %7356 = vmatmul.msk.f32.gmra.mxu1 %vm389_vm2, %v8702_v57 }
 0x3d7   :  { %7361 = vmatmul.msk.f32.vlgmr.msrb.gmra.mxu3 %vm389_vm2, %v8699_v32 }
 0x3dd   :  { %7358 = vmatmul.msk.f32.gmra.mxu2 %vm389_vm2, %v8700_v41 }
 0x3df   :  { %7362 = vmatmul.msk.f32.gmra.mxu3 %vm389_vm2, %v8700_v41 }
 0x3e5   :  { %7359 = vmatmul.msk.f32.gmra.mxu2 %vm389_vm2, %v8701_v39 }
 0x3e7   :  { %7363 = vmatmul.msk.f32.gmra.mxu3 %vm389_vm2, %v8701_v39  ;;  %v14215_v39 = vld [vmem:[#allocation25_spill] sm:$0xff] }
 0x3ed   :  { %7360 = vmatmul.msk.f32.gmra.mxu2 %vm389_vm2, %v8702_v57 }
 0x3ef   :  { %7364 = vmatmul.msk.f32.gmra.mxu3 %vm389_vm2, %v8702_v57 }
 0x418   :  { %v2903_v30 = vpop.f32.mrf.mxu0 }
 0x419   :  { %v2932_v20 = vpop.f32.mrf.mxu1  ;;  %v2904_v23 = vadd.f32 %v2903_v30, %v14206_v60 }
 0x41a   :  { %v2933_v24 = vadd.f32 %v2932_v20, %v14210_v42 }
 0x41b   :  { %v3534_v62 = vmul.f32 0.5, %v2904_v23 }
 0x41c   :  { %v3535_v28 = vmul.f32 0.5, %v2933_v24 }
 0x41d   :  { %8031 = vtanh.f32 %v3534_v62  ;;  %v14217_v62 = vld [vmem:[#allocation26_spill] sm:$0xff] }
 0x420   :  { %v2906_v48 = vpop.f32.mrf.mxu0 }
 0x421   :  { %v2935_v13 = vpop.f32.mrf.mxu1  ;;  %v2907_v45 = vadd.f32 %v2906_v48, %v14207_v38 }
 0x422   :  { %v2936_v21 = vadd.f32 %v2935_v13, %v14208_v54  ;;  %v14228_v54 = vld [vmem:[#allocation33_spill] sm:$0xff] }
 0x423   :  { %v3538_v19 = vmul.f32 0.5, %v2907_v45  ;;  %v8032_v3 = vpop.eup %8031 }
 0x424   :  { %v3539_v16 = vmul.f32 0.5, %v2936_v21  ;;  %v3566_v20 = vadd.f32 1.0, %v8032_v3 }
 0x425   :  { %8033 = vtanh.f32 %v3538_v19 }
 0x426   :  { %8035 = vtanh.f32 %v3539_v16 }
 0x428   :  { %v2909_v34 = vpop.f32.mrf.mxu0 }
 0x429   :  { %v2938_v27 = vpop.f32.mrf.mxu1  ;;  %v2910_v55 = vadd.f32 %v2909_v34, %v14209_v0 }
 0x42a   :  { %v2939_v63 = vadd.f32 %v2938_v27, %v14211_v59  ;;  %v14216_v27 = vld [vmem:[#allocation18_spill] sm:$0xff] }
 0x42b   :  { %v3542_v22 = vmul.f32 0.5, %v2910_v55  ;;  %v8034_v49 = vpop.eup %8033 }
 0x42c   :  { %v3543_v15 = vmul.f32 0.5, %v2939_v63  ;;  %v8036_v35 = vpop.eup %8035  ;;  %v3570_v21 = vadd.f32 1.0, %v8034_v49 }
 0x42d   :  { %8037 = vtanh.f32 %v3542_v22  ;;  %v3571_v19 = vadd.f32 1.0, %v8036_v35 }
 0x42e   :  { %8039 = vtanh.f32 %v3535_v28 }
 0x42f   :  { %8041 = vtanh.f32 %v3543_v15  ;;  %v3586_v15 = vmul.f32 0.5, %v3570_v21 }
 0x430   :  { %v2912_v4 = vpop.f32.mrf.mxu0 }
 0x431   :  { %v2913_v51 = vadd.f32 %v2912_v4, %v14214_v11 }
 0x432   :  { %v2941_v56 = vpop.f32.mrf.mxu1 }
 0x433   :  { %v3546_v32 = vmul.f32 0.5, %v2913_v51  ;;  %v8038_v30 = vpop.eup %8037  ;;  %v2942_v4 = vadd.f32 %v2941_v56, %v14216_v27 }
 0x434   :  { %v8040_v34 = vpop.eup %8039  ;;  %v3574_v16 = vadd.f32 1.0, %v8038_v30  ;;  %v14218_v30 = vld [vmem:[#allocation7_spill] sm:$0xff] }
 0x435   :  { %v3567_v28 = vadd.f32 1.0, %v8040_v34  ;;  %v3602_v34 = vmul.f32 0.125, %v3586_v15 }
 0x436   :  { %v3590_v3 = vmul.f32 0.5, %v3574_v16 }
 0x437   :  { %v3583_v35 = vmul.f32 0.5, %v3567_v28  ;;  %v14219_v28 = vld [vmem:[#allocation8_spill] sm:$0xff] }
 0x438   :  { %v3019_v2 = vpop.f32.mrf.mxu0  ;;  %v2961_v36 = vpop.f32.mrf.mxu2 }
 0x439   :  { %v3020_v46 = vadd.f32 %v3019_v2, %v14212_v53  ;;  %v3582_v2 = vmul.f32 0.5, %v3566_v20  ;;  %v2962_v20 = vadd.f32 %v2961_v36, %v14218_v30  ;;  %v10900_v36 = vmul.f32 0.125, %v3583_v35 }
 0x43a   :  { %v3048_v9 = vpop.f32.mrf.mxu1  ;;  %v2990_v31 = vpop.f32.mrf.mxu3 }
 0x43b   :  { %v10872_v29 = vclamps-f32 %v3020_v46, 50.0  ;;  %v3049_v43 = vadd.f32 %v3048_v9, %v14213_v33  ;;  %v8042_v46 = vpop.eup %8041  ;;  %v3547_v9 = vmul.f32 0.5, %v2942_v4 }
 0x43d   :  { %v3198_v61 = vand.u32 2147483647, %v10872_v29  ;;  %v10877_v1 = vclamps-f32 %v3049_v43, 50.0  ;;  %vm3166_vm9 = vcmp.ne.f32.partialorder %v10872_v29, %v10872_v29 }
 0x43f   :  { %v3214_v18 = vsub.f32 0.0, %v3198_v61  ;;  %v3199_v41 = vand.u32 2147483647, %v10877_v1  ;;  %v3587_v61 = vmul.f32 0.5, %v3571_v19  ;;  %vm3167_vm12 = vcmp.ne.f32.partialorder %v10877_v1, %v10877_v1 }
 0x440   :  { %v3022_v26 = vpop.f32.mrf.mxu0  ;;  %v10884_v55 = vpop.f32.mrf.mxu2 }
 0x441   :  { %v3023_v57 = vadd.f32 %v3022_v26, %v14215_v39  ;;  %v3230_v48 = vmul.f32 1.442695, %v3214_v18  ;;  %v3215_v23 = vsub.f32 0.0, %v3199_v41  ;;  %v3598_v26 = vmul.f32 0.125, %v3582_v2 }
 0x442   :  { %v3051_v13 = vpop.f32.mrf.mxu1  ;;  %v10888_v56 = vpop.f32.mrf.mxu3  ;;  %v3603_v4 = vmul.f32 0.125, %v3587_v61  ;;  %v10903_v61 = vadd.f32 %v10687_v7, %v3602_v34  ;;  %v3151_v39 = vmax.f32 %v10877_v1, 0.0 }
 0x443   :  { %v10882_v45 = vclamps-f32 %v3023_v57, 50.0  ;;  %8043 = vpow2.f32 %v3230_v48  ;;  %v3052_v24 = vadd.f32 %v3051_v13, %v14217_v62  ;;  %v3232_v22 = vmul.f32 1.442695, %v3215_v23 }
 0x444   :  { %8045 = vtanh.f32 %v3546_v32  ;;  %v3575_v32 = vadd.f32 1.0, %v8042_v46  ;;  %v3606_v23 = vmul.f32 0.125, %v3590_v3  ;;  %v10895_v16 = vadd.f32 %v10711_v6, %v3598_v26 }
 0x445   :  { %v3202_v63 = vand.u32 2147483647, %v10882_v45  ;;  %v10890_v43 = vclamps-f32 %v3052_v24, 50.0  ;;  %8047 = vpow2.f32 %v3232_v22  ;;  %v3154_v53 = vmax.f32 %v10882_v45, 0.0 }
 0x446   :  { %8049 = vtanh.f32 %v3547_v9  ;;  %v3591_v22 = vmul.f32 0.5, %v3575_v32  ;;  %v3536_v9 = vmul.f32 0.5, %v2962_v20  ;;  %v10907_v32 = vadd.f32 %v10709_v12, %v3603_v4 }
 0x447   :  { %v3218_v51 = vsub.f32 0.0, %v3202_v63  ;;  %v3203_v49 = vand.u32 2147483647, %v10890_v43  ;;  %v2991_v63 = vadd.f32 %v2990_v31, %v14219_v28  ;;  %v10910_v31 = vadd.f32 %v10643_v50, %v3606_v23 }
 0x448   :  { %v3025_v24 = vpop.f32.mrf.mxu0  ;;  %v10898_v46 = vpop.f32.mrf.mxu2  ;;  %vm3170_vm13 = vcmp.ne.f32.partialorder %v10882_v45, %v10882_v45  ;;  %vm3171_vm0 = vcmp.ne.f32.partialorder %v10890_v43, %v10890_v43 }
 0x449   :  { %v8044_v18 = vpop.eup %8043  ;;  %v3238_v41 = vmul.f32 1.442695, %v3218_v51  ;;  %v3219_v21 = vsub.f32 0.0, %v3203_v49  ;;  %v3537_v34 = vmul.f32 0.5, %v2991_v63 }
 0x44a   :  { %v8046_v57 = vpop.eup %8045  ;;  %v3262_v48 = vadd.f32 1.0, %v8044_v18  ;;  %v3265_v13 = vmul.f32 -0.5, %v8044_v18  ;;  %v2996_v35 = vpop.f32.mrf.mxu3 }
 0x44b   :  { %8051 = vpow2.f32 %v3238_v41  ;;  %v8048_v19 = vpop.eup %8047  ;;  %v3578_v2 = vadd.f32 1.0, %v8046_v57  ;;  %v3240_v49 = vmul.f32 1.442695, %v3219_v21  ;;  %v14220_v41 = vld [vmem:[#allocation29_spill] sm:$0xff]  ;;  %v3268_v57 = vand.u32 2147483647, %v8044_v18 }
 0x44c   :  { %8053 = vlog2.f32 %v3262_v48  ;;  %v3266_v15 = vadd.f32 1.0, %v3265_v13  ;;  %v3271_v51 = vadd.f32 1.0, %v8048_v19  ;;  %v3274_v3 = vmul.f32 -0.5, %v8048_v19  ;;  %v8050_v26 = vpop.eup %8049 }
 0x44d   :  { %v3026_v48 = vadd.f32 %v3025_v24, %v14220_v41  ;;  %v10912_v13 = vmul.f32 0.125, %v3591_v22  ;;  %v3594_v28 = vmul.f32 0.5, %v3578_v2  ;;  %v3150_v21 = vmax.f32 %v10872_v29, 0.0 }
 0x44e   :  { %8055 = vlog2.f32 %v3271_v51  ;;  %v3267_v24 = vmul.f32 %v8044_v18, %v3266_v15  ;;  %v3275_v62 = vadd.f32 1.0, %v3274_v3  ;;  %vm3269_vm10 = vcmp.lt.f32.partialorder %v3268_v57, 0.0004427343  ;;  %v3054_v51 = vpop.f32.mrf.mxu1  ;;  %v14221_v18 = vld [vmem:[#allocation11_spill] sm:$0xff]  ;;  %v14222_v15 = vld [vmem:[#allocation12_spill] sm:$0xff] }
 0x44f   :  { %8057 = vpow2.f32 %v3240_v49  ;;  %v10915_v23 = vclamps-f32 %v3026_v48, 50.0  ;;  %v3277_v22 = vand.u32 2147483647, %v8048_v19  ;;  %v10919_v2 = vmul.f32 0.125, %v3594_v28 }
 0x450   :  { %8059 = vtanh.f32 %v3536_v9  ;;  %v3579_v63 = vadd.f32 1.0, %v8050_v26  ;;  %v2994_v3 = vadd.f32 %v10888_v56, %v14222_v15  ;;  %v3276_v59 = vmul.f32 %v8048_v19, %v3275_v62  ;;  %v2970_v28 = vpop.f32.mrf.mxu2 }
 0x451   :  { %v8052_v20 = vpop.eup %8051  ;;  %v3206_v26 = vand.u32 2147483647, %v10915_v23  ;;  %vm3278_vm11 = vcmp.lt.f32.partialorder %v3277_v22, 0.0004427343  ;;  %vm3174_vm1 = vcmp.ne.f32.partialorder %v10915_v23, %v10915_v23 }
 0x452   :  { %v8054_v30 = vpop.eup %8053  ;;  %v3298_v41 = vadd.f32 1.0, %v8052_v20  ;;  %v3301_v27 = vmul.f32 -0.5, %v8052_v20  ;;  %v2999_v15 = vpop.f32.mrf.mxu3  ;;  %v3541_v33 = vmul.f32 0.5, %v2994_v3 }
 0x453   :  { %v3264_v4 = vmul.f32 0.6931472, %v8054_v30  ;;  %v2965_v30 = vadd.f32 %v10884_v55, %v14221_v18  ;;  %v3222_v22 = vsub.f32 0.0, %v3206_v26 }
 0x454   :  { %8061 = vlog2.f32 %v3298_v41  ;;  %v8056_v49 = vpop.eup %8055  ;;  %v3302_v41 = vadd.f32 1.0, %v3301_v27 }
 0x455   :  { %8063 = vtanh.f32 %v3537_v34  ;;  %v3270_v9 = vsel %vm3269_vm10, %v3267_v24, %v3264_v4  ;;  %v8058_v11 = vpop.eup %8057  ;;  %v3273_v57 = vmul.f32 0.6931472, %v8056_v49  ;;  %v3304_v24 = vand.u32 2147483647, %v8052_v20 }
 0x456   :  { %v3406_v48 = vadd.f32 %v3270_v9, %v3150_v21  ;;  %v10927_v34 = vpop.eup %8059  ;;  %v3307_v56 = vadd.f32 1.0, %v8058_v11  ;;  %v3595_v21 = vmul.f32 0.5, %v3579_v63  ;;  %v3310_v62 = vmul.f32 -0.5, %v8058_v11  ;;  %v3057_v42 = vpop.f32.mrf.mxu1 }
 0x457   :  { %v3279_v4 = vsel %vm3278_vm11, %v3276_v59, %v3273_v57  ;;  %v3540_v19 = vmul.f32 0.5, %v2965_v30  ;;  %vm3305_vm14 = vcmp.lt.f32.partialorder %v3304_v24, 0.0004427343  ;;  %v3028_v59 = vpop.f32.mrf.mxu0  ;;  %v14225_v30 = vld [vmem:[#allocation16_spill] sm:$0xff] }
 0x458   :  { %v3422_v55 = vsel %vm3166_vm9, %v10872_v29, %v3406_v48  ;;  %v3407_v49 = vadd.f32 %v3279_v4, %v3151_v39  ;;  %8065 = vlog2.f32 %v3307_v56  ;;  %v3303_v29 = vmul.f32 %v8052_v20, %v3302_v41  ;;  %v14224_v48 = vld [vmem:[#allocation15_spill] sm:$0xff] }
 0x459   :  { %v3438_v9 = vmul.f32 9.9, %v3422_v55  ;;  %v2968_v63 = vadd.f32 %v10898_v46, %v14224_v48  ;;  %v2997_v3 = vadd.f32 %v2996_v35, %v14225_v30  ;;  %v3311_v20 = vadd.f32 1.0, %v3310_v62  ;;  %v14226_v4 = vld [vmem:[#allocation19_spill] sm:$0xff]  ;;  %v14227_v48 = vld [vmem:[#allocation30_spill] sm:$0xff] }
 0x45a   :  { %v8062_v27 = vpop.eup %8061  ;;  %v3423_v39 = vsel %vm3167_vm12, %v10877_v1, %v3407_v49  ;;  %v3313_v55 = vand.u32 2147483647, %v8058_v11  ;;  %v3246_v46 = vmul.f32 1.442695, %v3222_v22  ;;  %v3155_v56 = vmax.f32 %v10890_v43, 0.0  ;;  %v14229_v49 = vld [vmem:[#allocation34_spill] sm:$0xff] }
 0x45b   :  { %v10935_v18 = vpop.eup %8063  ;;  %v3300_v0 = vmul.f32 0.6931472, %v8062_v27  ;;  %v3454_v41 = vadd.f32 0.1, %v3438_v9  ;;  %v2971_v27 = vadd.f32 %v2970_v28, %v14226_v4  ;;  %v3055_v24 = vadd.f32 %v3054_v51, %v14227_v48  ;;  %v3077_v28 = vpop.f32.mrf.mxu2  ;;  %v14236_v30 = vld [vmem:[#allocation27_spill] sm:$0xff] }
 0x45c   :  { %14223 = vst [vmem:[#allocation45_spill] sm:$0xff] %v10935_v18  ;;  %v3029_v38 = vadd.f32 %v3028_v59, %v14228_v54  ;;  %v3439_v10 = vmul.f32 9.9, %v3423_v39  ;;  %v3544_v1 = vmul.f32 0.5, %v2968_v63  ;;  %8067 = vpow2.f32 %v3246_v46 }
 0x45d   :  { %v3306_v57 = vsel %vm3305_vm14, %v3303_v29, %v3300_v0  ;;  %v3312_v62 = vmul.f32 %v8058_v11, %v3311_v20  ;;  %v10955_v9 = vclamps-f32 %v3055_v24, 50.0  ;;  %8069 = vrcp.f32 %v3454_v41  ;;  %v3106_v11 = vpop.f32.mrf.mxu3 }
 0x45e   :  { %v3410_v26 = vadd.f32 %v3306_v57, %v3154_v53  ;;  %v8066_v60 = vpop.eup %8065  ;;  %v3545_v53 = vmul.f32 0.5, %v2997_v3  ;;  %vm3314_vm15 = vcmp.lt.f32.partialorder %v3313_v55, 0.0004427343  ;;  %v10957_v51 = vclamps-f32 %v3029_v38, 50.0  ;;  %v14230_v57 = vld [vmem:[#allocation20_spill] sm:$0xff] }
 0x45f   :  { %v3309_v35 = vmul.f32 0.6931472, %v8066_v60  ;;  %v3058_v29 = vadd.f32 %v3057_v42, %v14229_v49  ;;  %8071 = vtanh.f32 %v3540_v19  ;;  %v3548_v59 = vmul.f32 0.5, %v2971_v27 }
 0x460   :  { %v3426_v0 = vsel %vm3170_vm13, %v10882_v45, %v3410_v26  ;;  %8073 = vtanh.f32 %v3541_v33  ;;  %v10960_v39 = vadd.f32 0.1, %v3439_v10  ;;  %v3207_v60 = vand.u32 2147483647, %v10955_v9 }
 0x461   :  { %v3442_v22 = vmul.f32 9.9, %v3426_v0  ;;  %v3315_v63 = vsel %vm3314_vm15, %v3312_v62, %v3309_v35  ;;  %v3611_v3 = vmul.f32 0.125, %v3595_v21  ;;  %8075 = vtanh.f32 %v3544_v1 }
 0x462   :  { %v3411_v45 = vadd.f32 %v3315_v63, %v3155_v56  ;;  %v3000_v20 = vadd.f32 %v2999_v15, %v14230_v57  ;;  %v3210_v38 = vand.u32 2147483647, %v10957_v51  ;;  %v8068_v26 = vpop.eup %8067  ;;  %8077 = vtanh.f32 %v3545_v53 }
 0x463   :  { %v3223_v42 = vsub.f32 0.0, %v3207_v60  ;;  %v10967_v19 = vclamps-f32 %v3058_v29, 50.0  ;;  %v10969_v10 = vadd.f32 0.1, %v3442_v22  ;;  %8079 = vtanh.f32 %v3548_v59  ;;  %v10972_v21 = vpop.eup %8069 }
 0x464   :  { %v3427_v33 = vsel %vm3171_vm0, %v10890_v43, %v3411_v45  ;;  %v3334_v55 = vadd.f32 1.0, %v8068_v26  ;;  %8081 = vrcp.f32 %v10960_v39  ;;  %v3337_v15 = vmul.f32 -0.5, %v8068_v26  ;;  %v3080_v45 = vpop.f32.mrf.mxu2 }
 0x465   :  { %v3248_v46 = vmul.f32 1.442695, %v3223_v42  ;;  %v3226_v56 = vsub.f32 0.0, %v3210_v38  ;;  %v10975_v27 = vpop.eup %8071  ;;  %v10979_v24 = vadd.f32 %v10674_v58, %v10912_v13  ;;  %v10983_v1 = vadd.f32 %v10645_v5, %v10919_v2  ;;  %v14232_v13 = vld [vmem:[#allocation23_spill] sm:$0xff]  ;;  %v14233_v2 = vld [vmem:[#allocation24_spill] sm:$0xff] }
 0x466   :  { %v3549_v43 = vmul.f32 0.5, %v3000_v20  ;;  %8083 = vlog2.f32 %v3334_v55  ;;  %v10985_v0 = vpop.eup %8073  ;;  %v3443_v53 = vmul.f32 9.9, %v3427_v33  ;;  %v3211_v62 = vand.u32 2147483647, %v10967_v19 }
 0x467   :  { %14231 = vst [vmem:[#allocation49_spill] sm:$0xff] %v10985_v0  ;;  %8085 = vpow2.f32 %v3248_v46  ;;  %v3254_v35 = vmul.f32 1.442695, %v3226_v56  ;;  %v10988_v29 = vpop.eup %8075  ;;  %v10991_v22 = vmul.f32 %v10972_v21, %v3454_v41  ;;  %v3078_v63 = vadd.f32 %v3077_v28, %v14232_v13 }
 0x468   :  { %8087 = vrcp.f32 %v10969_v10  ;;  %v3107_v59 = vadd.f32 %v3106_v11, %v14233_v2  ;;  %v10996_v60 = vpop.eup %8077  ;;  %v10999_v20 = vadd.f32 %v10663_v37, %v3611_v3  ;;  %v3338_v38 = vadd.f32 1.0, %v3337_v15  ;;  %v3109_v15 = vpop.f32.mrf.mxu3 }
 0x469   :  { %14234 = vst [vmem:[#allocation48_spill] sm:$0xff] %v10996_v60  ;;  %8089 = vpow2.f32 %v3254_v35  ;;  %v3227_v42 = vsub.f32 0.0, %v3211_v62  ;;  %v11001_v33 = vpop.eup %8079  ;;  %v3158_v41 = vmax.f32 %v10915_v23, 0.0  ;;  %v3340_v55 = vand.u32 2147483647, %v8068_v26 }
 0x46a   :  { %14235 = vst [vmem:[#allocation37_spill] sm:$0xff] %v11001_v33  ;;  %v11004_v46 = vclamps-f32 %v3078_v63, 50.0  ;;  %v11006_v56 = vclamps-f32 %v3107_v59, 50.0  ;;  %v11008_v28 = vpop.eup %8081  ;;  %v11010_v11 = vadd.f32 0.1, %v3443_v53  ;;  %8091 = vtanh.f32 %v3549_v43 }
 0x46b   :  { %v3256_v3 = vmul.f32 1.442695, %v3227_v42  ;;  %v3339_v13 = vmul.f32 %v8068_v26, %v3338_v38  ;;  %vm3341_vm3 = vcmp.lt.f32.partialorder %v3340_v55, 0.0004427343  ;;  %v3081_v54 = vadd.f32 %v3080_v45, %v14236_v30  ;;  %v14238_v30 = vld [vmem:[#allocation28_spill] sm:$0xff] }
 0x46c   :  { %v8084_v35 = vpop.eup %8083  ;;  %v3200_v59 = vand.u32 2147483647, %v11004_v46  ;;  %v3201_v43 = vand.u32 2147483647, %v11006_v56  ;;  %vm3175_vm4 = vcmp.ne.f32.partialorder %v10955_v9, %v10955_v9  ;;  %vm3178_vm5 = vcmp.ne.f32.partialorder %v10957_v51, %v10957_v51 }
 0x46d   :  { %v8086_v57 = vpop.eup %8085  ;;  %v3336_v4 = vmul.f32 0.6931472, %v8084_v35  ;;  %8093 = vpow2.f32 %v3256_v3  ;;  %v11025_v35 = vmul.f32 %v11008_v28, %v10960_v39  ;;  %vm3179_vm8 = vcmp.ne.f32.partialorder %v10967_v19, %v10967_v19 }
 0x46e   :  { %v11019_v53 = vpop.eup %8087  ;;  %v3343_v42 = vadd.f32 1.0, %v8086_v57  ;;  %v3216_v49 = vsub.f32 0.0, %v3200_v59  ;;  %8095 = vrcp.f32 %v11010_v11  ;;  %v3346_v63 = vmul.f32 -0.5, %v8086_v57 }
 0x46f   :  { %v8090_v62 = vpop.eup %8089  ;;  %v3342_v2 = vsel %vm3341_vm3, %v3339_v13, %v3336_v4  ;;  %v3217_v48 = vsub.f32 0.0, %v3201_v43  ;;  %v11032_v55 = vmul.f32 %v11019_v53, %v10969_v10  ;;  %v3110_v4 = vadd.f32 %v3109_v15, %v14238_v30  ;;  %v3083_v43 = vpop.f32.mrf.mxu2 }
 0x470   :  { %v3414_v26 = vadd.f32 %v3342_v2, %v3158_v41  ;;  %8097 = vlog2.f32 %v3343_v42  ;;  %v11028_v3 = vpop.eup %8091  ;;  %v3370_v45 = vadd.f32 1.0, %v8090_v62  ;;  %v3373_v59 = vmul.f32 -0.5, %v8090_v62 }
 0x471   :  { %14237 = vst [vmem:[#allocation47_spill] sm:$0xff] %v11028_v3  ;;  %v3234_v13 = vmul.f32 1.442695, %v3216_v49  ;;  %v3236_v2 = vmul.f32 1.442695, %v3217_v48  ;;  %v11039_v41 = vclamps-f32 %v3081_v54, 50.0  ;;  %vm3168_vm10 = vcmp.ne.f32.partialorder %v11004_v46, %v11004_v46 }
 0x472   :  { %v3430_v39 = vsel %vm3174_vm1, %v10915_v23, %v3414_v26  ;;  %v3347_v10 = vadd.f32 1.0, %v3346_v63  ;;  %v3349_v44 = vand.u32 2147483647, %v8086_v57  ;;  %8099 = vlog2.f32 %v3370_v45  ;;  %v14239_v54 = vld [vmem:[#allocation31_spill] sm:$0xff]  ;;  %v3112_v26 = vpop.f32.mrf.mxu3 }
 0x473   :  { %v8094_v42 = vpop.eup %8093  ;;  %v3446_v38 = vmul.f32 9.9, %v3430_v39  ;;  %v3376_v8 = vand.u32 2147483647, %v8090_v62  ;;  %8101 = vpow2.f32 %v3234_v13  ;;  %v3374_v48 = vadd.f32 1.0, %v3373_v59 }
 0x474   :  { %v3379_v15 = vadd.f32 1.0, %v8094_v42  ;;  %v3382_v30 = vmul.f32 -0.5, %v8094_v42  ;;  %v11043_v25 = vpop.eup %8095  ;;  %8103 = vpow2.f32 %v3236_v2  ;;  %v3084_v49 = vadd.f32 %v3083_v43, %v14239_v54  ;;  %v14242_v43 = vld [vmem:[#allocation32_spill] sm:$0xff] }
 0x475   :  { %v3462_v52 = vadd.f32 0.1, %v3446_v38  ;;  %v3204_v63 = vand.u32 2147483647, %v11039_v41  ;;  %v3348_v13 = vmul.f32 %v8086_v57, %v3347_v10  ;;  %v11051_v40 = vclamps-f32 %v3110_v4, 50.0 }
 0x476   :  { %v8098_v39 = vpop.eup %8097  ;;  %8105 = vlog2.f32 %v3379_v15  ;;  %v3383_v14 = vadd.f32 1.0, %v3382_v30  ;;  %vm3350_vm6 = vcmp.lt.f32.partialorder %v3349_v44, 0.0004427343  ;;  %vm11053_vm7 = vcmp.lt.f32.partialorder %v3376_v8, 0.0004427343 }
 0x477   :  { %v3345_v45 = vmul.f32 0.6931472, %v8098_v39  ;;  %v3113_v38 = vadd.f32 %v3112_v26, %v14242_v43  ;;  %v3375_v54 = vmul.f32 %v8090_v62, %v3374_v48  ;;  %v3385_v15 = vand.u32 2147483647, %v8094_v42 }
 0x478   :  { %v8100_v23 = vpop.eup %8099  ;;  %v3205_v30 = vand.u32 2147483647, %v11051_v40  ;;  %8107 = vrcp.f32 %v3462_v52  ;;  %v14243_v8 = vmax.f32 %v10955_v9, 0.0  ;;  %v3220_v10 = vsub.f32 0.0, %v3204_v63 }
 0x479   :  { %v3351_v47 = vsel %vm3350_vm6, %v3348_v13, %v3345_v45  ;;  %v8102_v57 = vpop.eup %8101  ;;  %v3372_v4 = vmul.f32 0.6931472, %v8100_v23  ;;  %v3384_v2 = vmul.f32 %v8094_v42, %v3383_v14  ;;  %vm3386_vm9 = vcmp.lt.f32.partialorder %v3385_v15, 0.0004427343 }
 0x47a   :  { %v3415_v44 = vadd.f32 %v3351_v47, %v14243_v8  ;;  %v8104_v39 = vpop.eup %8103  ;;  %v3280_v0 = vadd.f32 1.0, %v8102_v57  ;;  %v3283_v26 = vmul.f32 -0.5, %v8102_v57  ;;  %v3221_v43 = vsub.f32 0.0, %v3205_v30 }
 0x47b   :  { %v3378_v48 = vsel %vm11053_vm7, %v3375_v54, %v3372_v4  ;;  %v3289_v13 = vadd.f32 1.0, %v8104_v39  ;;  %v3292_v3 = vmul.f32 -0.5, %v8104_v39  ;;  %v14244_v47 = vmax.f32 %v10957_v51, 0.0 }
 0x47c   :  { %v8106_v45 = vpop.eup %8105  ;;  %v3431_v62 = vsel %vm3175_vm4, %v10955_v9, %v3415_v44  ;;  %8109 = vlog2.f32 %v3280_v0  ;;  %v3153_v14 = vmax.f32 %v11006_v56, 0.0  ;;  %v3242_v42 = vmul.f32 1.442695, %v3220_v10 }
 0x47d   :  { %v3447_v60 = vmul.f32 9.9, %v3431_v62  ;;  %v3418_v23 = vadd.f32 %v3378_v48, %v14244_v47  ;;  %v3381_v63 = vmul.f32 0.6931472, %v8106_v45  ;;  %8111 = vlog2.f32 %v3289_v13 }
 0x47e   :  { %v11075_v30 = vmul.f32 %v11043_v25, %v11010_v11  ;;  %v11081_v59 = vclamps-f32 %v3084_v49, 50.0  ;;  %v11083_v8 = vpop.eup %8107  ;;  %v14245_v15 = vmax.f32 %v10967_v19, 0.0  ;;  %v3284_v4 = vadd.f32 1.0, %v3283_v26 }
 0x47f   :  { %v3434_v9 = vsel %vm3178_vm5, %v10957_v51, %v3418_v23  ;;  %v3387_v54 = vsel %vm3386_vm9, %v3384_v2, %v3381_v63  ;;  %v3286_v11 = vand.u32 2147483647, %v8102_v57  ;;  %v11089_v10 = vadd.f32 0.1, %v3447_v60  ;;  %v3086_v63 = vpop.f32.mrf.mxu2 }
 0x480   :  { %v3450_v0 = vmul.f32 9.9, %v3434_v9  ;;  %v3419_v44 = vadd.f32 %v3387_v54, %v14245_v15  ;;  %vm3169_vm11 = vcmp.ne.f32.partialorder %v11006_v56, %v11006_v56  ;;  %v3293_v51 = vadd.f32 1.0, %v3292_v3 }
 0x481   :  { %v3244_v2 = vmul.f32 1.442695, %v3221_v43  ;;  %v11093_v49 = vclamps-f32 %v3113_v38, 50.0  ;;  %v3295_v48 = vand.u32 2147483647, %v8104_v39  ;;  %8113 = vpow2.f32 %v3242_v42 }
 0x482   :  { %v3466_v45 = vadd.f32 0.1, %v3450_v0  ;;  %v3435_v62 = vsel %vm3179_vm8, %v10967_v19, %v3419_v44  ;;  %v8110_v13 = vpop.eup %8109  ;;  %v3494_v26 = vmul.f32 %v11083_v8, %v3462_v52  ;;  %v3285_v43 = vmul.f32 %v8102_v57, %v3284_v4 }
 0x483   :  { %v3451_v60 = vmul.f32 9.9, %v3435_v62  ;;  %8115 = vpow2.f32 %v3244_v2  ;;  %v8112_v23 = vpop.eup %8111  ;;  %v3282_v3 = vmul.f32 0.6931472, %v8110_v13  ;;  %v3208_v38 = vand.u32 2147483647, %v11081_v59 }
 0x484   :  { %8117 = vrcp.f32 %v3466_v45  ;;  %vm3287_vm12 = vcmp.lt.f32.partialorder %v3286_v11, 0.0004427343  ;;  %v3291_v54 = vmul.f32 0.6931472, %v8112_v23  ;;  %v3294_v19 = vmul.f32 %v8104_v39, %v3293_v51  ;;  %v14247_v2 = vld [vmem:[#allocation35_spill] sm:$0xff]  ;;  %v3115_v51 = vpop.f32.mrf.mxu3 }
 0x485   :  { %v3467_v9 = vadd.f32 0.1, %v3451_v60  ;;  %8119 = vrcp.f32 %v11089_v10  ;;  %v3288_v42 = vsel %vm3287_vm12, %v3285_v43, %v3282_v3  ;;  %vm3296_vm13 = vcmp.lt.f32.partialorder %v3295_v48, 0.0004427343 }
 0x486   :  { %v3209_v52 = vand.u32 2147483647, %v11093_v49  ;;  %v14246_v0 = vmax.f32 %v11004_v46, 0.0  ;;  %v3297_v44 = vsel %vm3296_vm13, %v3294_v19, %v3291_v54  ;;  %v3087_v57 = vadd.f32 %v3086_v63, %v14247_v2 }
 0x487   :  { %8121 = vrcp.f32 %v3467_v9  ;;  %v8114_v4 = vpop.eup %8113  ;;  %v3409_v13 = vadd.f32 %v3297_v44, %v3153_v14  ;;  %v3224_v39 = vsub.f32 0.0, %v3208_v38  ;;  %v3510_v23 = vsub.f32 2.0, %v3494_v26  ;;  %v14248_v26 = vld [vmem:[#allocation36_spill] sm:$0xff] }
 0x488   :  { %v3408_v15 = vadd.f32 %v3288_v42, %v14246_v0  ;;  %v3316_v3 = vadd.f32 1.0, %v8114_v4  ;;  %v3225_v43 = vsub.f32 0.0, %v3209_v52  ;;  %v3319_v63 = vmul.f32 -0.5, %v8114_v4 }
 0x489   :  { %v8116_v60 = vpop.eup %8115  ;;  %v3425_v14 = vsel %vm3169_vm11, %v11006_v56, %v3409_v13  ;;  %v11117_v0 = vclamps-f32 %v3087_v57, 50.0  ;;  %v3116_v44 = vadd.f32 %v3115_v51, %v14248_v26  ;;  %vm3172_vm14 = vcmp.ne.f32.partialorder %v11039_v41, %v11039_v41 }
 0x48a   :  { %v3424_v48 = vsel %vm3168_vm10, %v11004_v46, %v3408_v15  ;;  %v8118_v54 = vpop.eup %8117  ;;  %v3325_v42 = vadd.f32 1.0, %v8116_v60  ;;  %8123 = vlog2.f32 %v3316_v3  ;;  %v3322_v46 = vand.u32 2147483647, %v8114_v4 }
 0x48b   :  { %v3440_v19 = vmul.f32 9.9, %v3424_v48  ;;  %v3498_v38 = vmul.f32 %v8118_v54, %v3466_v45  ;;  %v11120_v62 = vpop.eup %8119  ;;  %v3328_v52 = vmul.f32 -0.5, %v8116_v60  ;;  %v3250_v15 = vmul.f32 1.442695, %v3224_v39 }
 0x48c   :  { %8125 = vlog2.f32 %v3325_v42  ;;  %v3441_v47 = vmul.f32 9.9, %v3425_v14  ;;  %v3320_v45 = vadd.f32 1.0, %v3319_v63  ;;  %v3252_v57 = vmul.f32 1.442695, %v3225_v43 }
 0x48d   :  { %v8122_v48 = vpop.eup %8121  ;;  %v3514_v11 = vsub.f32 2.0, %v3498_v38  ;;  %v11124_v13 = vadd.f32 0.1, %v3440_v19  ;;  %v3526_v51 = vmul.f32 %v11083_v8, %v3510_v23  ;;  %v3495_v3 = vmul.f32 %v11120_v62, %v11089_v10 }
 0x48e   :  { %vm3173_vm15 = vcmp.ne.f32.partialorder %v11051_v40, %v11051_v40  ;;  %v3329_v39 = vadd.f32 1.0, %v3328_v52  ;;  %v3331_v14 = vand.u32 2147483647, %v8116_v60  ;;  %v3212_v42 = vand.u32 2147483647, %v11117_v0 }
 0x48f   :  { %v3499_v38 = vmul.f32 %v8122_v48, %v3467_v9  ;;  %vm11134_vm0 = vcmp.lt.f32.partialorder %v3322_v46, 0.0004427343  ;;  %8127 = vpow2.f32 %v3250_v15  ;;  %v11138_v63 = vclamps-f32 %v3116_v44, 50.0 }
 0x490   :  { %v8124_v43 = vpop.eup %8123  ;;  %v11140_v8 = vadd.f32 0.1, %v3441_v47  ;;  %8129 = vpow2.f32 %v3252_v57  ;;  %v3228_v10 = vsub.f32 0.0, %v3212_v42  ;;  %v3530_v23 = vmul.f32 %v8118_v54, %v3514_v11 }
 0x491   :  { %8131 = vrcp.f32 %v11124_v13  ;;  %v3318_v52 = vmul.f32 0.6931472, %v8124_v43  ;;  %v3321_v2 = vmul.f32 %v8114_v4, %v3320_v45  ;;  %v3213_v9 = vand.u32 2147483647, %v11138_v63 }
 0x492   :  { %v8126_v56 = vpop.eup %8125  ;;  %v3330_v26 = vmul.f32 %v8116_v60, %v3329_v39  ;;  %vm3332_vm1 = vcmp.lt.f32.partialorder %v3331_v14, 0.0004427343  ;;  %v3258_v18 = vmul.f32 1.442695, %v3228_v10  ;;  %v3515_v15 = vsub.f32 2.0, %v3499_v38 }
 0x493   :  { %v3327_v46 = vmul.f32 0.6931472, %v8126_v56  ;;  %v3324_v44 = vsel %vm11134_vm0, %v3321_v2, %v3318_v52  ;;  %v3229_v47 = vsub.f32 0.0, %v3213_v9  ;;  %v3642_v33 = vmul.f32 0.125, %v3530_v23 }
 0x494   :  { %v14251_v57 = vmax.f32 %v11039_v41, 0.0  ;;  %v3164_v42 = vmax.f32 %v11117_v0, 0.0  ;;  %8133 = vpow2.f32 %v3258_v18  ;;  %v3511_v45 = vsub.f32 2.0, %v3495_v3 }
 0x495   :  { %v3333_v54 = vsel %vm3332_vm1, %v3330_v26, %v3327_v46  ;;  %v8128_v4 = vpop.eup %8127  ;;  %8135 = vrcp.f32 %v11140_v8  ;;  %v14252_v60 = vmax.f32 %v11051_v40, 0.0  ;;  %v3260_v39 = vmul.f32 1.442695, %v3229_v47 }
 0x496   :  { %v3412_v11 = vadd.f32 %v3324_v44, %v14251_v57  ;;  %v8130_v14 = vpop.eup %8129  ;;  %v3352_v38 = vadd.f32 1.0, %v8128_v4  ;;  %v3355_v19 = vmul.f32 -0.5, %v8128_v4  ;;  %v3638_v26 = vmul.f32 0.125, %v3526_v51 }
 0x497   :  { %v3413_v56 = vadd.f32 %v3333_v54, %v14252_v60  ;;  %v11156_v43 = vpop.eup %8131  ;;  %v3658_v10 = vmul.f32 %v10645_v5, %v3642_v33  ;;  %v3531_v23 = vmul.f32 %v8122_v48, %v3515_v15  ;;  %v3358_v9 = vand.u32 2147483647, %v8128_v4 }
 0x498   :  { %v3428_v2 = vsel %vm3172_vm14, %v11039_v41, %v3412_v11  ;;  %8137 = vlog2.f32 %v3352_v38  ;;  %v3361_v46 = vadd.f32 1.0, %v8130_v14  ;;  %v3356_v41 = vadd.f32 1.0, %v3355_v19 }
 0x499   :  { %v3444_v18 = vmul.f32 9.9, %v3428_v2  ;;  %v3429_v3 = vsel %vm3173_vm15, %v11051_v40, %v3413_v56  ;;  %v3364_v47 = vmul.f32 -0.5, %v8130_v14  ;;  %8139 = vpow2.f32 %v3260_v39 }
 0x49a   :  { %v3445_v52 = vmul.f32 9.9, %v3429_v3  ;;  %v8134_v51 = vpop.eup %8133  ;;  %8141 = vlog2.f32 %v3361_v46  ;;  %v3367_v57 = vand.u32 2147483647, %v8130_v14  ;;  %v3654_v11 = vmul.f32 %v10643_v50, %v3638_v26 }
 0x49b   :  { %v11163_v44 = vadd.f32 0.1, %v3444_v18  ;;  %v3527_v54 = vmul.f32 %v11120_v62, %v3511_v45  ;;  %v11167_v40 = vpop.eup %8135  ;;  %vm3176_vm3 = vcmp.ne.f32.partialorder %v11081_v59, %v11081_v59  ;;  %v3365_v5 = vadd.f32 1.0, %v3364_v47 }
 0x49c   :  { %v3388_v33 = vadd.f32 1.0, %v8134_v51  ;;  %v3391_v48 = vmul.f32 -0.5, %v8134_v51  ;;  %v3165_v15 = vmax.f32 %v11138_v63, 0.0  ;;  %v11173_v60 = vadd.f32 0.1, %v3445_v52 }
 0x49d   :  { %8143 = vrcp.f32 %v11163_v44  ;;  %vm11175_vm4 = vcmp.lt.f32.partialorder %v3358_v9, 0.0004427343  ;;  %v3674_v50 = vsub.f32 %v10983_v1, %v3658_v10  ;;  %v3357_v62 = vmul.f32 %v8128_v4, %v3356_v41 }
 0x49e   :  { %vm3177_vm5 = vcmp.ne.f32.partialorder %v11093_v49, %v11093_v49  ;;  %vm11182_vm6 = vcmp.lt.f32.partialorder %v3367_v57, 0.0004427343  ;;  %8145 = vlog2.f32 %v3388_v33  ;;  %v3643_v39 = vmul.f32 0.125, %v3531_v23  ;;  %v8138_v2 = vpop.eup %8137 }
 0x49f   :  { %v3394_v38 = vand.u32 2147483647, %v8134_v51  ;;  %v11186_v19 = vclamps-f32 %v3674_v50, 100.0  ;;  %v3670_v26 = vsub.f32 %v10910_v31, %v3654_v11  ;;  %v3639_v18 = vmul.f32 0.125, %v3527_v54  ;;  %v8140_v3 = vpop.eup %8139 }
 0x4a0   :  { %v3354_v52 = vmul.f32 0.6931472, %v8138_v2  ;;  %v3366_v1 = vmul.f32 %v8130_v14, %v3365_v5  ;;  %v3392_v4 = vadd.f32 1.0, %v3391_v48  ;;  %v3659_v10 = vmul.f32 %v10663_v37, %v3643_v39  ;;  %v8142_v9 = vpop.eup %8141 }
 0x4a1   :  { %vm3180_vm7 = vcmp.ne.f32.partialorder %v11117_v0, %v11117_v0  ;;  %v3397_v46 = vadd.f32 1.0, %v8140_v3  ;;  %v3400_v41 = vmul.f32 -0.5, %v8140_v3  ;;  %v3403_v23 = vand.u32 2147483647, %v8140_v3  ;;  %3722 = vmatpush.msra.mxu0 %v11186_v19 }
 0x4a2   :  { %v11193_v47 = vclamps-f32 %v3670_v26, 100.0  ;;  %v3360_v31 = vsel %vm11175_vm4, %v3357_v62, %v3354_v52  ;;  %v3363_v57 = vmul.f32 0.6931472, %v8142_v9  ;;  %v3675_v14 = vsub.f32 %v10999_v20, %v3659_v10 }
 0x4a3   :  { %v3655_v11 = vmul.f32 %v10674_v58, %v3639_v18  ;;  %v11199_v37 = vpop.eup %8143  ;;  %v14257_v54 = vmax.f32 %v11081_v59, 0.0  ;;  %8147 = vlog2.f32 %v3397_v46  ;;  %v3401_v33 = vadd.f32 1.0, %v3400_v41 }
 0x4a4   :  { %3723 = vmatpush.msra.mxu0 %v11193_v47  ;;  %v14258_v48 = vsub.f32 2.0, %v11032_v55  ;;  %v8146_v56 = vpop.eup %8145  ;;  %8149 = vrcp.f32 %v11173_v60  ;;  %v3369_v20 = vsel %vm11182_vm6, %v3366_v1, %v3363_v57  ;;  %vm11210_vm8 = vcmp.lt.f32.partialorder %v3394_v38, 0.0004427343 }
 0x4a5   :  { %v3416_v5 = vadd.f32 %v3360_v31, %v14257_v54  ;;  %v11214_v62 = vclamps-f32 %v3675_v14, 100.0  ;;  %v14261_v55 = vmax.f32 %v11093_v49, 0.0  ;;  %v3390_v2 = vmul.f32 0.6931472, %v8146_v56 }
 0x4a6   :  { %v3522_v50 = vmul.f32 %v11019_v53, %v14258_v48  ;;  %v3393_v26 = vmul.f32 %v8134_v51, %v3392_v4  ;;  %v3402_v52 = vmul.f32 %v8140_v3, %v3401_v33  ;;  %vm11222_vm9 = vcmp.lt.f32.partialorder %v3403_v23, 0.0004427343 }
 0x4a7   :  { %v3432_v39 = vsel %vm3176_vm3, %v11081_v59, %v3416_v5  ;;  %v3417_v53 = vadd.f32 %v3369_v20, %v14261_v55  ;;  %3751 = vmatpush.msra.mxu1 %v11214_v62  ;;  %v3671_v38 = vsub.f32 %v10979_v24, %v3655_v11  ;;  %v14264_v51 = vsub.f32 2.0, %v11075_v30 }
 0x4a8   :  { %v3448_v18 = vmul.f32 9.9, %v3432_v39  ;;  %v3396_v1 = vsel %vm11210_vm8, %v3393_v26, %v3390_v2  ;;  %v3634_v10 = vmul.f32 0.125, %v3522_v50  ;;  %v14266_v14 = vsub.f32 2.0, %v11025_v35 }
 0x4a9   :  { %v3433_v59 = vsel %vm3177_vm5, %v11093_v49, %v3417_v53  ;;  %v3523_v3 = vmul.f32 %v11043_v25, %v14264_v51  ;;  %v3420_v46 = vadd.f32 %v3396_v1, %v3164_v42  ;;  %v11239_v41 = vclamps-f32 %v3671_v38, 100.0  ;;  %v8148_v24 = vpop.eup %8147  ;;  %v14268_v1 = vld [vmem:[#allocation45_spill] sm:$0xff] }
 0x4aa   :  { %v3464_v4 = vadd.f32 0.1, %v3448_v18  ;;  %v3449_v9 = vmul.f32 9.9, %v3433_v59  ;;  %v3650_v23 = vmul.f32 %v10687_v7, %v3634_v10  ;;  %v14265_v49 = vsub.f32 2.0, %v10991_v22  ;;  %v11248_v25 = vpop.eup %8149 }
 0x4ab   :  { %v3635_v31 = vmul.f32 0.125, %v3523_v3  ;;  %v3519_v30 = vmul.f32 %v11008_v28, %v14266_v14  ;;  %v3436_v42 = vsel %vm3180_vm7, %v11117_v0, %v3420_v46  ;;  %v3399_v54 = vmul.f32 0.6931472, %v8148_v24  ;;  %3752 = vmatpush.msra.mxu1 %v11239_v41 }
 0x4ac   :  { %v3518_v57 = vmul.f32 %v10972_v21, %v14265_v49  ;;  %8151 = vrcp.f32 %v3464_v4  ;;  %v3465_v11 = vadd.f32 0.1, %v3449_v9  ;;  %v3452_v7 = vmul.f32 9.9, %v3436_v42 }
 0x4ad   :  { %v3666_v22 = vsub.f32 %v10903_v61, %v3650_v23  ;;  %v3651_v21 = vmul.f32 %v10709_v12, %v3635_v31  ;;  %v3615_v28 = vadd.f32 %v10721_v17, %v10900_v36  ;;  %v3405_v5 = vsel %vm11222_vm9, %v3402_v52, %v3399_v54  ;;  %v14271_v54 = vld [vmem:[#allocation49_spill] sm:$0xff] }
 0x4ae   :  { %v3630_v35 = vmul.f32 0.125, %v3518_v57  ;;  %8153 = vrcp.f32 %v3465_v11  ;;  %v3631_v33 = vmul.f32 0.125, %v3519_v30  ;;  %v3468_v48 = vadd.f32 0.1, %v3452_v7  ;;  %v14269_v57 = vld [vmem:[#allocation48_spill] sm:$0xff]  ;;  %v14270_v30 = vld [vmem:[#allocation47_spill] sm:$0xff] }
 0x4af   :  { %v3421_v0 = vadd.f32 %v3405_v5, %v3165_v15  ;;  %v11263_v50 = vclamps-f32 %v3666_v22, 100.0  ;;  %v3667_v56 = vsub.f32 %v10907_v32, %v3651_v21  ;;  %v3492_v12 = vmul.f32 %v11199_v37, %v11163_v44 }
 0x4b0   :  { %vm3181_vm10 = vcmp.ne.f32.partialorder %v11138_v63, %v11138_v63  ;;  %v3646_v36 = vmul.f32 %v10711_v6, %v3630_v35  ;;  %v3647_v61 = vmul.f32 %v10721_v17, %v3631_v33  ;;  %v3568_v20 = vadd.f32 1.0, %v10927_v34  ;;  %v14267_v34 = vld [vmem:[#allocation37_spill] sm:$0xff] }
 0x4b1   :  { %8155 = vrcp.f32 %v3468_v48  ;;  %v3437_v58 = vsel %vm3181_vm10, %v11138_v63, %v3421_v0  ;;  %3724 = vmatpush.msra.mxu0 %v11263_v50  ;;  %v11275_v15 = vclamps-f32 %v3667_v56, 100.0  ;;  %v3488_v44 = vmul.f32 %v11156_v43, %v11124_v13 }
 0x4b2   :  { %v8152_v32 = vpop.eup %8151  ;;  %v3453_v39 = vmul.f32 9.9, %v3437_v58  ;;  %v3662_v55 = vsub.f32 %v10895_v16, %v3646_v36  ;;  %v3663_v53 = vsub.f32 %v3615_v28, %v3647_v61  ;;  %v3572_v6 = vadd.f32 1.0, %v10975_v27 }
 0x4b3   :  { %v3576_v17 = vadd.f32 1.0, %v10988_v29  ;;  %v3580_v2 = vadd.f32 1.0, %v14267_v34  ;;  %v3496_v26 = vmul.f32 %v8152_v32, %v3464_v4  ;;  %3753 = vmatpush.msra.mxu1 %v11275_v15  ;;  %v3508_v18 = vsub.f32 2.0, %v3492_v12 }
 0x4b4   :  { %v8154_v63 = vpop.eup %8153  ;;  %v3469_v52 = vadd.f32 0.1, %v3453_v39  ;;  %v11284_v45 = vclamps-f32 %v3662_v55, 100.0  ;;  %v11286_v38 = vclamps-f32 %v3663_v53, 100.0  ;;  %v3584_v13 = vmul.f32 0.5, %v3568_v20  ;;  %v14272_v39 = vld [vmem:[#allocation52_spill] sm:$0xff] }
 0x4b5   :  { %v3493_v16 = vmul.f32 %v11248_v25, %v11173_v60  ;;  %v3512_v59 = vsub.f32 2.0, %v3496_v26  ;;  %v3497_v27 = vmul.f32 %v8154_v63, %v3465_v11  ;;  %v3569_v29 = vadd.f32 1.0, %v14268_v1  ;;  %v11298_v60 = vld [vmem:[%s13770_s1] sm:$0xff] }
 0x4b6   :  { %v3504_v10 = vsub.f32 2.0, %v3488_v44  ;;  %8157 = vrcp.f32 %v3469_v52  ;;  %3725 = vmatpush.msra.mxu0 %v11284_v45  ;;  %3754 = vmatpush.msra.mxu1 %v11286_v38  ;;  %v3588_v3 = vmul.f32 0.5, %v3572_v6  ;;  %v3489_v4 = vmul.f32 %v11167_v40, %v11140_v8  ;;  %v14273_v6 = vld [vmem:[#allocation50_spill] sm:$0xff] }
 0x4b7   :  { %v8156_v51 = vpop.eup %8155  ;;  %v3513_v9 = vsub.f32 2.0, %v3497_v27  ;;  %7397 = vmatmul.msk.f32.vlgmr.msra.gmra.mxu0 %vm389_vm2, %v11298_v60  ;;  %7401 = vmatmul.msk.f32.vlgmr.msra.gmra.mxu1 %vm389_vm2, %v11298_v60  ;;  %v3528_v46 = vmul.f32 %v8152_v32, %v3512_v59  ;;  %v3592_v24 = vmul.f32 0.5, %v3576_v17  ;;  %v3596_v23 = vmul.f32 0.5, %v3580_v2  ;;  %v11323_v2 = vld [vmem:[%s13770_s1 + $0x8] sm:$0xff] }
 0x4b8   :  { %v3500_v31 = vmul.f32 %v8156_v51, %v3468_v48  ;;  %3838 = vmatpush.msrb.mxu0 %v11186_v19  ;;  %3867 = vmatpush.msrb.mxu1 %v11214_v62  ;;  %v3524_v8 = vmul.f32 %v11199_v37, %v3508_v18  ;;  %v3600_v49 = vmul.f32 0.125, %v3584_v13  ;;  %v3577_v14 = vadd.f32 1.0, %v14269_v57  ;;  %v14274_v18 = vld [vmem:[#allocation42_spill] sm:$0xff] }
 0x4b9   :  { %v3581_v11 = vadd.f32 1.0, %v14270_v30  ;;  %v3509_v42 = vsub.f32 2.0, %v3493_v16  ;;  %v3573_v7 = vadd.f32 1.0, %v14271_v54  ;;  %v3640_v21 = vmul.f32 0.125, %v3528_v46 }
 0x4ba   :  { %v3516_v22 = vsub.f32 2.0, %v3500_v31  ;;  %3839 = vmatpush.msrb.mxu0 %v11193_v47  ;;  %3868 = vmatpush.msrb.mxu1 %v11239_v41  ;;  %v3520_v35 = vmul.f32 %v11156_v43, %v3504_v10  ;;  %v3585_v28 = vmul.f32 0.5, %v3569_v29  ;;  %v3604_v5 = vmul.f32 0.125, %v3588_v3 }
 0x4bb   :  { %v3505_v33 = vsub.f32 2.0, %v3489_v4  ;;  %v3529_v37 = vmul.f32 %v8154_v63, %v3513_v9  ;;  %v3608_v0 = vmul.f32 0.125, %v3592_v24  ;;  %v3612_v56 = vmul.f32 0.125, %v3596_v23  ;;  %v14275_v4 = vld [vmem:[#allocation44_spill] sm:$0xff]  ;;  %v14276_v24 = vld [vmem:[#allocation43_spill] sm:$0xff] }
 0x4bc   :  { %v8158_v48 = vpop.eup %8157  ;;  %3840 = vmatpush.msrb.mxu0 %v11263_v50  ;;  %3869 = vmatpush.msrb.mxu1 %v11275_v15  ;;  %v3532_v12 = vmul.f32 %v8156_v51, %v3516_v22  ;;  %v3636_v36 = vmul.f32 0.125, %v3524_v8  ;;  %v3593_v61 = vmul.f32 0.5, %v3577_v14  ;;  %v3597_v20 = vmul.f32 0.5, %v3581_v11  ;;  %v14278_v11 = vld [vmem:[#allocation51_spill] sm:$0xff] }
 0x4bd   :  { %v3501_v58 = vmul.f32 %v8158_v48, %v3469_v52  ;;  %v3525_v32 = vmul.f32 %v11248_v25, %v3509_v42  ;;  %v3589_v44 = vmul.f32 0.5, %v3573_v7  ;;  %v3656_v55 = vmul.f32 %v14272_v39, %v3640_v21  ;;  %v14279_v7 = vld [vmem:[#allocation46_spill] sm:$0xff] }
 0x4be   :  { %3841 = vmatpush.msrb.mxu0 %v11284_v45  ;;  %3870 = vmatpush.msrb.mxu1 %v11286_v38  ;;  %v3644_v43 = vmul.f32 0.125, %v3532_v12  ;;  %v3632_v53 = vmul.f32 0.125, %v3520_v35  ;;  %v3620_v17 = vadd.f32 %v14273_v6, %v3604_v5  ;;  %v3641_v25 = vmul.f32 0.125, %v3529_v37  ;;  %v14281_v37 = vld [vmem:[#allocation40_spill] sm:$0xff] }
 0x4bf   :  { %v3517_v34 = vsub.f32 2.0, %v3501_v58  ;;  %7398 = vmatmul.msk.f32.gmra.mxu0 %vm389_vm2, %v11323_v2  ;;  %7402 = vmatmul.msk.f32.gmra.mxu1 %vm389_vm2, %v11323_v2  ;;  %v3521_v26 = vmul.f32 %v11167_v40, %v3505_v33  ;;  %v3624_v63 = vadd.f32 %v14272_v39, %v3608_v0  ;;  %v3628_v52 = vadd.f32 %v14274_v18, %v3612_v56  ;;  %v8707_v39 = vld [vmem:[%s13771_s2] sm:$0xff] }
 0x4c0   :  { %v3660_v13 = vmul.f32 %v14274_v18, %v3644_v43  ;;  %v3652_v16 = vmul.f32 %v14273_v6, %v3636_v36  ;;  %v3609_v59 = vmul.f32 0.125, %v3593_v61  ;;  %v3613_v27 = vmul.f32 0.125, %v3597_v20  ;;  %v8706_v43 = vld [vmem:[%s13770_s1 + $0x18] sm:$0xff] }
 0x4c1   :  { %v3533_v1 = vmul.f32 %v8158_v48, %v3517_v34  ;;  %v3637_v29 = vmul.f32 0.125, %v3525_v32  ;;  %v3605_v10 = vmul.f32 0.125, %v3589_v44  ;;  %v3672_v3 = vsub.f32 %v3624_v63, %v3656_v55  ;;  %v8709_v55 = vld [vmem:[%s13771_s2 + $0x10] sm:$0xff]  ;;  %v14288_v63 = vld [vmem:[#allocation5_spill] sm:$0xff] }
 0x4c2   :  { %v3676_v51 = vsub.f32 %v3628_v52, %v3660_v13  ;;  %v3648_v9 = vmul.f32 %v14275_v4, %v3632_v53  ;;  %v3657_v40 = vmul.f32 %v14276_v24, %v3641_v25  ;;  %v3633_v23 = vmul.f32 0.125, %v3521_v26  ;;  %v8710_v53 = vld [vmem:[%s13771_s2 + $0x18] sm:$0xff] }
 0x4c3   :  { %v3645_v46 = vmul.f32 0.125, %v3533_v1  ;;  %v3616_v31 = vadd.f32 %v14275_v4, %v3600_v49  ;;  %v3601_v8 = vmul.f32 0.125, %v3585_v28  ;;  %v3668_v14 = vsub.f32 %v3620_v17, %v3652_v16  ;;  %v8705_v49 = vld [vmem:[%s13770_s1 + $0x10] sm:$0xff]  ;;  %v14290_v1 = vld [vmem:[#allocation9_spill] sm:$0xff] }
 0x4c4   :  { %v11337_v57 = vclamps-f32 %v3676_v51, 100.0  ;;  %v3625_v30 = vadd.f32 %v14276_v24, %v3609_v59  ;;  %v3629_v42 = vadd.f32 %v14278_v11, %v3613_v27  ;;  %v3653_v22 = vmul.f32 %v14279_v7, %v3637_v29  ;;  %v14289_v59 = vld [vmem:[#allocation6_spill] sm:$0xff] }
 0x4c5   :  { %v3661_v54 = vmul.f32 %v14278_v11, %v3645_v46  ;;  %v3621_v21 = vadd.f32 %v14279_v7, %v3605_v10  ;;  %v11345_v35 = vclamps-f32 %v3672_v3, 100.0  ;;  %v3664_v5 = vsub.f32 %v3616_v31, %v3648_v9  ;;  %v14291_v10 = vld [vmem:[#allocation10_spill] sm:$0xff]  ;;  %v14292_v46 = vld [vmem:[#allocation21_spill] sm:$0xff] }
 0x4c6   :  { %14277 = vst [vmem:[#allocation39_spill] sm:$0xff] %v11337_v57  ;;  %3780 = vmatpush.msra.mxu2 %v11337_v57  ;;  %v3673_v33 = vsub.f32 %v3625_v30, %v3657_v40  ;;  %v3649_v48 = vmul.f32 %v14281_v37, %v3633_v23  ;;  %v11354_v0 = vclamps-f32 %v3668_v14, 100.0  ;;  %v3617_v56 = vadd.f32 %v14281_v37, %v3601_v8  ;;  %v14293_v31 = vld [vmem:[#allocation13_spill] sm:$0xff]  ;;  %v14294_v14 = vld [vmem:[#allocation22_spill] sm:$0xff] }
 0x4c7   :  { %14280 = vst [vmem:[#allocation38_spill] sm:$0xff] %v11345_v35  ;;  %7399 = vmatmul.msk.f32.gmra.mxu0 %vm389_vm2, %v8705_v49  ;;  %7403 = vmatmul.msk.f32.gmra.mxu1 %vm389_vm2, %v8705_v49  ;;  %v3677_v28 = vsub.f32 %v3629_v42, %v3661_v54  ;;  %v3669_v36 = vsub.f32 %v3621_v21, %v3653_v22  ;;  %v11360_v61 = vclamps-f32 %v3664_v5, 100.0  ;;  %v14295_v54 = vld [vmem:[#allocation14_spill] sm:$0xff] }
 0x4c8   :  { %3781 = vmatpush.msra.mxu2 %v11345_v35  ;;  %14282 = vst [vmem:[#allocation41_spill] sm:$0xff] %v11354_v0  ;;  %v11363_v20 = vclamps-f32 %v3673_v33, 100.0  ;;  %v3665_v58 = vsub.f32 %v3617_v56, %v3649_v48 }
 0x4c9   :  { %v11357_v12 = vclamps-f32 %v3677_v28, 100.0  ;;  %14284 = vst [vmem:[#allocation45_spill] sm:$0xff] %v11360_v61  ;;  %v11367_v32 = vclamps-f32 %v3669_v36, 100.0 }
 0x4ca   :  { %3782 = vmatpush.msra.mxu2 %v11354_v0  ;;  %14285 = vst [vmem:[#allocation48_spill] sm:$0xff] %v11363_v20  ;;  %v11373_v44 = vclamps-f32 %v3665_v58, 100.0 }
 0x4cb   :  { %14283 = vst [vmem:[#allocation37_spill] sm:$0xff] %v11357_v12  ;;  %3809 = vmatpush.msra.mxu3 %v11357_v12 }
 0x4cc   :  { %3783 = vmatpush.msra.mxu2 %v11360_v61  ;;  %14286 = vst [vmem:[#allocation47_spill] sm:$0xff] %v11367_v32 }
 0x4cd   :  { %3810 = vmatpush.msra.mxu3 %v11363_v20  ;;  %7405 = vmatmul.msk.f32.vlgmr.msra.gmra.mxu2 %vm389_vm2, %v11298_v60  ;;  %14287 = vst [vmem:[#allocation49_spill] sm:$0xff] %v11373_v44 }
 0x4ce   :  { %3896 = vmatpush.msrb.mxu2 %v11337_v57 }
 0x4cf   :  { %3811 = vmatpush.msra.mxu3 %v11367_v32  ;;  %7400 = vmatmul.msk.f32.gmra.mxu0 %vm389_vm2, %v8706_v43 }
 0x4d0   :  { %7404 = vmatmul.msk.f32.gmra.mxu1 %vm389_vm2, %v8706_v43  ;;  %3897 = vmatpush.msrb.mxu2 %v11345_v35 }
 0x4d1   :  { %3812 = vmatpush.msra.mxu3 %v11373_v44 }
 0x4d2   :  { %7409 = vmatmul.msk.f32.vlgmr.msra.gmra.mxu3 %vm389_vm2, %v11298_v60  ;;  %3898 = vmatpush.msrb.mxu2 %v11354_v0  ;;  %v8708_v60 = vld [vmem:[%s13771_s2 + $0x8] sm:$0xff] }
 0x4d3   :  { %3925 = vmatpush.msrb.mxu3 %v11357_v12 }
 0x4d4   :  { %3899 = vmatpush.msrb.mxu2 %v11360_v61 }
 0x4d5   :  { %3926 = vmatpush.msrb.mxu3 %v11363_v20  ;;  %7406 = vmatmul.msk.f32.gmra.mxu2 %vm389_vm2, %v11323_v2  ;;  %v14333_v20 = vld [vmem:[#allocation31_spill] sm:$0xff] }
 0x4d7   :  { %3927 = vmatpush.msrb.mxu3 %v11367_v32  ;;  %7413 = vmatmul.msk.f32.vlgmr.msrb.gmra.mxu0 %vm389_vm2, %v8707_v39 }
 0x4d8   :  { %7417 = vmatmul.msk.f32.vlgmr.msrb.gmra.mxu1 %vm389_vm2, %v8707_v39 }
 0x4d9   :  { %3928 = vmatpush.msrb.mxu3 %v11373_v44  ;;  %v14328_v44 = vld [vmem:[#allocation24_spill] sm:$0xff] }
 0x4da   :  { %7410 = vmatmul.msk.f32.gmra.mxu3 %vm389_vm2, %v11323_v2 }
 0x4dd   :  { %7407 = vmatmul.msk.f32.gmra.mxu2 %vm389_vm2, %v8705_v49 }
 0x4df   :  { %7414 = vmatmul.msk.f32.gmra.mxu0 %vm389_vm2, %v8708_v60 }
 0x4e0   :  { %7418 = vmatmul.msk.f32.gmra.mxu1 %vm389_vm2, %v8708_v60 }
 0x4e2   :  { %7411 = vmatmul.msk.f32.gmra.mxu3 %vm389_vm2, %v8705_v49 }
 0x4e5   :  { %7408 = vmatmul.msk.f32.gmra.mxu2 %vm389_vm2, %v8706_v43 }
 0x4e7   :  { %7415 = vmatmul.msk.f32.gmra.mxu0 %vm389_vm2, %v8709_v55 }
 0x4e8   :  { %7419 = vmatmul.msk.f32.gmra.mxu1 %vm389_vm2, %v8709_v55 }
 0x4ea   :  { %7412 = vmatmul.msk.f32.gmra.mxu3 %vm389_vm2, %v8706_v43 }
 0x4ed   :  { %7421 = vmatmul.msk.f32.vlgmr.msrb.gmra.mxu2 %vm389_vm2, %v8707_v39 }
 0x4ef   :  { %7416 = vmatmul.msk.f32.gmra.mxu0 %vm389_vm2, %v8710_v53 }
 0x4f0   :  { %7420 = vmatmul.msk.f32.gmra.mxu1 %vm389_vm2, %v8710_v53 }
 0x4f2   :  { %7425 = vmatmul.msk.f32.vlgmr.msrb.gmra.mxu3 %vm389_vm2, %v8707_v39 }
 0x4f5   :  { %7422 = vmatmul.msk.f32.gmra.mxu2 %vm389_vm2, %v8708_v60 }
 0x4fa   :  { %7426 = vmatmul.msk.f32.gmra.mxu3 %vm389_vm2, %v8708_v60  ;;  %v14296_v60 = vld [vmem:[#allocation17_spill] sm:$0xff] }
 0x4fd   :  { %7423 = vmatmul.msk.f32.gmra.mxu2 %vm389_vm2, %v8709_v55 }
 0x502   :  { %7427 = vmatmul.msk.f32.gmra.mxu3 %vm389_vm2, %v8709_v55 }
 0x505   :  { %7424 = vmatmul.msk.f32.gmra.mxu2 %vm389_vm2, %v8710_v53 }
 0x50a   :  { %7428 = vmatmul.msk.f32.gmra.mxu3 %vm389_vm2, %v8710_v53 }
 0x534   :  { %v3727_v6 = vpop.f32.mrf.mxu0  ;;  %v3756_v17 = vpop.f32.mrf.mxu1 }
 0x535   :  { %v3728_v18 = vadd.f32 %v3727_v6, %v14288_v63  ;;  %v3757_v27 = vadd.f32 %v3756_v17, %v14289_v59  ;;  %v14297_v6 = vld [vmem:[#allocation25_spill] sm:$0xff] }
 0x537   :  { %v4358_v16 = vmul.f32 0.5, %v3728_v18  ;;  %v4359_v3 = vmul.f32 0.5, %v3757_v27  ;;  %v14299_v18 = vld [vmem:[#allocation26_spill] sm:$0xff] }
 0x539   :  { %8159 = vtanh.f32 %v4358_v16 }
 0x53a   :  { %8161 = vtanh.f32 %v4359_v3 }
 0x53c   :  { %v3730_v34 = vpop.f32.mrf.mxu0  ;;  %v3759_v2 = vpop.f32.mrf.mxu1 }
 0x53d   :  { %v3731_v29 = vadd.f32 %v3730_v34, %v14290_v1  ;;  %v3760_v51 = vadd.f32 %v3759_v2, %v14291_v10  ;;  %v14298_v2 = vld [vmem:[#allocation18_spill] sm:$0xff] }
 0x53f   :  { %v4362_v9 = vmul.f32 0.5, %v3731_v29  ;;  %v4363_v23 = vmul.f32 0.5, %v3760_v51  ;;  %v8160_v5 = vpop.eup %8159 }
 0x540   :  { %v4390_v56 = vadd.f32 1.0, %v8160_v5  ;;  %v8162_v39 = vpop.eup %8161 }
 0x541   :  { %8163 = vtanh.f32 %v4362_v9  ;;  %v4391_v3 = vadd.f32 1.0, %v8162_v39  ;;  %v14300_v39 = vld [vmem:[#allocation29_spill] sm:$0xff] }
 0x542   :  { %8165 = vtanh.f32 %v4363_v23  ;;  %v4406_v51 = vmul.f32 0.5, %v4390_v56 }
 0x544   :  { %v3733_v25 = vpop.f32.mrf.mxu0  ;;  %v3762_v26 = vpop.f32.mrf.mxu1  ;;  %v4422_v5 = vmul.f32 0.125, %v4406_v51 }
 0x545   :  { %v3734_v8 = vadd.f32 %v3733_v25, %v14293_v31  ;;  %v3763_v7 = vadd.f32 %v3762_v26, %v14295_v54 }
 0x547   :  { %v4366_v49 = vmul.f32 0.5, %v3734_v8  ;;  %v4367_v37 = vmul.f32 0.5, %v3763_v7  ;;  %v8164_v34 = vpop.eup %8163 }
 0x548   :  { %v8166_v27 = vpop.eup %8165  ;;  %v4394_v9 = vadd.f32 1.0, %v8164_v34 }
 0x549   :  { %8167 = vtanh.f32 %v4366_v49  ;;  %v4407_v49 = vmul.f32 0.5, %v4391_v3 }
 0x54c   :  { %v3736_v52 = vpop.f32.mrf.mxu0 }
 0x54d   :  { %v3765_v13 = vpop.f32.mrf.mxu1  ;;  %v3737_v55 = vadd.f32 %v3736_v52, %v14296_v60 }
 0x54e   :  { %v3766_v25 = vadd.f32 %v3765_v13, %v14298_v2 }
 0x54f   :  { %v8168_v8 = vpop.eup %8167 }
 0x550   :  { %v11433_v11 = vpop.f32.mrf.mxu2  ;;  %v4371_v23 = vmul.f32 0.5, %v3766_v25 }
 0x554   :  { %v3843_v4 = vpop.f32.mrf.mxu0 }
 0x555   :  { %v3844_v24 = vadd.f32 %v3843_v4, %v14292_v46  ;;  %v3872_v40 = vpop.f32.mrf.mxu1  ;;  %v11443_v53 = vpop.f32.mrf.mxu3 }
 0x556   :  { %v3873_v30 = vadd.f32 %v3872_v40, %v14294_v14  ;;  %v4395_v40 = vadd.f32 1.0, %v8166_v27 }
 0x557   :  { %v11435_v42 = vclamps-f32 %v3844_v24, 50.0  ;;  %v4370_v24 = vmul.f32 0.5, %v3737_v55 }
 0x558   :  { %v11438_v22 = vclamps-f32 %v3873_v30, 50.0  ;;  %v11450_v4 = vpop.f32.mrf.mxu2 }
 0x559   :  { %v4022_v21 = vand.u32 2147483647, %v11435_v42  ;;  %vm3990_vm13 = vcmp.ne.f32.partialorder %v11435_v42, %v11435_v42 }
 0x55a   :  { %v4023_v33 = vand.u32 2147483647, %v11438_v22  ;;  %vm3991_vm14 = vcmp.ne.f32.partialorder %v11438_v22, %v11438_v22 }
 0x55b   :  { %v4038_v28 = vsub.f32 0.0, %v4022_v21 }
 0x55c   :  { %v3846_v48 = vpop.f32.mrf.mxu0  ;;  %v4039_v58 = vsub.f32 0.0, %v4023_v33 }
 0x55d   :  { %v4054_v36 = vmul.f32 1.442695, %v4038_v28  ;;  %v3875_v43 = vpop.f32.mrf.mxu1  ;;  %v3847_v17 = vadd.f32 %v3846_v48, %v14297_v6  ;;  %v11457_v25 = vpop.f32.mrf.mxu3 }
 0x55e   :  { %v4056_v26 = vmul.f32 1.442695, %v4039_v58  ;;  %v3876_v16 = vadd.f32 %v3875_v43, %v14299_v18  ;;  %v4411_v58 = vmul.f32 0.5, %v4395_v40  ;;  %v4398_v43 = vadd.f32 1.0, %v8168_v8 }
 0x55f   :  { %8169 = vpow2.f32 %v4054_v36  ;;  %v11448_v29 = vclamps-f32 %v3847_v17, 50.0 }
 0x560   :  { %8171 = vtanh.f32 %v4367_v37  ;;  %v11452_v52 = vclamps-f32 %v3876_v16, 50.0  ;;  %v4410_v37 = vmul.f32 0.5, %v4394_v9  ;;  %v4423_v16 = vmul.f32 0.125, %v4407_v49 }
 0x561   :  { %8173 = vpow2.f32 %v4056_v26  ;;  %v4026_v13 = vand.u32 2147483647, %v11448_v29  ;;  %v4427_v40 = vmul.f32 0.125, %v4411_v58  ;;  %vm3994_vm15 = vcmp.ne.f32.partialorder %v11448_v29, %v11448_v29 }
 0x562   :  { %v4027_v30 = vand.u32 2147483647, %v11452_v52  ;;  %8175 = vtanh.f32 %v4370_v24  ;;  %v4426_v51 = vmul.f32 0.125, %v4410_v37  ;;  %vm3995_vm1 = vcmp.ne.f32.partialorder %v11452_v52, %v11452_v52 }
 0x563   :  { %v4042_v28 = vsub.f32 0.0, %v4026_v13  ;;  %8177 = vtanh.f32 %v4371_v23  ;;  %v11460_v13 = vadd.f32 %v11284_v45, %v4422_v5  ;;  %v14301_v23 = vld [vmem:[#allocation7_spill] sm:$0xff]  ;;  %v11468_v5 = vadd.f32 %v11286_v38, %v4423_v16 }
 0x564   :  { %v3849_v7 = vpop.f32.mrf.mxu0  ;;  %v4043_v56 = vsub.f32 0.0, %v4027_v30  ;;  %v3786_v8 = vadd.f32 %v11433_v11, %v14301_v23  ;;  %v3791_v30 = vpop.f32.mrf.mxu2  ;;  %v11471_v58 = vadd.f32 %v11263_v50, %v4426_v51 }
 0x565   :  { %v8170_v21 = vpop.eup %8169  ;;  %v3850_v55 = vadd.f32 %v3849_v7, %v14300_v39  ;;  %v4062_v26 = vmul.f32 1.442695, %v4042_v28  ;;  %v3878_v24 = vpop.f32.mrf.mxu1  ;;  %14303 = vst [vmem:[#allocation52_spill] sm:$0xff] %v11468_v5 }
 0x566   :  { %v8172_v33 = vpop.eup %8171  ;;  %v4086_v48 = vadd.f32 1.0, %v8170_v21  ;;  %v4089_v17 = vmul.f32 -0.5, %v8170_v21  ;;  %v4064_v9 = vmul.f32 1.442695, %v4043_v56  ;;  %v4092_v37 = vand.u32 2147483647, %v8170_v21 }
 0x567   :  { %v8174_v36 = vpop.eup %8173  ;;  %v4399_v3 = vadd.f32 1.0, %v8172_v33  ;;  %v11464_v28 = vclamps-f32 %v3850_v55, 50.0  ;;  %v14302_v56 = vld [vmem:[#allocation30_spill] sm:$0xff] }
 0x568   :  { %8179 = vlog2.f32 %v4086_v48  ;;  %v4095_v34 = vadd.f32 1.0, %v8174_v36  ;;  %v4098_v27 = vmul.f32 -0.5, %v8174_v36  ;;  %v8176_v7 = vpop.eup %8175  ;;  %v4414_v48 = vmul.f32 0.5, %v4398_v43 }
 0x569   :  { %v4090_v39 = vadd.f32 1.0, %v4089_v17  ;;  %v8178_v49 = vpop.eup %8177  ;;  %v4415_v11 = vmul.f32 0.5, %v4399_v3  ;;  %v4101_v23 = vand.u32 2147483647, %v8174_v36  ;;  %v11474_v43 = vadd.f32 %v11275_v15, %v4427_v40 }
 0x56a   :  { %8181 = vlog2.f32 %v4095_v34  ;;  %v4099_v33 = vadd.f32 1.0, %v4098_v27  ;;  %v3879_v34 = vadd.f32 %v3878_v24, %v14302_v56  ;;  %v4402_v55 = vadd.f32 1.0, %v8176_v7  ;;  %v14306_v7 = vld [vmem:[#allocation8_spill] sm:$0xff] }
 0x56b   :  { %8183 = vpow2.f32 %v4062_v26  ;;  %v4360_v17 = vmul.f32 0.5, %v3786_v8  ;;  %v4430_v27 = vmul.f32 0.125, %v4414_v48  ;;  %v4091_v6 = vmul.f32 %v8170_v21, %v4090_v39  ;;  %v3820_v39 = vpop.f32.mrf.mxu3 }
 0x56c   :  { %8185 = vpow2.f32 %v4064_v9  ;;  %v4403_v9 = vadd.f32 1.0, %v8178_v49  ;;  %v4030_v24 = vand.u32 2147483647, %v11464_v28  ;;  %vm11477_vm11 = vcmp.lt.f32.partialorder %v4092_v37, 0.0004427343 }
 0x56d   :  { %v4100_v56 = vmul.f32 %v8174_v36, %v4099_v33  ;;  %v11481_v3 = vclamps-f32 %v3879_v34, 50.0  ;;  %v4431_v40 = vmul.f32 0.125, %v4415_v11  ;;  %vm11489_vm12 = vcmp.lt.f32.partialorder %v4101_v23, 0.0004427343  ;;  %v3852_v33 = vpop.f32.mrf.mxu0 }
 0x56e   :  { %v8180_v18 = vpop.eup %8179  ;;  %v3974_v36 = vmax.f32 %v11435_v42, 0.0  ;;  %v3975_v34 = vmax.f32 %v11438_v22, 0.0  ;;  %v4046_v11 = vsub.f32 0.0, %v4030_v24  ;;  %8187 = vtanh.f32 %v4360_v17 }
 0x56f   :  { %v4088_v26 = vmul.f32 0.6931472, %v8180_v18  ;;  %v3815_v18 = vadd.f32 %v11443_v53, %v14306_v7  ;;  %v4419_v53 = vmul.f32 0.5, %v4403_v9  ;;  %v11504_v7 = vpop.f32.mrf.mxu2  ;;  %v14310_v9 = vld [vmem:[#allocation33_spill] sm:$0xff]  ;;  %v3982_v63 = vmax.f32 %v11464_v28, 0.0 }
 0x570   :  { %v8182_v2 = vpop.eup %8181  ;;  %v4070_v54 = vmul.f32 1.442695, %v4046_v11  ;;  %vm3998_vm4 = vcmp.ne.f32.partialorder %v11464_v28, %v11464_v28  ;;  %vm3999_vm6 = vcmp.ne.f32.partialorder %v11481_v3, %v11481_v3 }
 0x571   :  { %v4097_v51 = vmul.f32 0.6931472, %v8182_v2  ;;  %v11483_v60 = vpop.eup %8183  ;;  %v4094_v8 = vsel %vm11477_vm11, %v4091_v6, %v4088_v26  ;;  %v4418_v2 = vmul.f32 0.5, %v4402_v55  ;;  %v14309_v6 = vld [vmem:[#allocation11_spill] sm:$0xff]  ;;  %v4031_v55 = vand.u32 2147483647, %v11481_v3 }
 0x572   :  { %v11493_v48 = vpop.eup %8185  ;;  %v4122_v37 = vadd.f32 1.0, %v11483_v60  ;;  %v3789_v23 = vadd.f32 %v11450_v4, %v14309_v6  ;;  %v4230_v26 = vadd.f32 %v4094_v8, %v3974_v36  ;;  %v4361_v21 = vmul.f32 0.5, %v3815_v18  ;;  %v14311_v4 = vld [vmem:[#allocation15_spill] sm:$0xff]  ;;  %v14312_v36 = vld [vmem:[#allocation16_spill] sm:$0xff] }
 0x573   :  { %v4103_v49 = vsel %vm11489_vm12, %v4100_v56, %v4097_v51  ;;  %v4131_v16 = vadd.f32 1.0, %v11493_v48  ;;  %v3853_v51 = vadd.f32 %v3852_v33, %v14310_v9  ;;  %v4434_v14 = vmul.f32 0.125, %v4418_v2  ;;  %v14313_v2 = vld [vmem:[#allocation12_spill] sm:$0xff] }
 0x574   :  { %v4231_v56 = vadd.f32 %v4103_v49, %v3975_v34  ;;  %8189 = vlog2.f32 %v4122_v37  ;;  %v3792_v17 = vadd.f32 %v3791_v30, %v14311_v4  ;;  %v4435_v24 = vmul.f32 0.125, %v4419_v53  ;;  %v11520_v30 = vpop.eup %8187 }
 0x575   :  { %v4364_v8 = vmul.f32 0.5, %v3789_v23  ;;  %v3821_v6 = vadd.f32 %v3820_v39, %v14312_v36  ;;  %v4246_v18 = vsel %vm3990_vm13, %v11435_v42, %v4230_v26  ;;  %v4125_v46 = vmul.f32 -0.5, %v11483_v60  ;;  %14314 = vst [vmem:[#allocation50_spill] sm:$0xff] %v11520_v30  ;;  %v14341_v30 = vld [vmem:[#allocation36_spill] sm:$0xff] }
 0x576   :  { %8191 = vlog2.f32 %v4131_v16  ;;  %v4047_v49 = vsub.f32 0.0, %v4031_v55  ;;  %v4247_v33 = vsel %vm3991_vm14, %v11438_v22, %v4231_v56  ;;  %v3818_v34 = vadd.f32 %v11457_v25, %v14313_v2  ;;  %v3823_v16 = vpop.f32.mrf.mxu3  ;;  %v3881_v25 = vpop.f32.mrf.mxu1 }
 0x577   :  { %8193 = vpow2.f32 %v4070_v54  ;;  %v11518_v37 = vclamps-f32 %v3853_v51, 50.0  ;;  %v11523_v53 = vadd.f32 %v11193_v47, %v4430_v27  ;;  %v11526_v39 = vadd.f32 %v11239_v41, %v4431_v40  ;;  %v3901_v36 = vpop.f32.mrf.mxu2 }
 0x578   :  { %v4368_v42 = vmul.f32 0.5, %v3792_v17  ;;  %v4072_v23 = vmul.f32 1.442695, %v4047_v49  ;;  %8195 = vtanh.f32 %v4361_v21  ;;  %v4262_v11 = vmul.f32 9.9, %v4246_v18  ;;  %v14316_v49 = vld [vmem:[#allocation34_spill] sm:$0xff] }
 0x579   :  { %v4134_v22 = vmul.f32 -0.5, %v11493_v48  ;;  %v4369_v26 = vmul.f32 0.5, %v3821_v6  ;;  %v11530_v55 = vadd.f32 %v11186_v19, %v4434_v14  ;;  %v4263_v56 = vmul.f32 9.9, %v4247_v33 }
 0x57a   :  { %v8190_v54 = vpop.eup %8189  ;;  %v4126_v51 = vadd.f32 1.0, %v4125_v46  ;;  %8197 = vpow2.f32 %v4072_v23  ;;  %v11533_v27 = vadd.f32 %v11214_v62, %v4435_v24  ;;  %v11535_v40 = vmul.f32 0.5, %v3818_v34 }
 0x57b   :  { %8199 = vtanh.f32 %v4364_v8  ;;  %v4034_v21 = vand.u32 2147483647, %v11518_v37  ;;  %v3978_v6 = vmax.f32 %v11448_v29, 0.0  ;;  %v4128_v18 = vand.u32 2147483647, %v11483_v60 }
 0x57c   :  { %14315 = vst [vmem:[#allocation42_spill] sm:$0xff] %v11535_v40  ;;  %v8192_v17 = vpop.eup %8191  ;;  %8201 = vtanh.f32 %v4368_v42  ;;  %v3882_v14 = vadd.f32 %v3881_v25, %v14316_v49  ;;  %v11541_v46 = vadd.f32 0.1, %v4262_v11  ;;  %v4124_v23 = vmul.f32 0.6931472, %v8190_v54  ;;  %v14318_v11 = vld [vmem:[#allocation23_spill] sm:$0xff] }
 0x57d   :  { %v8194_v33 = vpop.eup %8193  ;;  %v4135_v24 = vadd.f32 1.0, %v4134_v22  ;;  %8203 = vtanh.f32 %v4369_v26  ;;  %v11543_v8 = vadd.f32 0.1, %v4263_v56  ;;  %v4127_v34 = vmul.f32 %v11483_v60, %v4126_v51 }
 0x57e   :  { %v4137_v4 = vand.u32 2147483647, %v11493_v48  ;;  %v4158_v2 = vadd.f32 1.0, %v8194_v33  ;;  %v11547_v9 = vpop.eup %8195  ;;  %v4133_v42 = vmul.f32 0.6931472, %v8192_v17  ;;  %v4161_v25 = vmul.f32 -0.5, %v8194_v33 }
 0x57f   :  { %14317 = vst [vmem:[#allocation44_spill] sm:$0xff] %v11547_v9  ;;  %v4050_v49 = vsub.f32 0.0, %v4034_v21  ;;  %v3902_v31 = vadd.f32 %v3901_v36, %v14318_v11  ;;  %vm11554_vm0 = vcmp.lt.f32.partialorder %v4128_v18, 0.0004427343  ;;  %v3979_v60 = vmax.f32 %v11452_v52, 0.0  ;;  %v14325_v18 = vld [vmem:[#allocation19_spill] sm:$0xff]  ;;  %v3930_v11 = vpop.f32.mrf.mxu3 }
 0x580   :  { %v11552_v54 = vpop.eup %8197  ;;  %8205 = vlog2.f32 %v4158_v2  ;;  %v11559_v26 = vclamps-f32 %v3882_v14, 50.0  ;;  %v4130_v51 = vsel %vm11554_vm0, %v4127_v34, %v4124_v23  ;;  %v4136_v36 = vmul.f32 %v11493_v48, %v4135_v24 }
 0x581   :  { %v11561_v56 = vpop.eup %8199  ;;  %8207 = vrcp.f32 %v11541_v46  ;;  %v4167_v21 = vadd.f32 1.0, %v11552_v54  ;;  %vm11573_vm3 = vcmp.lt.f32.partialorder %v4137_v4, 0.0004427343  ;;  %v3795_v14 = vadd.f32 %v11504_v7, %v14325_v18  ;;  %v14327_v7 = vld [vmem:[#allocation20_spill] sm:$0xff] }
 0x582   :  { %14321 = vst [vmem:[#allocation43_spill] sm:$0xff] %v11561_v56  ;;  %v11568_v17 = vpop.eup %8201  ;;  %8209 = vrcp.f32 %v11543_v8  ;;  %v4139_v48 = vsel %vm11573_vm3, %v4136_v36, %v4133_v42  ;;  %v4162_v23 = vadd.f32 1.0, %v4161_v25  ;;  %v4078_v24 = vmul.f32 1.442695, %v4050_v49 }
 0x583   :  { %14322 = vst [vmem:[#allocation51_spill] sm:$0xff] %v11568_v17  ;;  %v11579_v22 = vpop.eup %8203  ;;  %v11583_v34 = vclamps-f32 %v3902_v31, 50.0  ;;  %v4234_v10 = vadd.f32 %v4130_v51, %v3978_v6  ;;  %v4164_v1 = vand.u32 2147483647, %v8194_v33  ;;  %v4170_v4 = vmul.f32 -0.5, %v11552_v54 }
 0x584   :  { %14326 = vst [vmem:[#allocation46_spill] sm:$0xff] %v11579_v22  ;;  %v4035_v59 = vand.u32 2147483647, %v11559_v26  ;;  %8211 = vlog2.f32 %v4167_v21  ;;  %v3824_v2 = vadd.f32 %v3823_v16, %v14327_v7  ;;  %v4235_v25 = vadd.f32 %v4139_v48, %v3979_v60 }
 0x585   :  { %v4372_v49 = vmul.f32 0.5, %v3795_v14  ;;  %8213 = vpow2.f32 %v4078_v24  ;;  %v4163_v51 = vmul.f32 %v8194_v33, %v4162_v23  ;;  %v4024_v18 = vand.u32 2147483647, %v11583_v34  ;;  %v3904_v14 = vpop.f32.mrf.mxu2 }
 0x586   :  { %v8206_v42 = vpop.eup %8205  ;;  %v4051_v31 = vsub.f32 0.0, %v4035_v59  ;;  %v3931_v32 = vadd.f32 %v3930_v11, %v14328_v44  ;;  %v4250_v16 = vsel %vm3994_vm15, %v11448_v29, %v4234_v10  ;;  %vm4165_vm5 = vcmp.lt.f32.partialorder %v4164_v1, 0.0004427343  ;;  %v14329_v29 = vld [vmem:[#allocation27_spill] sm:$0xff] }
 0x587   :  { %v11591_v36 = vpop.eup %8207  ;;  %v4160_v6 = vmul.f32 0.6931472, %v8206_v42  ;;  %v4171_v60 = vadd.f32 1.0, %v4170_v4  ;;  %v4173_v48 = vand.u32 2147483647, %v11552_v54  ;;  %v4040_v24 = vsub.f32 0.0, %v4024_v18 }
 0x588   :  { %v11595_v12 = vpop.eup %8209  ;;  %v4080_v21 = vmul.f32 1.442695, %v4051_v31  ;;  %v11602_v33 = vclamps-f32 %v3931_v32, 50.0  ;;  %v4251_v11 = vsel %vm3995_vm1, %v11452_v52, %v4235_v25  ;;  %v3983_v42 = vmax.f32 %v11481_v3, 0.0 }
 0x589   :  { %v4166_v59 = vsel %vm4165_vm5, %v4163_v51, %v4160_v6  ;;  %v4058_v1 = vmul.f32 1.442695, %v4040_v24  ;;  %v3905_v4 = vadd.f32 %v3904_v14, %v14329_v29  ;;  %v4266_v32 = vmul.f32 9.9, %v4250_v16 }
 0x58a   :  { %v4238_v23 = vadd.f32 %v4166_v59, %v3982_v63  ;;  %8215 = vpow2.f32 %v4080_v21  ;;  %v8212_v10 = vpop.eup %8211  ;;  %v4172_v6 = vmul.f32 %v11552_v54, %v4171_v60  ;;  %v4025_v51 = vand.u32 2147483647, %v11602_v33  ;;  %v3933_v21 = vpop.f32.mrf.mxu3 }
 0x58b   :  { %8217 = vtanh.f32 %v4372_v49  ;;  %v8214_v18 = vpop.eup %8213  ;;  %v4169_v31 = vmul.f32 0.6931472, %v8212_v10  ;;  %v4267_v52 = vmul.f32 9.9, %v4251_v11  ;;  %vm4174_vm7 = vcmp.lt.f32.partialorder %v4173_v48, 0.0004427343 }
 0x58c   :  { %v4254_v63 = vsel %vm3998_vm4, %v11464_v28, %v4238_v23  ;;  %v4194_v25 = vadd.f32 1.0, %v8214_v18  ;;  %v4197_v59 = vmul.f32 -0.5, %v8214_v18  ;;  %8219 = vpow2.f32 %v4058_v1  ;;  %v14331_v48 = vld [vmem:[#allocation28_spill] sm:$0xff] }
 0x58d   :  { %v4175_v49 = vsel %vm4174_vm7, %v4172_v6, %v4169_v31  ;;  %v4041_v14 = vsub.f32 0.0, %v4025_v51  ;;  %v11618_v16 = vmul.f32 0.5, %v3824_v2  ;;  %v11620_v54 = vclamps-f32 %v3905_v4, 50.0 }
 0x58e   :  { %v4239_v24 = vadd.f32 %v4175_v49, %v3983_v42  ;;  %8221 = vlog2.f32 %v4194_v25  ;;  %v11624_v11 = vmul.f32 %v11591_v36, %v11541_v46  ;;  %v11626_v10 = vadd.f32 0.1, %v4266_v32 }
 0x58f   :  { %14330 = vst [vmem:[#allocation40_spill] sm:$0xff] %v11618_v16  ;;  %v4060_v28 = vmul.f32 1.442695, %v4041_v14  ;;  %v3934_v23 = vadd.f32 %v3933_v21, %v14331_v48  ;;  %v11631_v1 = vadd.f32 0.1, %v4267_v52  ;;  %v3986_v2 = vmax.f32 %v11518_v37, 0.0 }
 0x590   :  { %v8216_v60 = vpop.eup %8215  ;;  %v4270_v42 = vmul.f32 9.9, %v4254_v63  ;;  %vm4002_vm8 = vcmp.ne.f32.partialorder %v11518_v37, %v11518_v37  ;;  %v4198_v4 = vadd.f32 1.0, %v4197_v59  ;;  %v3987_v46 = vmax.f32 %v11559_v26, 0.0 }
 0x591   :  { %v11629_v31 = vpop.eup %8217  ;;  %v4203_v6 = vadd.f32 1.0, %v8216_v60  ;;  %v4206_v51 = vmul.f32 -0.5, %v8216_v60  ;;  %8223 = vpow2.f32 %v4060_v28  ;;  %v4255_v32 = vsel %vm3999_vm6, %v11481_v3, %v4239_v24 }
 0x592   :  { %14332 = vst [vmem:[#allocation53_spill] sm:$0xff] %v11629_v31  ;;  %v4200_v25 = vand.u32 2147483647, %v8214_v18  ;;  %v4028_v52 = vand.u32 2147483647, %v11620_v54  ;;  %v11642_v63 = vpop.eup %8219  ;;  %v11647_v49 = vmul.f32 %v11595_v12, %v11543_v8  ;;  %v11650_v59 = vclamps-f32 %v3934_v23, 50.0 }
 0x593   :  { %8225 = vlog2.f32 %v4203_v6  ;;  %v11653_v3 = vadd.f32 0.1, %v4270_v42  ;;  %v4104_v24 = vadd.f32 1.0, %v11642_v63  ;;  %v3907_v6 = vpop.f32.mrf.mxu2  ;;  %v4271_v7 = vmul.f32 9.9, %v4255_v32 }
 0x594   :  { %8227 = vrcp.f32 %v11626_v10  ;;  %v8222_v14 = vpop.eup %8221  ;;  %v4044_v28 = vsub.f32 0.0, %v4028_v52  ;;  %v4199_v21 = vmul.f32 %v8214_v18, %v4198_v4  ;;  %v4207_v29 = vadd.f32 1.0, %v4206_v51 }
 0x595   :  { %8229 = vrcp.f32 %v11631_v1  ;;  %v4196_v48 = vmul.f32 0.6931472, %v8222_v14  ;;  %vm4201_vm9 = vcmp.lt.f32.partialorder %v4200_v25, 0.0004427343  ;;  %vm4003_vm10 = vcmp.ne.f32.partialorder %v11559_v26, %v11559_v26 }
 0x596   :  { %v4209_v8 = vand.u32 2147483647, %v8216_v60  ;;  %v4066_v23 = vmul.f32 1.442695, %v4044_v28  ;;  %8231 = vlog2.f32 %v4104_v24  ;;  %v4029_v42 = vand.u32 2147483647, %v11650_v59 }
 0x597   :  { %v11658_v44 = vpop.eup %8223  ;;  %v4202_v61 = vsel %vm4201_vm9, %v4199_v21, %v4196_v48  ;;  %v3908_v0 = vadd.f32 %v3907_v6, %v14333_v20  ;;  %v11667_v25 = vadd.f32 0.1, %v4271_v7  ;;  %v4208_v57 = vmul.f32 %v8216_v60, %v4207_v29  ;;  %v3936_v48 = vpop.f32.mrf.mxu3 }
 0x598   :  { %v4242_v14 = vadd.f32 %v4202_v61, %v3986_v2  ;;  %v4113_v4 = vadd.f32 1.0, %v11658_v44  ;;  %8233 = vpow2.f32 %v4066_v23  ;;  %vm4210_vm11 = vcmp.lt.f32.partialorder %v4209_v8, 0.0004427343  ;;  %v14334_v23 = vld [vmem:[#allocation32_spill] sm:$0xff] }
 0x599   :  { %v8226_v52 = vpop.eup %8225  ;;  %v4107_v61 = vmul.f32 -0.5, %v11642_v63  ;;  %v4045_v2 = vsub.f32 0.0, %v4029_v42  ;;  %8235 = vrcp.f32 %v11653_v3  ;;  %v11677_v32 = vclamps-f32 %v3908_v0, 50.0 }
 0x59a   :  { %v11665_v51 = vpop.eup %8227  ;;  %v4205_v28 = vmul.f32 0.6931472, %v8226_v52  ;;  %v4258_v24 = vsel %vm4002_vm8, %v11518_v37, %v4242_v14  ;;  %8237 = vlog2.f32 %v4113_v4  ;;  %v3937_v52 = vadd.f32 %v3936_v48, %v14334_v23 }
 0x59b   :  { %v11669_v21 = vpop.eup %8229  ;;  %v4274_v6 = vmul.f32 9.9, %v4258_v24  ;;  %v4068_v60 = vmul.f32 1.442695, %v4045_v2  ;;  %v11682_v20 = vmul.f32 %v11665_v51, %v11626_v10  ;;  %8239 = vrcp.f32 %v11667_v25  ;;  %v3910_v31 = vpop.f32.mrf.mxu2 }
 0x59c   :  { %v4211_v7 = vsel %vm4210_vm11, %v4208_v57, %v4205_v28  ;;  %v8232_v18 = vpop.eup %8231  ;;  %v11686_v37 = vmul.f32 %v11669_v21, %v11631_v1  ;;  %v4108_v0 = vadd.f32 1.0, %v4107_v61  ;;  %v4110_v14 = vand.u32 2147483647, %v11642_v63 }
 0x59d   :  { %v4243_v29 = vadd.f32 %v4211_v7, %v3987_v46  ;;  %v4290_v8 = vadd.f32 0.1, %v4274_v6  ;;  %8241 = vpow2.f32 %v4068_v60  ;;  %v4032_v46 = vand.u32 2147483647, %v11677_v32 }
 0x59e   :  { %v8234_v42 = vpop.eup %8233  ;;  %v4116_v1 = vmul.f32 -0.5, %v11658_v44  ;;  %v4106_v4 = vmul.f32 0.6931472, %v8232_v18  ;;  %v3977_v28 = vmax.f32 %v11602_v33, 0.0  ;;  %v11697_v24 = vclamps-f32 %v3937_v52, 50.0 }
 0x59f   :  { %v4259_v57 = vsel %vm4003_vm10, %v11559_v26, %v4243_v29  ;;  %8243 = vrcp.f32 %v4290_v8  ;;  %v4140_v48 = vadd.f32 1.0, %v8234_v42  ;;  %v11699_v2 = vpop.eup %8235  ;;  %v4143_v6 = vmul.f32 -0.5, %v8234_v42  ;;  %v3939_v23 = vpop.f32.mrf.mxu3 }
 0x5a0   :  { %v4275_v10 = vmul.f32 9.9, %v4259_v57  ;;  %v4048_v7 = vsub.f32 0.0, %v4032_v46  ;;  %v8238_v29 = vpop.eup %8237  ;;  %vm3992_vm12 = vcmp.ne.f32.partialorder %v11583_v34, %v11583_v34  ;;  %v4109_v18 = vmul.f32 %v11642_v63, %v4108_v0 }
 0x5a1   :  { %v4119_v57 = vand.u32 2147483647, %v11658_v44  ;;  %8245 = vlog2.f32 %v4140_v48  ;;  %v11709_v52 = vpop.eup %8239  ;;  %vm11711_vm13 = vcmp.lt.f32.partialorder %v4110_v14, 0.0004427343  ;;  %v3980_v46 = vmax.f32 %v11620_v54, 0.0 }
 0x5a2   :  { %v11702_v61 = vadd.f32 0.1, %v4275_v10  ;;  %v4117_v10 = vadd.f32 1.0, %v4116_v1  ;;  %v4074_v26 = vmul.f32 1.442695, %v4048_v7  ;;  %v11718_v60 = vmul.f32 %v11699_v2, %v11653_v3 }
 0x5a3   :  { %v8242_v35 = vpop.eup %8241  ;;  %v4112_v63 = vsel %vm11711_vm13, %v4109_v18, %v4106_v4  ;;  %v4033_v48 = vand.u32 2147483647, %v11697_v24  ;;  %v4115_v22 = vmul.f32 0.6931472, %v8238_v29  ;;  %v4144_v1 = vadd.f32 1.0, %v4143_v6 }
 0x5a4   :  { %8247 = vrcp.f32 %v11702_v61  ;;  %v4149_v56 = vadd.f32 1.0, %v8242_v35  ;;  %vm11725_vm14 = vcmp.lt.f32.partialorder %v4119_v57, 0.0004427343  ;;  %v4146_v3 = vand.u32 2147483647, %v8234_v42 }
 0x5a5   :  { %v8244_v14 = vpop.eup %8243  ;;  %8249 = vpow2.f32 %v4074_v26  ;;  %v4049_v17 = vsub.f32 0.0, %v4033_v48  ;;  %v14339_v18 = vmax.f32 %v11583_v34, 0.0  ;;  %vm3993_vm15 = vcmp.ne.f32.partialorder %v11602_v33, %v11602_v33 }
 0x5a6   :  { %v4322_v4 = vmul.f32 %v8244_v14, %v4290_v8  ;;  %v4118_v29 = vmul.f32 %v11658_v44, %v4117_v10  ;;  %v4152_v6 = vmul.f32 -0.5, %v8242_v35  ;;  %v11736_v57 = vmul.f32 %v11709_v52, %v11667_v25  ;;  %v14340_v8 = vld [vmem:[#allocation35_spill] sm:$0xff] }
 0x5a7   :  { %v4232_v0 = vadd.f32 %v4112_v63, %v14339_v18  ;;  %v8246_v9 = vpop.eup %8245  ;;  %vm3996_vm0 = vcmp.ne.f32.partialorder %v11620_v54, %v11620_v54  ;;  %8251 = vlog2.f32 %v4149_v56  ;;  %v4076_v26 = vmul.f32 1.442695, %v4049_v17 }
 0x5a8   :  { %v3911_v48 = vadd.f32 %v3910_v31, %v14340_v8  ;;  %v4121_v63 = vsel %vm11725_vm14, %v4118_v29, %v4115_v22  ;;  %v4142_v18 = vmul.f32 0.6931472, %v8246_v9  ;;  %v4145_v40 = vmul.f32 %v8234_v42, %v4144_v1 }
 0x5a9   :  { %v3940_v44 = vadd.f32 %v3939_v23, %v14341_v30  ;;  %vm4147_vm1 = vcmp.lt.f32.partialorder %v4146_v3, 0.0004427343  ;;  %v4155_v10 = vand.u32 2147483647, %v8242_v35  ;;  %8253 = vpow2.f32 %v4076_v26 }
 0x5aa   :  { %v11744_v16 = vclamps-f32 %v3911_v48, 50.0  ;;  %v8248_v25 = vpop.eup %8247  ;;  %v4338_v5 = vsub.f32 2.0, %v4322_v4  ;;  %v4248_v56 = vsel %vm3992_vm12, %v11583_v34, %v4232_v0  ;;  %v4148_v17 = vsel %vm4147_vm1, %v4145_v40, %v4142_v18 }
 0x5ab   :  { %v4153_v31 = vadd.f32 1.0, %v4152_v6  ;;  %v8250_v7 = vpop.eup %8249  ;;  %v4334_v9 = vsub.f32 2.0, %v11718_v60  ;;  %v4233_v22 = vadd.f32 %v4121_v63, %v3977_v28  ;;  %v3984_v42 = vmax.f32 %v11677_v32, 0.0 }
 0x5ac   :  { %v11752_v1 = vclamps-f32 %v3940_v44, 50.0  ;;  %v4236_v3 = vadd.f32 %v4148_v17, %v3980_v46  ;;  %vm3997_vm3 = vcmp.ne.f32.partialorder %v11650_v59, %v11650_v59  ;;  %v4176_v23 = vadd.f32 1.0, %v8250_v7 }
 0x5ad   :  { %v4179_v4 = vmul.f32 -0.5, %v8250_v7  ;;  %v4036_v29 = vand.u32 2147483647, %v11744_v16  ;;  %v8252_v26 = vpop.eup %8251  ;;  %v4335_v40 = vsub.f32 2.0, %v11736_v57  ;;  %v4323_v34 = vmul.f32 %v8248_v25, %v11702_v61 }
 0x5ae   :  { %v4264_v0 = vmul.f32 9.9, %v4248_v56  ;;  %vm4156_vm4 = vcmp.lt.f32.partialorder %v4155_v10, 0.0004427343  ;;  %v4151_v28 = vmul.f32 0.6931472, %v8252_v26  ;;  %v4154_v60 = vmul.f32 %v8242_v35, %v4153_v31 }
 0x5af   :  { %8255 = vlog2.f32 %v4176_v23  ;;  %v4354_v6 = vmul.f32 %v8244_v14, %v4338_v5  ;;  %v8254_v48 = vpop.eup %8253  ;;  %v4249_v46 = vsel %vm3993_vm15, %v11602_v33, %v4233_v22  ;;  %v4182_v63 = vand.u32 2147483647, %v8250_v7 }
 0x5b0   :  { %v4052_v18 = vsub.f32 0.0, %v4036_v29  ;;  %v4037_v44 = vand.u32 2147483647, %v11752_v1  ;;  %v4252_v61 = vsel %vm3996_vm0, %v11620_v54, %v4236_v3  ;;  %v4157_v57 = vsel %vm4156_vm4, %v4154_v60, %v4151_v28 }
 0x5b1   :  { %v4180_v10 = vadd.f32 1.0, %v4179_v4  ;;  %v4185_v35 = vadd.f32 1.0, %v8254_v48  ;;  %v4339_v56 = vsub.f32 2.0, %v4323_v34  ;;  %v14342_v5 = vmax.f32 %v11650_v59, 0.0 }
 0x5b2   :  { %vm4000_vm5 = vcmp.ne.f32.partialorder %v11677_v32, %v11677_v32  ;;  %v3985_v33 = vmax.f32 %v11697_v24, 0.0  ;;  %v4350_v17 = vmul.f32 %v11699_v2, %v4334_v9  ;;  %v4188_v31 = vmul.f32 -0.5, %v8254_v48 }
 0x5b3   :  { %v4237_v14 = vadd.f32 %v4157_v57, %v14342_v5  ;;  %v4082_v22 = vmul.f32 1.442695, %v4052_v18  ;;  %v4053_v23 = vsub.f32 0.0, %v4037_v44  ;;  %v4466_v29 = vmul.f32 0.125, %v4354_v6 }
 0x5b4   :  { %v11774_v26 = vadd.f32 0.1, %v4264_v0  ;;  %v4265_v54 = vmul.f32 9.9, %v4249_v46  ;;  %v4268_v3 = vmul.f32 9.9, %v4252_v61  ;;  %8257 = vlog2.f32 %v4185_v35 }
 0x5b5   :  { %v8256_v4 = vpop.eup %8255  ;;  %v4181_v34 = vmul.f32 %v8250_v7, %v4180_v10  ;;  %vm11776_vm6 = vcmp.lt.f32.partialorder %v4182_v63, 0.0004427343  ;;  %8259 = vpow2.f32 %v4082_v22  ;;  %v4084_v60 = vmul.f32 1.442695, %v4053_v23 }
 0x5b6   :  { %v4253_v2 = vsel %vm3997_vm3, %v11650_v59, %v4237_v14  ;;  %v4178_v9 = vmul.f32 0.6931472, %v8256_v4  ;;  %v4482_v0 = vmul.f32 %v11186_v19, %v4466_v29  ;;  %v4355_v6 = vmul.f32 %v8248_v25, %v4339_v56 }
 0x5b7   :  { %vm4001_vm7 = vcmp.ne.f32.partialorder %v11697_v24, %v11697_v24  ;;  %v4189_v46 = vadd.f32 1.0, %v4188_v31  ;;  %8261 = vpow2.f32 %v4084_v60  ;;  %v4462_v7 = vmul.f32 0.125, %v4350_v17 }
 0x5b8   :  { %v4351_v63 = vmul.f32 %v11709_v52, %v4335_v40  ;;  %v4184_v18 = vsel %vm11776_vm6, %v4181_v34, %v4178_v9  ;;  %v4191_v44 = vand.u32 2147483647, %v8254_v48  ;;  %v4498_v61 = vsub.f32 %v11530_v55, %v4482_v0 }
 0x5b9   :  { %v4467_v57 = vmul.f32 0.125, %v4355_v6  ;;  %v11791_v59 = vadd.f32 0.1, %v4268_v3  ;;  %v4240_v10 = vadd.f32 %v4184_v18, %v3984_v42  ;;  %v4478_v19 = vmul.f32 %v11193_v47, %v4462_v7 }
 0x5ba   :  { %v14345_v25 = vsub.f32 2.0, %v11682_v20  ;;  %v8258_v56 = vpop.eup %8257  ;;  %v4269_v5 = vmul.f32 9.9, %v4253_v2  ;;  %v11797_v14 = vclamps-f32 %v4498_v61, 100.0  ;;  %v4463_v40 = vmul.f32 0.125, %v4351_v63 }
 0x5bb   :  { %v4483_v52 = vmul.f32 %v11214_v62, %v4467_v57  ;;  %v8260_v17 = vpop.eup %8259  ;;  %v4256_v55 = vsel %vm4000_vm5, %v11677_v32, %v4240_v10  ;;  %v4187_v42 = vmul.f32 0.6931472, %v8258_v56  ;;  %v4190_v31 = vmul.f32 %v8254_v48, %v4189_v46 }
 0x5bc   :  { %v4346_v35 = vmul.f32 %v11665_v51, %v14345_v25  ;;  %v4494_v47 = vsub.f32 %v11523_v53, %v4478_v19  ;;  %8263 = vrcp.f32 %v11774_v26  ;;  %v4272_v20 = vmul.f32 9.9, %v4256_v55  ;;  %4546 = vmatpush.msra.mxu0 %v11797_v14 }
 0x5bd   :  { %vm4192_vm8 = vcmp.lt.f32.partialorder %v4191_v44, 0.0004427343  ;;  %v4212_v51 = vadd.f32 1.0, %v8260_v17  ;;  %v8262_v22 = vpop.eup %8261  ;;  %v4215_v23 = vmul.f32 -0.5, %v8260_v17  ;;  %v4499_v32 = vsub.f32 %v11533_v27, %v4483_v52 }
 0x5be   :  { %v4193_v62 = vsel %vm4192_vm8, %v4190_v31, %v4187_v42  ;;  %v11807_v29 = vclamps-f32 %v4494_v47, 100.0  ;;  %v4458_v3 = vmul.f32 0.125, %v4346_v35  ;;  %v4479_v48 = vmul.f32 %v11239_v41, %v4463_v40 }
 0x5bf   :  { %v4241_v4 = vadd.f32 %v4193_v62, %v3985_v33  ;;  %8265 = vlog2.f32 %v4212_v51  ;;  %v11811_v53 = vadd.f32 0.1, %v4265_v54  ;;  %v11813_v34 = vadd.f32 0.1, %v4272_v20 }
 0x5c0   :  { %v3988_v28 = vmax.f32 %v11744_v16, 0.0  ;;  %v4221_v60 = vadd.f32 1.0, %v8262_v22  ;;  %4547 = vmatpush.msra.mxu0 %v11807_v29  ;;  %8267 = vrcp.f32 %v11791_v59  ;;  %v11818_v2 = vadd.f32 0.1, %v4269_v5 }
 0x5c1   :  { %v4257_v27 = vsel %vm4001_vm7, %v11697_v24, %v4241_v4  ;;  %v4224_v33 = vmul.f32 -0.5, %v8262_v22  ;;  %vm4004_vm9 = vcmp.ne.f32.partialorder %v11744_v16, %v11744_v16  ;;  %v4216_v54 = vadd.f32 1.0, %v4215_v23 }
 0x5c2   :  { %v4273_v41 = vmul.f32 9.9, %v4257_v27  ;;  %v4218_v9 = vand.u32 2147483647, %v8260_v17  ;;  %8269 = vlog2.f32 %v4221_v60  ;;  %v11826_v0 = vpop.eup %8263  ;;  %v4227_v6 = vand.u32 2147483647, %v8262_v22 }
 0x5c3   :  { %v11828_v46 = vclamps-f32 %v4499_v32, 100.0  ;;  %v4495_v7 = vsub.f32 %v11526_v39, %v4479_v48  ;;  %v4474_v63 = vmul.f32 %v11263_v50, %v4458_v3  ;;  %8271 = vrcp.f32 %v11813_v34 }
 0x5c4   :  { %v4289_v24 = vadd.f32 0.1, %v4273_v41  ;;  %v14346_v18 = vsub.f32 2.0, %v11686_v37  ;;  %v14347_v61 = vsub.f32 2.0, %v11624_v11  ;;  %v4225_v19 = vadd.f32 1.0, %v4224_v33 }
 0x5c5   :  { %v8266_v10 = vpop.eup %8265  ;;  %4575 = vmatpush.msra.mxu1 %v11828_v46  ;;  %v11840_v25 = vclamps-f32 %v4495_v7, 100.0  ;;  %v4490_v39 = vsub.f32 %v11471_v58, %v4474_v63  ;;  %v14348_v50 = vsub.f32 2.0, %v11647_v49  ;;  %v4217_v37 = vmul.f32 %v8260_v17, %v4216_v54  ;;  %v14352_v54 = vld [vmem:[#allocation42_spill] sm:$0xff] }
 0x5c6   :  { %v4347_v44 = vmul.f32 %v11669_v21, %v14346_v18  ;;  %v4342_v57 = vmul.f32 %v11591_v36, %v14347_v61  ;;  %v4214_v56 = vmul.f32 0.6931472, %v8266_v10  ;;  %v11846_v52 = vpop.eup %8267  ;;  %8273 = vrcp.f32 %v4289_v24 }
 0x5c7   :  { %v4343_v35 = vmul.f32 %v11595_v12, %v14348_v50  ;;  %vm4219_vm10 = vcmp.lt.f32.partialorder %v4218_v9, 0.0004427343  ;;  %4576 = vmatpush.msra.mxu1 %v11840_v25  ;;  %v11849_v36 = vclamps-f32 %v4490_v39, 100.0  ;;  %8275 = vrcp.f32 %v11818_v2  ;;  %v14355_v50 = vld [vmem:[#allocation53_spill] sm:$0xff] }
 0x5c8   :  { %v4459_v5 = vmul.f32 0.125, %v4347_v44  ;;  %v4454_v21 = vmul.f32 0.125, %v4342_v57  ;;  %v8270_v40 = vpop.eup %8269  ;;  %v4220_v58 = vsel %vm4219_vm10, %v4217_v37, %v4214_v56  ;;  %v4226_v42 = vmul.f32 %v8262_v22, %v4225_v19  ;;  %v14349_v22 = vld [vmem:[#allocation52_spill] sm:$0xff]  ;;  %v14354_v19 = vld [vmem:[#allocation51_spill] sm:$0xff] }
 0x5c9   :  { %v4455_v11 = vmul.f32 0.125, %v4343_v35  ;;  %v4244_v17 = vadd.f32 %v4220_v58, %v3988_v28  ;;  %v4223_v55 = vmul.f32 0.6931472, %v8270_v40  ;;  %4548 = vmatpush.msra.mxu0 %v11849_v36  ;;  %v8272_v47 = vpop.eup %8271  ;;  %v3989_v20 = vmax.f32 %v11752_v1, 0.0 }
 0x5ca   :  { %v4475_v49 = vmul.f32 %v11275_v15, %v4459_v5  ;;  %v4470_v12 = vmul.f32 %v11284_v45, %v4454_v21  ;;  %vm4228_vm11 = vcmp.lt.f32.partialorder %v4227_v6, 0.0004427343  ;;  %8277 = vrcp.f32 %v11811_v53  ;;  %v11887_v6 = vld [vmem:[%s13770_s1] sm:$0xff]  ;;  %v14356_v21 = vld [vmem:[#allocation43_spill] sm:$0xff] }
 0x5cb   :  { %v4471_v31 = vmul.f32 %v11286_v38, %v4455_v11  ;;  %v4260_v15 = vsel %vm4004_vm9, %v11744_v16, %v4244_v17  ;;  %v4229_v45 = vsel %vm4228_vm11, %v4226_v42, %v4223_v55  ;;  %vm4005_vm12 = vcmp.ne.f32.partialorder %v11752_v1, %v11752_v1  ;;  %v14351_v16 = vld [vmem:[#allocation50_spill] sm:$0xff] }
 0x5cc   :  { %v4491_v51 = vsub.f32 %v11474_v43, %v4475_v49  ;;  %v4486_v62 = vsub.f32 %v11460_v13, %v4470_v12  ;;  %v4276_v3 = vmul.f32 9.9, %v4260_v15  ;;  %v4245_v38 = vadd.f32 %v4229_v45, %v3989_v20  ;;  %v8274_v48 = vpop.eup %8273  ;;  %v14350_v43 = vld [vmem:[#allocation40_spill] sm:$0xff]  ;;  %v14357_v17 = vld [vmem:[#allocation46_spill] sm:$0xff] }
 0x5cd   :  { %v4487_v23 = vsub.f32 %v14349_v22, %v4471_v31  ;;  %8279 = vtanh.f32 %v14350_v43  ;;  %v4320_v13 = vmul.f32 %v8272_v47, %v11813_v34  ;;  %v11873_v28 = vpop.eup %8275  ;;  %v4392_v60 = vadd.f32 1.0, %v14351_v16 }
 0x5ce   :  { %v11865_v4 = vclamps-f32 %v4491_v51, 100.0  ;;  %v11867_v32 = vclamps-f32 %v4486_v62, 100.0  ;;  %v4292_v27 = vadd.f32 0.1, %v4276_v3  ;;  %v4261_v33 = vsel %vm4005_vm12, %v11752_v1, %v4245_v38  ;;  %v14353_v1 = vld [vmem:[#allocation44_spill] sm:$0xff]  ;;  %v11914_v62 = vld [vmem:[%s13770_s1 + $0x8] sm:$0xff] }
 0x5cf   :  { %v11879_v41 = vclamps-f32 %v4487_v23, 100.0  ;;  %8281 = vtanh.f32 %v14352_v54  ;;  %v4316_v34 = vmul.f32 %v11846_v52, %v11791_v59  ;;  %v4277_v9 = vmul.f32 9.9, %v4261_v33 }
 0x5d0   :  { %4577 = vmatpush.msra.mxu1 %v11865_v4  ;;  %4549 = vmatpush.msra.mxu0 %v11867_v32  ;;  %v4393_v7 = vadd.f32 1.0, %v14353_v1  ;;  %v4321_v63 = vmul.f32 %v8274_v48, %v4289_v24  ;;  %8283 = vrcp.f32 %v4292_v27  ;;  %v8278_v18 = vpop.eup %8277  ;;  %v4312_v59 = vmul.f32 %v11826_v0, %v11774_v26 }
 0x5d1   :  { %7461 = vmatmul.msk.f32.vlgmr.msra.gmra.mxu0 %vm389_vm2, %v11887_v6  ;;  %v4336_v44 = vsub.f32 2.0, %v4320_v13  ;;  %v4293_v61 = vadd.f32 0.1, %v4277_v9  ;;  %v4408_v57 = vmul.f32 0.5, %v4392_v60  ;;  %v4317_v10 = vmul.f32 %v11873_v28, %v11818_v2 }
 0x5d2   :  { %4578 = vmatpush.msra.mxu1 %v11879_v41  ;;  %4662 = vmatpush.msrb.mxu0 %v11797_v14  ;;  %v4400_v39 = vadd.f32 1.0, %v14354_v19  ;;  %v4404_v35 = vadd.f32 1.0, %v14355_v50  ;;  %v4332_v56 = vsub.f32 2.0, %v4316_v34  ;;  %v4409_v26 = vmul.f32 0.5, %v4393_v7 }
 0x5d3   :  { %7465 = vmatmul.msk.f32.vlgmr.msra.gmra.mxu1 %vm389_vm2, %v11887_v6  ;;  %v8280_v24 = vpop.eup %8279  ;;  %8285 = vrcp.f32 %v4293_v61  ;;  %v4313_v37 = vmul.f32 %v8278_v18, %v11811_v53  ;;  %v4337_v5 = vsub.f32 2.0, %v4321_v63  ;;  %v4396_v11 = vadd.f32 1.0, %v14356_v21 }
 0x5d4   :  { %4691 = vmatpush.msrb.mxu1 %v11828_v46  ;;  %4663 = vmatpush.msrb.mxu0 %v11807_v29  ;;  %v4328_v40 = vsub.f32 2.0, %v4312_v59  ;;  %v4352_v58 = vmul.f32 %v8272_v47, %v4336_v44  ;;  %v4424_v12 = vmul.f32 0.125, %v4408_v57  ;;  %v4401_v55 = vadd.f32 1.0, %v14357_v17 }
 0x5d5   :  { %v8282_v2 = vpop.eup %8281  ;;  %v4405_v42 = vadd.f32 1.0, %v8280_v24  ;;  %v4333_v31 = vsub.f32 2.0, %v4317_v10  ;;  %v4416_v53 = vmul.f32 0.5, %v4400_v39  ;;  %v4420_v20 = vmul.f32 0.5, %v4404_v35  ;;  %v14358_v10 = vld [vmem:[#allocation38_spill] sm:$0xff] }
 0x5d6   :  { %4692 = vmatpush.msrb.mxu1 %v11840_v25  ;;  %4664 = vmatpush.msrb.mxu0 %v11849_v36  ;;  %v8284_v49 = vpop.eup %8283  ;;  %v4348_v47 = vmul.f32 %v11846_v52, %v4332_v56  ;;  %v4425_v15 = vmul.f32 0.125, %v4409_v26  ;;  %v4397_v45 = vadd.f32 1.0, %v8282_v2  ;;  %v4329_v22 = vsub.f32 2.0, %v4313_v37  ;;  %v11930_v26 = vld [vmem:[%s13770_s1 + $0x10] sm:$0xff]  ;;  %v14360_v37 = vld [vmem:[#allocation41_spill] sm:$0xff] }
 0x5d7   :  { %v4324_v51 = vmul.f32 %v8284_v49, %v4292_v27  ;;  %v4353_v23 = vmul.f32 %v8274_v48, %v4337_v5  ;;  %v4412_v38 = vmul.f32 0.5, %v4396_v11  ;;  %v4464_v13 = vmul.f32 0.125, %v4352_v58  ;;  %v14361_v11 = vld [vmem:[#allocation48_spill] sm:$0xff] }
 0x5d8   :  { %4693 = vmatpush.msrb.mxu1 %v11865_v4  ;;  %4665 = vmatpush.msrb.mxu0 %v11867_v32  ;;  %v4344_v16 = vmul.f32 %v11826_v0, %v4328_v40  ;;  %v4417_v60 = vmul.f32 0.5, %v4401_v55  ;;  %v4421_v27 = vmul.f32 0.5, %v4405_v42  ;;  %v4349_v52 = vmul.f32 %v11873_v28, %v4333_v31  ;;  %v14359_v28 = vld [vmem:[#allocation39_spill] sm:$0xff]  ;;  %v14362_v42 = vld [vmem:[#allocation45_spill] sm:$0xff] }
 0x5d9   :  { %7462 = vmatmul.msk.f32.gmra.mxu0 %vm389_vm2, %v11914_v62  ;;  %v8286_v3 = vpop.eup %8285  ;;  %v4340_v43 = vsub.f32 2.0, %v4324_v51  ;;  %v4432_v54 = vmul.f32 0.125, %v4416_v53  ;;  %v4436_v34 = vmul.f32 0.125, %v4420_v20  ;;  %v4460_v1 = vmul.f32 0.125, %v4348_v47  ;;  %v14363_v20 = vld [vmem:[#allocation37_spill] sm:$0xff] }
 0x5da   :  { %4694 = vmatpush.msrb.mxu1 %v11879_v41  ;;  %v4325_v33 = vmul.f32 %v8286_v3, %v4293_v61  ;;  %v4413_v7 = vmul.f32 0.5, %v4397_v45  ;;  %v4465_v63 = vmul.f32 0.125, %v4353_v23  ;;  %v4345_v59 = vmul.f32 %v8278_v18, %v4329_v22  ;;  %v14364_v45 = vld [vmem:[#allocation47_spill] sm:$0xff] }
 0x5db   :  { %7466 = vmatmul.msk.f32.gmra.mxu1 %vm389_vm2, %v11914_v62  ;;  %v4356_v9 = vmul.f32 %v8284_v49, %v4340_v43  ;;  %v4428_v44 = vmul.f32 0.125, %v4412_v38  ;;  %v4480_v24 = vmul.f32 %v14358_v10, %v4464_v13  ;;  %v4456_v19 = vmul.f32 0.125, %v4344_v16 }
 0x5dc   :  { %v4341_v48 = vsub.f32 2.0, %v4325_v33  ;;  %v4433_v39 = vmul.f32 0.125, %v4417_v60  ;;  %v4437_v0 = vmul.f32 0.125, %v4421_v27  ;;  %v4461_v35 = vmul.f32 0.125, %v4349_v52  ;;  %v14366_v60 = vld [vmem:[#allocation49_spill] sm:$0xff] }
 0x5dd   :  { %v4468_v57 = vmul.f32 0.125, %v4356_v9  ;;  %v4448_v61 = vadd.f32 %v14358_v10, %v4432_v54  ;;  %v4452_v56 = vadd.f32 %v14359_v28, %v4436_v34  ;;  %v4476_v5 = vmul.f32 %v14360_v37, %v4460_v1 }
 0x5de   :  { %v4357_v50 = vmul.f32 %v8286_v3, %v4341_v48  ;;  %v4429_v2 = vmul.f32 0.125, %v4413_v7  ;;  %v4481_v40 = vmul.f32 %v14361_v11, %v4465_v63  ;;  %v4457_v58 = vmul.f32 0.125, %v4345_v59 }
 0x5df   :  { %v4484_v18 = vmul.f32 %v14359_v28, %v4468_v57  ;;  %v4444_v49 = vadd.f32 %v14360_v37, %v4428_v44  ;;  %v4496_v55 = vsub.f32 %v4448_v61, %v4480_v24  ;;  %v4472_v31 = vmul.f32 %v14362_v42, %v4456_v19  ;;  %v8715_v44 = vld [vmem:[%s13771_s2] sm:$0xff]  ;;  %v8717_v57 = vld [vmem:[%s13771_s2 + $0x10] sm:$0xff]  ;;  %v14374_v61 = vld [vmem:[#allocation5_spill] sm:$0xff] }
 0x5e0   :  { %v4469_v21 = vmul.f32 0.125, %v4357_v50  ;;  %v4449_v53 = vadd.f32 %v14361_v11, %v4433_v39  ;;  %v4453_v51 = vadd.f32 %v14363_v20, %v4437_v0  ;;  %v4477_v22 = vmul.f32 %v14364_v45, %v4461_v35  ;;  %v14376_v37 = vld [vmem:[#allocation9_spill] sm:$0xff] }
 0x5e1   :  { %7463 = vmatmul.msk.f32.gmra.mxu0 %vm389_vm2, %v11930_v26  ;;  %v4500_v17 = vsub.f32 %v4452_v56, %v4484_v18  ;;  %v4440_v23 = vadd.f32 %v14362_v42, %v4424_v12  ;;  %v4492_v38 = vsub.f32 %v4444_v49, %v4476_v5  ;;  %v4445_v43 = vadd.f32 %v14364_v45, %v4429_v2  ;;  %v8714_v12 = vld [vmem:[%s13770_s1 + $0x18] sm:$0xff]  ;;  %v14375_v56 = vld [vmem:[#allocation6_spill] sm:$0xff] }
 0x5e2   :  { %v4485_v47 = vmul.f32 %v14363_v20, %v4469_v21  ;;  %v4497_v16 = vsub.f32 %v4449_v53, %v4481_v40  ;;  %v4473_v27 = vmul.f32 %v14366_v60, %v4457_v58  ;;  %v11951_v33 = vclamps-f32 %v4496_v55, 100.0  ;;  %v14377_v2 = vld [vmem:[#allocation10_spill] sm:$0xff]  ;;  %v14378_v58 = vld [vmem:[#allocation13_spill] sm:$0xff] }
 0x5e3   :  { %7467 = vmatmul.msk.f32.gmra.mxu1 %vm389_vm2, %v11930_v26  ;;  %v11946_v3 = vclamps-f32 %v4500_v17, 100.0  ;;  %v4488_v52 = vsub.f32 %v4440_v23, %v4472_v31  ;;  %v4441_v54 = vadd.f32 %v14366_v60, %v4425_v15  ;;  %v4493_v9 = vsub.f32 %v4445_v43, %v4477_v22  ;;  %v14379_v31 = vld [vmem:[#allocation21_spill] sm:$0xff]  ;;  %v14381_v23 = vld [vmem:[#allocation22_spill] sm:$0xff] }
 0x5e4   :  { %v4501_v13 = vsub.f32 %v4453_v51, %v4485_v47  ;;  %14367 = vst [vmem:[#allocation40_spill] sm:$0xff] %v11951_v33  ;;  %v11961_v1 = vclamps-f32 %v4492_v38, 100.0  ;;  %v11964_v7 = vclamps-f32 %v4497_v16, 100.0  ;;  %v14380_v51 = vld [vmem:[#allocation14_spill] sm:$0xff] }
 0x5e5   :  { %14365 = vst [vmem:[#allocation52_spill] sm:$0xff] %v11946_v3  ;;  %4604 = vmatpush.msra.mxu2 %v11946_v3  ;;  %v4489_v48 = vsub.f32 %v4441_v54, %v4473_v27  ;;  %v11968_v15 = vclamps-f32 %v4488_v52, 100.0  ;;  %v11971_v63 = vclamps-f32 %v4493_v9, 100.0  ;;  %v14382_v9 = vld [vmem:[#allocation17_spill] sm:$0xff] }
 0x5e6   :  { %v11954_v34 = vclamps-f32 %v4501_v13, 100.0  ;;  %14369 = vst [vmem:[#allocation42_spill] sm:$0xff] %v11961_v1 }
 0x5e7   :  { %4605 = vmatpush.msra.mxu2 %v11951_v33  ;;  %14370 = vst [vmem:[#allocation44_spill] sm:$0xff] %v11964_v7  ;;  %v11975_v59 = vclamps-f32 %v4489_v48, 100.0 }
 0x5e8   :  { %14368 = vst [vmem:[#allocation50_spill] sm:$0xff] %v11954_v34  ;;  %4633 = vmatpush.msra.mxu3 %v11954_v34 }
 0x5e9   :  { %7464 = vmatmul.msk.f32.gmra.mxu0 %vm389_vm2, %v8714_v12  ;;  %4606 = vmatpush.msra.mxu2 %v11961_v1  ;;  %14371 = vst [vmem:[#allocation51_spill] sm:$0xff] %v11968_v15 }
 0x5ea   :  { %4634 = vmatpush.msra.mxu3 %v11964_v7  ;;  %14372 = vst [vmem:[#allocation53_spill] sm:$0xff] %v11971_v63 }
 0x5eb   :  { %7468 = vmatmul.msk.f32.gmra.mxu1 %vm389_vm2, %v8714_v12  ;;  %4607 = vmatpush.msra.mxu2 %v11968_v15  ;;  %14373 = vst [vmem:[#allocation43_spill] sm:$0xff] %v11975_v59 }
 0x5ec   :  { %4635 = vmatpush.msra.mxu3 %v11971_v63  ;;  %7469 = vmatmul.msk.f32.vlgmr.msra.gmra.mxu2 %vm389_vm2, %v11887_v6 }
 0x5ed   :  { %4720 = vmatpush.msrb.mxu2 %v11946_v3 }
 0x5ee   :  { %4636 = vmatpush.msra.mxu3 %v11975_v59 }
 0x5ef   :  { %7473 = vmatmul.msk.f32.vlgmr.msra.gmra.mxu3 %vm389_vm2, %v11887_v6  ;;  %4721 = vmatpush.msrb.mxu2 %v11951_v33  ;;  %v8716_v6 = vld [vmem:[%s13771_s2 + $0x8] sm:$0xff] }
 0x5f0   :  { %4749 = vmatpush.msrb.mxu3 %v11954_v34 }
 0x5f1   :  { %7477 = vmatmul.msk.f32.vlgmr.msrb.gmra.mxu0 %vm389_vm2, %v8715_v44  ;;  %4722 = vmatpush.msrb.mxu2 %v11961_v1 }
 0x5f2   :  { %4750 = vmatpush.msrb.mxu3 %v11964_v7 }
 0x5f3   :  { %7481 = vmatmul.msk.f32.vlgmr.msrb.gmra.mxu1 %vm389_vm2, %v8715_v44  ;;  %4723 = vmatpush.msrb.mxu2 %v11968_v15 }
 0x5f4   :  { %4751 = vmatpush.msrb.mxu3 %v11971_v63  ;;  %7470 = vmatmul.msk.f32.gmra.mxu2 %vm389_vm2, %v11914_v62 }
 0x5f6   :  { %4752 = vmatpush.msrb.mxu3 %v11975_v59 }
 0x5f7   :  { %7474 = vmatmul.msk.f32.gmra.mxu3 %vm389_vm2, %v11914_v62  ;;  %v8718_v62 = vld [vmem:[%s13771_s2 + $0x18] sm:$0xff] }
 0x5f9   :  { %7478 = vmatmul.msk.f32.gmra.mxu0 %vm389_vm2, %v8716_v6 }
 0x5fb   :  { %7482 = vmatmul.msk.f32.gmra.mxu1 %vm389_vm2, %v8716_v6 }
 0x5fc   :  { %7471 = vmatmul.msk.f32.gmra.mxu2 %vm389_vm2, %v11930_v26 }
 0x5ff   :  { %7475 = vmatmul.msk.f32.gmra.mxu3 %vm389_vm2, %v11930_v26 }
 0x601   :  { %7479 = vmatmul.msk.f32.gmra.mxu0 %vm389_vm2, %v8717_v57 }
 0x603   :  { %7483 = vmatmul.msk.f32.gmra.mxu1 %vm389_vm2, %v8717_v57 }
 0x604   :  { %7472 = vmatmul.msk.f32.gmra.mxu2 %vm389_vm2, %v8714_v12 }
 0x607   :  { %7476 = vmatmul.msk.f32.gmra.mxu3 %vm389_vm2, %v8714_v12 }
 0x609   :  { %7480 = vmatmul.msk.f32.gmra.mxu0 %vm389_vm2, %v8718_v62 }
 0x60b   :  { %7484 = vmatmul.msk.f32.gmra.mxu1 %vm389_vm2, %v8718_v62 }
 0x60c   :  { %7485 = vmatmul.msk.f32.vlgmr.msrb.gmra.mxu2 %vm389_vm2, %v8715_v44 }
 0x60f   :  { %7489 = vmatmul.msk.f32.vlgmr.msrb.gmra.mxu3 %vm389_vm2, %v8715_v44 }
 0x614   :  { %7486 = vmatmul.msk.f32.gmra.mxu2 %vm389_vm2, %v8716_v6 }
 0x617   :  { %7490 = vmatmul.msk.f32.gmra.mxu3 %vm389_vm2, %v8716_v6 }
 0x61c   :  { %7487 = vmatmul.msk.f32.gmra.mxu2 %vm389_vm2, %v8717_v57 }
 0x61f   :  { %7491 = vmatmul.msk.f32.gmra.mxu3 %vm389_vm2, %v8717_v57 }
 0x624   :  { %7488 = vmatmul.msk.f32.gmra.mxu2 %vm389_vm2, %v8718_v62 }
 0x627   :  { %7492 = vmatmul.msk.f32.gmra.mxu3 %vm389_vm2, %v8718_v62 }
 0x64e   :  { %v4551_v10 = vpop.f32.mrf.mxu0 }
 0x64f   :  { %v4552_v28 = vadd.f32 %v4551_v10, %v14374_v61  ;;  %v14383_v10 = vld [vmem:[#allocation25_spill] sm:$0xff] }
 0x650   :  { %v4580_v24 = vpop.f32.mrf.mxu1 }
 0x651   :  { %v4581_v26 = vadd.f32 %v4580_v24, %v14375_v56  ;;  %v5182_v11 = vmul.f32 0.5, %v4552_v28 }
 0x653   :  { %v5183_v40 = vmul.f32 0.5, %v4581_v26  ;;  %8287 = vtanh.f32 %v5182_v11 }
 0x655   :  { %8289 = vtanh.f32 %v5183_v40 }
 0x656   :  { %v4554_v19 = vpop.f32.mrf.mxu0 }
 0x657   :  { %v4555_v5 = vadd.f32 %v4554_v19, %v14376_v37 }
 0x658   :  { %v4583_v39 = vpop.f32.mrf.mxu1 }
 0x659   :  { %v4584_v21 = vadd.f32 %v4583_v39, %v14377_v2  ;;  %v5186_v17 = vmul.f32 0.5, %v4555_v5  ;;  %v8288_v60 = vpop.eup %8287 }
 0x65a   :  { %v5214_v39 = vadd.f32 1.0, %v8288_v60 }
 0x65b   :  { %v5187_v55 = vmul.f32 0.5, %v4584_v21  ;;  %8291 = vtanh.f32 %v5186_v17  ;;  %v8290_v54 = vpop.eup %8289 }
 0x65d   :  { %8293 = vtanh.f32 %v5187_v55 }
 0x65e   :  { %v4557_v0 = vpop.f32.mrf.mxu0 }
 0x65f   :  { %v4558_v49 = vadd.f32 %v4557_v0, %v14378_v58  ;;  %v14384_v0 = vld [vmem:[#allocation18_spill] sm:$0xff] }
 0x660   :  { %v4586_v50 = vpop.f32.mrf.mxu1 }
 0x661   :  { %v5190_v20 = vmul.f32 0.5, %v4558_v49  ;;  %v4587_v47 = vadd.f32 %v4586_v50, %v14380_v51  ;;  %v8292_v6 = vpop.eup %8291  ;;  %v5215_v49 = vadd.f32 1.0, %v8290_v54 }
 0x662   :  { %v5218_v55 = vadd.f32 1.0, %v8292_v6  ;;  %v14386_v6 = vld [vmem:[#allocation29_spill] sm:$0xff] }
 0x663   :  { %8295 = vtanh.f32 %v5190_v20  ;;  %v5191_v16 = vmul.f32 0.5, %v4587_v47  ;;  %v8294_v19 = vpop.eup %8293 }
 0x664   :  { %v5234_v54 = vmul.f32 0.5, %v5218_v55 }
 0x665   :  { %8297 = vtanh.f32 %v5191_v16  ;;  %v5231_v16 = vmul.f32 0.5, %v5215_v49 }
 0x666   :  { %v4560_v35 = vpop.f32.mrf.mxu0 }
 0x667   :  { %v4561_v12 = vadd.f32 %v4560_v35, %v14382_v9  ;;  %v14385_v35 = vld [vmem:[#allocation26_spill] sm:$0xff] }
 0x668   :  { %v4589_v18 = vpop.f32.mrf.mxu1 }
 0x669   :  { %v4590_v50 = vadd.f32 %v4589_v18, %v14384_v0  ;;  %v8296_v40 = vpop.eup %8295  ;;  %v5194_v17 = vmul.f32 0.5, %v4561_v12  ;;  %v5230_v18 = vmul.f32 0.5, %v5214_v39 }
 0x66b   :  { %v5195_v20 = vmul.f32 0.5, %v4590_v50  ;;  %v5246_v50 = vmul.f32 0.125, %v5230_v18 }
 0x66e   :  { %v4667_v42 = vpop.f32.mrf.mxu0 }
 0x66f   :  { %v4668_v53 = vadd.f32 %v4667_v42, %v14379_v31  ;;  %v12043_v48 = vpop.f32.mrf.mxu2  ;;  %v5219_v42 = vadd.f32 1.0, %v8294_v19 }
 0x670   :  { %v4696_v45 = vpop.f32.mrf.mxu1 }
 0x671   :  { %v12035_v22 = vclamps-f32 %v4668_v53, 50.0  ;;  %v4697_v38 = vadd.f32 %v4696_v45, %v14381_v23  ;;  %v5222_v45 = vadd.f32 1.0, %v8296_v40  ;;  %v5235_v12 = vmul.f32 0.5, %v5219_v42 }
 0x672   :  { %v12047_v5 = vpop.f32.mrf.mxu3 }
 0x673   :  { %v4846_v43 = vand.u32 2147483647, %v12035_v22  ;;  %v12039_v13 = vclamps-f32 %v4697_v38, 50.0  ;;  %v5251_v55 = vmul.f32 0.125, %v5235_v12  ;;  %vm4814_vm13 = vcmp.ne.f32.partialorder %v12035_v22, %v12035_v22 }
 0x675   :  { %v4862_v27 = vsub.f32 0.0, %v4846_v43  ;;  %v4847_v52 = vand.u32 2147483647, %v12039_v13  ;;  %v8298_v43 = vpop.eup %8297  ;;  %vm4815_vm15 = vcmp.ne.f32.partialorder %v12039_v13, %v12039_v13 }
 0x676   :  { %v4670_v44 = vpop.f32.mrf.mxu0 }
 0x677   :  { %v4878_v57 = vmul.f32 1.442695, %v4862_v27  ;;  %v4863_v62 = vsub.f32 0.0, %v4847_v52  ;;  %v4671_v24 = vadd.f32 %v4670_v44, %v14383_v10  ;;  %v12060_v19 = vpop.f32.mrf.mxu2  ;;  %v14388_v10 = vld [vmem:[#allocation7_spill] sm:$0xff] }
 0x678   :  { %v4699_v28 = vpop.f32.mrf.mxu1 }
 0x679   :  { %8299 = vpow2.f32 %v4878_v57  ;;  %v4880_v26 = vmul.f32 1.442695, %v4863_v62  ;;  %v12049_v21 = vclamps-f32 %v4671_v24, 50.0  ;;  %v4700_v11 = vadd.f32 %v4699_v28, %v14385_v35 }
 0x67a   :  { %v5238_v28 = vmul.f32 0.5, %v5222_v45  ;;  %v12067_v42 = vpop.f32.mrf.mxu3 }
 0x67b   :  { %8301 = vpow2.f32 %v4880_v26  ;;  %v4850_v53 = vand.u32 2147483647, %v12049_v21  ;;  %v12053_v47 = vclamps-f32 %v4700_v11, 50.0  ;;  %v5223_v26 = vadd.f32 1.0, %v8298_v43 }
 0x67c   :  { %8303 = vtanh.f32 %v5194_v17  ;;  %v5247_v11 = vmul.f32 0.125, %v5231_v16  ;;  %v5250_v17 = vmul.f32 0.125, %v5234_v54  ;;  %v12071_v16 = vadd.f32 %v11867_v32, %v5246_v50 }
 0x67d   :  { %v4866_v38 = vsub.f32 0.0, %v4850_v53  ;;  %v4851_v60 = vand.u32 2147483647, %v12053_v47  ;;  %8305 = vtanh.f32 %v5195_v20  ;;  %v5239_v18 = vmul.f32 0.5, %v5223_v26 }
 0x67e   :  { %v4673_v27 = vpop.f32.mrf.mxu0  ;;  %vm4818_vm4 = vcmp.ne.f32.partialorder %v12049_v21, %v12049_v21  ;;  %vm4819_vm5 = vcmp.ne.f32.partialorder %v12053_v47, %v12053_v47 }
 0x67f   :  { %v12056_v52 = vpop.eup %8299  ;;  %v4886_v44 = vmul.f32 1.442695, %v4866_v38  ;;  %v4674_v57 = vadd.f32 %v4673_v27, %v14386_v6  ;;  %v4867_v24 = vsub.f32 0.0, %v4851_v60  ;;  %v5254_v60 = vmul.f32 0.125, %v5238_v28  ;;  %v14387_v6 = vld [vmem:[#allocation30_spill] sm:$0xff] }
 0x680   :  { %v4910_v62 = vadd.f32 1.0, %v12056_v52  ;;  %v4913_v20 = vmul.f32 -0.5, %v12056_v52  ;;  %v4702_v45 = vpop.f32.mrf.mxu1  ;;  %v12074_v27 = vadd.f32 %v11879_v41, %v5247_v11  ;;  %v12088_v0 = vmul.f32 0.125, %v5239_v18 }
 0x681   :  { %v12062_v39 = vpop.eup %8301  ;;  %8307 = vpow2.f32 %v4886_v44  ;;  %v12065_v49 = vclamps-f32 %v4674_v57, 50.0  ;;  %v4888_v38 = vmul.f32 1.442695, %v4867_v24  ;;  %v12078_v44 = vadd.f32 %v11849_v36, %v5250_v17 }
 0x682   :  { %8309 = vlog2.f32 %v4910_v62  ;;  %v4919_v40 = vadd.f32 1.0, %v12062_v39  ;;  %v8304_v53 = vpop.eup %8303  ;;  %v12081_v57 = vadd.f32 %v11865_v4, %v5251_v55  ;;  %v4922_v24 = vmul.f32 -0.5, %v12062_v39 }
 0x683   :  { %v8306_v43 = vpop.eup %8305  ;;  %v4854_v54 = vand.u32 2147483647, %v12065_v49  ;;  %v5226_v62 = vadd.f32 1.0, %v8304_v53  ;;  %v4914_v26 = vadd.f32 1.0, %v4913_v20  ;;  %v4703_v11 = vadd.f32 %v4702_v45, %v14387_v6  ;;  %v12093_v20 = vpop.f32.mrf.mxu2 }
 0x684   :  { %8311 = vlog2.f32 %v4919_v40  ;;  %v4916_v17 = vand.u32 2147483647, %v12056_v52  ;;  %v4610_v53 = vadd.f32 %v12043_v48, %v14388_v10  ;;  %v5227_v58 = vadd.f32 1.0, %v8306_v43 }
 0x685   :  { %8313 = vpow2.f32 %v4888_v38  ;;  %v4870_v40 = vsub.f32 0.0, %v4854_v54  ;;  %v12086_v38 = vadd.f32 %v11807_v29, %v5254_v60  ;;  %v5242_v54 = vmul.f32 0.5, %v5226_v62 }
 0x686   :  { %v4798_v45 = vmax.f32 %v12035_v22, 0.0  ;;  %v4923_v60 = vadd.f32 1.0, %v4922_v24  ;;  %v4915_v18 = vmul.f32 %v12056_v52, %v4914_v26  ;;  %v12100_v2 = vclamps-f32 %v4703_v11, 50.0 }
 0x687   :  { %v8308_v12 = vpop.eup %8307  ;;  %v4894_v51 = vmul.f32 1.442695, %v4870_v40  ;;  %vm12102_vm14 = vcmp.lt.f32.partialorder %v4916_v17, 0.0004427343  ;;  %v12106_v40 = vpop.f32.mrf.mxu3  ;;  %v5184_v10 = vmul.f32 0.5, %v4610_v53  ;;  %v4799_v26 = vmax.f32 %v12039_v13, 0.0 }
 0x688   :  { %v8310_v28 = vpop.eup %8309  ;;  %v4946_v50 = vadd.f32 1.0, %v8308_v12  ;;  %v4949_v35 = vmul.f32 -0.5, %v8308_v12  ;;  %v4952_v23 = vand.u32 2147483647, %v8308_v12  ;;  %v14393_v17 = vld [vmem:[#allocation8_spill] sm:$0xff]  ;;  %vm4822_vm7 = vcmp.ne.f32.partialorder %v12065_v49, %v12065_v49 }
 0x689   :  { %v4912_v55 = vmul.f32 0.6931472, %v8310_v28  ;;  %v4925_v28 = vand.u32 2147483647, %v12062_v39  ;;  %v4855_v53 = vand.u32 2147483647, %v12100_v2  ;;  %vm4823_vm8 = vcmp.ne.f32.partialorder %v12100_v2, %v12100_v2 }
 0x68a   :  { %v8312_v9 = vpop.eup %8311  ;;  %8315 = vlog2.f32 %v4946_v50  ;;  %v4950_v43 = vadd.f32 1.0, %v4949_v35  ;;  %vm12125_vm1 = vcmp.lt.f32.partialorder %v4952_v23, 0.0004427343 }
 0x68b   :  { %v8314_v6 = vpop.eup %8313  ;;  %8317 = vpow2.f32 %v4894_v51  ;;  %v4921_v62 = vmul.f32 0.6931472, %v8312_v9  ;;  %v4918_v24 = vsel %vm12102_vm14, %v4915_v18, %v4912_v55  ;;  %v4924_v51 = vmul.f32 %v12062_v39, %v4923_v60 }
 0x68c   :  { %v4955_v50 = vadd.f32 1.0, %v8314_v6  ;;  %v4958_v52 = vmul.f32 -0.5, %v8314_v6  ;;  %v5243_v9 = vmul.f32 0.5, %v5227_v58  ;;  %vm12114_vm0 = vcmp.lt.f32.partialorder %v4925_v28, 0.0004427343 }
 0x68d   :  { %v4639_v55 = vadd.f32 %v12047_v5, %v14393_v17  ;;  %v5054_v18 = vadd.f32 %v4918_v24, %v4798_v45  ;;  %v4927_v48 = vsel %vm12114_vm0, %v4924_v51, %v4921_v62  ;;  %v4951_v31 = vmul.f32 %v8308_v12, %v4950_v43 }
 0x68e   :  { %8319 = vlog2.f32 %v4955_v50  ;;  %v5258_v39 = vmul.f32 0.125, %v5242_v54  ;;  %v4959_v60 = vadd.f32 1.0, %v4958_v52  ;;  %v4871_v28 = vsub.f32 0.0, %v4855_v53  ;;  %v4676_v50 = vpop.f32.mrf.mxu0  ;;  %v12133_v54 = vpop.f32.mrf.mxu2 }
 0x68f   :  { %8321 = vtanh.f32 %v5184_v10  ;;  %v4961_v45 = vand.u32 2147483647, %v8314_v6  ;;  %v5259_v62 = vmul.f32 0.125, %v5243_v9  ;;  %v5055_v51 = vadd.f32 %v4927_v48, %v4799_v26  ;;  %v14396_v10 = vld [vmem:[#allocation11_spill] sm:$0xff]  ;;  %v12145_v17 = vpop.f32.mrf.mxu3 }
 0x690   :  { %v8316_v11 = vpop.eup %8315  ;;  %v5185_v12 = vmul.f32 0.5, %v4639_v55  ;;  %v4802_v43 = vmax.f32 %v12049_v21, 0.0  ;;  %v5070_v52 = vsel %vm4814_vm13, %v12035_v22, %v5054_v18  ;;  %v4960_v26 = vmul.f32 %v8314_v6, %v4959_v60  ;;  %v4705_v55 = vpop.f32.mrf.mxu1 }
 0x691   :  { %v4948_v37 = vmul.f32 0.6931472, %v8316_v11  ;;  %v12123_v56 = vpop.eup %8317  ;;  %v4613_v11 = vadd.f32 %v12060_v19, %v14396_v10  ;;  %v4803_v48 = vmax.f32 %v12053_v47, 0.0  ;;  %vm4962_vm3 = vcmp.lt.f32.partialorder %v4961_v45, 0.0004427343  ;;  %v14399_v45 = vld [vmem:[#allocation34_spill] sm:$0xff] }
 0x692   :  { %v4982_v24 = vadd.f32 1.0, %v12123_v56  ;;  %v5086_v22 = vmul.f32 9.9, %v5070_v52  ;;  %v5071_v19 = vsel %vm4815_vm15, %v12039_v13, %v5055_v51  ;;  %v12154_v60 = vadd.f32 %v11840_v25, %v12088_v0 }
 0x693   :  { %v4954_v5 = vsel %vm12125_vm1, %v4951_v31, %v4948_v37  ;;  %v4896_v37 = vmul.f32 1.442695, %v4871_v28  ;;  %v14397_v31 = vld [vmem:[#allocation33_spill] sm:$0xff]  ;;  %v4985_v28 = vmul.f32 -0.5, %v12123_v56  ;;  %v12167_v52 = vadd.f32 %v11828_v46, %v5259_v62 }
 0x694   :  { %v8320_v23 = vpop.eup %8319  ;;  %v4677_v35 = vadd.f32 %v4676_v50, %v14397_v31  ;;  %v5058_v53 = vadd.f32 %v4954_v5, %v4802_v43  ;;  %8323 = vlog2.f32 %v4982_v24  ;;  %v14398_v50 = vld [vmem:[#allocation12_spill] sm:$0xff]  ;;  %v4706_v24 = vadd.f32 %v4705_v55, %v14399_v45 }
 0x695   :  { %v4957_v9 = vmul.f32 0.6931472, %v8320_v23  ;;  %8325 = vpow2.f32 %v4896_v37  ;;  %v8322_v6 = vpop.eup %8321  ;;  %v4642_v5 = vadd.f32 %v12067_v42, %v14398_v50  ;;  %v12162_v43 = vadd.f32 %v11797_v14, %v5258_v39 }
 0x696   :  { %v12143_v58 = vclamps-f32 %v4677_v35, 50.0  ;;  %v5074_v13 = vsel %vm4818_vm4, %v12049_v21, %v5058_v53  ;;  %v5087_v0 = vmul.f32 9.9, %v5071_v19  ;;  %8327 = vtanh.f32 %v5185_v12  ;;  %v4725_v19 = vpop.f32.mrf.mxu2 }
 0x697   :  { %v4963_v18 = vsel %vm4962_vm3, %v4960_v26, %v4957_v9  ;;  %v5188_v37 = vmul.f32 0.5, %v4613_v11  ;;  %v5102_v9 = vadd.f32 0.1, %v5086_v22  ;;  %v12169_v26 = vadd.f32 1.0, %v8322_v6  ;;  %v14401_v11 = vld [vmem:[#allocation15_spill] sm:$0xff]  ;;  %v14402_v6 = vld [vmem:[#allocation16_spill] sm:$0xff] }
 0x698   :  { %v5059_v51 = vadd.f32 %v4963_v18, %v4803_v48  ;;  %v4858_v23 = vand.u32 2147483647, %v12143_v58  ;;  %v4986_v42 = vadd.f32 1.0, %v4985_v28  ;;  %v5090_v39 = vmul.f32 9.9, %v5074_v13 }
 0x699   :  { %14400 = vst [vmem:[#allocation46_spill] sm:$0xff] %v12169_v26  ;;  %v5189_v21 = vmul.f32 0.5, %v4642_v5  ;;  %v12173_v53 = vclamps-f32 %v4706_v24, 50.0  ;;  %v4988_v48 = vand.u32 2147483647, %v12123_v56  ;;  %v4616_v22 = vadd.f32 %v12093_v20, %v14401_v11  ;;  %v4754_v11 = vpop.f32.mrf.mxu3 }
 0x69a   :  { %v8324_v35 = vpop.eup %8323  ;;  %v4874_v55 = vsub.f32 0.0, %v4858_v23  ;;  %v5075_v62 = vsel %vm4819_vm5, %v12053_v47, %v5059_v51  ;;  %v12179_v18 = vadd.f32 0.1, %v5087_v0  ;;  %8329 = vtanh.f32 %v5188_v37 }
 0x69b   :  { %v8326_v50 = vpop.eup %8325  ;;  %v4984_v28 = vmul.f32 0.6931472, %v8324_v35  ;;  %v4645_v13 = vadd.f32 %v12106_v40, %v14402_v6  ;;  %8331 = vrcp.f32 %v5102_v9  ;;  %v4987_v5 = vmul.f32 %v12123_v56, %v4986_v42 }
 0x69c   :  { %v4991_v12 = vadd.f32 1.0, %v8326_v50  ;;  %v4994_v24 = vmul.f32 -0.5, %v8326_v50  ;;  %v4902_v23 = vmul.f32 1.442695, %v4874_v55  ;;  %v8328_v47 = vpop.eup %8327  ;;  %v12184_v51 = vadd.f32 0.1, %v5090_v39 }
 0x69d   :  { %v5091_v10 = vmul.f32 9.9, %v5075_v62  ;;  %v4859_v20 = vand.u32 2147483647, %v12173_v53  ;;  %v4806_v0 = vmax.f32 %v12065_v49, 0.0  ;;  %v5192_v40 = vmul.f32 0.5, %v4616_v22 }
 0x69e   :  { %8333 = vlog2.f32 %v4991_v12  ;;  %vm12188_vm6 = vcmp.lt.f32.partialorder %v4988_v48, 0.0004427343  ;;  %v5193_v35 = vmul.f32 0.5, %v4645_v13  ;;  %v4995_v55 = vadd.f32 1.0, %v4994_v24  ;;  %v14405_v39 = vld [vmem:[#allocation23_spill] sm:$0xff]  ;;  %v14406_v12 = vld [vmem:[#allocation24_spill] sm:$0xff] }
 0x69f   :  { %8335 = vpow2.f32 %v4902_v23  ;;  %v4990_v56 = vsel %vm12188_vm6, %v4987_v5, %v4984_v28  ;;  %v4875_v42 = vsub.f32 0.0, %v4859_v20  ;;  %v4726_v62 = vadd.f32 %v4725_v19, %v14405_v39 }
 0x6a0   :  { %8337 = vrcp.f32 %v12179_v18  ;;  %v4755_v6 = vadd.f32 %v4754_v11, %v14406_v12  ;;  %v12197_v45 = vpop.eup %8329  ;;  %v12200_v48 = vadd.f32 0.1, %v5091_v10  ;;  %v4997_v22 = vand.u32 2147483647, %v8326_v50 }
 0x6a1   :  { %8339 = vtanh.f32 %v5189_v21  ;;  %14407 = vst [vmem:[#allocation38_spill] sm:$0xff] %v12197_v45  ;;  %v4904_v23 = vmul.f32 1.442695, %v4875_v42  ;;  %v12202_v31 = vpop.eup %8331  ;;  %v12204_v37 = vadd.f32 1.0, %v8328_v47  ;;  %v5062_v28 = vadd.f32 %v4990_v56, %v4806_v0  ;;  %v4728_v47 = vpop.f32.mrf.mxu2 }
 0x6a2   :  { %8341 = vrcp.f32 %v12184_v51  ;;  %v12206_v21 = vclamps-f32 %v4726_v62, 50.0  ;;  %v4807_v11 = vmax.f32 %v12100_v2, 0.0  ;;  %v4996_v5 = vmul.f32 %v8326_v50, %v4995_v55 }
 0x6a3   :  { %14408 = vst [vmem:[#allocation39_spill] sm:$0xff] %v12204_v37  ;;  %8343 = vtanh.f32 %v5192_v40  ;;  %v12213_v24 = vclamps-f32 %v4755_v6, 50.0  ;;  %v12218_v0 = vmul.f32 %v12202_v31, %v5102_v9  ;;  %vm4998_vm9 = vcmp.lt.f32.partialorder %v4997_v22, 0.0004427343 }
 0x6a4   :  { %v8334_v13 = vpop.eup %8333  ;;  %8345 = vtanh.f32 %v5193_v35  ;;  %v5078_v50 = vsel %vm4822_vm7, %v12065_v49, %v5062_v28  ;;  %v4848_v42 = vand.u32 2147483647, %v12206_v21  ;;  %v4810_v9 = vmax.f32 %v12143_v58, 0.0 }
 0x6a5   :  { %v8336_v10 = vpop.eup %8335  ;;  %v4993_v19 = vmul.f32 0.6931472, %v8334_v13  ;;  %8347 = vpow2.f32 %v4904_v23  ;;  %v14410_v23 = vld [vmem:[#allocation19_spill] sm:$0xff]  ;;  %v4757_v13 = vpop.f32.mrf.mxu3  ;;  %v4849_v28 = vand.u32 2147483647, %v12213_v24  ;;  %vm4826_vm10 = vcmp.ne.f32.partialorder %v12143_v58, %v12143_v58 }
 0x6a6   :  { %v12215_v20 = vpop.eup %8337  ;;  %8349 = vrcp.f32 %v12200_v48  ;;  %v5018_v40 = vadd.f32 1.0, %v8336_v10  ;;  %v5021_v6 = vmul.f32 -0.5, %v8336_v10  ;;  %v4619_v22 = vadd.f32 %v12133_v54, %v14410_v23 }
 0x6a7   :  { %v12221_v56 = vpop.eup %8339  ;;  %v4999_v35 = vsel %vm4998_vm9, %v4996_v5, %v4993_v19  ;;  %v12237_v39 = vmul.f32 %v12215_v20, %v12179_v18  ;;  %v4864_v49 = vsub.f32 0.0, %v4848_v42  ;;  %v14412_v19 = vld [vmem:[#allocation27_spill] sm:$0xff]  ;;  %v5024_v63 = vand.u32 2147483647, %v8336_v10 }
 0x6a8   :  { %14409 = vst [vmem:[#allocation41_spill] sm:$0xff] %v12221_v56  ;;  %v12228_v55 = vpop.eup %8341  ;;  %v5063_v62 = vadd.f32 %v4999_v35, %v4807_v11  ;;  %8351 = vlog2.f32 %v5018_v40  ;;  %v4729_v5 = vadd.f32 %v4728_v47, %v14412_v19  ;;  %v5094_v40 = vmul.f32 9.9, %v5078_v50  ;;  %v14414_v19 = vld [vmem:[#allocation28_spill] sm:$0xff] }
 0x6a9   :  { %v12233_v12 = vpop.eup %8343  ;;  %v12251_v18 = vmul.f32 %v12228_v55, %v12184_v51  ;;  %v5022_v47 = vadd.f32 1.0, %v5021_v6  ;;  %v4882_v42 = vmul.f32 1.442695, %v4864_v49  ;;  %v4758_v11 = vadd.f32 %v4757_v13, %v14414_v19  ;;  %v14415_v6 = vld [vmem:[#allocation20_spill] sm:$0xff]  ;;  %v4731_v33 = vpop.f32.mrf.mxu2 }
 0x6aa   :  { %14411 = vst [vmem:[#allocation48_spill] sm:$0xff] %v12233_v12  ;;  %v12241_v61 = vpop.eup %8345  ;;  %v5079_v54 = vsel %vm4823_vm8, %v12100_v2, %v5063_v62  ;;  %v4865_v2 = vsub.f32 0.0, %v4849_v28  ;;  %v12259_v15 = vclamps-f32 %v4729_v5, 50.0  ;;  %v5110_v7 = vadd.f32 0.1, %v5094_v40  ;;  %v14416_v40 = vld [vmem:[#allocation31_spill] sm:$0xff] }
 0x6ab   :  { %14413 = vst [vmem:[#allocation45_spill] sm:$0xff] %v12241_v61  ;;  %v8348_v23 = vpop.eup %8347  ;;  %v5095_v59 = vmul.f32 9.9, %v5079_v54  ;;  %8353 = vpow2.f32 %v4882_v42  ;;  %v5196_v1 = vmul.f32 0.5, %v4619_v22  ;;  %v4648_v49 = vadd.f32 %v12145_v17, %v14415_v6 }
 0x6ac   :  { %v12256_v50 = vpop.eup %8349  ;;  %v5027_v34 = vadd.f32 1.0, %v8348_v23  ;;  %v5030_v35 = vmul.f32 -0.5, %v8348_v23  ;;  %v5023_v19 = vmul.f32 %v8336_v10, %v5022_v47  ;;  %v4884_v3 = vmul.f32 1.442695, %v4865_v2 }
 0x6ad   :  { %v12263_v54 = vclamps-f32 %v4758_v11, 50.0  ;;  %v12268_v42 = vmul.f32 %v12256_v50, %v12200_v48  ;;  %v12270_v5 = vadd.f32 0.1, %v5095_v59  ;;  %vm5025_vm11 = vcmp.lt.f32.partialorder %v5024_v63, 0.0004427343 }
 0x6ae   :  { %v8352_v51 = vpop.eup %8351  ;;  %8355 = vlog2.f32 %v5027_v34  ;;  %vm4827_vm12 = vcmp.ne.f32.partialorder %v12173_v53, %v12173_v53  ;;  %v5031_v17 = vadd.f32 1.0, %v5030_v35  ;;  %v4852_v10 = vand.u32 2147483647, %v12259_v15 }
 0x6af   :  { %v5020_v13 = vmul.f32 0.6931472, %v8352_v51  ;;  %8357 = vpow2.f32 %v4884_v3  ;;  %v5033_v11 = vand.u32 2147483647, %v8348_v23  ;;  %v4732_v47 = vadd.f32 %v4731_v33, %v14416_v40 }
 0x6b0   :  { %8359 = vrcp.f32 %v5110_v7  ;;  %v5197_v48 = vmul.f32 0.5, %v4648_v49  ;;  %v4868_v51 = vsub.f32 0.0, %v4852_v10  ;;  %v4853_v59 = vand.u32 2147483647, %v12263_v54 }
 0x6b1   :  { %v5026_v34 = vsel %vm5025_vm11, %v5023_v19, %v5020_v13  ;;  %v8354_v2 = vpop.eup %8353  ;;  %8361 = vtanh.f32 %v5196_v1  ;;  %v4760_v1 = vpop.f32.mrf.mxu3  ;;  %vm5034_vm13 = vcmp.lt.f32.partialorder %v5033_v11, 0.0004427343  ;;  %v12284_v10 = vclamps-f32 %v4732_v47, 50.0  ;;  %v14419_v47 = vld [vmem:[#allocation32_spill] sm:$0xff] }
 0x6b2   :  { %v5066_v22 = vadd.f32 %v5026_v34, %v4810_v9  ;;  %v4928_v35 = vadd.f32 1.0, %v8354_v2  ;;  %v4931_v13 = vmul.f32 -0.5, %v8354_v2  ;;  %8363 = vrcp.f32 %v12270_v5  ;;  %v4734_v49 = vpop.f32.mrf.mxu2 }
 0x6b3   :  { %v5032_v34 = vmul.f32 %v8348_v23, %v5031_v17  ;;  %v14417_v6 = vmax.f32 %v12173_v53, 0.0  ;;  %vm4816_vm14 = vcmp.ne.f32.partialorder %v12206_v21, %v12206_v21  ;;  %vm4817_vm0 = vcmp.ne.f32.partialorder %v12213_v24, %v12213_v24 }
 0x6b4   :  { %v8356_v63 = vpop.eup %8355  ;;  %v5082_v19 = vsel %vm4826_vm10, %v12143_v58, %v5066_v22  ;;  %8365 = vlog2.f32 %v4928_v35  ;;  %v4890_v58 = vmul.f32 1.442695, %v4868_v51  ;;  %v4869_v22 = vsub.f32 0.0, %v4853_v59 }
 0x6b5   :  { %v5098_v9 = vmul.f32 9.9, %v5082_v19  ;;  %v5029_v33 = vmul.f32 0.6931472, %v8356_v63  ;;  %v8358_v62 = vpop.eup %8357  ;;  %8367 = vtanh.f32 %v5197_v48  ;;  %v4932_v63 = vadd.f32 1.0, %v4931_v13 }
 0x6b6   :  { %v12286_v3 = vpop.eup %8359  ;;  %v4937_v23 = vadd.f32 1.0, %v8358_v62  ;;  %v4940_v11 = vmul.f32 -0.5, %v8358_v62  ;;  %v4892_v19 = vmul.f32 1.442695, %v4869_v22  ;;  %v4761_v35 = vadd.f32 %v4760_v1, %v14419_v47 }
 0x6b7   :  { %v5114_v28 = vadd.f32 0.1, %v5098_v9  ;;  %v5035_v40 = vsel %vm5034_vm13, %v5032_v34, %v5029_v33  ;;  %v12290_v17 = vpop.eup %8361  ;;  %v4934_v59 = vand.u32 2147483647, %v8354_v2  ;;  %v12301_v48 = vmul.f32 %v12286_v3, %v5110_v7 }
 0x6b8   :  { %v5067_v56 = vadd.f32 %v5035_v40, %v14417_v6  ;;  %14418 = vst [vmem:[#allocation37_spill] sm:$0xff] %v12290_v17  ;;  %v4856_v6 = vand.u32 2147483647, %v12284_v10  ;;  %v12298_v40 = vpop.eup %8363  ;;  %v4801_v9 = vmax.f32 %v12213_v24, 0.0  ;;  %v4933_v34 = vmul.f32 %v8354_v2, %v4932_v63 }
 0x6b9   :  { %8369 = vrcp.f32 %v5114_v28  ;;  %v12307_v47 = vclamps-f32 %v4761_v35, 50.0  ;;  %vm12311_vm15 = vcmp.lt.f32.partialorder %v4934_v59, 0.0004427343  ;;  %v4763_v35 = vpop.f32.mrf.mxu3  ;;  %vm4820_vm3 = vcmp.ne.f32.partialorder %v12259_v15, %v12259_v15 }
 0x6ba   :  { %v5083_v51 = vsel %vm4827_vm12, %v12173_v53, %v5067_v56  ;;  %8371 = vlog2.f32 %v4937_v23  ;;  %v8366_v33 = vpop.eup %8365  ;;  %v4872_v53 = vsub.f32 0.0, %v4856_v6  ;;  %v4735_v56 = vadd.f32 %v4734_v49, %v14340_v8 }
 0x6bb   :  { %v5099_v13 = vmul.f32 9.9, %v5083_v51  ;;  %8373 = vpow2.f32 %v4890_v58  ;;  %v4930_v22 = vmul.f32 0.6931472, %v8366_v33  ;;  %v4941_v23 = vadd.f32 1.0, %v4940_v11  ;;  %v12309_v7 = vpop.eup %8367 }
 0x6bc   :  { %8375 = vpow2.f32 %v4892_v19  ;;  %14420 = vst [vmem:[#allocation47_spill] sm:$0xff] %v12309_v7  ;;  %v4943_v58 = vand.u32 2147483647, %v8358_v62  ;;  %v4898_v2 = vmul.f32 1.442695, %v4872_v53  ;;  %v5158_v49 = vsub.f32 2.0, %v12301_v48 }
 0x6bd   :  { %v5115_v1 = vadd.f32 0.1, %v5099_v13  ;;  %v4936_v11 = vsel %vm12311_vm15, %v4933_v34, %v4930_v22  ;;  %v12325_v6 = vmul.f32 %v12298_v40, %v12270_v5  ;;  %v12328_v33 = vclamps-f32 %v4735_v56, 50.0 }
 0x6be   :  { %v14423_v48 = vmax.f32 %v12206_v21, 0.0  ;;  %v4942_v51 = vmul.f32 %v8358_v62, %v4941_v23  ;;  %v4857_v34 = vand.u32 2147483647, %v12307_v47  ;;  %vm4944_vm1 = vcmp.lt.f32.partialorder %v4943_v58, 0.0004427343 }
 0x6bf   :  { %v12317_v63 = vpop.eup %8369  ;;  %8377 = vrcp.f32 %v5115_v1  ;;  %v4764_v5 = vadd.f32 %v4763_v35, %v14341_v30  ;;  %v4860_v58 = vand.u32 2147483647, %v12328_v33  ;;  %vm4821_vm5 = vcmp.ne.f32.partialorder %v12263_v54, %v12263_v54 }
 0x6c0   :  { %v8372_v59 = vpop.eup %8371  ;;  %8379 = vpow2.f32 %v4898_v2  ;;  %v5056_v8 = vadd.f32 %v4936_v11, %v14423_v48  ;;  %v5146_v45 = vmul.f32 %v12317_v63, %v5114_v28  ;;  %v4873_v23 = vsub.f32 0.0, %v4857_v34 }
 0x6c1   :  { %v8374_v53 = vpop.eup %8373  ;;  %v4939_v7 = vmul.f32 0.6931472, %v8372_v59  ;;  %vm4824_vm7 = vcmp.ne.f32.partialorder %v12284_v10, %v12284_v10  ;;  %vm4825_vm9 = vcmp.ne.f32.partialorder %v12307_v47, %v12307_v47  ;;  %vm4828_vm11 = vcmp.ne.f32.partialorder %v12328_v33, %v12328_v33 }
 0x6c2   :  { %v8376_v22 = vpop.eup %8375  ;;  %v4964_v19 = vadd.f32 1.0, %v8374_v53  ;;  %v4967_v61 = vmul.f32 -0.5, %v8374_v53  ;;  %v4970_v12 = vand.u32 2147483647, %v8374_v53  ;;  %v5072_v62 = vsel %vm4816_vm14, %v12206_v21, %v5056_v8 }
 0x6c3   :  { %v4945_v13 = vsel %vm4944_vm1, %v4942_v51, %v4939_v7  ;;  %v4973_v2 = vadd.f32 1.0, %v8376_v22  ;;  %v4976_v11 = vmul.f32 -0.5, %v8376_v22  ;;  %v4979_v48 = vand.u32 2147483647, %v8376_v22 }
 0x6c4   :  { %v5057_v17 = vadd.f32 %v4945_v13, %v4801_v9  ;;  %8381 = vlog2.f32 %v4964_v19  ;;  %v4968_v7 = vadd.f32 1.0, %v4967_v61  ;;  %v12341_v51 = vclamps-f32 %v4764_v5, 50.0 }
 0x6c5   :  { %v8378_v59 = vpop.eup %8377  ;;  %8383 = vlog2.f32 %v4973_v2  ;;  %v4977_v19 = vadd.f32 1.0, %v4976_v11  ;;  %v12350_v21 = vmul.f32 %v12286_v3, %v5158_v49  ;;  %v5162_v13 = vsub.f32 2.0, %v5146_v45 }
 0x6c6   :  { %v8380_v35 = vpop.eup %8379  ;;  %v5147_v28 = vmul.f32 %v8378_v59, %v5115_v1  ;;  %v5073_v9 = vsel %vm4817_vm0, %v12213_v24, %v5057_v17  ;;  %v5088_v34 = vmul.f32 9.9, %v5072_v62  ;;  %vm12352_vm4 = vcmp.lt.f32.partialorder %v4970_v12, 0.0004427343 }
 0x6c7   :  { %v5000_v8 = vadd.f32 1.0, %v8380_v35  ;;  %v5003_v1 = vmul.f32 -0.5, %v8380_v35  ;;  %v4900_v24 = vmul.f32 1.442695, %v4873_v23  ;;  %v4876_v17 = vsub.f32 0.0, %v4860_v58 }
 0x6c8   :  { %v5163_v5 = vsub.f32 2.0, %v5147_v28  ;;  %v5089_v11 = vmul.f32 9.9, %v5073_v9  ;;  %v4969_v56 = vmul.f32 %v8374_v53, %v4968_v7  ;;  %vm12358_vm6 = vcmp.lt.f32.partialorder %v4979_v48, 0.0004427343 }
 0x6c9   :  { %8385 = vlog2.f32 %v5000_v8  ;;  %v5006_v45 = vand.u32 2147483647, %v8380_v35  ;;  %v4978_v62 = vmul.f32 %v8376_v22, %v4977_v19  ;;  %v4906_v30 = vmul.f32 1.442695, %v4876_v17 }
 0x6ca   :  { %v8382_v2 = vpop.eup %8381  ;;  %v4861_v37 = vand.u32 2147483647, %v12341_v51  ;;  %v5004_v23 = vadd.f32 1.0, %v5003_v1  ;;  %8387 = vpow2.f32 %v4900_v24  ;;  %v5178_v58 = vmul.f32 %v12317_v63, %v5162_v13 }
 0x6cb   :  { %v8384_v12 = vpop.eup %8383  ;;  %v4966_v49 = vmul.f32 0.6931472, %v8382_v2  ;;  %8389 = vpow2.f32 %v4906_v30  ;;  %v5179_v7 = vmul.f32 %v8378_v59, %v5163_v5  ;;  %v12368_v48 = vadd.f32 0.1, %v5088_v34 }
 0x6cc   :  { %v4975_v26 = vmul.f32 0.6931472, %v8384_v12  ;;  %v4877_v28 = vsub.f32 0.0, %v4861_v37  ;;  %v14428_v22 = vmax.f32 %v12259_v15, 0.0  ;;  %v5290_v8 = vmul.f32 0.125, %v5178_v58 }
 0x6cd   :  { %v4972_v53 = vsel %vm12352_vm4, %v4969_v56, %v4966_v49  ;;  %v12374_v1 = vadd.f32 0.1, %v5089_v11  ;;  %v14429_v63 = vmax.f32 %v12263_v54, 0.0  ;;  %vm12378_vm8 = vcmp.lt.f32.partialorder %v5006_v45, 0.0004427343 }
 0x6ce   :  { %v5060_v9 = vadd.f32 %v4972_v53, %v14428_v22  ;;  %v4981_v19 = vsel %vm12358_vm6, %v4978_v62, %v4975_v26  ;;  %v4908_v30 = vmul.f32 1.442695, %v4877_v28  ;;  %v5005_v34 = vmul.f32 %v8380_v35, %v5004_v23 }
 0x6cf   :  { %v8386_v17 = vpop.eup %8385  ;;  %v5061_v13 = vadd.f32 %v4981_v19, %v14429_v63  ;;  %v5306_v26 = vmul.f32 %v11797_v14, %v5290_v8  ;;  %v5291_v24 = vmul.f32 0.125, %v5179_v7  ;;  %v14432_v14 = vmax.f32 %v12284_v10, 0.0 }
 0x6d0   :  { %v5076_v37 = vsel %vm4820_vm3, %v12259_v15, %v5060_v9  ;;  %v5002_v59 = vmul.f32 0.6931472, %v8386_v17  ;;  %8391 = vpow2.f32 %v4908_v30  ;;  %v8388_v2 = vpop.eup %8387  ;;  %v4809_v53 = vmax.f32 %v12307_v47, 0.0 }
 0x6d1   :  { %v5092_v61 = vmul.f32 9.9, %v5076_v37  ;;  %v5077_v5 = vsel %vm4821_vm5, %v12263_v54, %v5061_v13  ;;  %8393 = vrcp.f32 %v12368_v48  ;;  %v5322_v15 = vsub.f32 %v12162_v43, %v5306_v26  ;;  %v8390_v35 = vpop.eup %8389 }
 0x6d2   :  { %v5093_v11 = vmul.f32 9.9, %v5077_v5  ;;  %v5008_v3 = vsel %vm12378_vm8, %v5005_v34, %v5002_v59  ;;  %v5009_v49 = vadd.f32 1.0, %v8388_v2  ;;  %v5012_v62 = vmul.f32 -0.5, %v8388_v2 }
 0x6d3   :  { %v12395_v45 = vadd.f32 0.1, %v5092_v61  ;;  %v5064_v12 = vadd.f32 %v5008_v3, %v14432_v14  ;;  %v5159_v54 = vsub.f32 2.0, %v12325_v6  ;;  %8395 = vrcp.f32 %v12374_v1 }
 0x6d4   :  { %v12401_v23 = vadd.f32 0.1, %v5093_v11  ;;  %v5036_v58 = vadd.f32 1.0, %v8390_v35  ;;  %v5307_v28 = vmul.f32 %v11828_v46, %v5291_v24  ;;  %v5039_v6 = vmul.f32 -0.5, %v8390_v35 }
 0x6d5   :  { %8397 = vrcp.f32 %v12395_v45  ;;  %v5080_v43 = vsel %vm4824_vm7, %v12284_v10, %v5064_v12  ;;  %v5286_v22 = vmul.f32 0.125, %v12350_v21  ;;  %v5013_v19 = vadd.f32 1.0, %v5012_v62 }
 0x6d6   :  { %8399 = vrcp.f32 %v12401_v23  ;;  %v5096_v7 = vmul.f32 9.9, %v5080_v43  ;;  %v12412_v9 = vpop.eup %8391  ;;  %v5015_v8 = vand.u32 2147483647, %v8388_v2  ;;  %v12414_v17 = vclamps-f32 %v5322_v15, 100.0 }
 0x6d7   :  { %8401 = vlog2.f32 %v5009_v49  ;;  %v12416_v63 = vpop.eup %8393  ;;  %v4812_v10 = vmax.f32 %v12328_v33, 0.0  ;;  %v4813_v46 = vmax.f32 %v12341_v51, 0.0  ;;  %v5045_v13 = vadd.f32 1.0, %v12412_v9 }
 0x6d8   :  { %8403 = vlog2.f32 %v5036_v58  ;;  %v12421_v56 = vadd.f32 0.1, %v5096_v7  ;;  %v5042_v30 = vand.u32 2147483647, %v8390_v35  ;;  %v5048_v21 = vmul.f32 -0.5, %v12412_v9  ;;  %5370 = vmatpush.msra.mxu0 %v12414_v17 }
 0x6d9   :  { %v5323_v37 = vsub.f32 %v12167_v52, %v5307_v28  ;;  %v12426_v59 = vpop.eup %8395  ;;  %v5040_v34 = vadd.f32 1.0, %v5039_v6  ;;  %v5302_v26 = vmul.f32 %v11807_v29, %v5286_v22  ;;  %v5175_v61 = vmul.f32 %v12298_v40, %v5159_v54 }
 0x6da   :  { %v14433_v5 = vsub.f32 2.0, %v12251_v18  ;;  %v5014_v3 = vmul.f32 %v8388_v2, %v5013_v19  ;;  %vm12437_vm10 = vcmp.lt.f32.partialorder %v5015_v8, 0.0004427343  ;;  %8405 = vlog2.f32 %v5045_v13 }
 0x6db   :  { %v12435_v11 = vpop.eup %8397  ;;  %v12443_v52 = vclamps-f32 %v5323_v37, 100.0  ;;  %v5049_v40 = vadd.f32 1.0, %v5048_v21  ;;  %v5318_v18 = vsub.f32 %v12086_v38, %v5302_v26  ;;  %v5287_v14 = vmul.f32 0.125, %v5175_v61 }
 0x6dc   :  { %v5170_v24 = vmul.f32 %v12228_v55, %v14433_v5  ;;  %v12445_v29 = vpop.eup %8399  ;;  %8407 = vrcp.f32 %v12421_v56  ;;  %vm12449_vm12 = vcmp.lt.f32.partialorder %v5042_v30, 0.0004427343  ;;  %v14438_v49 = vsub.f32 2.0, %v12268_v42 }
 0x6dd   :  { %v8402_v12 = vpop.eup %8401  ;;  %5399 = vmatpush.msra.mxu1 %v12443_v52  ;;  %v14439_v54 = vsub.f32 2.0, %v12218_v0  ;;  %v5041_v28 = vmul.f32 %v8390_v35, %v5040_v34  ;;  %v12460_v7 = vclamps-f32 %v5318_v18, 100.0  ;;  %v5303_v6 = vmul.f32 %v11840_v25, %v5287_v14 }
 0x6de   :  { %v5282_v55 = vmul.f32 0.125, %v5170_v24  ;;  %v5171_v62 = vmul.f32 %v12256_v50, %v14438_v49  ;;  %v8404_v38 = vpop.eup %8403  ;;  %v5011_v43 = vmul.f32 0.6931472, %v8402_v12  ;;  %v5051_v19 = vand.u32 2147483647, %v12412_v9  ;;  %v14442_v12 = vld [vmem:[#allocation46_spill] sm:$0xff] }
 0x6df   :  { %v5166_v58 = vmul.f32 %v12202_v31, %v14439_v54  ;;  %v5038_v22 = vmul.f32 0.6931472, %v8404_v38  ;;  %v5050_v0 = vmul.f32 %v12412_v9, %v5049_v40  ;;  %5371 = vmatpush.msra.mxu0 %v12460_v7  ;;  %v5319_v31 = vsub.f32 %v12154_v60, %v5303_v6 }
 0x6e0   :  { %v5298_v8 = vmul.f32 %v11849_v36, %v5282_v55  ;;  %v5283_v13 = vmul.f32 0.125, %v5171_v62  ;;  %v5017_v50 = vsel %vm12437_vm10, %v5014_v3, %v5011_v43  ;;  %v8406_v35 = vpop.eup %8405  ;;  %v14440_v36 = vsub.f32 2.0, %v12237_v39  ;;  %v14446_v43 = vld [vmem:[#allocation37_spill] sm:$0xff] }
 0x6e1   :  { %v5278_v42 = vmul.f32 0.125, %v5166_v58  ;;  %v5065_v30 = vadd.f32 %v5017_v50, %v4809_v53  ;;  %v5044_v25 = vsel %vm12449_vm12, %v5041_v28, %v5038_v22  ;;  %v5047_v26 = vmul.f32 0.6931472, %v8406_v35  ;;  %v14447_v22 = vld [vmem:[#allocation38_spill] sm:$0xff]  ;;  %v14448_v50 = vld [vmem:[#allocation45_spill] sm:$0xff] }
 0x6e2   :  { %v5314_v21 = vsub.f32 %v12078_v44, %v5298_v8  ;;  %v5167_v37 = vmul.f32 %v12215_v20, %v14440_v36  ;;  %v5068_v34 = vadd.f32 %v5044_v25, %v4812_v10  ;;  %v12476_v61 = vclamps-f32 %v5319_v31, 100.0  ;;  %v8408_v5 = vpop.eup %8407  ;;  %v14449_v25 = vld [vmem:[#allocation47_spill] sm:$0xff] }
 0x6e3   :  { %v5299_v9 = vmul.f32 %v11865_v4, %v5283_v13  ;;  %v5081_v60 = vsel %vm4825_vm9, %v12307_v47, %v5065_v30  ;;  %vm5052_vm13 = vcmp.lt.f32.partialorder %v5051_v19, 0.0004427343  ;;  %v5294_v44 = vmul.f32 %v11867_v32, %v5278_v42 }
 0x6e4   :  { %v12483_v53 = vclamps-f32 %v5314_v21, 100.0  ;;  %v5097_v39 = vmul.f32 9.9, %v5081_v60  ;;  %v5084_v20 = vsel %vm4828_vm11, %v12328_v33, %v5068_v34  ;;  %v5053_v10 = vsel %vm5052_vm13, %v5050_v0, %v5047_v26  ;;  %5400 = vmatpush.msra.mxu1 %v12476_v61 }
 0x6e5   :  { %v5315_v4 = vsub.f32 %v12081_v57, %v5299_v9  ;;  %v5100_v24 = vmul.f32 9.9, %v5084_v20  ;;  %v5069_v47 = vadd.f32 %v5053_v10, %v4813_v46  ;;  %v5310_v3 = vsub.f32 %v12071_v16, %v5294_v44  ;;  %v14450_v44 = vld [vmem:[#allocation41_spill] sm:$0xff] }
 0x6e6   :  { %5372 = vmatpush.msra.mxu0 %v12483_v53  ;;  %v5279_v32 = vmul.f32 0.125, %v5167_v37  ;;  %v5144_v15 = vmul.f32 %v8408_v5, %v12421_v56  ;;  %v5113_v40 = vadd.f32 0.1, %v5097_v39  ;;  %vm4829_vm14 = vcmp.ne.f32.partialorder %v12341_v51, %v12341_v51 }
 0x6e7   :  { %v12499_v33 = vclamps-f32 %v5315_v4, 100.0  ;;  %v5116_v18 = vadd.f32 0.1, %v5100_v24  ;;  %v5085_v57 = vsel %vm4829_vm14, %v12341_v51, %v5069_v47  ;;  %v12502_v14 = vclamps-f32 %v5310_v3, 100.0  ;;  %v12550_v47 = vld [vmem:[%s13770_s1 + $0x8] sm:$0xff] }
 0x6e8   :  { %v5295_v46 = vmul.f32 %v11879_v41, %v5279_v32  ;;  %v5140_v55 = vmul.f32 %v12435_v11, %v12395_v45  ;;  %8409 = vrcp.f32 %v5113_v40  ;;  %v5101_v16 = vmul.f32 9.9, %v5085_v57  ;;  %v12516_v41 = vld [vmem:[%s13770_s1] sm:$0xff]  ;;  %v14443_v45 = vld [vmem:[#allocation39_spill] sm:$0xff] }
 0x6e9   :  { %14441 = vst [vmem:[#allocation49_spill] sm:$0xff] %v12502_v14  ;;  %5401 = vmatpush.msra.mxu1 %v12499_v33  ;;  %8411 = vrcp.f32 %v5116_v18  ;;  %5373 = vmatpush.msra.mxu0 %v12502_v14  ;;  %v5232_v2 = vmul.f32 0.5, %v14442_v12  ;;  %v5136_v51 = vmul.f32 %v12416_v63, %v12368_v48  ;;  %v5160_v49 = vsub.f32 2.0, %v5144_v15  ;;  %v14445_v48 = vld [vmem:[#allocation48_spill] sm:$0xff] }
 0x6ea   :  { %v5311_v56 = vsub.f32 %v12074_v27, %v5295_v46  ;;  %v5117_v62 = vadd.f32 0.1, %v5101_v16  ;;  %7525 = vmatmul.msk.f32.vlgmr.msra.gmra.mxu0 %vm389_vm2, %v12516_v41  ;;  %v5233_v54 = vmul.f32 0.5, %v14443_v45  ;;  %v5141_v27 = vmul.f32 %v12445_v29, %v12401_v23 }
 0x6eb   :  { %5486 = vmatpush.msrb.mxu0 %v12414_v17  ;;  %v5224_v38 = vadd.f32 1.0, %v14445_v48  ;;  %v5228_v28 = vadd.f32 1.0, %v14446_v43  ;;  %v5156_v6 = vsub.f32 2.0, %v5140_v55  ;;  %v5220_v19 = vadd.f32 1.0, %v14447_v22 }
 0x6ec   :  { %v12523_v58 = vclamps-f32 %v5311_v56, 100.0  ;;  %8413 = vrcp.f32 %v5117_v62  ;;  %v5137_v8 = vmul.f32 %v12426_v59, %v12374_v1  ;;  %v12533_v13 = vmul.f32 0.125, %v5232_v2 }
 0x6ed   :  { %5487 = vmatpush.msrb.mxu0 %v12460_v7  ;;  %v5225_v0 = vadd.f32 1.0, %v14448_v50  ;;  %v5152_v31 = vsub.f32 2.0, %v5136_v51  ;;  %v5176_v42 = vmul.f32 %v8408_v5, %v5160_v49  ;;  %v12538_v30 = vmul.f32 0.125, %v5233_v54  ;;  %v14454_v50 = vld [vmem:[#allocation44_spill] sm:$0xff] }
 0x6ee   :  { %14444 = vst [vmem:[#allocation46_spill] sm:$0xff] %v12523_v58  ;;  %5402 = vmatpush.msra.mxu1 %v12523_v58  ;;  %v8410_v23 = vpop.eup %8409  ;;  %v5229_v21 = vadd.f32 1.0, %v14449_v25  ;;  %v5157_v1 = vsub.f32 2.0, %v5141_v27  ;;  %v5240_v37 = vmul.f32 0.5, %v5224_v38  ;;  %v5244_v34 = vmul.f32 0.5, %v5228_v28  ;;  %v14452_v28 = vld [vmem:[#allocation52_spill] sm:$0xff] }
 0x6ef   :  { %7529 = vmatmul.msk.f32.vlgmr.msra.gmra.mxu1 %vm389_vm2, %v12516_v41  ;;  %v8412_v35 = vpop.eup %8411  ;;  %v5145_v36 = vmul.f32 %v8410_v23, %v5113_v40  ;;  %5488 = vmatpush.msrb.mxu0 %v12483_v53  ;;  %v5172_v9 = vmul.f32 %v12435_v11, %v5156_v6  ;;  %v5236_v60 = vmul.f32 0.5, %v5220_v19  ;;  %v5221_v39 = vadd.f32 1.0, %v14450_v44  ;;  %v14453_v19 = vld [vmem:[#allocation42_spill] sm:$0xff] }
 0x6f0   :  { %5515 = vmatpush.msrb.mxu1 %v12443_v52  ;;  %v5148_v26 = vmul.f32 %v8412_v35, %v5116_v18  ;;  %v5153_v5 = vsub.f32 2.0, %v5137_v8  ;;  %v5241_v4 = vmul.f32 0.5, %v5225_v0  ;;  %v5288_v11 = vmul.f32 0.125, %v5176_v42 }
 0x6f1   :  { %v5161_v20 = vsub.f32 2.0, %v5145_v36  ;;  %5489 = vmatpush.msrb.mxu0 %v12502_v14  ;;  %v5168_v3 = vmul.f32 %v12416_v63, %v5152_v31  ;;  %v5245_v32 = vmul.f32 0.5, %v5229_v21  ;;  %v5173_v18 = vmul.f32 %v12445_v29, %v5157_v1  ;;  %v14455_v1 = vld [vmem:[#allocation51_spill] sm:$0xff] }
 0x6f2   :  { %5516 = vmatpush.msrb.mxu1 %v12476_v61  ;;  %v8414_v10 = vpop.eup %8413  ;;  %v5164_v24 = vsub.f32 2.0, %v5148_v26  ;;  %7526 = vmatmul.msk.f32.gmra.mxu0 %vm389_vm2, %v12550_v47  ;;  %v5256_v57 = vmul.f32 0.125, %v5240_v37  ;;  %v5260_v46 = vmul.f32 0.125, %v5244_v34  ;;  %v5284_v16 = vmul.f32 0.125, %v5172_v9  ;;  %v14456_v34 = vld [vmem:[#allocation50_spill] sm:$0xff] }
 0x6f3   :  { %v5149_v15 = vmul.f32 %v8414_v10, %v5117_v62  ;;  %v5177_v40 = vmul.f32 %v8410_v23, %v5161_v20  ;;  %v5237_v56 = vmul.f32 0.5, %v5221_v39  ;;  %v5169_v51 = vmul.f32 %v12426_v59, %v5153_v5  ;;  %v14451_v62 = vld [vmem:[#allocation40_spill] sm:$0xff] }
 0x6f4   :  { %5517 = vmatpush.msrb.mxu1 %v12499_v33  ;;  %v5180_v55 = vmul.f32 %v8412_v35, %v5164_v24  ;;  %v5252_v49 = vmul.f32 0.125, %v5236_v60  ;;  %v5304_v45 = vmul.f32 %v14451_v62, %v5288_v11  ;;  %v5280_v54 = vmul.f32 0.125, %v5168_v3  ;;  %v8721_v35 = vld [vmem:[%s13770_s1 + $0x10] sm:$0xff]  ;;  %v14457_v60 = vld [vmem:[#allocation53_spill] sm:$0xff]  ;;  %v14459_v11 = vld [vmem:[#allocation43_spill] sm:$0xff] }
 0x6f5   :  { %v5165_v12 = vsub.f32 2.0, %v5149_v15  ;;  %v5289_v2 = vmul.f32 0.125, %v5177_v40  ;;  %v5257_v29 = vmul.f32 0.125, %v5241_v4  ;;  %v5261_v27 = vmul.f32 0.125, %v5245_v32 }
 0x6f6   :  { %5518 = vmatpush.msrb.mxu1 %v12523_v58  ;;  %v5292_v63 = vmul.f32 0.125, %v5180_v55  ;;  %v5285_v38 = vmul.f32 0.125, %v5173_v18  ;;  %v5272_v43 = vadd.f32 %v14451_v62, %v5256_v57  ;;  %v5276_v6 = vadd.f32 %v14452_v28, %v5260_v46 }
 0x6f7   :  { %7530 = vmatmul.msk.f32.gmra.mxu1 %vm389_vm2, %v12550_v47  ;;  %v5181_v48 = vmul.f32 %v8414_v10, %v5165_v12  ;;  %v5300_v59 = vmul.f32 %v14453_v19, %v5284_v16  ;;  %v5253_v8 = vmul.f32 0.125, %v5237_v56  ;;  %v5305_v0 = vmul.f32 %v14454_v50, %v5289_v2  ;;  %v8722_v16 = vld [vmem:[%s13770_s1 + $0x18] sm:$0xff]  ;;  %v8723_v2 = vld [vmem:[%s13771_s2] sm:$0xff] }
 0x6f8   :  { %v5308_v22 = vmul.f32 %v14452_v28, %v5292_v63  ;;  %v5281_v31 = vmul.f32 0.125, %v5169_v51  ;;  %v5268_v42 = vadd.f32 %v14453_v19, %v5252_v49  ;;  %v5320_v21 = vsub.f32 %v5272_v43, %v5304_v45  ;;  %v8725_v51 = vld [vmem:[%s13771_s2 + $0x10] sm:$0xff]  ;;  %v14469_v19 = vld [vmem:[#allocation21_spill] sm:$0xff] }
 0x6f9   :  { %v5293_v23 = vmul.f32 0.125, %v5181_v48  ;;  %v5296_v36 = vmul.f32 %v14455_v1, %v5280_v54  ;;  %v5273_v37 = vadd.f32 %v14454_v50, %v5257_v29  ;;  %v5277_v26 = vadd.f32 %v14456_v34, %v5261_v27  ;;  %v14470_v50 = vld [vmem:[#allocation9_spill] sm:$0xff] }
 0x6fa   :  { %7527 = vmatmul.msk.f32.gmra.mxu0 %vm389_vm2, %v8721_v35  ;;  %v5324_v25 = vsub.f32 %v5276_v6, %v5308_v22  ;;  %v5301_v44 = vmul.f32 %v14457_v60, %v5285_v38  ;;  %v5264_v39 = vadd.f32 %v14455_v1, %v12533_v13  ;;  %v5316_v20 = vsub.f32 %v5268_v42, %v5300_v59  ;;  %v14467_v38 = vld [vmem:[#allocation5_spill] sm:$0xff]  ;;  %v14468_v6 = vld [vmem:[#allocation6_spill] sm:$0xff] }
 0x6fb   :  { %v5309_v9 = vmul.f32 %v14456_v34, %v5293_v23  ;;  %v5269_v10 = vadd.f32 %v14457_v60, %v5253_v8  ;;  %v5321_v24 = vsub.f32 %v5273_v37, %v5305_v0  ;;  %v5297_v3 = vmul.f32 %v14459_v11, %v5281_v31  ;;  %v14472_v1 = vld [vmem:[#allocation10_spill] sm:$0xff] }
 0x6fc   :  { %v12579_v5 = vclamps-f32 %v5324_v25, 100.0  ;;  %v12585_v32 = vclamps-f32 %v5320_v21, 100.0  ;;  %v5312_v15 = vsub.f32 %v5264_v39, %v5296_v36  ;;  %v5265_v40 = vadd.f32 %v14459_v11, %v12538_v30  ;;  %v14471_v25 = vld [vmem:[#allocation22_spill] sm:$0xff]  ;;  %v14473_v39 = vld [vmem:[#allocation13_spill] sm:$0xff] }
 0x6fd   :  { %v5325_v4 = vsub.f32 %v5277_v26, %v5309_v9  ;;  %v5317_v18 = vsub.f32 %v5269_v10, %v5301_v44  ;;  %v12592_v57 = vclamps-f32 %v5316_v20, 100.0  ;;  %v12595_v46 = vclamps-f32 %v5321_v24, 100.0 }
 0x6fe   :  { %14458 = vst [vmem:[#allocation39_spill] sm:$0xff] %v12579_v5  ;;  %5428 = vmatpush.msra.mxu2 %v12579_v5  ;;  %v5313_v55 = vsub.f32 %v5265_v40, %v5297_v3  ;;  %v12602_v30 = vclamps-f32 %v5312_v15, 100.0  ;;  %v14475_v3 = vld [vmem:[#allocation25_spill] sm:$0xff] }
 0x6ff   :  { %7531 = vmatmul.msk.f32.gmra.mxu1 %vm389_vm2, %v8721_v35  ;;  %14460 = vst [vmem:[#allocation48_spill] sm:$0xff] %v12585_v32  ;;  %v12589_v13 = vclamps-f32 %v5325_v4, 100.0  ;;  %v12605_v56 = vclamps-f32 %v5317_v18, 100.0  ;;  %v14474_v4 = vld [vmem:[#allocation14_spill] sm:$0xff]  ;;  %v14476_v40 = vld [vmem:[#allocation17_spill] sm:$0xff] }
 0x700   :  { %5429 = vmatpush.msra.mxu2 %v12585_v32  ;;  %14462 = vst [vmem:[#allocation38_spill] sm:$0xff] %v12592_v57  ;;  %v12609_v12 = vclamps-f32 %v5313_v55, 100.0 }
 0x701   :  { %14461 = vst [vmem:[#allocation37_spill] sm:$0xff] %v12589_v13  ;;  %5457 = vmatpush.msra.mxu3 %v12589_v13 }
 0x702   :  { %14463 = vst [vmem:[#allocation45_spill] sm:$0xff] %v12595_v46  ;;  %7528 = vmatmul.msk.f32.gmra.mxu0 %vm389_vm2, %v8722_v16  ;;  %5430 = vmatpush.msra.mxu2 %v12592_v57 }
 0x703   :  { %14464 = vst [vmem:[#allocation47_spill] sm:$0xff] %v12602_v30  ;;  %5458 = vmatpush.msra.mxu3 %v12595_v46 }
 0x704   :  { %14465 = vst [vmem:[#allocation41_spill] sm:$0xff] %v12605_v56  ;;  %5431 = vmatpush.msra.mxu2 %v12602_v30 }
 0x705   :  { %5459 = vmatpush.msra.mxu3 %v12605_v56  ;;  %14466 = vst [vmem:[#allocation40_spill] sm:$0xff] %v12609_v12  ;;  %7533 = vmatmul.msk.f32.vlgmr.msra.gmra.mxu2 %vm389_vm2, %v12516_v41 }
 0x706   :  { %5544 = vmatpush.msrb.mxu2 %v12579_v5 }
 0x707   :  { %7532 = vmatmul.msk.f32.gmra.mxu1 %vm389_vm2, %v8722_v16  ;;  %5460 = vmatpush.msra.mxu3 %v12609_v12 }
 0x708   :  { %7537 = vmatmul.msk.f32.vlgmr.msra.gmra.mxu3 %vm389_vm2, %v12516_v41  ;;  %5545 = vmatpush.msrb.mxu2 %v12585_v32  ;;  %v8724_v41 = vld [vmem:[%s13771_s2 + $0x8] sm:$0xff] }
 0x709   :  { %5573 = vmatpush.msrb.mxu3 %v12589_v13  ;;  %v14511_v13 = vld [vmem:[#allocation28_spill] sm:$0xff] }
 0x70a   :  { %7541 = vmatmul.msk.f32.vlgmr.msrb.gmra.mxu0 %vm389_vm2, %v8723_v2  ;;  %5546 = vmatpush.msrb.mxu2 %v12592_v57 }
 0x70b   :  { %5574 = vmatpush.msrb.mxu3 %v12595_v46  ;;  %v14512_v46 = vld [vmem:[#allocation31_spill] sm:$0xff] }
 0x70c   :  { %5547 = vmatpush.msrb.mxu2 %v12602_v30 }
 0x70d   :  { %5575 = vmatpush.msrb.mxu3 %v12605_v56  ;;  %7534 = vmatmul.msk.f32.gmra.mxu2 %vm389_vm2, %v12550_v47 }
 0x70f   :  { %7545 = vmatmul.msk.f32.vlgmr.msrb.gmra.mxu1 %vm389_vm2, %v8723_v2  ;;  %5576 = vmatpush.msrb.mxu3 %v12609_v12 }
 0x710   :  { %7538 = vmatmul.msk.f32.gmra.mxu3 %vm389_vm2, %v12550_v47  ;;  %v8726_v47 = vld [vmem:[%s13771_s2 + $0x18] sm:$0xff] }
 0x712   :  { %7542 = vmatmul.msk.f32.gmra.mxu0 %vm389_vm2, %v8724_v41 }
 0x715   :  { %7535 = vmatmul.msk.f32.gmra.mxu2 %vm389_vm2, %v8721_v35 }
 0x717   :  { %7546 = vmatmul.msk.f32.gmra.mxu1 %vm389_vm2, %v8724_v41 }
 0x718   :  { %7539 = vmatmul.msk.f32.gmra.mxu3 %vm389_vm2, %v8721_v35 }
 0x71a   :  { %7543 = vmatmul.msk.f32.gmra.mxu0 %vm389_vm2, %v8725_v51 }
 0x71d   :  { %7536 = vmatmul.msk.f32.gmra.mxu2 %vm389_vm2, %v8722_v16 }
 0x71f   :  { %7547 = vmatmul.msk.f32.gmra.mxu1 %vm389_vm2, %v8725_v51 }
 0x720   :  { %7540 = vmatmul.msk.f32.gmra.mxu3 %vm389_vm2, %v8722_v16 }
 0x722   :  { %7544 = vmatmul.msk.f32.gmra.mxu0 %vm389_vm2, %v8726_v47 }
 0x725   :  { %7549 = vmatmul.msk.f32.vlgmr.msrb.gmra.mxu2 %vm389_vm2, %v8723_v2 }
 0x727   :  { %7548 = vmatmul.msk.f32.gmra.mxu1 %vm389_vm2, %v8726_v47 }
 0x728   :  { %7553 = vmatmul.msk.f32.vlgmr.msrb.gmra.mxu3 %vm389_vm2, %v8723_v2 }
 0x72d   :  { %7550 = vmatmul.msk.f32.gmra.mxu2 %vm389_vm2, %v8724_v41 }
 0x730   :  { %7554 = vmatmul.msk.f32.gmra.mxu3 %vm389_vm2, %v8724_v41 }
 0x735   :  { %7551 = vmatmul.msk.f32.gmra.mxu2 %vm389_vm2, %v8725_v51 }
 0x738   :  { %7555 = vmatmul.msk.f32.gmra.mxu3 %vm389_vm2, %v8725_v51 }
 0x73d   :  { %7552 = vmatmul.msk.f32.gmra.mxu2 %vm389_vm2, %v8726_v47 }
 0x740   :  { %7556 = vmatmul.msk.f32.gmra.mxu3 %vm389_vm2, %v8726_v47  ;;  %v14477_v47 = vld [vmem:[#allocation26_spill] sm:$0xff] }
 0x767   :  { %v5375_v49 = vpop.f32.mrf.mxu0 }
 0x768   :  { %v5376_v43 = vadd.f32 %v5375_v49, %v14467_v38 }
 0x76a   :  { %v6006_v8 = vmul.f32 0.5, %v5376_v43 }
 0x76c   :  { %v5404_v63 = vpop.f32.mrf.mxu1  ;;  %8415 = vtanh.f32 %v6006_v8 }
 0x76d   :  { %v5405_v22 = vadd.f32 %v5404_v63, %v14468_v6 }
 0x76f   :  { %v5378_v62 = vpop.f32.mrf.mxu0  ;;  %v6007_v42 = vmul.f32 0.5, %v5405_v22 }
 0x770   :  { %v5379_v0 = vadd.f32 %v5378_v62, %v14470_v50 }
 0x771   :  { %8417 = vtanh.f32 %v6007_v42 }
 0x772   :  { %v6010_v26 = vmul.f32 0.5, %v5379_v0  ;;  %v8416_v2 = vpop.eup %8415 }
 0x774   :  { %v5407_v45 = vpop.f32.mrf.mxu1 }
 0x775   :  { %v5408_v36 = vadd.f32 %v5407_v45, %v14472_v1 }
 0x777   :  { %v5381_v54 = vpop.f32.mrf.mxu0  ;;  %v6011_v44 = vmul.f32 0.5, %v5408_v36  ;;  %v8418_v62 = vpop.eup %8417 }
 0x778   :  { %v5382_v20 = vadd.f32 %v5381_v54, %v14473_v39  ;;  %v14478_v54 = vld [vmem:[#allocation18_spill] sm:$0xff]  ;;  %v6039_v42 = vadd.f32 1.0, %v8418_v62 }
 0x77a   :  { %v6014_v63 = vmul.f32 0.5, %v5382_v20 }
 0x77c   :  { %v5410_v29 = vpop.f32.mrf.mxu1 }
 0x77d   :  { %v5411_v24 = vadd.f32 %v5410_v29, %v14474_v4 }
 0x77f   :  { %v5384_v27 = vpop.f32.mrf.mxu0  ;;  %v6015_v45 = vmul.f32 0.5, %v5411_v24 }
 0x780   :  { %v5385_v18 = vadd.f32 %v5384_v27, %v14476_v40 }
 0x782   :  { %v6018_v27 = vmul.f32 0.5, %v5385_v18  ;;  %v14480_v18 = vld [vmem:[#allocation30_spill] sm:$0xff] }
 0x784   :  { %v5413_v48 = vpop.f32.mrf.mxu1 }
 0x785   :  { %v5414_v29 = vadd.f32 %v5413_v48, %v14478_v54 }
 0x787   :  { %v5491_v28 = vpop.f32.mrf.mxu0  ;;  %v6019_v48 = vmul.f32 0.5, %v5414_v29 }
 0x788   :  { %v5492_v59 = vadd.f32 %v5491_v28, %v14469_v19  ;;  %v12677_v16 = vpop.f32.mrf.mxu2  ;;  %v6038_v28 = vadd.f32 1.0, %v8416_v2  ;;  %v6055_v2 = vmul.f32 0.5, %v6039_v42 }
 0x78a   :  { %v12664_v23 = vclamps-f32 %v5492_v59, 50.0 }
 0x78b   :  { %v12688_v0 = vpop.f32.mrf.mxu3 }
 0x78c   :  { %v5520_v31 = vpop.f32.mrf.mxu1  ;;  %v5670_v35 = vand.u32 2147483647, %v12664_v23  ;;  %vm5638_vm1 = vcmp.ne.f32.partialorder %v12664_v23, %v12664_v23 }
 0x78d   :  { %v5521_v21 = vadd.f32 %v5520_v31, %v14471_v25 }
 0x78e   :  { %v5686_v37 = vsub.f32 0.0, %v5670_v35 }
 0x78f   :  { %v12670_v34 = vclamps-f32 %v5521_v21, 50.0  ;;  %v5494_v10 = vpop.f32.mrf.mxu0 }
 0x790   :  { %v5702_v9 = vmul.f32 1.442695, %v5686_v37  ;;  %v5495_v15 = vadd.f32 %v5494_v10, %v14475_v3  ;;  %v12693_v10 = vpop.f32.mrf.mxu2 }
 0x791   :  { %v5671_v60 = vand.u32 2147483647, %v12670_v34  ;;  %vm5639_vm3 = vcmp.ne.f32.partialorder %v12670_v34, %v12670_v34 }
 0x792   :  { %8419 = vpow2.f32 %v5702_v9  ;;  %v12679_v51 = vclamps-f32 %v5495_v15, 50.0  ;;  %v6054_v9 = vmul.f32 0.5, %v6038_v28 }
 0x793   :  { %v5687_v11 = vsub.f32 0.0, %v5671_v60  ;;  %8421 = vtanh.f32 %v6010_v26  ;;  %v14479_v60 = vld [vmem:[#allocation29_spill] sm:$0xff] }
 0x794   :  { %v5523_v55 = vpop.f32.mrf.mxu1  ;;  %8423 = vtanh.f32 %v6011_v44  ;;  %v5674_v43 = vand.u32 2147483647, %v12679_v51  ;;  %v6070_v29 = vmul.f32 0.125, %v6054_v9  ;;  %vm5642_vm5 = vcmp.ne.f32.partialorder %v12679_v51, %v12679_v51 }
 0x795   :  { %v5704_v41 = vmul.f32 1.442695, %v5687_v11  ;;  %v5524_v49 = vadd.f32 %v5523_v55, %v14477_v47 }
 0x796   :  { %v5690_v8 = vsub.f32 0.0, %v5674_v43  ;;  %v12712_v9 = vadd.f32 %v12502_v14, %v6070_v29 }
 0x797   :  { %8425 = vpow2.f32 %v5704_v41  ;;  %v12684_v22 = vclamps-f32 %v5524_v49, 50.0  ;;  %v5497_v21 = vpop.f32.mrf.mxu0 }
 0x798   :  { %v12686_v59 = vpop.eup %8419  ;;  %8427 = vtanh.f32 %v6014_v63  ;;  %v5710_v36 = vmul.f32 1.442695, %v5690_v8  ;;  %v5498_v44 = vadd.f32 %v5497_v21, %v14479_v60  ;;  %14481 = vst [vmem:[#allocation52_spill] sm:$0xff] %v12712_v9  ;;  %v12715_v60 = vpop.f32.mrf.mxu2 }
 0x799   :  { %v8422_v31 = vpop.eup %8421  ;;  %v5734_v35 = vadd.f32 1.0, %v12686_v59  ;;  %8429 = vtanh.f32 %v6015_v45  ;;  %v5675_v37 = vand.u32 2147483647, %v12684_v22  ;;  %v5737_v8 = vmul.f32 -0.5, %v12686_v59 }
 0x79a   :  { %v8424_v26 = vpop.eup %8423  ;;  %8431 = vtanh.f32 %v6018_v27  ;;  %v6042_v11 = vadd.f32 1.0, %v8422_v31  ;;  %v12699_v63 = vclamps-f32 %v5498_v44, 50.0  ;;  %v12709_v44 = vpop.f32.mrf.mxu3  ;;  %v5740_v40 = vand.u32 2147483647, %v12686_v59 }
 0x79b   :  { %8433 = vpow2.f32 %v5710_v36  ;;  %v5691_v15 = vsub.f32 0.0, %v5675_v37  ;;  %v6043_v43 = vadd.f32 1.0, %v8424_v26  ;;  %vm5643_vm8 = vcmp.ne.f32.partialorder %v12684_v22, %v12684_v22 }
 0x79c   :  { %v5526_v20 = vpop.f32.mrf.mxu1  ;;  %8435 = vlog2.f32 %v5734_v35  ;;  %v6058_v27 = vmul.f32 0.5, %v6042_v11  ;;  %v5678_v31 = vand.u32 2147483647, %v12699_v63  ;;  %v6071_v35 = vmul.f32 0.125, %v6055_v2 }
 0x79d   :  { %v12695_v24 = vpop.eup %8425  ;;  %v5527_v55 = vadd.f32 %v5526_v20, %v14480_v18  ;;  %8437 = vtanh.f32 %v6019_v48  ;;  %v5712_v49 = vmul.f32 1.442695, %v5691_v15  ;;  %v6059_v20 = vmul.f32 0.5, %v6043_v43 }
 0x79e   :  { %v5743_v41 = vadd.f32 1.0, %v12695_v24  ;;  %v8428_v45 = vpop.eup %8427  ;;  %v5746_v21 = vmul.f32 -0.5, %v12695_v24  ;;  %v5694_v36 = vsub.f32 0.0, %v5678_v31  ;;  %v12718_v54 = vadd.f32 %v12523_v58, %v6071_v35 }
 0x79f   :  { %v12701_v62 = vclamps-f32 %v5527_v55, 50.0  ;;  %v8430_v28 = vpop.eup %8429  ;;  %v6046_v11 = vadd.f32 1.0, %v8428_v45  ;;  %v5749_v43 = vand.u32 2147483647, %v12695_v24  ;;  %vm12729_vm15 = vcmp.lt.f32.partialorder %v5740_v40, 0.0004427343 }
 0x7a0   :  { %8439 = vlog2.f32 %v5743_v41  ;;  %v8432_v42 = vpop.eup %8431  ;;  %v6074_v41 = vmul.f32 0.125, %v6058_v27  ;;  %v6047_v2 = vadd.f32 1.0, %v8430_v28  ;;  %v5718_v18 = vmul.f32 1.442695, %v5694_v36  ;;  %14482 = vst [vmem:[#allocation42_spill] sm:$0xff] %v12718_v54 }
 0x7a1   :  { %8441 = vpow2.f32 %v5712_v49  ;;  %v12706_v48 = vpop.eup %8433  ;;  %v5679_v37 = vand.u32 2147483647, %v12701_v62  ;;  %v5738_v49 = vadd.f32 1.0, %v5737_v8  ;;  %v6050_v47 = vadd.f32 1.0, %v8432_v42 }
 0x7a2   :  { %v8436_v26 = vpop.eup %8435  ;;  %v5770_v15 = vadd.f32 1.0, %v12706_v48  ;;  %v5747_v29 = vadd.f32 1.0, %v5746_v21  ;;  %8443 = vpow2.f32 %v5718_v18  ;;  %v6075_v28 = vmul.f32 0.125, %v6059_v20 }
 0x7a3   :  { %v8438_v55 = vpop.eup %8437  ;;  %v5736_v45 = vmul.f32 0.6931472, %v8436_v26  ;;  %v5695_v27 = vsub.f32 0.0, %v5679_v37  ;;  %v6062_v8 = vmul.f32 0.5, %v6046_v11  ;;  %v12725_v4 = vadd.f32 %v12483_v53, %v6074_v41  ;;  %v5500_v37 = vpop.f32.mrf.mxu0 }
 0x7a4   :  { %8445 = vlog2.f32 %v5770_v15  ;;  %v6063_v35 = vmul.f32 0.5, %v6047_v2  ;;  %v5739_v42 = vmul.f32 %v12686_v59, %v5738_v49  ;;  %v6066_v21 = vmul.f32 0.5, %v6050_v47 }
 0x7a5   :  { %v6051_v1 = vadd.f32 1.0, %v8438_v55  ;;  %v5748_v18 = vmul.f32 %v12695_v24, %v5747_v29  ;;  %vm12736_vm0 = vcmp.lt.f32.partialorder %v5749_v43, 0.0004427343  ;;  %v5773_v59 = vmul.f32 -0.5, %v12706_v48 }
 0x7a6   :  { %v8440_v31 = vpop.eup %8439  ;;  %v5742_v20 = vsel %vm12729_vm15, %v5739_v42, %v5736_v45  ;;  %v5720_v15 = vmul.f32 1.442695, %v5695_v27  ;;  %v12742_v47 = vadd.f32 %v12499_v33, %v6075_v28  ;;  %v6078_v40 = vmul.f32 0.125, %v6062_v8  ;;  %v12751_v45 = vpop.f32.mrf.mxu3 }
 0x7a7   :  { %v12721_v3 = vpop.eup %8441  ;;  %v5745_v36 = vmul.f32 0.6931472, %v8440_v31  ;;  %v5622_v55 = vmax.f32 %v12664_v23, 0.0  ;;  %v6079_v2 = vmul.f32 0.125, %v6063_v35  ;;  %v5623_v49 = vmax.f32 %v12670_v34, 0.0  ;;  %v14488_v31 = vld [vmem:[#allocation33_spill] sm:$0xff] }
 0x7a8   :  { %v5779_v39 = vadd.f32 1.0, %v12721_v3  ;;  %14487 = vst [vmem:[#allocation44_spill] sm:$0xff] %v12742_v47  ;;  %v12747_v41 = vpop.eup %8443  ;;  %v5501_v29 = vadd.f32 %v5500_v37, %v14488_v31  ;;  %v6082_v27 = vmul.f32 0.125, %v6066_v21  ;;  %v6067_v28 = vmul.f32 0.5, %v6051_v1 }
 0x7a9   :  { %v5751_v24 = vsel %vm12736_vm0, %v5748_v18, %v5745_v36  ;;  %v5878_v42 = vadd.f32 %v5742_v20, %v5622_v55  ;;  %v5806_v8 = vadd.f32 1.0, %v12747_v41  ;;  %v5774_v50 = vadd.f32 1.0, %v5773_v59  ;;  %v12755_v18 = vpop.f32.mrf.mxu2  ;;  %v5529_v20 = vpop.f32.mrf.mxu1 }
 0x7aa   :  { %8447 = vlog2.f32 %v5779_v39  ;;  %v8446_v43 = vpop.eup %8445  ;;  %v5879_v26 = vadd.f32 %v5751_v24, %v5623_v49  ;;  %v5782_v36 = vmul.f32 -0.5, %v12721_v3  ;;  %v12758_v35 = vadd.f32 %v12460_v7, %v6078_v40  ;;  %v14489_v40 = vld [vmem:[#allocation7_spill] sm:$0xff] }
 0x7ab   :  { %8449 = vpow2.f32 %v5720_v15  ;;  %v5776_v39 = vand.u32 2147483647, %v12706_v48  ;;  %v12764_v1 = vadd.f32 %v12476_v61, %v6079_v2  ;;  %v5772_v21 = vmul.f32 0.6931472, %v8446_v43 }
 0x7ac   :  { %8451 = vlog2.f32 %v5806_v8  ;;  %v12768_v37 = vclamps-f32 %v5501_v29, 50.0  ;;  %v12771_v11 = vadd.f32 %v12414_v17, %v6082_v27  ;;  %v12773_v59 = vmul.f32 0.125, %v6067_v28  ;;  %v14492_v27 = vld [vmem:[#allocation8_spill] sm:$0xff] }
 0x7ad   :  { %v5894_v15 = vsel %vm5638_vm1, %v12664_v23, %v5878_v42  ;;  %v5434_v55 = vadd.f32 %v12677_v16, %v14489_v40  ;;  %v5895_v2 = vsel %vm5639_vm3, %v12670_v34, %v5879_v26  ;;  %v5775_v49 = vmul.f32 %v12706_v48, %v5774_v50  ;;  %v14493_v42 = vld [vmem:[#allocation34_spill] sm:$0xff] }
 0x7ae   :  { %v5783_v8 = vadd.f32 1.0, %v5782_v36  ;;  %v5809_v29 = vmul.f32 -0.5, %v12747_v41  ;;  %vm12781_vm4 = vcmp.lt.f32.partialorder %v5776_v39, 0.0004427343  ;;  %v12787_v28 = vadd.f32 %v12688_v0, %v14492_v27 }
 0x7af   :  { %v5682_v23 = vand.u32 2147483647, %v12768_v37  ;;  %v5530_v16 = vadd.f32 %v5529_v20, %v14493_v42  ;;  %v5910_v31 = vmul.f32 9.9, %v5894_v15  ;;  %v5626_v34 = vmax.f32 %v12679_v51, 0.0  ;;  %v12797_v42 = vpop.f32.mrf.mxu3 }
 0x7b0   :  { %v8448_v24 = vpop.eup %8447  ;;  %v5778_v50 = vsel %vm12781_vm4, %v5775_v49, %v5772_v21  ;;  %v5785_v48 = vand.u32 2147483647, %v12721_v3  ;;  %v5911_v36 = vmul.f32 9.9, %v5895_v2  ;;  %v6008_v25 = vmul.f32 0.5, %v5434_v55 }
 0x7b1   :  { %v8450_v40 = vpop.eup %8449  ;;  %v5781_v39 = vmul.f32 0.6931472, %v8448_v24  ;;  %v5784_v0 = vmul.f32 %v12721_v3, %v5783_v8  ;;  %v5810_v27 = vadd.f32 1.0, %v5809_v29  ;;  %v5812_v19 = vand.u32 2147483647, %v12747_v41  ;;  %v5549_v24 = vpop.f32.mrf.mxu2 }
 0x7b2   :  { %v8452_v26 = vpop.eup %8451  ;;  %v5815_v6 = vadd.f32 1.0, %v8450_v40  ;;  %v5818_v20 = vmul.f32 -0.5, %v8450_v40  ;;  %v5882_v15 = vadd.f32 %v5778_v50, %v5626_v34  ;;  %v5698_v38 = vsub.f32 0.0, %v5682_v23 }
 0x7b3   :  { %v12799_v43 = vclamps-f32 %v5530_v16, 50.0  ;;  %v12801_v21 = vadd.f32 0.1, %v5910_v31  ;;  %vm12805_vm6 = vcmp.lt.f32.partialorder %v5785_v48, 0.0004427343  ;;  %v5627_v49 = vmax.f32 %v12684_v22, 0.0 }
 0x7b4   :  { %8453 = vlog2.f32 %v5815_v6  ;;  %v5808_v3 = vmul.f32 0.6931472, %v8452_v26  ;;  %v5927_v2 = vadd.f32 0.1, %v5911_v36  ;;  %v5787_v6 = vsel %vm12805_vm6, %v5784_v0, %v5781_v39  ;;  %v14498_v16 = vld [vmem:[#allocation11_spill] sm:$0xff] }
 0x7b5   :  { %v5726_v8 = vmul.f32 1.442695, %v5698_v38  ;;  %v5811_v29 = vmul.f32 %v12747_v41, %v5810_v27  ;;  %vm12813_vm7 = vcmp.lt.f32.partialorder %v5812_v19, 0.0004427343  ;;  %v5819_v23 = vadd.f32 1.0, %v5818_v20 }
 0x7b6   :  { %v5437_v34 = vadd.f32 %v12693_v10, %v14498_v16  ;;  %v5898_v50 = vsel %vm5642_vm5, %v12679_v51, %v5882_v15  ;;  %v5821_v48 = vand.u32 2147483647, %v8450_v40  ;;  %v5683_v26 = vand.u32 2147483647, %v12799_v43  ;;  %v14499_v10 = vld [vmem:[#allocation12_spill] sm:$0xff] }
 0x7b7   :  { %8455 = vpow2.f32 %v5726_v8  ;;  %v5883_v38 = vadd.f32 %v5787_v6, %v5627_v49  ;;  %v5814_v19 = vsel %vm12813_vm7, %v5811_v29, %v5808_v3  ;;  %v5630_v27 = vmax.f32 %v12699_v63, 0.0  ;;  %v14500_v29 = vld [vmem:[#allocation23_spill] sm:$0xff] }
 0x7b8   :  { %8457 = vrcp.f32 %v12801_v21  ;;  %v5466_v51 = vadd.f32 %v12709_v44, %v14499_v10  ;;  %v5699_v36 = vsub.f32 0.0, %v5683_v26  ;;  %v5914_v39 = vmul.f32 9.9, %v5898_v50  ;;  %v5578_v44 = vpop.f32.mrf.mxu3 }
 0x7b9   :  { %8459 = vrcp.f32 %v5927_v2  ;;  %v5820_v20 = vmul.f32 %v8450_v40, %v5819_v23  ;;  %v6012_v15 = vmul.f32 0.5, %v5437_v34  ;;  %v5886_v55 = vadd.f32 %v5814_v19, %v5630_v27 }
 0x7ba   :  { %v8454_v41 = vpop.eup %8453  ;;  %v5631_v8 = vmax.f32 %v12701_v62, 0.0  ;;  %vm5822_vm9 = vcmp.lt.f32.partialorder %v5821_v48, 0.0004427343  ;;  %v5728_v49 = vmul.f32 1.442695, %v5699_v36  ;;  %v5899_v3 = vsel %vm5643_vm8, %v12684_v22, %v5883_v38  ;;  %v5552_v22 = vpop.f32.mrf.mxu2 }
 0x7bb   :  { %v5817_v0 = vmul.f32 0.6931472, %v8454_v41  ;;  %8461 = vtanh.f32 %v6008_v25  ;;  %v5550_v31 = vadd.f32 %v5549_v24, %v14500_v29  ;;  %v12837_v40 = vadd.f32 %v12443_v52, %v12773_v59 }
 0x7bc   :  { %v6013_v34 = vmul.f32 0.5, %v5466_v51  ;;  %8463 = vpow2.f32 %v5728_v49  ;;  %v5930_v48 = vadd.f32 0.1, %v5914_v39  ;;  %vm5646_vm10 = vcmp.ne.f32.partialorder %v12699_v63, %v12699_v63  ;;  %v14502_v39 = vld [vmem:[#allocation15_spill] sm:$0xff] }
 0x7bd   :  { %v5823_v6 = vsel %vm5822_vm9, %v5820_v20, %v5817_v0  ;;  %v8456_v26 = vpop.eup %8455  ;;  %vm5647_vm11 = vcmp.ne.f32.partialorder %v12701_v62, %v12701_v62  ;;  %v5915_v38 = vmul.f32 9.9, %v5899_v3  ;;  %v5902_v59 = vsel %vm5646_vm10, %v12699_v63, %v5886_v55  ;;  %v14503_v20 = vld [vmem:[#allocation24_spill] sm:$0xff] }
 0x7be   :  { %v5887_v23 = vadd.f32 %v5823_v6, %v5631_v8  ;;  %v12839_v50 = vpop.eup %8457  ;;  %v5842_v25 = vadd.f32 1.0, %v8456_v26  ;;  %8465 = vtanh.f32 %v6012_v15  ;;  %v5845_v19 = vmul.f32 -0.5, %v8456_v26 }
 0x7bf   :  { %v12845_v24 = vpop.eup %8459  ;;  %v12849_v41 = vmul.f32 0.5, %v12787_v28  ;;  %v12852_v51 = vclamps-f32 %v5550_v31, 50.0  ;;  %v5634_v36 = vmax.f32 %v12768_v37, 0.0  ;;  %v5440_v0 = vadd.f32 %v12715_v60, %v14502_v39  ;;  %v14507_v39 = vld [vmem:[#allocation16_spill] sm:$0xff] }
 0x7c0   :  { %v5903_v27 = vsel %vm5647_vm11, %v12701_v62, %v5887_v23  ;;  %8467 = vlog2.f32 %v5842_v25  ;;  %v5579_v8 = vadd.f32 %v5578_v44, %v14503_v20  ;;  %v12862_v63 = vmul.f32 %v12839_v50, %v12801_v21  ;;  %v14505_v23 = vld [vmem:[#allocation27_spill] sm:$0xff]  ;;  %v5581_v29 = vpop.f32.mrf.mxu3 }
 0x7c1   :  { %14501 = vst [vmem:[#allocation51_spill] sm:$0xff] %v12849_v41  ;;  %8469 = vtanh.f32 %v6013_v34  ;;  %v12858_v49 = vpop.eup %8461  ;;  %v12865_v28 = vmul.f32 %v12845_v24, %v5927_v2  ;;  %v5918_v62 = vmul.f32 9.9, %v5902_v59  ;;  %v12867_v55 = vadd.f32 0.1, %v5915_v38 }
 0x7c2   :  { %14504 = vst [vmem:[#allocation50_spill] sm:$0xff] %v12858_v49  ;;  %8471 = vrcp.f32 %v5930_v48  ;;  %v8464_v15 = vpop.eup %8463  ;;  %v5919_v3 = vmul.f32 9.9, %v5903_v27  ;;  %vm5650_vm12 = vcmp.ne.f32.partialorder %v12768_v37, %v12768_v37  ;;  %v5846_v60 = vadd.f32 1.0, %v5845_v19 }
 0x7c3   :  { %v5848_v6 = vand.u32 2147483647, %v8456_v26  ;;  %v5851_v31 = vadd.f32 1.0, %v8464_v15  ;;  %v5672_v44 = vand.u32 2147483647, %v12852_v51  ;;  %v5553_v21 = vadd.f32 %v5552_v22, %v14505_v23 }
 0x7c4   :  { %v12873_v34 = vpop.eup %8465  ;;  %v5854_v2 = vmul.f32 -0.5, %v8464_v15  ;;  %v6016_v25 = vmul.f32 0.5, %v5440_v0  ;;  %v5469_v59 = vadd.f32 %v12751_v45, %v14507_v39  ;;  %v12877_v38 = vclamps-f32 %v5579_v8, 50.0 }
 0x7c5   :  { %14506 = vst [vmem:[#allocation53_spill] sm:$0xff] %v12873_v34  ;;  %v12881_v10 = vadd.f32 0.1, %v5918_v62  ;;  %8473 = vlog2.f32 %v5851_v31  ;;  %v12886_v22 = vadd.f32 0.1, %v5919_v3  ;;  %v5847_v23 = vmul.f32 %v8456_v26, %v5846_v60  ;;  %v5555_v62 = vpop.f32.mrf.mxu2  ;;  %v14509_v60 = vld [vmem:[#allocation19_spill] sm:$0xff] }
 0x7c6   :  { %v8468_v27 = vpop.eup %8467  ;;  %8475 = vrcp.f32 %v12867_v55  ;;  %vm5849_vm13 = vcmp.lt.f32.partialorder %v5848_v6, 0.0004427343  ;;  %v5635_v8 = vmax.f32 %v12799_v43, 0.0  ;;  %v5688_v20 = vsub.f32 0.0, %v5672_v44 }
 0x7c7   :  { %v12883_v16 = vpop.eup %8469  ;;  %v5844_v0 = vmul.f32 0.6931472, %v8468_v27  ;;  %v12891_v39 = vclamps-f32 %v5553_v21, 50.0  ;;  %v5855_v31 = vadd.f32 1.0, %v5854_v2  ;;  %8477 = vtanh.f32 %v6016_v25  ;;  %v14510_v2 = vld [vmem:[#allocation20_spill] sm:$0xff] }
 0x7c8   :  { %14508 = vst [vmem:[#allocation43_spill] sm:$0xff] %v12883_v16  ;;  %v12888_v45 = vpop.eup %8471  ;;  %v5673_v12 = vand.u32 2147483647, %v12877_v38  ;;  %8479 = vrcp.f32 %v12881_v10  ;;  %v5857_v56 = vand.u32 2147483647, %v8464_v15  ;;  %v5443_v6 = vadd.f32 %v12755_v18, %v14509_v60 }
 0x7c9   :  { %v5850_v19 = vsel %vm5849_vm13, %v5847_v23, %v5844_v0  ;;  %v5706_v27 = vmul.f32 1.442695, %v5688_v20  ;;  %v12896_v26 = vmul.f32 %v12888_v45, %v5930_v48  ;;  %8481 = vrcp.f32 %v12886_v22 }
 0x7ca   :  { %v5890_v3 = vadd.f32 %v5850_v19, %v5634_v36  ;;  %v5689_v44 = vsub.f32 0.0, %v5673_v12  ;;  %v5472_v36 = vadd.f32 %v12797_v42, %v14510_v2  ;;  %v5676_v20 = vand.u32 2147483647, %v12891_v39 }
 0x7cb   :  { %v8474_v21 = vpop.eup %8473  ;;  %8483 = vpow2.f32 %v5706_v27  ;;  %v5856_v0 = vmul.f32 %v8464_v15, %v5855_v31  ;;  %v5582_v18 = vadd.f32 %v5581_v29, %v14511_v13  ;;  %vm5858_vm14 = vcmp.lt.f32.partialorder %v5857_v56, 0.0004427343  ;;  %v5584_v29 = vpop.f32.mrf.mxu3 }
 0x7cc   :  { %v5906_v23 = vsel %vm5650_vm12, %v12768_v37, %v5890_v3  ;;  %v12908_v48 = vpop.eup %8475  ;;  %v5853_v19 = vmul.f32 0.6931472, %v8474_v21  ;;  %v5708_v12 = vmul.f32 1.442695, %v5689_v44  ;;  %v5692_v60 = vsub.f32 0.0, %v5676_v20 }
 0x7cd   :  { %v5922_v25 = vmul.f32 9.9, %v5906_v23  ;;  %v5556_v30 = vadd.f32 %v5555_v62, %v14512_v46  ;;  %v12912_v57 = vpop.eup %8477  ;;  %v6020_v42 = vmul.f32 0.5, %v5443_v6  ;;  %v12914_v27 = vclamps-f32 %v5582_v18, 50.0 }
 0x7ce   :  { %14513 = vst [vmem:[#allocation54_spill] sm:$0xff] %v12912_v57  ;;  %v5859_v3 = vsel %vm5858_vm14, %v5856_v0, %v5853_v19  ;;  %v12916_v2 = vpop.eup %8479  ;;  %8485 = vpow2.f32 %v5708_v12  ;;  %v5714_v21 = vmul.f32 1.442695, %v5692_v60  ;;  %vm5651_vm15 = vcmp.ne.f32.partialorder %v12799_v43, %v12799_v43  ;;  %v14516_v19 = vld [vmem:[#allocation32_spill] sm:$0xff] }
 0x7cf   :  { %v5938_v37 = vadd.f32 0.1, %v5922_v25  ;;  %v5891_v5 = vadd.f32 %v5859_v3, %v5635_v8  ;;  %v12918_v15 = vclamps-f32 %v5556_v30, 50.0  ;;  %v12920_v56 = vpop.eup %8481  ;;  %v12924_v62 = vmul.f32 0.5, %v5469_v59  ;;  %v5558_v30 = vpop.f32.mrf.mxu2 }
 0x7d0   :  { %v5677_v31 = vand.u32 2147483647, %v12914_v27  ;;  %v12929_v23 = vmul.f32 0.5, %v5472_v36  ;;  %v12933_v60 = vmul.f32 %v12908_v48, %v12867_v55  ;;  %v5585_v59 = vadd.f32 %v5584_v29, %v14516_v19 }
 0x7d1   :  { %8487 = vrcp.f32 %v5938_v37  ;;  %14514 = vst [vmem:[#allocation55_spill] sm:$0xff] %v12924_v62  ;;  %v8484_v6 = vpop.eup %8483  ;;  %v5907_v8 = vsel %vm5651_vm15, %v12799_v43, %v5891_v5  ;;  %v5680_v12 = vand.u32 2147483647, %v12918_v15  ;;  %v5624_v5 = vmax.f32 %v12852_v51, 0.0  ;;  %v14517_v43 = vld [vmem:[#allocation35_spill] sm:$0xff] }
 0x7d2   :  { %14515 = vst [vmem:[#allocation56_spill] sm:$0xff] %v12929_v23  ;;  %8489 = vpow2.f32 %v5714_v21  ;;  %v5923_v20 = vmul.f32 9.9, %v5907_v8  ;;  %v5752_v25 = vadd.f32 1.0, %v8484_v6  ;;  %v5755_v0 = vmul.f32 -0.5, %v8484_v6 }
 0x7d3   :  { %8491 = vtanh.f32 %v6020_v42  ;;  %v5693_v18 = vsub.f32 0.0, %v5677_v31  ;;  %v5559_v36 = vadd.f32 %v5558_v30, %v14517_v43  ;;  %v12941_v55 = vmul.f32 %v12916_v2, %v12881_v10 }
 0x7d4   :  { %v5939_v3 = vadd.f32 0.1, %v5923_v20  ;;  %8493 = vlog2.f32 %v5752_v25  ;;  %v8486_v21 = vpop.eup %8485  ;;  %v12945_v8 = vmul.f32 %v12920_v56, %v12886_v22  ;;  %v5696_v29 = vsub.f32 0.0, %v5680_v12 }
 0x7d5   :  { %v5716_v42 = vmul.f32 1.442695, %v5693_v18  ;;  %v5758_v44 = vand.u32 2147483647, %v8484_v6  ;;  %v5761_v20 = vadd.f32 1.0, %v8486_v21  ;;  %v12947_v19 = vclamps-f32 %v5585_v59, 50.0 }
 0x7d6   :  { %8495 = vrcp.f32 %v5939_v3  ;;  %vm5640_vm0 = vcmp.ne.f32.partialorder %v12852_v51, %v12852_v51  ;;  %v5756_v30 = vadd.f32 1.0, %v5755_v0  ;;  %v5764_v43 = vmul.f32 -0.5, %v8486_v21 }
 0x7d7   :  { %v8488_v31 = vpop.eup %8487  ;;  %8497 = vpow2.f32 %v5716_v42  ;;  %v5722_v10 = vmul.f32 1.442695, %v5696_v29  ;;  %v12951_v13 = vclamps-f32 %v5559_v36, 50.0  ;;  %v5767_v59 = vand.u32 2147483647, %v8486_v21 }
 0x7d8   :  { %v8490_v25 = vpop.eup %8489  ;;  %8499 = vlog2.f32 %v5761_v20  ;;  %v5970_v16 = vmul.f32 %v8488_v31, %v5938_v37  ;;  %v5625_v41 = vmax.f32 %v12877_v38, 0.0  ;;  %v5628_v0 = vmax.f32 %v12891_v39, 0.0 }
 0x7d9   :  { %v5788_v46 = vadd.f32 1.0, %v8490_v25  ;;  %v5791_v22 = vmul.f32 -0.5, %v8490_v25  ;;  %v12953_v18 = vpop.eup %8491  ;;  %8501 = vpow2.f32 %v5722_v10  ;;  %v5681_v42 = vand.u32 2147483647, %v12947_v19 }
 0x7da   :  { %14518 = vst [vmem:[#allocation57_spill] sm:$0xff] %v12953_v18  ;;  %v8494_v32 = vpop.eup %8493  ;;  %v5757_v20 = vmul.f32 %v8484_v6, %v5756_v30  ;;  %v5765_v23 = vadd.f32 1.0, %v5764_v43  ;;  %v5794_v36 = vand.u32 2147483647, %v8490_v25  ;;  %vm5759_vm1 = vcmp.lt.f32.partialorder %v5758_v44, 0.0004427343 }
 0x7db   :  { %8503 = vlog2.f32 %v5788_v46  ;;  %v5754_v29 = vmul.f32 0.6931472, %v8494_v32  ;;  %v5792_v12 = vadd.f32 1.0, %v5791_v22  ;;  %v5684_v37 = vand.u32 2147483647, %v12951_v13  ;;  %v5587_v46 = vpop.f32.mrf.mxu3 }
 0x7dc   :  { %v8496_v62 = vpop.eup %8495  ;;  %v5986_v49 = vsub.f32 2.0, %v5970_v16  ;;  %vm12961_vm3 = vcmp.lt.f32.partialorder %v5767_v59, 0.0004427343  ;;  %vm5644_vm4 = vcmp.ne.f32.partialorder %v12891_v39, %v12891_v39  ;;  %v5697_v32 = vsub.f32 0.0, %v5681_v42 }
 0x7dd   :  { %v8498_v10 = vpop.eup %8497  ;;  %v5760_v18 = vsel %vm5759_vm1, %v5757_v20, %v5754_v29  ;;  %v5971_v43 = vmul.f32 %v8496_v62, %v5939_v3  ;;  %v5766_v58 = vmul.f32 %v8486_v21, %v5765_v23  ;;  %vm12967_vm5 = vcmp.lt.f32.partialorder %v5794_v36, 0.0004427343  ;;  %v14523_v3 = vld [vmem:[#allocation36_spill] sm:$0xff] }
 0x7de   :  { %v8500_v6 = vpop.eup %8499  ;;  %v5880_v30 = vadd.f32 %v5760_v18, %v5624_v5  ;;  %v5797_v34 = vadd.f32 1.0, %v8498_v10  ;;  %v5800_v44 = vmul.f32 -0.5, %v8498_v10  ;;  %v5700_v59 = vsub.f32 0.0, %v5684_v37 }
 0x7df   :  { %v8502_v22 = vpop.eup %8501  ;;  %v5763_v57 = vmul.f32 0.6931472, %v8500_v6  ;;  %v5793_v20 = vmul.f32 %v8490_v25, %v5792_v12  ;;  %v5588_v5 = vadd.f32 %v5587_v46, %v14523_v3  ;;  %v6002_v6 = vmul.f32 %v8488_v31, %v5986_v49 }
 0x7e0   :  { %v5896_v42 = vsel %vm5640_vm0, %v12852_v51, %v5880_v30  ;;  %8505 = vlog2.f32 %v5797_v34  ;;  %v5801_v9 = vadd.f32 1.0, %v5800_v44  ;;  %v5824_v47 = vadd.f32 1.0, %v8502_v22 }
 0x7e1   :  { %v8504_v29 = vpop.eup %8503  ;;  %v5987_v23 = vsub.f32 2.0, %v5971_v43  ;;  %vm5641_vm6 = vcmp.ne.f32.partialorder %v12877_v38, %v12877_v38  ;;  %v5769_v21 = vsel %vm12961_vm3, %v5766_v58, %v5763_v57  ;;  %v5827_v36 = vmul.f32 -0.5, %v8502_v22 }
 0x7e2   :  { %v5790_v18 = vmul.f32 0.6931472, %v8504_v29  ;;  %v5724_v37 = vmul.f32 1.442695, %v5697_v32  ;;  %v5912_v14 = vmul.f32 9.9, %v5896_v42  ;;  %8507 = vlog2.f32 %v5824_v47 }
 0x7e3   :  { %v5730_v34 = vmul.f32 1.442695, %v5700_v59  ;;  %v5629_v12 = vmax.f32 %v12914_v27, 0.0  ;;  %vm5645_vm7 = vcmp.ne.f32.partialorder %v12914_v27, %v12914_v27  ;;  %v5803_v49 = vand.u32 2147483647, %v8498_v10 }
 0x7e4   :  { %v5796_v51 = vsel %vm12967_vm5, %v5793_v20, %v5790_v18  ;;  %v5881_v31 = vadd.f32 %v5769_v21, %v5625_v41  ;;  %v5802_v46 = vmul.f32 %v8498_v10, %v5801_v9  ;;  %v12985_v43 = vclamps-f32 %v5588_v5, 50.0 }
 0x7e5   :  { %v5884_v25 = vadd.f32 %v5796_v51, %v5628_v0  ;;  %v6114_v58 = vmul.f32 0.125, %v6002_v6  ;;  %v5828_v47 = vadd.f32 1.0, %v5827_v36  ;;  %8509 = vpow2.f32 %v5724_v37 }
 0x7e6   :  { %v8506_v57 = vpop.eup %8505  ;;  %v6003_v0 = vmul.f32 %v8496_v62, %v5987_v23  ;;  %v12991_v32 = vadd.f32 0.1, %v5912_v14  ;;  %v5830_v44 = vand.u32 2147483647, %v8502_v22  ;;  %8511 = vpow2.f32 %v5730_v34 }
 0x7e7   :  { %v5900_v54 = vsel %vm5644_vm4, %v12891_v39, %v5884_v25  ;;  %v5799_v30 = vmul.f32 0.6931472, %v8506_v57  ;;  %vm5804_vm8 = vcmp.lt.f32.partialorder %v5803_v49, 0.0004427343  ;;  %v5685_v9 = vand.u32 2147483647, %v12985_v43 }
 0x7e8   :  { %v5916_v16 = vmul.f32 9.9, %v5900_v54  ;;  %v6130_v41 = vmul.f32 %v12414_v17, %v6114_v58  ;;  %v8508_v10 = vpop.eup %8507  ;;  %v5632_v29 = vmax.f32 %v12918_v15, 0.0  ;;  %v6115_v42 = vmul.f32 0.125, %v6003_v0 }
 0x7e9   :  { %v5805_v59 = vsel %vm5804_vm8, %v5802_v46, %v5799_v30  ;;  %v14524_v39 = vsub.f32 2.0, %v12941_v55  ;;  %v5826_v20 = vmul.f32 0.6931472, %v8508_v10  ;;  %v5829_v5 = vmul.f32 %v8502_v22, %v5828_v47  ;;  %v14534_v10 = vld [vmem:[#allocation46_spill] sm:$0xff] }
 0x7ea   :  { %v5885_v14 = vadd.f32 %v5805_v59, %v5629_v12  ;;  %v5701_v18 = vsub.f32 0.0, %v5685_v9  ;;  %8513 = vrcp.f32 %v12991_v32  ;;  %v5897_v17 = vsel %vm5641_vm6, %v12877_v38, %v5881_v31 }
 0x7eb   :  { %v5998_v62 = vmul.f32 %v12916_v2, %v14524_v39  ;;  %vm5648_vm9 = vcmp.ne.f32.partialorder %v12918_v15, %v12918_v15  ;;  %vm5831_vm10 = vcmp.lt.f32.partialorder %v5830_v44, 0.0004427343  ;;  %v8510_v6 = vpop.eup %8509  ;;  %v13006_v23 = vadd.f32 0.1, %v5916_v16 }
 0x7ec   :  { %v5901_v2 = vsel %vm5645_vm7, %v12914_v27, %v5885_v14  ;;  %v5832_v55 = vsel %vm5831_vm10, %v5829_v5, %v5826_v20  ;;  %v6146_v22 = vsub.f32 %v12771_v11, %v6130_v41  ;;  %v8512_v21 = vpop.eup %8511  ;;  %v5833_v37 = vadd.f32 1.0, %v8510_v6 }
 0x7ed   :  { %v5888_v36 = vadd.f32 %v5832_v55, %v5632_v29  ;;  %v5836_v51 = vmul.f32 -0.5, %v8510_v6  ;;  %v6131_v38 = vmul.f32 %v12443_v52, %v6115_v42  ;;  %v5917_v34 = vmul.f32 9.9, %v5901_v2 }
 0x7ee   :  { %v5860_v25 = vadd.f32 1.0, %v8512_v21  ;;  %v5732_v12 = vmul.f32 1.442695, %v5701_v18  ;;  %v6110_v49 = vmul.f32 0.125, %v5998_v62  ;;  %8515 = vlog2.f32 %v5833_v37 }
 0x7ef   :  { %v5904_v31 = vsel %vm5648_vm9, %v12918_v15, %v5888_v36  ;;  %v5863_v27 = vmul.f32 -0.5, %v8512_v21  ;;  %v14525_v46 = vsub.f32 2.0, %v12945_v8  ;;  %v5837_v57 = vadd.f32 1.0, %v5836_v51 }
 0x7f0   :  { %v5920_v58 = vmul.f32 9.9, %v5904_v31  ;;  %v5839_v54 = vand.u32 2147483647, %v8510_v6  ;;  %8517 = vlog2.f32 %v5860_v25  ;;  %v13021_v52 = vpop.eup %8513  ;;  %v5979_v47 = vsub.f32 2.0, %v12933_v60 }
 0x7f1   :  { %v5999_v11 = vmul.f32 %v12920_v56, %v14525_v46  ;;  %8519 = vrcp.f32 %v13006_v23  ;;  %v5633_v0 = vmax.f32 %v12947_v19, 0.0  ;;  %v5636_v15 = vmax.f32 %v12951_v13, 0.0 }
 0x7f2   :  { %v5913_v30 = vmul.f32 9.9, %v5897_v17  ;;  %v13027_v44 = vadd.f32 0.1, %v5917_v34  ;;  %v5936_v8 = vadd.f32 0.1, %v5920_v58  ;;  %vm5649_vm11 = vcmp.ne.f32.partialorder %v12947_v19, %v12947_v19 }
 0x7f3   :  { %8521 = vpow2.f32 %v5732_v12  ;;  %v5864_v56 = vadd.f32 1.0, %v5863_v27  ;;  %v5866_v16 = vand.u32 2147483647, %v8512_v21  ;;  %v13031_v9 = vclamps-f32 %v6146_v22, 100.0 }
 0x7f4   :  { %v6147_v60 = vsub.f32 %v12837_v40, %v6131_v38  ;;  %v5838_v41 = vmul.f32 %v8510_v6, %v5837_v57  ;;  %vm13034_vm12 = vcmp.lt.f32.partialorder %v5839_v54, 0.0004427343  ;;  %v6126_v59 = vmul.f32 %v12460_v7, %v6110_v49  ;;  %v8516_v42 = vpop.eup %8515 }
 0x7f5   :  { %v6111_v29 = vmul.f32 0.125, %v5999_v11  ;;  %8523 = vrcp.f32 %v5936_v8  ;;  %6194 = vmatpush.msra.mxu0 %v13031_v9  ;;  %v14528_v62 = vsub.f32 2.0, %v12896_v26  ;;  %v5995_v40 = vmul.f32 %v12908_v48, %v5979_v47  ;;  %v14531_v47 = vld [vmem:[#allocation49_spill] sm:$0xff] }
 0x7f6   :  { %v13040_v39 = vclamps-f32 %v6147_v60, 100.0  ;;  %v8518_v20 = vpop.eup %8517  ;;  %v5835_v5 = vmul.f32 0.6931472, %v8516_v42  ;;  %v6142_v18 = vsub.f32 %v12758_v35, %v6126_v59  ;;  %v14529_v7 = vsub.f32 2.0, %v12862_v63 }
 0x7f7   :  { %v5994_v14 = vmul.f32 %v12888_v45, %v14528_v62  ;;  %v6127_v17 = vmul.f32 %v12476_v61, %v6111_v29  ;;  %v13051_v2 = vpop.eup %8519  ;;  %v5862_v55 = vmul.f32 0.6931472, %v8518_v20  ;;  %v5865_v22 = vmul.f32 %v8512_v21, %v5864_v56  ;;  %v14535_v29 = vld [vmem:[#allocation54_spill] sm:$0xff] }
 0x7f8   :  { %v5990_v6 = vmul.f32 %v12839_v50, %v14529_v7  ;;  %vm5867_vm13 = vcmp.lt.f32.partialorder %v5866_v16, 0.0004427343  ;;  %6223 = vmatpush.msra.mxu1 %v13040_v39  ;;  %v5841_v48 = vsel %vm13034_vm12, %v5838_v41, %v5835_v5  ;;  %v13056_v36 = vclamps-f32 %v6142_v18, 100.0  ;;  %v14532_v16 = vld [vmem:[#allocation44_spill] sm:$0xff]  ;;  %v14536_v5 = vld [vmem:[#allocation42_spill] sm:$0xff] }
 0x7f9   :  { %v6106_v45 = vmul.f32 0.125, %v5994_v14  ;;  %v8522_v26 = vpop.eup %8521  ;;  %v6143_v61 = vsub.f32 %v12764_v1, %v6127_v17  ;;  %v6107_v35 = vmul.f32 0.125, %v5995_v40  ;;  %v5889_v63 = vadd.f32 %v5841_v48, %v5633_v0  ;;  %v14537_v17 = vld [vmem:[#allocation57_spill] sm:$0xff] }
 0x7fa   :  { %v5868_v37 = vsel %vm5867_vm13, %v5865_v22, %v5862_v55  ;;  %v5869_v50 = vadd.f32 1.0, %v8522_v26  ;;  %v5872_v51 = vmul.f32 -0.5, %v8522_v26  ;;  %6195 = vmatpush.msra.mxu0 %v13056_v36  ;;  %v6102_v34 = vmul.f32 0.125, %v5990_v6 }
 0x7fb   :  { %v5892_v38 = vadd.f32 %v5868_v37, %v5636_v15  ;;  %v13060_v21 = vclamps-f32 %v6143_v61, 100.0  ;;  %v14530_v25 = vsub.f32 2.0, %v12865_v28  ;;  %v13065_v49 = vpop.eup %8523  ;;  %v13067_v31 = vadd.f32 0.1, %v5913_v30  ;;  %v14540_v61 = vld [vmem:[#allocation53_spill] sm:$0xff] }
 0x7fc   :  { %v5905_v1 = vsel %vm5649_vm11, %v12947_v19, %v5889_v63  ;;  %vm5652_vm14 = vcmp.ne.f32.partialorder %v12951_v13, %v12951_v13  ;;  %8525 = vlog2.f32 %v5869_v50  ;;  %v5964_v46 = vmul.f32 %v13051_v2, %v13006_v23  ;;  %v14533_v23 = vld [vmem:[#allocation52_spill] sm:$0xff]  ;;  %v14541_v63 = vld [vmem:[#allocation55_spill] sm:$0xff]  ;;  %v13114_v50 = vld [vmem:[%s13770_s1] sm:$0xff] }
 0x7fd   :  { %v5991_v12 = vmul.f32 %v12845_v24, %v14530_v25  ;;  %8527 = vrcp.f32 %v13027_v44  ;;  %v5921_v27 = vmul.f32 9.9, %v5905_v1  ;;  %v5908_v28 = vsel %vm5652_vm14, %v12951_v13, %v5892_v38  ;;  %6224 = vmatpush.msra.mxu1 %v13060_v21  ;;  %v14542_v38 = vld [vmem:[#allocation56_spill] sm:$0xff] }
 0x7fe   :  { %v6122_v24 = vmul.f32 %v12483_v53, %v6106_v45  ;;  %v5924_v11 = vmul.f32 9.9, %v5908_v28  ;;  %v5873_v58 = vadd.f32 1.0, %v5872_v51  ;;  %v6123_v19 = vmul.f32 %v12499_v33, %v6107_v35 }
 0x7ff   :  { %v5937_v57 = vadd.f32 0.1, %v5921_v27  ;;  %v6118_v0 = vmul.f32 %v14531_v47, %v6102_v34  ;;  %v6103_v15 = vmul.f32 0.125, %v5991_v12  ;;  %v5968_v30 = vmul.f32 %v13065_v49, %v5936_v8  ;;  %v14543_v12 = vld [vmem:[#allocation51_spill] sm:$0xff] }
 0x800   :  { %v6138_v54 = vsub.f32 %v12725_v4, %v6122_v24  ;;  %v5940_v13 = vadd.f32 0.1, %v5924_v11  ;;  %v5875_v56 = vand.u32 2147483647, %v8522_v26  ;;  %v6139_v60 = vsub.f32 %v14532_v16, %v6123_v19 }
 0x801   :  { %8529 = vrcp.f32 %v5937_v57  ;;  %v6134_v41 = vsub.f32 %v14533_v23, %v6118_v0  ;;  %v6119_v59 = vmul.f32 %v14534_v10, %v6103_v15  ;;  %v6048_v42 = vadd.f32 1.0, %v14535_v29 }
 0x802   :  { %v13086_v53 = vclamps-f32 %v6138_v54, 100.0  ;;  %v8526_v33 = vpop.eup %8525  ;;  %v5960_v4 = vmul.f32 %v13021_v52, %v12991_v32  ;;  %8531 = vrcp.f32 %v5940_v13  ;;  %v13093_v62 = vclamps-f32 %v6139_v60, 100.0 }
 0x803   :  { %v13095_v8 = vpop.eup %8527  ;;  %v5871_v14 = vmul.f32 0.6931472, %v8526_v33  ;;  %v5874_v40 = vmul.f32 %v8522_v26, %v5873_v58  ;;  %v13098_v20 = vclamps-f32 %v6134_v41, 100.0  ;;  %v6135_v18 = vsub.f32 %v14536_v5, %v6119_v59  ;;  %v14539_v26 = vld [vmem:[#allocation50_spill] sm:$0xff] }
 0x804   :  { %6196 = vmatpush.msra.mxu0 %v13086_v53  ;;  %v6052_v7 = vadd.f32 1.0, %v14537_v17  ;;  %v5984_v6 = vsub.f32 2.0, %v5968_v30  ;;  %v5637_v55 = vmax.f32 %v12985_v43, 0.0  ;;  %vm5876_vm15 = vcmp.lt.f32.partialorder %v5875_v56, 0.0004427343  ;;  %6225 = vmatpush.msra.mxu1 %v13093_v62 }
 0x805   :  { %8533 = vrcp.f32 %v13067_v31  ;;  %v5980_v32 = vsub.f32 2.0, %v5964_v46  ;;  %v5877_v22 = vsel %vm5876_vm15, %v5874_v40, %v5871_v14  ;;  %v13106_v45 = vclamps-f32 %v6135_v18, 100.0  ;;  %v14545_v40 = vld [vmem:[#allocation43_spill] sm:$0xff] }
 0x806   :  { %6197 = vmatpush.msra.mxu0 %v13098_v20  ;;  %v6040_v48 = vadd.f32 1.0, %v14539_v26  ;;  %v6044_v35 = vadd.f32 1.0, %v14540_v61  ;;  %8535 = vtanh.f32 %v14541_v63  ;;  %v5893_v37 = vadd.f32 %v5877_v22, %v5637_v55  ;;  %v14547_v22 = vld [vmem:[#allocation38_spill] sm:$0xff] }
 0x807   :  { %14538 = vst [vmem:[#allocation36_spill] sm:$0xff] %v13106_v45  ;;  %7589 = vmatmul.msk.f32.vlgmr.msra.gmra.mxu0 %vm389_vm2, %v13114_v50  ;;  %v8530_v51 = vpop.eup %8529  ;;  %8537 = vtanh.f32 %v14542_v38  ;;  %v5976_v34 = vsub.f32 2.0, %v5960_v4  ;;  %vm5653_vm0 = vcmp.ne.f32.partialorder %v12985_v43, %v12985_v43  ;;  %6226 = vmatpush.msra.mxu1 %v13106_v45  ;;  %v6064_v1 = vmul.f32 0.5, %v6048_v42  ;;  %v14544_v42 = vld [vmem:[#allocation48_spill] sm:$0xff] }
 0x808   :  { %6310 = vmatpush.msrb.mxu0 %v13031_v9  ;;  %v8532_v25 = vpop.eup %8531  ;;  %8539 = vtanh.f32 %v14543_v12  ;;  %v5909_v27 = vsel %vm5653_vm0, %v12985_v43, %v5893_v37  ;;  %7593 = vmatmul.msk.f32.vlgmr.msra.gmra.mxu1 %vm389_vm2, %v13114_v50  ;;  %v6000_v28 = vmul.f32 %v13065_v49, %v5984_v6  ;;  %v6068_v24 = vmul.f32 0.5, %v6052_v7  ;;  %v14546_v6 = vld [vmem:[#allocation39_spill] sm:$0xff] }
 0x809   :  { %v5972_v46 = vmul.f32 %v8532_v25, %v5940_v13  ;;  %v5925_v11 = vmul.f32 9.9, %v5909_v27  ;;  %6339 = vmatpush.msrb.mxu1 %v13040_v39  ;;  %v5996_v58 = vmul.f32 %v13051_v2, %v5980_v32  ;;  %v6056_v19 = vmul.f32 0.5, %v6040_v48 }
 0x80a   :  { %6311 = vmatpush.msrb.mxu0 %v13056_v36  ;;  %v6060_v54 = vmul.f32 0.5, %v6044_v35  ;;  %v5969_v47 = vmul.f32 %v8530_v51, %v5937_v57  ;;  %v6112_v49 = vmul.f32 0.125, %v6000_v28  ;;  %v5992_v30 = vmul.f32 %v13021_v52, %v5976_v34  ;;  %v13142_v52 = vld [vmem:[%s13770_s1 + $0x8] sm:$0xff] }
 0x80b   :  { %v8534_v0 = vpop.eup %8533  ;;  %v5988_v15 = vsub.f32 2.0, %v5972_v46  ;;  %v5941_v43 = vadd.f32 0.1, %v5925_v11  ;;  %6340 = vmatpush.msrb.mxu1 %v13060_v21  ;;  %v6080_v56 = vmul.f32 0.125, %v6064_v1  ;;  %v5965_v16 = vmul.f32 %v13095_v8, %v13027_v44 }
 0x80c   :  { %6312 = vmatpush.msrb.mxu0 %v13086_v53  ;;  %v8536_v13 = vpop.eup %8535  ;;  %v6084_v2 = vmul.f32 0.125, %v6068_v24  ;;  %v6108_v23 = vmul.f32 0.125, %v5996_v58  ;;  %v6072_v10 = vmul.f32 0.125, %v6056_v19  ;;  %v5961_v59 = vmul.f32 %v8534_v0, %v13067_v31 }
 0x80d   :  { %v8538_v60 = vpop.eup %8537  ;;  %8541 = vrcp.f32 %v5941_v43  ;;  %6341 = vmatpush.msrb.mxu1 %v13093_v62  ;;  %v6004_v57 = vmul.f32 %v8532_v25, %v5988_v15  ;;  %v5985_v33 = vsub.f32 2.0, %v5969_v47  ;;  %v6076_v44 = vmul.f32 0.125, %v6060_v54  ;;  %v14548_v25 = vld [vmem:[#allocation47_spill] sm:$0xff] }
 0x80e   :  { %6313 = vmatpush.msrb.mxu0 %v13098_v20  ;;  %v8540_v41 = vpop.eup %8539  ;;  %v6128_v4 = vmul.f32 %v14544_v42, %v6112_v49  ;;  %v6104_v14 = vmul.f32 0.125, %v5992_v30  ;;  %v6045_v5 = vadd.f32 1.0, %v14545_v40  ;;  %v6049_v18 = vadd.f32 1.0, %v8536_v13 }
 0x80f   :  { %7590 = vmatmul.msk.f32.gmra.mxu0 %vm389_vm2, %v13142_v52  ;;  %6342 = vmatpush.msrb.mxu1 %v13106_v45  ;;  %v6116_v29 = vmul.f32 0.125, %v6004_v57  ;;  %v6053_v31 = vadd.f32 1.0, %v8538_v60  ;;  %v5981_v17 = vsub.f32 2.0, %v5965_v16  ;;  %v6096_v7 = vadd.f32 %v14544_v42, %v6080_v56 }
 0x810   :  { %7594 = vmatmul.msk.f32.gmra.mxu1 %vm389_vm2, %v13142_v52  ;;  %v6100_v55 = vadd.f32 %v14546_v6, %v6084_v2  ;;  %v6124_v26 = vmul.f32 %v14547_v22, %v6108_v23  ;;  %v6041_v48 = vadd.f32 1.0, %v8540_v41  ;;  %v5977_v61 = vsub.f32 2.0, %v5961_v59 }
 0x811   :  { %v6132_v32 = vmul.f32 %v14546_v6, %v6116_v29  ;;  %v6001_v35 = vmul.f32 %v8530_v51, %v5985_v33  ;;  %v6092_v37 = vadd.f32 %v14547_v22, %v6076_v44  ;;  %v6144_v34 = vsub.f32 %v6096_v7, %v6128_v4  ;;  %v13164_v51 = vld [vmem:[%s13770_s1 + $0x10] sm:$0xff]  ;;  %v14554_v44 = vld [vmem:[#allocation37_spill] sm:$0xff] }
 0x812   :  { %v6120_v12 = vmul.f32 %v14548_v25, %v6104_v14  ;;  %v6065_v1 = vmul.f32 0.5, %v6049_v18  ;;  %v6069_v27 = vmul.f32 0.5, %v6053_v31  ;;  %v5997_v24 = vmul.f32 %v13095_v8, %v5981_v17  ;;  %v14555_v4 = vld [vmem:[#allocation41_spill] sm:$0xff]  ;;  %v14556_v17 = vld [vmem:[#allocation40_spill] sm:$0xff] }
 0x813   :  { %v8542_v63 = vpop.eup %8541  ;;  %v6148_v38 = vsub.f32 %v6100_v55, %v6132_v32  ;;  %v6088_v46 = vadd.f32 %v14548_v25, %v6072_v10  ;;  %v6061_v11 = vmul.f32 0.5, %v6045_v5  ;;  %v6140_v19 = vsub.f32 %v6092_v37, %v6124_v26  ;;  %v8730_v5 = vld [vmem:[%s13770_s1 + $0x18] sm:$0xff] }
 0x814   :  { %v5973_v28 = vmul.f32 %v8542_v63, %v5941_v43  ;;  %v6113_v47 = vmul.f32 0.125, %v6001_v35  ;;  %v5993_v15 = vmul.f32 %v8534_v0, %v5977_v61  ;;  %v6057_v43 = vmul.f32 0.5, %v6041_v48  ;;  %v14552_v0 = vld [vmem:[#allocation45_spill] sm:$0xff]  ;;  %v8731_v61 = vld [vmem:[%s13771_s2] sm:$0xff] }
 0x815   :  { %v13159_v58 = vclamps-f32 %v6148_v38, 100.0  ;;  %v13169_v8 = vclamps-f32 %v6144_v34, 100.0  ;;  %v6136_v49 = vsub.f32 %v6088_v46, %v6120_v12  ;;  %v6081_v30 = vmul.f32 0.125, %v6065_v1  ;;  %v8734_v37 = vld [vmem:[%s13771_s2 + $0x18] sm:$0xff] }
 0x816   :  { %v5989_v54 = vsub.f32 2.0, %v5973_v28  ;;  %v6085_v13 = vmul.f32 0.125, %v6069_v27  ;;  %v6109_v16 = vmul.f32 0.125, %v5997_v24  ;;  %v6077_v60 = vmul.f32 0.125, %v6061_v11  ;;  %v14561_v24 = vld [vmem:[#allocation5_spill] sm:$0xff] }
 0x817   :  { %14549 = vst [vmem:[#allocation49_spill] sm:$0xff] %v13159_v58  ;;  %7591 = vmatmul.msk.f32.gmra.mxu0 %vm389_vm2, %v13164_v51  ;;  %6252 = vmatpush.msra.mxu2 %v13159_v58  ;;  %v13174_v2 = vclamps-f32 %v6140_v19, 100.0  ;;  %v6129_v23 = vmul.f32 %v14552_v0, %v6113_v47  ;;  %v6105_v41 = vmul.f32 0.125, %v5993_v15  ;;  %v6073_v10 = vmul.f32 0.125, %v6057_v43  ;;  %v14562_v19 = vld [vmem:[#allocation21_spill] sm:$0xff] }
 0x818   :  { %14550 = vst [vmem:[#allocation44_spill] sm:$0xff] %v13169_v8  ;;  %7595 = vmatmul.msk.f32.gmra.mxu1 %vm389_vm2, %v13164_v51  ;;  %v6005_v56 = vmul.f32 %v8542_v63, %v5989_v54  ;;  %v13178_v59 = vclamps-f32 %v6136_v49, 100.0  ;;  %v6097_v33 = vadd.f32 %v14552_v0, %v6081_v30  ;;  %v6101_v29 = vadd.f32 %v14554_v44, %v6085_v13  ;;  %v8732_v63 = vld [vmem:[%s13771_s2 + $0x8] sm:$0xff]  ;;  %v14564_v49 = vld [vmem:[#allocation22_spill] sm:$0xff] }
 0x819   :  { %6253 = vmatpush.msra.mxu2 %v13169_v8  ;;  %14551 = vst [vmem:[#allocation52_spill] sm:$0xff] %v13174_v2  ;;  %v6125_v14 = vmul.f32 %v14555_v4, %v6109_v16  ;;  %v6093_v40 = vadd.f32 %v14555_v4, %v6077_v60  ;;  %v6121_v7 = vmul.f32 %v14556_v17, %v6105_v41 }
 0x81a   :  { %v6117_v57 = vmul.f32 0.125, %v6005_v56  ;;  %14553 = vst [vmem:[#allocation46_spill] sm:$0xff] %v13178_v59  ;;  %v6145_v31 = vsub.f32 %v6097_v33, %v6129_v23  ;;  %v6089_v6 = vadd.f32 %v14556_v17, %v6073_v10  ;;  %v14565_v56 = vld [vmem:[#allocation9_spill] sm:$0xff]  ;;  %v14566_v23 = vld [vmem:[#allocation10_spill] sm:$0xff] }
 0x81b   :  { %6254 = vmatpush.msra.mxu2 %v13174_v2  ;;  %v6141_v32 = vsub.f32 %v6093_v40, %v6125_v14  ;;  %v14568_v14 = vld [vmem:[#allocation14_spill] sm:$0xff] }
 0x81c   :  { %v6133_v42 = vmul.f32 %v14554_v44, %v6117_v57  ;;  %v13200_v22 = vclamps-f32 %v6145_v31, 100.0  ;;  %v6137_v26 = vsub.f32 %v6089_v6, %v6121_v7  ;;  %v14569_v31 = vld [vmem:[#allocation25_spill] sm:$0xff] }
 0x81d   :  { %6255 = vmatpush.msra.mxu2 %v13178_v59  ;;  %v13204_v48 = vclamps-f32 %v6141_v32, 100.0  ;;  %v14570_v6 = vld [vmem:[#allocation17_spill] sm:$0xff] }
 0x81e   :  { %v6149_v18 = vsub.f32 %v6101_v29, %v6133_v42  ;;  %7597 = vmatmul.msk.f32.vlgmr.msra.gmra.mxu2 %vm389_vm2, %v13114_v50  ;;  %14558 = vst [vmem:[#allocation42_spill] sm:$0xff] %v13200_v22  ;;  %v13212_v35 = vclamps-f32 %v6137_v26, 100.0  ;;  %v14567_v29 = vld [vmem:[#allocation13_spill] sm:$0xff] }
 0x81f   :  { %7592 = vmatmul.msk.f32.gmra.mxu0 %vm389_vm2, %v8730_v5  ;;  %6368 = vmatpush.msrb.mxu2 %v13159_v58  ;;  %14559 = vst [vmem:[#allocation57_spill] sm:$0xff] %v13204_v48 }
 0x820   :  { %7596 = vmatmul.msk.f32.gmra.mxu1 %vm389_vm2, %v8730_v5  ;;  %v13196_v55 = vclamps-f32 %v6149_v18, 100.0  ;;  %14560 = vst [vmem:[#allocation50_spill] sm:$0xff] %v13212_v35 }
 0x821   :  { %6369 = vmatpush.msrb.mxu2 %v13169_v8 }
 0x822   :  { %14557 = vst [vmem:[#allocation54_spill] sm:$0xff] %v13196_v55  ;;  %6281 = vmatpush.msra.mxu3 %v13196_v55 }
 0x823   :  { %6370 = vmatpush.msrb.mxu2 %v13174_v2 }
 0x824   :  { %6282 = vmatpush.msra.mxu3 %v13200_v22 }
 0x825   :  { %6371 = vmatpush.msrb.mxu2 %v13178_v59 }
 0x826   :  { %6283 = vmatpush.msra.mxu3 %v13204_v48  ;;  %7598 = vmatmul.msk.f32.gmra.mxu2 %vm389_vm2, %v13142_v52 }
 0x827   :  { %7605 = vmatmul.msk.f32.vlgmr.msrb.gmra.mxu0 %vm389_vm2, %v8731_v61 }
 0x828   :  { %7609 = vmatmul.msk.f32.vlgmr.msrb.gmra.mxu1 %vm389_vm2, %v8731_v61  ;;  %6284 = vmatpush.msra.mxu3 %v13212_v35 }
 0x829   :  { %7601 = vmatmul.msk.f32.vlgmr.msra.gmra.mxu3 %vm389_vm2, %v13114_v50  ;;  %v8733_v50 = vld [vmem:[%s13771_s2 + $0x10] sm:$0xff] }
 0x82a   :  { %6397 = vmatpush.msrb.mxu3 %v13196_v55 }
 0x82c   :  { %6398 = vmatpush.msrb.mxu3 %v13200_v22 }
 0x82e   :  { %6399 = vmatpush.msrb.mxu3 %v13204_v48  ;;  %7599 = vmatmul.msk.f32.gmra.mxu2 %vm389_vm2, %v13164_v51  ;;  %v14594_v48 = vld [vmem:[#allocation15_spill] sm:$0xff] }
 0x82f   :  { %7606 = vmatmul.msk.f32.gmra.mxu0 %vm389_vm2, %v8732_v63 }
 0x830   :  { %7610 = vmatmul.msk.f32.gmra.mxu1 %vm389_vm2, %v8732_v63  ;;  %6400 = vmatpush.msrb.mxu3 %v13212_v35 }
 0x831   :  { %7602 = vmatmul.msk.f32.gmra.mxu3 %vm389_vm2, %v13142_v52 }
 0x836   :  { %7600 = vmatmul.msk.f32.gmra.mxu2 %vm389_vm2, %v8730_v5 }
 0x837   :  { %7607 = vmatmul.msk.f32.gmra.mxu0 %vm389_vm2, %v8733_v50 }
 0x838   :  { %7611 = vmatmul.msk.f32.gmra.mxu1 %vm389_vm2, %v8733_v50 }
 0x839   :  { %7603 = vmatmul.msk.f32.gmra.mxu3 %vm389_vm2, %v13164_v51  ;;  %v14563_v51 = vld [vmem:[#allocation6_spill] sm:$0xff] }
 0x83e   :  { %7613 = vmatmul.msk.f32.vlgmr.msrb.gmra.mxu2 %vm389_vm2, %v8731_v61 }
 0x83f   :  { %7608 = vmatmul.msk.f32.gmra.mxu0 %vm389_vm2, %v8734_v37 }
 0x840   :  { %7612 = vmatmul.msk.f32.gmra.mxu1 %vm389_vm2, %v8734_v37 }
 0x841   :  { %7604 = vmatmul.msk.f32.gmra.mxu3 %vm389_vm2, %v8730_v5 }
 0x846   :  { %7614 = vmatmul.msk.f32.gmra.mxu2 %vm389_vm2, %v8732_v63 }
 0x849   :  { %7617 = vmatmul.msk.f32.vlgmr.msrb.gmra.mxu3 %vm389_vm2, %v8731_v61 }
 0x84e   :  { %7615 = vmatmul.msk.f32.gmra.mxu2 %vm389_vm2, %v8733_v50 }
 0x851   :  { %7618 = vmatmul.msk.f32.gmra.mxu3 %vm389_vm2, %v8732_v63 }
 0x856   :  { %7616 = vmatmul.msk.f32.gmra.mxu2 %vm389_vm2, %v8734_v37 }
 0x859   :  { %7619 = vmatmul.msk.f32.gmra.mxu3 %vm389_vm2, %v8733_v50  ;;  %v14571_v50 = vld [vmem:[#allocation26_spill] sm:$0xff] }
 0x861   :  { %7620 = vmatmul.msk.f32.gmra.mxu3 %vm389_vm2, %v8734_v37 }
 0x884   :  { %v6199_v52 = vpop.f32.mrf.mxu0 }
 0x885   :  { %v6228_v38 = vpop.f32.mrf.mxu1  ;;  %v6200_v46 = vadd.f32 %v6199_v52, %v14561_v24 }
 0x886   :  { %v6229_v47 = vadd.f32 %v6228_v38, %v14563_v51 }
 0x887   :  { %v6830_v13 = vmul.f32 0.5, %v6200_v46 }
 0x888   :  { %v6831_v0 = vmul.f32 0.5, %v6229_v47 }
 0x889   :  { %8543 = vtanh.f32 %v6830_v13 }
 0x88a   :  { %8545 = vtanh.f32 %v6831_v0 }
 0x88c   :  { %v6202_v34 = vpop.f32.mrf.mxu0 }
 0x88d   :  { %v6231_v25 = vpop.f32.mrf.mxu1  ;;  %v6203_v16 = vadd.f32 %v6202_v34, %v14565_v56 }
 0x88e   :  { %v6232_v41 = vadd.f32 %v6231_v25, %v14566_v23 }
 0x88f   :  { %v6834_v44 = vmul.f32 0.5, %v6203_v16  ;;  %v8544_v25 = vpop.eup %8543 }
 0x890   :  { %v6835_v7 = vmul.f32 0.5, %v6232_v41 }
 0x894   :  { %v6205_v12 = vpop.f32.mrf.mxu0 }
 0x895   :  { %v6234_v1 = vpop.f32.mrf.mxu1  ;;  %v6206_v42 = vadd.f32 %v6205_v12, %v14567_v29 }
 0x896   :  { %v6235_v40 = vadd.f32 %v6234_v1, %v14568_v14  ;;  %v14572_v1 = vld [vmem:[#allocation18_spill] sm:$0xff] }
 0x897   :  { %v6838_v52 = vmul.f32 0.5, %v6206_v42 }
 0x898   :  { %v6839_v38 = vmul.f32 0.5, %v6235_v40  ;;  %v14574_v40 = vld [vmem:[#allocation30_spill] sm:$0xff] }
 0x89c   :  { %v6208_v27 = vpop.f32.mrf.mxu0 }
 0x89d   :  { %v6237_v28 = vpop.f32.mrf.mxu1  ;;  %v6209_v32 = vadd.f32 %v6208_v27, %v14570_v6 }
 0x89e   :  { %v6238_v24 = vadd.f32 %v6237_v28, %v14572_v1 }
 0x89f   :  { %v6842_v12 = vmul.f32 0.5, %v6209_v32 }
 0x8a0   :  { %v6843_v28 = vmul.f32 0.5, %v6238_v24 }
 0x8a4   :  { %v6315_v11 = vpop.f32.mrf.mxu0 }
 0x8a5   :  { %v6316_v54 = vadd.f32 %v6315_v11, %v14562_v19  ;;  %v6344_v15 = vpop.f32.mrf.mxu1  ;;  %v8546_v11 = vpop.eup %8545 }
 0x8a6   :  { %v6345_v30 = vadd.f32 %v6344_v15, %v14564_v49 }
 0x8a7   :  { %v13258_v43 = vclamps-f32 %v6316_v54, 50.0  ;;  %v13279_v54 = vpop.f32.mrf.mxu2 }
 0x8a8   :  { %v13263_v57 = vclamps-f32 %v6345_v30, 50.0 }
 0x8a9   :  { %v6494_v60 = vand.u32 2147483647, %v13258_v43  ;;  %vm6462_vm3 = vcmp.ne.f32.partialorder %v13258_v43, %v13258_v43 }
 0x8aa   :  { %v6495_v33 = vand.u32 2147483647, %v13263_v57  ;;  %vm6463_vm5 = vcmp.ne.f32.partialorder %v13263_v57, %v13263_v57 }
 0x8ab   :  { %v6510_v10 = vsub.f32 0.0, %v6494_v60  ;;  %v14573_v60 = vld [vmem:[#allocation29_spill] sm:$0xff] }
 0x8ac   :  { %v6318_v4 = vpop.f32.mrf.mxu0  ;;  %v6511_v18 = vsub.f32 0.0, %v6495_v33  ;;  %v13281_v51 = vpop.f32.mrf.mxu3  ;;  %v6863_v33 = vadd.f32 1.0, %v8546_v11 }
 0x8ad   :  { %v6526_v5 = vmul.f32 1.442695, %v6510_v10  ;;  %v6319_v17 = vadd.f32 %v6318_v4, %v14569_v31  ;;  %v6347_v26 = vpop.f32.mrf.mxu1  ;;  %v6862_v10 = vadd.f32 1.0, %v8544_v25 }
 0x8ae   :  { %v6528_v61 = vmul.f32 1.442695, %v6511_v18  ;;  %v6348_v37 = vadd.f32 %v6347_v26, %v14571_v50 }
 0x8af   :  { %8547 = vpow2.f32 %v6526_v5  ;;  %v13271_v63 = vclamps-f32 %v6319_v17, 50.0  ;;  %v13295_v32 = vpop.f32.mrf.mxu2  ;;  %v6878_v50 = vmul.f32 0.5, %v6862_v10 }
 0x8b0   :  { %8549 = vtanh.f32 %v6834_v44  ;;  %v13276_v46 = vclamps-f32 %v6348_v37, 50.0 }
 0x8b1   :  { %8551 = vpow2.f32 %v6528_v61  ;;  %v6498_v34 = vand.u32 2147483647, %v13271_v63  ;;  %vm6466_vm7 = vcmp.ne.f32.partialorder %v13271_v63, %v13271_v63 }
 0x8b2   :  { %8553 = vtanh.f32 %v6835_v7  ;;  %v6499_v19 = vand.u32 2147483647, %v13276_v46  ;;  %vm6467_vm9 = vcmp.ne.f32.partialorder %v13276_v46, %v13276_v46 }
 0x8b3   :  { %v6514_v27 = vsub.f32 0.0, %v6498_v34  ;;  %8555 = vtanh.f32 %v6838_v52 }
 0x8b4   :  { %8557 = vtanh.f32 %v6839_v38  ;;  %v6321_v49 = vpop.f32.mrf.mxu0  ;;  %v6515_v56 = vsub.f32 0.0, %v6499_v19  ;;  %v13297_v26 = vpop.f32.mrf.mxu3  ;;  %v6879_v38 = vmul.f32 0.5, %v6863_v33 }
 0x8b5   :  { %v13283_v47 = vpop.eup %8547  ;;  %v6534_v15 = vmul.f32 1.442695, %v6514_v27  ;;  %8559 = vtanh.f32 %v6842_v12  ;;  %v6322_v0 = vadd.f32 %v6321_v49, %v14573_v60  ;;  %v6350_v23 = vpop.f32.mrf.mxu1 }
 0x8b6   :  { %v8550_v30 = vpop.eup %8549  ;;  %v6558_v13 = vadd.f32 1.0, %v13283_v47  ;;  %v6536_v29 = vmul.f32 1.442695, %v6515_v56  ;;  %v6351_v5 = vadd.f32 %v6350_v23, %v14574_v40  ;;  %v6561_v31 = vmul.f32 -0.5, %v13283_v47 }
 0x8b7   :  { %v13286_v16 = vpop.eup %8551  ;;  %8561 = vpow2.f32 %v6534_v15  ;;  %v6866_v44 = vadd.f32 1.0, %v8550_v30  ;;  %v13290_v14 = vclamps-f32 %v6322_v0, 50.0  ;;  %v6564_v49 = vand.u32 2147483647, %v13283_v47 }
 0x8b8   :  { %8563 = vlog2.f32 %v6558_v13  ;;  %v8554_v41 = vpop.eup %8553  ;;  %v6567_v4 = vadd.f32 1.0, %v13286_v16  ;;  %v13301_v37 = vclamps-f32 %v6351_v5, 50.0  ;;  %v6562_v12 = vadd.f32 1.0, %v6561_v31 }
 0x8b9   :  { %v8556_v42 = vpop.eup %8555  ;;  %8565 = vtanh.f32 %v6843_v28  ;;  %v6867_v7 = vadd.f32 1.0, %v8554_v41  ;;  %v6502_v6 = vand.u32 2147483647, %v13290_v14  ;;  %v6882_v34 = vmul.f32 0.5, %v6866_v44 }
 0x8ba   :  { %v8558_v18 = vpop.eup %8557  ;;  %8567 = vpow2.f32 %v6536_v29  ;;  %v6503_v24 = vand.u32 2147483647, %v13301_v37  ;;  %v6870_v19 = vadd.f32 1.0, %v8556_v42  ;;  %v13308_v28 = vmul.f32 0.125, %v6878_v50 }
 0x8bb   :  { %v8560_v17 = vpop.eup %8559  ;;  %8569 = vlog2.f32 %v6567_v4  ;;  %v6518_v25 = vsub.f32 0.0, %v6502_v6  ;;  %v6883_v11 = vmul.f32 0.5, %v6867_v7  ;;  %v6871_v15 = vadd.f32 1.0, %v8558_v18 }
 0x8bc   :  { %v6874_v13 = vadd.f32 1.0, %v8560_v17  ;;  %v6570_v60 = vmul.f32 -0.5, %v13286_v16  ;;  %v13311_v0 = vmul.f32 0.125, %v6879_v38  ;;  %v13313_v23 = vmul.f32 0.125, %v6882_v34  ;;  %v6324_v42 = vpop.f32.mrf.mxu0  ;;  %v13323_v17 = vpop.f32.mrf.mxu2 }
 0x8bd   :  { %v13299_v61 = vpop.eup %8561  ;;  %v6542_v41 = vmul.f32 1.442695, %v6518_v25  ;;  %v6519_v10 = vsub.f32 0.0, %v6503_v24  ;;  %v6563_v44 = vmul.f32 %v13283_v47, %v6562_v12  ;;  %v13317_v40 = vmul.f32 0.125, %v6883_v11  ;;  %v13325_v7 = vpop.f32.mrf.mxu3  ;;  %v14578_v24 = vld [vmem:[#allocation33_spill] sm:$0xff] }
 0x8be   :  { %v8564_v52 = vpop.eup %8563  ;;  %v6594_v1 = vadd.f32 1.0, %v13299_v61  ;;  %14575 = vst [vmem:[#allocation53_spill] sm:$0xff] %v13311_v0  ;;  %v6886_v5 = vmul.f32 0.5, %v6870_v19  ;;  %v6887_v18 = vmul.f32 0.5, %v6871_v15  ;;  %vm13319_vm1 = vcmp.lt.f32.partialorder %v6564_v49, 0.0004427343 }
 0x8bf   :  { %v8566_v27 = vpop.eup %8565  ;;  %v6560_v56 = vmul.f32 0.6931472, %v8564_v52  ;;  %v6890_v6 = vmul.f32 0.5, %v6874_v13  ;;  %v6446_v47 = vmax.f32 %v13258_v43, 0.0  ;;  %v6571_v52 = vadd.f32 1.0, %v6570_v60 }
 0x8c0   :  { %v13306_v30 = vpop.eup %8567  ;;  %v6875_v33 = vadd.f32 1.0, %v8566_v27  ;;  %8571 = vlog2.f32 %v6594_v1  ;;  %v6573_v38 = vand.u32 2147483647, %v13286_v16  ;;  %v6597_v34 = vmul.f32 -0.5, %v13299_v61 }
 0x8c1   :  { %v6603_v29 = vadd.f32 1.0, %v13306_v30  ;;  %v8570_v4 = vpop.eup %8569  ;;  %v6566_v50 = vsel %vm13319_vm1, %v6563_v44, %v6560_v56  ;;  %8573 = vpow2.f32 %v6542_v41  ;;  %v6544_v25 = vmul.f32 1.442695, %v6519_v10  ;;  %v6353_v41 = vpop.f32.mrf.mxu1 }
 0x8c2   :  { %v6891_v12 = vmul.f32 0.5, %v6875_v33  ;;  %v6569_v1 = vmul.f32 0.6931472, %v8570_v4  ;;  %v6325_v27 = vadd.f32 %v6324_v42, %v14578_v24  ;;  %v6902_v11 = vmul.f32 0.125, %v6886_v5 }
 0x8c3   :  { %8575 = vlog2.f32 %v6603_v29  ;;  %v13333_v19 = vmul.f32 0.125, %v6887_v18  ;;  %v6702_v15 = vadd.f32 %v6566_v50, %v6446_v47  ;;  %v6906_v13 = vmul.f32 0.125, %v6890_v6  ;;  %v14581_v29 = vld [vmem:[#allocation7_spill] sm:$0xff] }
 0x8c4   :  { %8577 = vpow2.f32 %v6544_v25  ;;  %v6572_v56 = vmul.f32 %v13286_v16, %v6571_v52  ;;  %v13338_v60 = vclamps-f32 %v6325_v27, 50.0  ;;  %v6447_v10 = vmax.f32 %v13263_v57, 0.0  ;;  %v14582_v52 = vld [vmem:[#allocation34_spill] sm:$0xff] }
 0x8c5   :  { %vm13341_vm4 = vcmp.lt.f32.partialorder %v6573_v38, 0.0004427343  ;;  %v6598_v44 = vadd.f32 1.0, %v6597_v34  ;;  %v6258_v42 = vadd.f32 %v13279_v54, %v14581_v29  ;;  %v6907_v4 = vmul.f32 0.125, %v6891_v12  ;;  %v13356_v34 = vpop.f32.mrf.mxu2  ;;  %v13358_v54 = vpop.f32.mrf.mxu3 }
 0x8c6   :  { %v8572_v49 = vpop.eup %8571  ;;  %v6575_v5 = vsel %vm13341_vm4, %v6572_v56, %v6569_v1  ;;  %v6600_v18 = vand.u32 2147483647, %v13299_v61  ;;  %v6606_v16 = vmul.f32 -0.5, %v13306_v30  ;;  %v6718_v6 = vsel %vm6462_vm3, %v13258_v43, %v6702_v15  ;;  %v14583_v1 = vld [vmem:[#allocation8_spill] sm:$0xff] }
 0x8c7   :  { %v13351_v31 = vpop.eup %8573  ;;  %v6596_v47 = vmul.f32 0.6931472, %v8572_v49  ;;  %v6506_v50 = vand.u32 2147483647, %v13338_v60  ;;  %v6354_v38 = vadd.f32 %v6353_v41, %v14582_v52  ;;  %v13361_v12 = vadd.f32 %v13031_v9, %v6906_v13 }
 0x8c8   :  { %v6287_v24 = vadd.f32 %v13281_v51, %v14583_v1  ;;  %v13368_v43 = vadd.f32 %v13056_v36, %v6902_v11  ;;  %v6703_v15 = vadd.f32 %v6575_v5, %v6447_v10  ;;  %v6599_v49 = vmul.f32 %v13299_v61, %v6598_v44 }
 0x8c9   :  { %v8576_v25 = vpop.eup %8575  ;;  %v6832_v56 = vmul.f32 0.5, %v6258_v42  ;;  %v6522_v41 = vsub.f32 0.0, %v6506_v50  ;;  %v6734_v33 = vmul.f32 9.9, %v6718_v6  ;;  %vm13373_vm6 = vcmp.lt.f32.partialorder %v6600_v18, 0.0004427343 }
 0x8ca   :  { %v13370_v27 = vpop.eup %8577  ;;  %v6607_v29 = vadd.f32 1.0, %v6606_v16  ;;  %v6630_v52 = vadd.f32 1.0, %v13351_v31  ;;  %v13379_v51 = vadd.f32 %v13040_v39, %v6907_v4  ;;  %v6602_v11 = vsel %vm13373_vm6, %v6599_v49, %v6596_v47  ;;  %v14586_v18 = vld [vmem:[#allocation11_spill] sm:$0xff] }
 0x8cb   :  { %v6609_v10 = vand.u32 2147483647, %v13306_v30  ;;  %v13384_v5 = vclamps-f32 %v6354_v38, 50.0  ;;  %v6450_v61 = vmax.f32 %v13271_v63, 0.0  ;;  %v6605_v44 = vmul.f32 0.6931472, %v8576_v25 }
 0x8cc   :  { %v6639_v42 = vadd.f32 1.0, %v13370_v27  ;;  %v6261_v16 = vadd.f32 %v13295_v32, %v14586_v18  ;;  %v6719_v4 = vsel %vm6463_vm5, %v13263_v57, %v6703_v15  ;;  %8579 = vtanh.f32 %v6832_v56  ;;  %v14591_v18 = vld [vmem:[#allocation12_spill] sm:$0xff] }
 0x8cd   :  { %v6833_v6 = vmul.f32 0.5, %v6287_v24  ;;  %v6550_v47 = vmul.f32 1.442695, %v6522_v41  ;;  %v13394_v50 = vadd.f32 0.1, %v6734_v33  ;;  %v6706_v38 = vadd.f32 %v6602_v11, %v6450_v61  ;;  %v6373_v57 = vpop.f32.mrf.mxu2  ;;  %v6402_v49 = vpop.f32.mrf.mxu3  ;;  %v14590_v61 = vld [vmem:[#allocation23_spill] sm:$0xff] }
 0x8ce   :  { %v6608_v1 = vmul.f32 %v13306_v30, %v6607_v29  ;;  %8581 = vlog2.f32 %v6630_v52  ;;  %vm13399_vm8 = vcmp.lt.f32.partialorder %v6609_v10, 0.0004427343  ;;  %v6507_v32 = vand.u32 2147483647, %v13384_v5 }
 0x8cf   :  { %8583 = vpow2.f32 %v6550_v47  ;;  %v6836_v15 = vmul.f32 0.5, %v6261_v16  ;;  %v13408_v30 = vadd.f32 %v13060_v21, %v13333_v19  ;;  %v6735_v56 = vmul.f32 9.9, %v6719_v4 }
 0x8d0   :  { %v6611_v24 = vsel %vm13399_vm8, %v6608_v1, %v6605_v44  ;;  %8585 = vlog2.f32 %v6639_v42  ;;  %v6451_v41 = vmax.f32 %v13276_v46, 0.0  ;;  %v6523_v33 = vsub.f32 0.0, %v6507_v32 }
 0x8d1   :  { %8587 = vtanh.f32 %v6833_v6  ;;  %v6722_v13 = vsel %vm6466_vm7, %v13271_v63, %v6706_v38  ;;  %v6633_v29 = vmul.f32 -0.5, %v13351_v31  ;;  %v6642_v19 = vmul.f32 -0.5, %v13370_v27 }
 0x8d2   :  { %8589 = vrcp.f32 %v13394_v50  ;;  %v13416_v52 = vpop.eup %8579  ;;  %v6707_v11 = vadd.f32 %v6611_v24, %v6451_v41  ;;  %v6552_v10 = vmul.f32 1.442695, %v6523_v33  ;;  %v6374_v44 = vadd.f32 %v6373_v57, %v14590_v61 }
 0x8d3   :  { %14589 = vst [vmem:[#allocation55_spill] sm:$0xff] %v13416_v52  ;;  %8591 = vtanh.f32 %v6836_v15  ;;  %v6290_v16 = vadd.f32 %v13297_v26, %v14591_v18  ;;  %v13424_v63 = vadd.f32 %v13086_v53, %v13313_v23  ;;  %v13428_v4 = vadd.f32 %v13093_v62, %v13317_v40 }
 0x8d4   :  { %v8582_v42 = vpop.eup %8581  ;;  %v13430_v47 = vadd.f32 0.1, %v6735_v56  ;;  %v6454_v38 = vmax.f32 %v13290_v14, 0.0  ;;  %v6455_v1 = vmax.f32 %v13301_v37, 0.0  ;;  %8593 = vpow2.f32 %v6552_v10 }
 0x8d5   :  { %v8584_v6 = vpop.eup %8583  ;;  %v6738_v32 = vmul.f32 9.9, %v6722_v13  ;;  %v6634_v57 = vadd.f32 1.0, %v6633_v29  ;;  %v6636_v26 = vand.u32 2147483647, %v13351_v31  ;;  %v6723_v40 = vsel %vm6467_vm9, %v13276_v46, %v6707_v11  ;;  %v14593_v29 = vld [vmem:[#allocation24_spill] sm:$0xff]  ;;  %v6376_v46 = vpop.f32.mrf.mxu2 }
 0x8d6   :  { %v8586_v25 = vpop.eup %8585  ;;  %v6666_v24 = vadd.f32 1.0, %v8584_v6  ;;  %v6643_v15 = vadd.f32 1.0, %v6642_v19  ;;  %v6669_v56 = vmul.f32 -0.5, %v8584_v6  ;;  %v13441_v41 = vclamps-f32 %v6374_v44, 50.0 }
 0x8d7   :  { %v13435_v23 = vpop.eup %8587  ;;  %v6645_v10 = vand.u32 2147483647, %v13370_v27  ;;  %v6837_v13 = vmul.f32 0.5, %v6290_v16  ;;  %v6403_v61 = vadd.f32 %v6402_v49, %v14593_v29  ;;  %v6632_v18 = vmul.f32 0.6931472, %v8582_v42  ;;  %v6405_v49 = vpop.f32.mrf.mxu3 }
 0x8d8   :  { %14592 = vst [vmem:[#allocation56_spill] sm:$0xff] %v13435_v23  ;;  %v13443_v33 = vpop.eup %8589  ;;  %8595 = vlog2.f32 %v6666_v24  ;;  %v6641_v35 = vmul.f32 0.6931472, %v8586_v25  ;;  %v6458_v59 = vmax.f32 %v13338_v60, 0.0  ;;  %v13450_v2 = vadd.f32 %v13323_v17, %v14594_v48 }
 0x8d9   :  { %v13452_v11 = vpop.eup %8591  ;;  %8597 = vrcp.f32 %v13430_v47  ;;  %v13455_v19 = vadd.f32 0.1, %v6738_v32  ;;  %v6739_v44 = vmul.f32 9.9, %v6723_v40  ;;  %vm13457_vm10 = vcmp.lt.f32.partialorder %v6636_v26, 0.0004427343 }
 0x8da   :  { %14595 = vst [vmem:[#allocation51_spill] sm:$0xff] %v13452_v11  ;;  %v8594_v42 = vpop.eup %8593  ;;  %v6635_v25 = vmul.f32 %v13351_v31, %v6634_v57  ;;  %v6644_v24 = vmul.f32 %v13370_v27, %v6643_v15  ;;  %vm6474_vm11 = vcmp.ne.f32.partialorder %v13338_v60, %v13338_v60  ;;  %v6670_v48 = vadd.f32 1.0, %v6669_v56 }
 0x8db   :  { %v6496_v17 = vand.u32 2147483647, %v13441_v41  ;;  %vm6470_vm12 = vcmp.ne.f32.partialorder %v13290_v14, %v13290_v14  ;;  %vm6471_vm13 = vcmp.ne.f32.partialorder %v13301_v37, %v13301_v37  ;;  %vm13470_vm14 = vcmp.lt.f32.partialorder %v6645_v10, 0.0004427343 }
 0x8dc   :  { %v6672_v26 = vand.u32 2147483647, %v8584_v6  ;;  %v6675_v31 = vadd.f32 1.0, %v8594_v42  ;;  %v13474_v57 = vclamps-f32 %v6403_v61, 50.0  ;;  %v6638_v27 = vsel %vm13457_vm10, %v6635_v25, %v6632_v18  ;;  %v14600_v25 = vld [vmem:[#allocation27_spill] sm:$0xff] }
 0x8dd   :  { %v6647_v40 = vsel %vm13470_vm14, %v6644_v24, %v6641_v35  ;;  %8599 = vtanh.f32 %v6837_v13  ;;  %v6512_v15 = vsub.f32 0.0, %v6496_v17  ;;  %v13481_v29 = vadd.f32 0.1, %v6739_v44  ;;  %v14601_v44 = vld [vmem:[#allocation28_spill] sm:$0xff] }
 0x8de   :  { %v8596_v56 = vpop.eup %8595  ;;  %8601 = vrcp.f32 %v13455_v19  ;;  %v6459_v10 = vmax.f32 %v13384_v5, 0.0  ;;  %v6678_v22 = vmul.f32 -0.5, %v8594_v42  ;;  %v6671_v8 = vmul.f32 %v8584_v6, %v6670_v48 }
 0x8df   :  { %v6668_v55 = vmul.f32 0.6931472, %v8596_v56  ;;  %8603 = vlog2.f32 %v6675_v31  ;;  %v6530_v61 = vmul.f32 1.442695, %v6512_v15  ;;  %v13484_v58 = vpop.eup %8597  ;;  %v6710_v18 = vadd.f32 %v6638_v27, %v6454_v38  ;;  %v6408_v15 = vpop.f32.mrf.mxu3 }
 0x8e0   :  { %v6711_v16 = vadd.f32 %v6647_v40, %v6455_v1  ;;  %vm6673_vm15 = vcmp.lt.f32.partialorder %v6672_v26, 0.0004427343  ;;  %v6497_v35 = vand.u32 2147483647, %v13474_v57  ;;  %v6377_v24 = vadd.f32 %v6376_v46, %v14600_v25  ;;  %v14603_v46 = vld [vmem:[#allocation19_spill] sm:$0xff] }
 0x8e1   :  { %v6674_v13 = vsel %vm6673_vm15, %v6671_v8, %v6668_v55  ;;  %8605 = vpow2.f32 %v6530_v61  ;;  %v6406_v17 = vadd.f32 %v6405_v49, %v14601_v44  ;;  %vm6475_vm0 = vcmp.ne.f32.partialorder %v13384_v5, %v13384_v5  ;;  %v6379_v8 = vpop.f32.mrf.mxu2  ;;  %v14604_v49 = vld [vmem:[#allocation20_spill] sm:$0xff] }
 0x8e2   :  { %v6714_v32 = vadd.f32 %v6674_v13, %v6458_v59  ;;  %v6679_v6 = vadd.f32 1.0, %v6678_v22  ;;  %v6513_v48 = vsub.f32 0.0, %v6497_v35  ;;  %8607 = vrcp.f32 %v13481_v29 }
 0x8e3   :  { %v13491_v31 = vpop.eup %8599  ;;  %v6681_v38 = vand.u32 2147483647, %v8594_v42  ;;  %v13494_v1 = vclamps-f32 %v6377_v24, 50.0  ;;  %v13496_v26 = vclamps-f32 %v6406_v17, 50.0  ;;  %v6267_v22 = vadd.f32 %v13356_v34, %v14603_v46 }
 0x8e4   :  { %14602 = vst [vmem:[#allocation48_spill] sm:$0xff] %v13491_v31  ;;  %v13498_v55 = vpop.eup %8601  ;;  %v6730_v59 = vsel %vm6474_vm11, %v13338_v60, %v6714_v32  ;;  %v6296_v27 = vadd.f32 %v13358_v54, %v14604_v49  ;;  %v6532_v40 = vmul.f32 1.442695, %v6513_v48  ;;  %v6726_v61 = vsel %vm6470_vm12, %v13290_v14, %v6710_v18  ;;  %v14605_v54 = vld [vmem:[#allocation31_spill] sm:$0xff]  ;;  %v14606_v48 = vld [vmem:[#allocation32_spill] sm:$0xff] }
 0x8e5   :  { %v8604_v56 = vpop.eup %8603  ;;  %v6727_v35 = vsel %vm6471_vm13, %v13301_v37, %v6711_v16  ;;  %v6746_v60 = vmul.f32 9.9, %v6730_v59  ;;  %v6500_v13 = vand.u32 2147483647, %v13494_v1  ;;  %v6680_v25 = vmul.f32 %v8594_v42, %v6679_v6 }
 0x8e6   :  { %v6677_v34 = vmul.f32 0.6931472, %v8604_v56  ;;  %8609 = vpow2.f32 %v6532_v40  ;;  %v6380_v24 = vadd.f32 %v6379_v8, %v14605_v54  ;;  %vm6682_vm1 = vcmp.lt.f32.partialorder %v6681_v38, 0.0004427343 }
 0x8e7   :  { %v8606_v44 = vpop.eup %8605  ;;  %v6516_v17 = vsub.f32 0.0, %v6500_v13  ;;  %v6501_v32 = vand.u32 2147483647, %v13496_v26  ;;  %v6409_v14 = vadd.f32 %v6408_v15, %v14606_v48  ;;  %v13520_v18 = vadd.f32 0.1, %v6746_v60 }
 0x8e8   :  { %v6683_v46 = vsel %vm6682_vm1, %v6680_v25, %v6677_v34  ;;  %v6844_v49 = vmul.f32 0.5, %v6267_v22  ;;  %v6576_v37 = vadd.f32 1.0, %v8606_v44  ;;  %v13522_v16 = vpop.eup %8607  ;;  %v6742_v59 = vmul.f32 9.9, %v6726_v61 }
 0x8e9   :  { %v6715_v56 = vadd.f32 %v6683_v46, %v6459_v10  ;;  %v6538_v42 = vmul.f32 1.442695, %v6516_v17  ;;  %v6517_v6 = vsub.f32 0.0, %v6501_v32  ;;  %v6743_v40 = vmul.f32 9.9, %v6727_v35  ;;  %v14608_v35 = vld [vmem:[#allocation16_spill] sm:$0xff] }
 0x8ea   :  { %8611 = vlog2.f32 %v6576_v37  ;;  %v6579_v8 = vmul.f32 -0.5, %v8606_v44  ;;  %v13524_v38 = vclamps-f32 %v6380_v24, 50.0  ;;  %v13530_v22 = vclamps-f32 %v6409_v14, 50.0 }
 0x8eb   :  { %v6731_v15 = vsel %vm6475_vm0, %v13384_v5, %v6715_v56  ;;  %8613 = vpow2.f32 %v6538_v42  ;;  %v6540_v60 = vmul.f32 1.442695, %v6517_v6  ;;  %v13536_v61 = vmul.f32 0.5, %v13450_v2 }
 0x8ec   :  { %v13532_v13 = vpop.eup %8609  ;;  %8615 = vrcp.f32 %v13520_v18  ;;  %v6747_v10 = vmul.f32 9.9, %v6731_v15  ;;  %v6293_v34 = vadd.f32 %v13325_v7, %v14608_v35  ;;  %v13540_v25 = vadd.f32 0.1, %v6742_v59 }
 0x8ed   :  { %14607 = vst [vmem:[#allocation43_spill] sm:$0xff] %v13536_v61  ;;  %v6845_v54 = vmul.f32 0.5, %v6296_v27  ;;  %v6585_v5 = vadd.f32 1.0, %v13532_v13  ;;  %8617 = vpow2.f32 %v6540_v60  ;;  %v6580_v17 = vadd.f32 1.0, %v6579_v8  ;;  %v6382_v60 = vpop.f32.mrf.mxu2 }
 0x8ee   :  { %v6763_v24 = vadd.f32 0.1, %v6747_v10  ;;  %8619 = vtanh.f32 %v6844_v49  ;;  %v6504_v32 = vand.u32 2147483647, %v13524_v38  ;;  %v13544_v48 = vadd.f32 0.1, %v6743_v40 }
 0x8ef   :  { %v6582_v14 = vand.u32 2147483647, %v8606_v44  ;;  %8621 = vlog2.f32 %v6585_v5  ;;  %v6505_v2 = vand.u32 2147483647, %v13530_v22  ;;  %v13547_v7 = vmul.f32 0.5, %v6293_v34 }
 0x8f0   :  { %v8612_v46 = vpop.eup %8611  ;;  %8623 = vrcp.f32 %v6763_v24  ;;  %v6520_v37 = vsub.f32 0.0, %v6504_v32  ;;  %v13551_v27 = vadd.f32 %v13098_v20, %v13308_v28  ;;  %v6448_v49 = vmax.f32 %v13441_v41, 0.0  ;;  %v6411_v28 = vpop.f32.mrf.mxu3 }
 0x8f1   :  { %14609 = vst [vmem:[#allocation39_spill] sm:$0xff] %v13547_v7  ;;  %v8614_v59 = vpop.eup %8613  ;;  %8625 = vtanh.f32 %v6845_v54  ;;  %v6578_v56 = vmul.f32 0.6931472, %v8612_v46  ;;  %v6521_v42 = vsub.f32 0.0, %v6505_v2  ;;  %v6581_v40 = vmul.f32 %v8606_v44, %v6580_v17  ;;  %v14613_v2 = vld [vmem:[#allocation35_spill] sm:$0xff] }
 0x8f2   :  { %v13554_v6 = vpop.eup %8615  ;;  %8627 = vrcp.f32 %v13540_v25  ;;  %v6588_v8 = vmul.f32 -0.5, %v13532_v13  ;;  %v6612_v15 = vadd.f32 1.0, %v8614_v59  ;;  %vm13561_vm3 = vcmp.lt.f32.partialorder %v6582_v14, 0.0004427343 }
 0x8f3   :  { %v13558_v10 = vpop.eup %8617  ;;  %8629 = vrcp.f32 %v13544_v48  ;;  %v6546_v35 = vmul.f32 1.442695, %v6520_v37  ;;  %v6548_v34 = vmul.f32 1.442695, %v6521_v42  ;;  %vm6464_vm4 = vcmp.ne.f32.partialorder %v13441_v41, %v13441_v41 }
 0x8f4   :  { %v13565_v54 = vpop.eup %8619  ;;  %v6584_v44 = vsel %vm13561_vm3, %v6581_v40, %v6578_v56  ;;  %8631 = vlog2.f32 %v6612_v15  ;;  %v6615_v5 = vmul.f32 -0.5, %v8614_v59  ;;  %v6449_v32 = vmax.f32 %v13474_v57, 0.0 }
 0x8f5   :  { %14612 = vst [vmem:[#allocation38_spill] sm:$0xff] %v13565_v54  ;;  %v8622_v17 = vpop.eup %8621  ;;  %v6621_v14 = vadd.f32 1.0, %v13558_v10  ;;  %8633 = vpow2.f32 %v6546_v35  ;;  %v6383_v46 = vadd.f32 %v6382_v60, %v14613_v2  ;;  %v6794_v42 = vmul.f32 %v13554_v6, %v13520_v18 }
 0x8f6   :  { %v8624_v37 = vpop.eup %8623  ;;  %v6589_v31 = vadd.f32 1.0, %v6588_v8  ;;  %v6591_v11 = vand.u32 2147483647, %v13532_v13  ;;  %8635 = vpow2.f32 %v6548_v34  ;;  %v6704_v15 = vadd.f32 %v6584_v44, %v6448_v49 }
 0x8f7   :  { %v13577_v56 = vpop.eup %8625  ;;  %v6795_v40 = vmul.f32 %v8624_v37, %v6763_v24  ;;  %v6618_v54 = vand.u32 2147483647, %v8614_v59  ;;  %8637 = vlog2.f32 %v6621_v14  ;;  %v6587_v35 = vmul.f32 0.6931472, %v8622_v17 }
 0x8f8   :  { %14614 = vst [vmem:[#allocation47_spill] sm:$0xff] %v13577_v56  ;;  %v13579_v23 = vpop.eup %8627  ;;  %v6452_v60 = vmax.f32 %v13494_v1, 0.0  ;;  %v6616_v2 = vadd.f32 1.0, %v6615_v5  ;;  %v6624_v52 = vmul.f32 -0.5, %v13558_v10  ;;  %v13587_v7 = vclamps-f32 %v6383_v46, 50.0 }
 0x8f9   :  { %v13583_v18 = vpop.eup %8629  ;;  %v6412_v24 = vadd.f32 %v6411_v28, %v14523_v3  ;;  %v6810_v44 = vsub.f32 2.0, %v6794_v42  ;;  %v6811_v14 = vsub.f32 2.0, %v6795_v40  ;;  %v6590_v17 = vmul.f32 %v13532_v13, %v6589_v31 }
 0x8fa   :  { %v8632_v49 = vpop.eup %8631  ;;  %vm13591_vm5 = vcmp.lt.f32.partialorder %v6591_v11, 0.0004427343  ;;  %v6720_v8 = vsel %vm6464_vm4, %v13441_v41, %v6704_v15  ;;  %vm13599_vm6 = vcmp.lt.f32.partialorder %v6618_v54, 0.0004427343  ;;  %v6627_v3 = vand.u32 2147483647, %v13558_v10 }
 0x8fb   :  { %v8634_v5 = vpop.eup %8633  ;;  %v6614_v34 = vmul.f32 0.6931472, %v8632_v49  ;;  %v6593_v11 = vsel %vm13591_vm5, %v6590_v17, %v6587_v35  ;;  %v6617_v31 = vmul.f32 %v8614_v59, %v6616_v2  ;;  %v6625_v13 = vadd.f32 1.0, %v6624_v52 }
 0x8fc   :  { %v8636_v42 = vpop.eup %8635  ;;  %v6648_v28 = vadd.f32 1.0, %v8634_v5  ;;  %v6651_v61 = vmul.f32 -0.5, %v8634_v5  ;;  %v6508_v0 = vand.u32 2147483647, %v13587_v7  ;;  %v13607_v41 = vclamps-f32 %v6412_v24, 50.0 }
 0x8fd   :  { %v8638_v40 = vpop.eup %8637  ;;  %v6657_v45 = vadd.f32 1.0, %v8636_v42  ;;  %v6660_v54 = vmul.f32 -0.5, %v8636_v42  ;;  %v6826_v15 = vmul.f32 %v13554_v6, %v6810_v44  ;;  %v6827_v49 = vmul.f32 %v8624_v37, %v6811_v14 }
 0x8fe   :  { %8639 = vlog2.f32 %v6648_v28  ;;  %vm6468_vm7 = vcmp.ne.f32.partialorder %v13494_v1, %v13494_v1  ;;  %v6620_v59 = vsel %vm13599_vm6, %v6617_v31, %v6614_v34  ;;  %v6623_v52 = vmul.f32 0.6931472, %v8638_v40 }
 0x8ff   :  { %v6654_v56 = vand.u32 2147483647, %v8634_v5  ;;  %8641 = vlog2.f32 %v6657_v45  ;;  %v6736_v35 = vmul.f32 9.9, %v6720_v8  ;;  %v6457_v2 = vmax.f32 %v13530_v22, 0.0 }
 0x900   :  { %v6663_v17 = vand.u32 2147483647, %v8636_v42  ;;  %v6790_v24 = vmul.f32 %v13579_v23, %v13540_v25  ;;  %v6705_v28 = vadd.f32 %v6593_v11, %v6449_v32  ;;  %v6626_v6 = vmul.f32 %v13558_v10, %v6625_v13 }
 0x901   :  { %vm13618_vm8 = vcmp.lt.f32.partialorder %v6627_v3, 0.0004427343  ;;  %v6652_v44 = vadd.f32 1.0, %v6651_v61  ;;  %v6708_v14 = vadd.f32 %v6620_v59, %v6452_v60  ;;  %vm6472_vm9 = vcmp.ne.f32.partialorder %v13524_v38, %v13524_v38 }
 0x902   :  { %v6661_v45 = vadd.f32 1.0, %v6660_v54  ;;  %v6524_v8 = vsub.f32 0.0, %v6508_v0  ;;  %v6509_v34 = vand.u32 2147483647, %v13607_v41  ;;  %vm6465_vm10 = vcmp.ne.f32.partialorder %v13474_v57, %v13474_v57 }
 0x903   :  { %v6629_v25 = vsel %vm13618_vm8, %v6626_v6, %v6623_v52  ;;  %vm13629_vm11 = vcmp.lt.f32.partialorder %v6654_v56, 0.0004427343  ;;  %v6938_v32 = vmul.f32 0.125, %v6826_v15  ;;  %v6939_v61 = vmul.f32 0.125, %v6827_v49 }
 0x904   :  { %v8640_v60 = vpop.eup %8639  ;;  %vm13633_vm12 = vcmp.lt.f32.partialorder %v6663_v17, 0.0004427343  ;;  %v6554_v0 = vmul.f32 1.442695, %v6524_v8  ;;  %v6525_v3 = vsub.f32 0.0, %v6509_v34  ;;  %v6806_v11 = vsub.f32 2.0, %v6790_v24 }
 0x905   :  { %v8642_v31 = vpop.eup %8641  ;;  %v6650_v13 = vmul.f32 0.6931472, %v8640_v60  ;;  %v6653_v40 = vmul.f32 %v8634_v5, %v6652_v44  ;;  %v6954_v54 = vmul.f32 %v13031_v9, %v6938_v32  ;;  %v6955_v59 = vmul.f32 %v13040_v39, %v6939_v61 }
 0x906   :  { %vm6469_vm13 = vcmp.ne.f32.partialorder %v13496_v26, %v13496_v26  ;;  %v6659_v15 = vmul.f32 0.6931472, %v8642_v31  ;;  %v6662_v49 = vmul.f32 %v8636_v42, %v6661_v45  ;;  %8643 = vpow2.f32 %v6554_v0 }
 0x907   :  { %v6556_v52 = vmul.f32 1.442695, %v6525_v3  ;;  %v6656_v56 = vsel %vm13629_vm11, %v6653_v40, %v6650_v13  ;;  %v6970_v17 = vsub.f32 %v13361_v12, %v6954_v54  ;;  %v6971_v24 = vsub.f32 %v13379_v51, %v6955_v59 }
 0x908   :  { %v6822_v5 = vmul.f32 %v13579_v23, %v6806_v11  ;;  %v6724_v9 = vsel %vm6468_vm7, %v13494_v1, %v6708_v14  ;;  %v14625_v39 = vmax.f32 %v13524_v38, 0.0  ;;  %v6665_v42 = vsel %vm13633_vm12, %v6662_v49, %v6659_v15 }
 0x909   :  { %v6791_v37 = vmul.f32 %v13583_v18, %v13544_v48  ;;  %v6713_v44 = vadd.f32 %v6665_v42, %v6457_v2  ;;  %8645 = vpow2.f32 %v6556_v52  ;;  %6996 = vmatpush.msra.mxu0 %v6970_v17  ;;  %7016 = vmatpush.msra.mxu1 %v6971_v24  ;;  %v6786_v51 = vmul.f32 %v13498_v55, %v13455_v19 }
 0x90a   :  { %v6712_v6 = vadd.f32 %v6656_v56, %v14625_v39  ;;  %v6934_v12 = vmul.f32 0.125, %v6822_v5  ;;  %v14626_v23 = vmax.f32 %v13496_v26, 0.0  ;;  %vm6473_vm14 = vcmp.ne.f32.partialorder %v13530_v22, %v13530_v22 }
 0x90b   :  { %v6807_v14 = vsub.f32 2.0, %v6791_v37  ;;  %v6787_v45 = vmul.f32 %v13522_v16, %v13481_v29  ;;  %v6802_v8 = vsub.f32 2.0, %v6786_v51  ;;  %v6782_v19 = vmul.f32 %v13443_v33, %v13394_v50 }
 0x90c   :  { %v6709_v1 = vadd.f32 %v6629_v25, %v14626_v23  ;;  %v6728_v48 = vsel %vm6472_vm9, %v13524_v38, %v6712_v6  ;;  %v6950_v2 = vmul.f32 %v13056_v36, %v6934_v12  ;;  %v8644_v34 = vpop.eup %8643  ;;  %v6721_v25 = vsel %vm6465_vm10, %v13474_v57, %v6705_v28 }
 0x90d   :  { %v6740_v10 = vmul.f32 9.9, %v6724_v9  ;;  %v6823_v29 = vmul.f32 %v13583_v18, %v6807_v14  ;;  %v6803_v32 = vsub.f32 2.0, %v6787_v45  ;;  %v13676_v61 = vadd.f32 0.1, %v6736_v35 }
 0x90e   :  { %v6729_v38 = vsel %vm6473_vm14, %v13530_v22, %v6713_v44  ;;  %v6460_v36 = vmax.f32 %v13587_v7, 0.0  ;;  %v6684_v60 = vadd.f32 1.0, %v8644_v34  ;;  %v6744_v46 = vmul.f32 9.9, %v6728_v48  ;;  %v13713_v45 = vld [vmem:[%s13776_s7] sm:$0x7] }
 0x90f   :  { %v6966_v50 = vsub.f32 %v13368_v43, %v6950_v2  ;;  %v6935_v0 = vmul.f32 0.125, %v6823_v29  ;;  %v6818_v3 = vmul.f32 %v13498_v55, %v6802_v8  ;;  %v8646_v11 = vpop.eup %8645  ;;  %v6737_v31 = vmul.f32 9.9, %v6721_v25  ;;  %v14627_v8 = vld [vmem:[#allocation53_spill] sm:$0xff]  ;;  %s8763_s7 = smov [#allocation2]  }
 0x910   :  { %v6725_v57 = vsel %vm6469_vm13, %v13496_v26, %v6709_v1  ;;  %v6819_v18 = vmul.f32 %v13522_v16, %v6803_v32  ;;  %v6798_v35 = vsub.f32 2.0, %v6782_v19  ;;  %v13687_v22 = vadd.f32 0.1, %v6740_v10  ;;  %v14628_v19 = vld [vmem:[#allocation36_spill] sm:$0xff]  ;;  %s7090_s5 = sshll.u32 %s8763_s7, 4  ;;  %s7091_s5 = int_to_ptr.vmem [resolvable:$true] %s7090_s5 }
 0x911   :  { %v6745_v28 = vmul.f32 9.9, %v6729_v38  ;;  %v6687_v13 = vmul.f32 -0.5, %v8644_v34  ;;  %v6693_v40 = vadd.f32 1.0, %v8646_v11  ;;  %6997 = vmatpush.msra.mxu0 %v6966_v50  ;;  %8647 = vlog2.f32 %v6684_v60  ;;  %v14629_v60 = vld [vmem:[#allocation43_spill] sm:$0xff] }
 0x912   :  { %v6696_v43 = vmul.f32 -0.5, %v8646_v11  ;;  %v6951_v55 = vmul.f32 %v13060_v21, %v6935_v0  ;;  %v6930_v54 = vmul.f32 0.125, %v6818_v3  ;;  %v6741_v59 = vmul.f32 9.9, %v6725_v57  ;;  %v14630_v0 = vld [vmem:[#allocation39_spill] sm:$0xff] }
 0x913   :  { %v13690_v15 = vadd.f32 0.1, %v6744_v46  ;;  %8649 = vlog2.f32 %v6693_v40  ;;  %v6931_v49 = vmul.f32 0.125, %v6819_v18  ;;  %v6814_v52 = vmul.f32 %v13443_v33, %v6798_v35 }
 0x914   :  { %v6967_v26 = vsub.f32 %v13408_v30, %v6951_v55  ;;  %v6946_v16 = vmul.f32 %v13086_v53, %v6930_v54  ;;  %v6783_v56 = vmul.f32 %v13484_v58, %v13430_v47  ;;  %v13697_v17 = vadd.f32 0.1, %v6745_v28  ;;  %v14632_v55 = vld [vmem:[#allocation56_spill] sm:$0xff] }
 0x915   :  { %v6688_v24 = vadd.f32 1.0, %v6687_v13  ;;  %v6690_v5 = vand.u32 2147483647, %v8644_v34  ;;  %v6947_v21 = vmul.f32 %v13093_v62, %v6931_v49  ;;  %v6697_v9 = vadd.f32 1.0, %v6696_v43  ;;  %v14631_v13 = vld [vmem:[#allocation55_spill] sm:$0xff] }
 0x916   :  { %7017 = vmatpush.msra.mxu1 %v6967_v26  ;;  %v6962_v39 = vsub.f32 %v13424_v63, %v6946_v16  ;;  %v6926_v6 = vmul.f32 0.125, %v6814_v52  ;;  %v6799_v42 = vsub.f32 2.0, %v6783_v56  ;;  %8651 = vrcp.f32 %v13687_v22  ;;  %v14633_v26 = vld [vmem:[#allocation38_spill] sm:$0xff]  ;;  %v14634_v56 = vld [vmem:[#allocation47_spill] sm:$0xff] }
 0x917   :  { %v6757_v53 = vadd.f32 0.1, %v6741_v59  ;;  %v6699_v30 = vand.u32 2147483647, %v8646_v11  ;;  %v6963_v33 = vsub.f32 %v13428_v4, %v6947_v21  ;;  %v8648_v37 = vpop.eup %8647  ;;  %v13703_v47 = vadd.f32 0.1, %v6737_v31 }
 0x918   :  { %8653 = vrcp.f32 %v13690_v15  ;;  %6998 = vmatpush.msra.mxu0 %v6962_v39  ;;  %v6942_v62 = vmul.f32 %v13098_v20, %v6926_v6  ;;  %v6815_v44 = vmul.f32 %v13484_v58, %v6799_v42  ;;  %v6686_v63 = vmul.f32 0.6931472, %v8648_v37 }
 0x919   :  { %v8650_v12 = vpop.eup %8649  ;;  %8655 = vrcp.f32 %v13697_v17  ;;  %v6689_v51 = vmul.f32 %v8644_v34, %v6688_v24  ;;  %vm6691_vm15 = vcmp.lt.f32.partialorder %v6690_v5, 0.0004427343  ;;  %7018 = vmatpush.msra.mxu1 %v6963_v33  ;;  %v6698_v1 = vmul.f32 %v8646_v11, %v6697_v9  ;;  %v14635_v9 = vld [vmem:[#allocation51_spill] sm:$0xff]  ;;  %v14636_v33 = vld [vmem:[#allocation48_spill] sm:$0xff] }
 0x91a   :  { %v6695_v23 = vmul.f32 0.6931472, %v8650_v12  ;;  %v6958_v4 = vsub.f32 %v13551_v27, %v6942_v62  ;;  %v6927_v14 = vmul.f32 0.125, %v6815_v44  ;;  %8657 = vrcp.f32 %v6757_v53 }
 0x91b   :  { %v6692_v20 = vsel %vm6691_vm15, %v6689_v51, %v6686_v63  ;;  %v6461_v58 = vmax.f32 %v13607_v41, 0.0  ;;  %vm6700_vm0 = vcmp.lt.f32.partialorder %v6699_v30, 0.0004427343  ;;  %v6911_v34 = vadd.f32 %v14628_v19, %v14627_v8 }
 0x91c   :  { %v6716_v48 = vadd.f32 %v6692_v20, %v6460_v36  ;;  %v6701_v2 = vsel %vm6700_vm0, %v6698_v1, %v6695_v23  ;;  %6999 = vmatpush.msra.mxu0 %v6958_v4  ;;  %v6943_v25 = vmul.f32 %v14628_v19, %v6927_v14  ;;  %v8652_v27 = vpop.eup %8651  ;;  %8659 = vrcp.f32 %v13676_v61 }
 0x91d   :  { %vm6476_vm1 = vcmp.ne.f32.partialorder %v13587_v7, %v13587_v7  ;;  %v6717_v10 = vadd.f32 %v6701_v2, %v6461_v58  ;;  %7637 = vmatmul.msk.f32.vlgmr.msra.gmra.mxu0 %vm389_vm2, %v13713_v45  ;;  %8661 = vrcp.f32 %v13703_v47  ;;  %vm6477_vm3 = vcmp.ne.f32.partialorder %v13607_v41, %v13607_v41 }
 0x91e   :  { %v8654_v29 = vpop.eup %8653  ;;  %v6732_v32 = vsel %vm6476_vm1, %v13587_v7, %v6716_v48  ;;  %v6959_v38 = vsub.f32 %v6911_v34, %v6943_v25  ;;  %8663 = vtanh.f32 %v14629_v60  ;;  %v6864_v40 = vadd.f32 1.0, %v14631_v13  ;;  %v14637_v13 = vld [vmem:[#allocation49_spill] sm:$0xff] }
 0x91f   :  { %v8656_v36 = vpop.eup %8655  ;;  %v6748_v46 = vmul.f32 9.9, %v6732_v32  ;;  %v6733_v50 = vsel %vm6477_vm3, %v13607_v41, %v6717_v10  ;;  %8665 = vtanh.f32 %v14630_v0  ;;  %v6792_v57 = vmul.f32 %v8654_v29, %v13690_v15 }
 0x920   :  { %v6749_v3 = vmul.f32 9.9, %v6733_v50  ;;  %7019 = vmatpush.msra.mxu1 %v6959_v38  ;;  %v8658_v11 = vpop.eup %8657  ;;  %v6793_v35 = vmul.f32 %v8656_v36, %v13697_v17  ;;  %v6788_v41 = vmul.f32 %v8652_v27, %v13687_v22  ;;  %v6865_v54 = vadd.f32 1.0, %v14632_v55 }
 0x921   :  { %v6764_v31 = vadd.f32 0.1, %v6748_v46  ;;  %7638 = vmatmul.msk.f32.vlgmr.msra.gmra.mxu1 %vm389_vm2, %v13713_v45  ;;  %v6789_v59 = vmul.f32 %v8658_v11, %v6757_v53  ;;  %v6876_v16 = vadd.f32 1.0, %v14633_v26  ;;  %v6808_v52 = vsub.f32 2.0, %v6792_v57 }
 0x922   :  { %v6765_v7 = vadd.f32 0.1, %v6749_v3  ;;  %v8660_v18 = vpop.eup %8659  ;;  %v6877_v24 = vadd.f32 1.0, %v14634_v56  ;;  %v6809_v5 = vsub.f32 2.0, %v6793_v35  ;;  %v6880_v21 = vmul.f32 0.5, %v6864_v40  ;;  %v14641_v56 = vld [vmem:[#allocation52_spill] sm:$0xff] }
 0x923   :  { %8667 = vrcp.f32 %v6764_v31  ;;  %v8662_v28 = vpop.eup %8661  ;;  %v6784_v15 = vmul.f32 %v8660_v18, %v13676_v61  ;;  %v6868_v39 = vadd.f32 1.0, %v14635_v9  ;;  %v6804_v22 = vsub.f32 2.0, %v6788_v41  ;;  %v14638_v41 = vld [vmem:[#allocation44_spill] sm:$0xff] }
 0x924   :  { %8669 = vrcp.f32 %v6765_v7  ;;  %v8664_v43 = vpop.eup %8663  ;;  %v6785_v17 = vmul.f32 %v8662_v28, %v13703_v47  ;;  %v6881_v30 = vmul.f32 0.5, %v6865_v54  ;;  %v6869_v53 = vadd.f32 1.0, %v14636_v33  ;;  %v14643_v33 = vld [vmem:[#allocation46_spill] sm:$0xff] }
 0x925   :  { %v8666_v49 = vpop.eup %8665  ;;  %v6872_v6 = vadd.f32 1.0, %v8664_v43  ;;  %v6805_v62 = vsub.f32 2.0, %v6789_v59  ;;  %v6892_v12 = vmul.f32 0.5, %v6876_v16  ;;  %v6824_v61 = vmul.f32 %v8654_v29, %v6808_v52 }
 0x926   :  { %v6873_v37 = vadd.f32 1.0, %v8666_v49  ;;  %v6800_v51 = vsub.f32 2.0, %v6784_v15  ;;  %v6893_v23 = vmul.f32 0.5, %v6877_v24  ;;  %v6825_v4 = vmul.f32 %v8656_v36, %v6809_v5 }
 0x927   :  { %v6801_v47 = vsub.f32 2.0, %v6785_v17  ;;  %v6884_v14 = vmul.f32 0.5, %v6868_v39  ;;  %v6888_v20 = vmul.f32 0.5, %v6872_v6  ;;  %v6820_v48 = vmul.f32 %v8652_v27, %v6804_v22  ;;  %v14642_v39 = vld [vmem:[#allocation57_spill] sm:$0xff] }
 0x928   :  { %v6885_v2 = vmul.f32 0.5, %v6869_v53  ;;  %v6889_v8 = vmul.f32 0.5, %v6873_v37  ;;  %v6821_v34 = vmul.f32 %v8658_v11, %v6805_v62  ;;  %v6908_v25 = vmul.f32 0.125, %v6892_v12  ;;  %v14644_v62 = vld [vmem:[#allocation50_spill] sm:$0xff] }
 0x929   :  { %v8668_v42 = vpop.eup %8667  ;;  %v6936_v32 = vmul.f32 0.125, %v6824_v61  ;;  %v6816_v38 = vmul.f32 %v8660_v18, %v6800_v51  ;;  %v6909_v60 = vmul.f32 0.125, %v6893_v23  ;;  %v6937_v29 = vmul.f32 0.125, %v6825_v4  ;;  %v14639_v18 = vld [vmem:[#allocation54_spill] sm:$0xff]  ;;  %v6979_v4 = vpop.permute.xlu2 %6978 }
 0x92a   :  { %v8670_v44 = vpop.eup %8669  ;;  %v6796_v63 = vmul.f32 %v8668_v42, %v6764_v31  ;;  %v6817_v50 = vmul.f32 %v8662_v28, %v6801_v47  ;;  %v6900_v0 = vmul.f32 0.125, %v6884_v14  ;;  %v6904_v3 = vmul.f32 0.125, %v6888_v20  ;;  %v14640_v28 = vld [vmem:[#allocation42_spill] sm:$0xff] }
 0x92b   :  { %v6797_v1 = vmul.f32 %v8670_v44, %v6765_v7  ;;  %v6932_v31 = vmul.f32 0.125, %v6820_v48  ;;  %v6901_v7 = vmul.f32 0.125, %v6885_v2  ;;  %v6905_v57 = vmul.f32 0.125, %v6889_v8 }
 0x92c   :  { %v6812_v58 = vsub.f32 2.0, %v6796_v63  ;;  %v6933_v27 = vmul.f32 0.125, %v6821_v34  ;;  %v6924_v40 = vadd.f32 %v14637_v13, %v6908_v25  ;;  %v6952_v43 = vmul.f32 %v14638_v41, %v6936_v32 }
 0x92d   :  { %v6813_v19 = vsub.f32 2.0, %v6797_v1  ;;  %v6928_v55 = vmul.f32 0.125, %v6816_v38  ;;  %v6925_v54 = vadd.f32 %v14639_v18, %v6909_v60  ;;  %v6953_v49 = vmul.f32 %v14640_v28, %v6937_v29 }
 0x92e   :  { %v6828_v10 = vmul.f32 %v8668_v42, %v6812_v58  ;;  %v6929_v26 = vmul.f32 0.125, %v6817_v50  ;;  %v6896_v16 = vmul.f32 0.125, %v6880_v21  ;;  %v6920_v15 = vadd.f32 %v14638_v41, %v6904_v3 }
 0x92f   :  { %v6829_v46 = vmul.f32 %v8670_v44, %v6813_v19  ;;  %v6948_v24 = vmul.f32 %v14641_v56, %v6932_v31  ;;  %v6897_v5 = vmul.f32 0.125, %v6881_v30  ;;  %v6921_v9 = vadd.f32 %v14640_v28, %v6905_v57 }
 0x930   :  { %v6940_v36 = vmul.f32 0.125, %v6828_v10  ;;  %v6949_v6 = vmul.f32 %v14642_v39, %v6933_v27  ;;  %v6968_v22 = vsub.f32 %v6920_v15, %v6952_v43  ;;  %v6916_v42 = vadd.f32 %v14641_v56, %v6900_v0 }
 0x931   :  { %v6941_v35 = vmul.f32 0.125, %v6829_v46  ;;  %v6944_v53 = vmul.f32 %v14643_v33, %v6928_v55  ;;  %v6969_v37 = vsub.f32 %v6921_v9, %v6953_v49  ;;  %v6917_v21 = vadd.f32 %v14642_v39, %v6901_v7 }
 0x932   :  { %v6956_v11 = vmul.f32 %v14637_v13, %v6940_v36  ;;  %v6945_v44 = vmul.f32 %v14644_v62, %v6929_v26  ;;  %v6964_v12 = vsub.f32 %v6916_v42, %v6948_v24  ;;  %v6912_v30 = vadd.f32 %v14643_v33, %v6896_v16 }
 0x933   :  { %v6957_v59 = vmul.f32 %v14639_v18, %v6941_v35  ;;  %v6965_v63 = vsub.f32 %v6917_v21, %v6949_v6  ;;  %v6913_v61 = vadd.f32 %v14644_v62, %v6897_v5  ;;  %vm7078_vm4 = vcmask 1043456  }
 0x934   :  { %v6972_v52 = vsub.f32 %v6924_v40, %v6956_v11  ;;  %v6960_v51 = vsub.f32 %v6912_v30, %v6944_v53 }
 0x935   :  { %v6973_v17 = vsub.f32 %v6925_v54, %v6957_v59  ;;  %v6961_v23 = vsub.f32 %v6913_v61, %v6945_v44 }
 0x936   :  { %7036 = vmatpush.msra.mxu2 %v6972_v52 }
 0x937   :  { %7056 = vmatpush.msra.mxu3 %v6973_v17 }
 0x938   :  { %7037 = vmatpush.msra.mxu2 %v6968_v22 }
 0x939   :  { %7057 = vmatpush.msra.mxu3 %v6969_v37 }
 0x93a   :  { %7038 = vmatpush.msra.mxu2 %v6964_v12 }
 0x93b   :  { %7058 = vmatpush.msra.mxu3 %v6965_v63 }
 0x93c   :  { %7039 = vmatpush.msra.mxu2 %v6960_v51 }
 0x93d   :  { %7059 = vmatpush.msra.mxu3 %v6961_v23  ;;  %7639 = vmatmul.msk.f32.vlgmr.msra.gmra.mxu2 %vm389_vm2, %v13713_v45 }
 0x93e   :  { %7640 = vmatmul.msk.f32.vlgmr.msra.gmra.mxu3 %vm389_vm2, %v13713_v45 }
 0x99a   :  { %v7001_v1 = vpop.f32.mrf.mxu0 }
 0x99b   :  { %v7002_v14 = vadd.f32 %v7001_v1, %v6979_v4 }
 0x99e   :  { %v7021_v47 = vpop.f32.mrf.mxu1 }
 0x99f   :  { %v7022_v20 = vadd.f32 %v7021_v47, %v6979_v4 }
 0x9a1   :  { %8671 = vtanh.f32 %v7022_v20 }
 0x9a2   :  { %8673 = vtanh.f32 %v7002_v14 }
 0x9a7   :  { %v8672_v58 = vpop.eup %8671 }
 0x9a8   :  { %v7069_v48 = vmul.f32 10.0, %v8672_v58  ;;  %v8674_v2 = vpop.eup %8673 }
 0x9a9   :  { %v7068_v19 = vmul.f32 10.0, %v8674_v2 }
 0x9aa   :  { %v7076_v8 = vrot.slane %v7069_v48, 4 }
 0x9ac   :  { %v7079_v34 = vsel %vm7078_vm4, %v7068_v19, %v7076_v8 }
 0x9ad   :  { %7083 = vst [vmem:[#allocation2] sm:$0x77] %v7079_v34 }
 0x9c0   :  { %v7041_v25 = vpop.f32.mrf.mxu2 }
 0x9c1   :  { %v7042_v10 = vadd.f32 %v7041_v25, %v6979_v4  ;;  %v7061_v32 = vpop.f32.mrf.mxu3 }
 0x9c2   :  { %v7062_v45 = vadd.f32 %v7061_v32, %v6979_v4 }
 0x9c3   :  { %8675 = vtanh.f32 %v7042_v10 }
 0x9c4   :  { %8677 = vtanh.f32 %v7062_v45 }
 0x9c9   :  { %v8676_v38 = vpop.eup %8675 }
 0x9ca   :  { %v8678_v60 = vpop.eup %8677  ;;  %v7070_v29 = vmul.f32 10.0, %v8676_v38 }
 0x9cb   :  { %v7071_v46 = vmul.f32 10.0, %v8678_v60 }
 0x9cd   :  { %v7077_v50 = vrot.slane %v7071_v46, 4 }
 0x9cf   :  { %v7080_v0 = vsel %vm7078_vm4, %v7070_v29, %v7077_v50 }
 0x9d0   :  { %7084 = vst [vmem:[#allocation2 + $0x8] sm:$0x77] %v7080_v0 }
 0x9d1   :  { %7095 = dma.vmem_to_hbm [thread:$0]  %s7091_s5, 256, %s7093_s0, [#allocation3]  }
 0x9d2   :  { %8759 = dma.done.wait [#allocation3], 256  }
 0x9d3   :  { %8760 = vsyncadd [#allocation3], 4294967040 }
 0x9d4   :  { %7100 = vsyncpa [#allocation3], 1 }

</bundles_post_ra>
